<compile_context>
chip_gen: v7x
topology: tpu7x:2x2x1
jax: 0.10.0
libtpu: 0.0.40
codegen_flags: <defaults>
</compile_context>

<pallas_src>
import functools

import jax
import jax.numpy as jnp
from jax.experimental import pallas as pl
from jax.experimental.pallas import tpu as pltpu

_LANE = 128                  # TPU lane width
_BN_EPS = 1e-5
_STORE_DTYPE = jnp.bfloat16  # inter-kernel intermediates (y1, y2)


def _round_up(x, m):
    return (x + m - 1) // m * m


@functools.lru_cache(maxsize=None)
def _vmem_limit_bytes():
    """Chip-aware VMEM budget: leave headroom below physical capacity for
    double-buffered BlockSpec inputs + compiler internal scratch."""
    try:
        cap = int(pltpu.get_tpu_info().vmem_capacity_bytes)
    except Exception:  # interpret mode / older runtimes
        cap = 64 * 1024 * 1024
    return max(32 * 1024 * 1024, min(int(cap * 0.8), 100 * 1024 * 1024))


def _compiler_params(dimension_semantics):
    return pltpu.CompilerParams(
        dimension_semantics=dimension_semantics,
        vmem_limit_bytes=_vmem_limit_bytes())


# ---------------------------------------------------------------------------
# In-kernel helpers
# ---------------------------------------------------------------------------
def _pad_tile(top, mid, bot, dtype):
    """Assemble a (TH+2, W+2, C) zero-column-padded tile from the row halos."""
    xh = jnp.concatenate([top, mid, bot], axis=0).astype(dtype)   # (TH+2, W, C)
    zc = jnp.zeros((xh.shape[0], 1, xh.shape[2]), dtype)
    return jnp.concatenate([zc, xh, zc], axis=1)                  # (TH+2, W+2, C)


def _conv3x3_tapsum(xp_ref, w_ref):
    """3x3 conv of one halo-padded tile via 9 accumulating MXU dots.

    xp_ref: (TH+2, W+2, C) VMEM scratch (matmul dtype)
    w_ref : (9*C, TC) weights, rows ordered (ky, kx, ci)
    returns (TH*W, TC) float32
    """
    thp2, wp2, c = xp_ref.shape
    th, w = thp2 - 2, wp2 - 2
    wt = w_ref[...]                                               # (9*C, TC)
    acc = jnp.zeros((th * w, wt.shape[1]), jnp.float32)
    for ky in range(3):
        for kx in range(3):
            tap = xp_ref[ky:ky + th, kx:kx + w, :].reshape(th * w, c)
            wk = wt[(ky * 3 + kx) * c:(ky * 3 + kx + 1) * c, :]
            acc = acc + jnp.dot(tap, wk, preferred_element_type=jnp.float32)
    return acc


def _emit_conv_outputs(acc, y_ref, stats_ref):
    """Store conv output (bf16) + per-tile per-channel sum / sum-of-squares."""
    _, th, w, tc = y_ref.shape
    y_ref[0] = acc.reshape(th, w, tc).astype(y_ref.dtype)
    s1 = jnp.sum(acc, axis=0)                                     # (TC,)
    s2 = jnp.sum(acc * acc, axis=0)                               # (TC,)
    stats_ref[...] = jnp.stack([s1, s2]).reshape(stats_ref.shape)


# ---------------------------------------------------------------------------
# Kernels
# ---------------------------------------------------------------------------
def _conv_stats_kernel(x_top_ref, x_ref, x_bot_ref, w_ref, y_ref, stats_ref,
                       xp_ref):
    """Block 1, pass 1: conv3x3 (no bias) + BN partial statistics."""
    r = pl.program_id(1)

    @pl.when(pl.program_id(2) == 0)          # scratch reused across co tiles
    def _build():
        top = x_top_ref[0]
        bot = x_bot_ref[0]
        top = jnp.where(r == 0, jnp.zeros_like(top), top)
        bot = jnp.where(r == pl.num_programs(1) - 1, jnp.zeros_like(bot), bot)
        xp_ref[...] = _pad_tile(top, x_ref[0], bot, xp_ref.dtype)

    acc = _conv3x3_tapsum(xp_ref, w_ref)      # (TH*W, TC) f32
    _emit_conv_outputs(acc, y_ref, stats_ref)


def _bn_relu_conv_stats_kernel(y_top_ref, y_mid_ref, y_bot_ref, scale_ref,
                               shift_ref, w_ref, y_ref, stats_ref, ap_ref):
    """Block 2, pass 1 -- block-1's BN+ReLU applied in VMEM, then conv + stats."""
    r = pl.program_id(1)

    @pl.when(pl.program_id(2) == 0)
    def _build():
        scale = scale_ref[...].reshape(1, 1, -1)
        shift = shift_ref[...].reshape(1, 1, -1)

        def act(v):
            a = jnp.maximum(v.astype(jnp.float32) * scale + shift, 0.0)
            return a.astype(ap_ref.dtype)

        top = act(y_top_ref[0])
        bot = act(y_bot_ref[0])
        # 'SAME' padding pads the *activation* with zeros at image edges.
        top = jnp.where(r == 0, jnp.zeros_like(top), top)
        bot = jnp.where(r == pl.num_programs(1) - 1, jnp.zeros_like(bot), bot)
        ap_ref[...] = _pad_tile(top, act(y_mid_ref[0]), bot, ap_ref.dtype)

    acc = _conv3x3_tapsum(ap_ref, w_ref)
    _emit_conv_outputs(acc, y_ref, stats_ref)


def _bn_relu_nchw_kernel(y_ref, scale_ref, shift_ref, o_ref):
    """Pass 2 of block 2: BN scale/shift + ReLU, emitted channel-major (NCHW)."""
    _, tr, w, tc = y_ref.shape
    y = y_ref[0].reshape(tr * w, tc).astype(jnp.float32)
    a = jnp.maximum(y * scale_ref[...] + shift_ref[...], 0.0)
    o_ref[0] = jnp.transpose(a).astype(o_ref.dtype)               # (TC, TR*W)


# ---------------------------------------------------------------------------
# Tile-size selection
# ---------------------------------------------------------------------------
def _pick_conv_row_tile(H, W, cin, cout_tile, vmem_budget):
    def est(th):
        act = th * W * cin * 2                    # input tile (bf16)
        halo = (th + 2) * (W + 2) * cin * 2       # padded scratch
        tap = th * W * cin * 2                    # transient tap slice
        acc = th * W * cout_tile * 4              # f32 accumulator
        out = th * W * cout_tile * 2              # bf16 output tile
        wgt = 9 * cin * cout_tile * 2
        return 2 * act + halo + tap + acc + 2 * out + 2 * wgt

    for th in range(H, 0, -1):
        if H % th == 0 and est(th) <= vmem_budget:
            return th
    # TODO(synk): even a single row tile may exceed VMEM for extreme W; needs
    # column tiling with in-kernel halo DMA.
    return 1


def _pick_out_row_tile(H, W):
    cands = [t for t in range(1, H + 1) if H % t == 0 and (t * W) % _LANE == 0]
    small = [t for t in cands if t * W <= 4096]
    if small:
        return max(small)
    if cands:
        return min(cands)
    return H  # whole-image block (== full extents) is always layout-legal


# ---------------------------------------------------------------------------
# pallas_call wrappers
# ---------------------------------------------------------------------------
def _call_conv_stats(x, w2d, tc, th):
    N, H, W, Cin = x.shape
    K9, Cout_p = w2d.shape
    rt = H // th
    flops = 2 * N * H * W * K9 * Cout_p
    bytes_accessed = (N * H * W * Cin * 2 + K9 * Cout_p * 2
                      + N * H * W * Cout_p * 2 + N * rt * 2 * Cout_p * 4)
    return pl.pallas_call(
        _conv_stats_kernel,
        grid=(N, rt, Cout_p // tc),
        in_specs=[
            pl.BlockSpec((1, 1, W, Cin),
                         lambda n, r, co: (n, jnp.maximum(r * th - 1, 0), 0, 0)),
            pl.BlockSpec((1, th, W, Cin), lambda n, r, co: (n, r, 0, 0)),
            pl.BlockSpec((1, 1, W, Cin),
                         lambda n, r, co: (n, jnp.minimum(r * th + th, H - 1), 0, 0)),
            pl.BlockSpec((K9, tc), lambda n, r, co: (0, co)),
        ],
        out_specs=(
            pl.BlockSpec((1, th, W, tc), lambda n, r, co: (n, r, 0, co)),
            pl.BlockSpec((1, 1, 2, tc), lambda n, r, co: (n, r, 0, co)),
        ),
        out_shape=(
            jax.ShapeDtypeStruct((N, H, W, Cout_p), _STORE_DTYPE),
            jax.ShapeDtypeStruct((N, rt, 2, Cout_p), jnp.float32),
        ),
        scratch_shapes=[pltpu.VMEM((th + 2, W + 2, Cin), x.dtype)],
        compiler_params=_compiler_params(("parallel", "parallel", "arbitrary")),
        cost_estimate=pl.CostEstimate(flops=flops, transcendentals=0,
                                      bytes_accessed=bytes_accessed),
    )(x, x, x, w2d)


def _call_bn_relu_conv_stats(y1, scale, shift, w2d, tc, th):
    N, H, W, Cin_p = y1.shape
    K9, Cout_p = w2d.shape
    rt = H // th
    flops = 2 * N * H * W * K9 * Cout_p
    bytes_accessed = (N * H * W * Cin_p * 2 + K9 * Cout_p * 2
                      + N * H * W * Cout_p * 2 + N * rt * 2 * Cout_p * 4)
    return pl.pallas_call(
        _bn_relu_conv_stats_kernel,
        grid=(N, rt, Cout_p // tc),
        in_specs=[
            pl.BlockSpec((1, 1, W, Cin_p),
                         lambda n, r, co: (n, jnp.maximum(r * th - 1, 0), 0, 0)),
            pl.BlockSpec((1, th, W, Cin_p), lambda n, r, co: (n, r, 0, 0)),
            pl.BlockSpec((1, 1, W, Cin_p),
                         lambda n, r, co: (n, jnp.minimum(r * th + th, H - 1), 0, 0)),
            pl.BlockSpec((1, Cin_p), lambda n, r, co: (0, 0)),
            pl.BlockSpec((1, Cin_p), lambda n, r, co: (0, 0)),
            pl.BlockSpec((K9, tc), lambda n, r, co: (0, co)),
        ],
        out_specs=(
            pl.BlockSpec((1, th, W, tc), lambda n, r, co: (n, r, 0, co)),
            pl.BlockSpec((1, 1, 2, tc), lambda n, r, co: (n, r, 0, co)),
        ),
        out_shape=(
            jax.ShapeDtypeStruct((N, H, W, Cout_p), _STORE_DTYPE),
            jax.ShapeDtypeStruct((N, rt, 2, Cout_p), jnp.float32),
        ),
        scratch_shapes=[pltpu.VMEM((th + 2, W + 2, Cin_p), w2d.dtype)],
        compiler_params=_compiler_params(("parallel", "parallel", "arbitrary")),
        cost_estimate=pl.CostEstimate(flops=flops, transcendentals=0,
                                      bytes_accessed=bytes_accessed),
    )(y1, y1, y1, scale, shift, w2d)


def _call_bn_relu_nchw(y2, scale, shift, tc):
    N, H, W, Cout_p = y2.shape
    tr = _pick_out_row_tile(H, W)
    return pl.pallas_call(
        _bn_relu_nchw_kernel,
        grid=(N, H // tr, Cout_p // tc),
        in_specs=[
            pl.BlockSpec((1, tr, W, tc), lambda n, r, co: (n, r, 0, co)),
            pl.BlockSpec((1, tc), lambda n, r, co: (0, co)),
            pl.BlockSpec((1, tc), lambda n, r, co: (0, co)),
        ],
        out_specs=pl.BlockSpec((1, tc, tr * W), lambda n, r, co: (n, co, r)),
        out_shape=jax.ShapeDtypeStruct((N, Cout_p, H * W), jnp.float32),
        compiler_params=_compiler_params(("parallel", "parallel", "parallel")),
    )(y2, scale, shift)


# ---------------------------------------------------------------------------
# Parameter packing / BN folding (plain-JAX glue on tiny tensors)
# ---------------------------------------------------------------------------
def _pad_last(x, target):
    pad = target - x.shape[-1]
    if pad == 0:
        return x
    cfg = [(0, 0)] * (x.ndim - 1) + [(0, pad)]
    return jnp.pad(x, cfg)


def _pack_weights(w_hwio, cin_pack, cout_p, dtype):
    kh, kw, cin, cout = w_hwio.shape
    w = jnp.zeros((kh, kw, cin_pack, cout_p), jnp.float32)
    w = w.at[:, :, :cin, :cout].set(w_hwio.astype(jnp.float32))
    return w.reshape(kh * kw * cin_pack, cout_p).astype(dtype)


def _bn_affine(stats, gamma_p, beta_p, count):
    """Fold batch statistics + BN affine into per-channel scale / shift (f32)."""
    tot = jnp.sum(stats.astype(jnp.float32), axis=(0, 1))   # (2, C)
    mean = tot[0] / count
    # TODO(synk): E[x^2]-mean^2 can cancel catastrophically for strongly
    # off-centered activations; switch to shifted/two-pass variance if needed.
    var = jnp.maximum(tot[1] / count - mean * mean, 0.0)
    scale = gamma_p * jax.lax.rsqrt(var + _BN_EPS)
    shift = beta_p - mean * scale
    return scale.reshape(1, -1), shift.reshape(1, -1)


# ---------------------------------------------------------------------------
# DoubleConv forward (NCHW in / NCHW out, PyTorch training-mode BatchNorm)
# ---------------------------------------------------------------------------
def double_conv_forward(x_nchw, p, matmul_dtype=jnp.bfloat16):
    N, Cin, H, W = x_nchw.shape
    Cout = p["w1"].shape[-1]
    Cout_p = _round_up(Cout, _LANE)
    # 256-wide output-channel tiles match the v6e/v7x MXU; 128 otherwise.
    TC = 256 if Cout_p % 256 == 0 else _LANE
    count = N * H * W
    budget = int(_vmem_limit_bytes() * 0.4)

    # Layout plumbing (fused by XLA): NCHW -> NHWC + cast.  Cin stays unpadded
    # (lane dim == true Cin), so conv1 does not pay a channel-padding tax.
    x = jnp.transpose(x_nchw, (0, 2, 3, 1)).astype(matmul_dtype)

    w1 = _pack_weights(p["w1"], Cin, Cout_p, matmul_dtype)       # (9*Cin, Cout_p)
    w2 = _pack_weights(p["w2"], Cout_p, Cout_p, matmul_dtype)    # (9*Cout_p, Cout_p)
    g1 = _pad_last(p["g1"].astype(jnp.float32), Cout_p)
    bt1 = _pad_last(p["bt1"].astype(jnp.float32), Cout_p)
    g2 = _pad_last(p["g2"].astype(jnp.float32), Cout_p)
    bt2 = _pad_last(p["bt2"].astype(jnp.float32), Cout_p)
    # NOTE: conv biases p["b1"]/p["b2"] are intentionally unused — training-mode
    # BatchNorm subtracts the batch mean, which cancels a per-channel bias.

    # Block 1, pass 1: conv + per-(image, row-tile) BN partials.
    th1 = _pick_conv_row_tile(H, W, Cin, TC, budget)
    y1, stats1 = _call_conv_stats(x, w1, TC, th1)
    scale1, shift1 = _bn_affine(stats1, g1, bt1, count)

    # Block 1 pass 2 fused with block 2 pass 1 (BN+ReLU apply, conv, partials).
    th2 = _pick_conv_row_tile(H, W, Cout_p, TC, budget)
    y2, stats2 = _call_bn_relu_conv_stats(y1, scale1, shift1, w2, TC, th2)
    scale2, shift2 = _bn_affine(stats2, g2, bt2, count)

    # Block 2, pass 2: BN + ReLU, emitted channel-major -> (N, Cout_p, H*W).
    out = _call_bn_relu_nchw(y2, scale2, shift2, TC)
    return out.reshape(N, Cout_p, H, W)[:, :Cout]


# ---------------------------------------------------------------------------
# Parameter init (mirrors the PyTorch module's shapes; weights stored HWIO)
# ---------------------------------------------------------------------------
def init_double_conv_params(key, in_channels, out_channels):
    k1, k2, k3, k4 = jax.random.split(key, 4)
    fan1 = in_channels * 9
    fan2 = out_channels * 9
    w1 = jax.random.uniform(k1, (3, 3, in_channels, out_channels),
                            minval=-1.0, maxval=1.0) / jnp.sqrt(fan1)
    b1 = jax.random.uniform(k2, (out_channels,),
                            minval=-1.0, maxval=1.0) / jnp.sqrt(fan1)
    w2 = jax.random.uniform(k3, (3, 3, out_channels, out_channels),
                            minval=-1.0, maxval=1.0) / jnp.sqrt(fan2)
    b2 = jax.random.uniform(k4, (out_channels,),
                            minval=-1.0, maxval=1.0) / jnp.sqrt(fan2)
    g1 = jnp.ones((out_channels,), jnp.float32)
    bt1 = jnp.zeros((out_channels,), jnp.float32)
    g2 = jnp.ones((out_channels,), jnp.float32)
    bt2 = jnp.zeros((out_channels,), jnp.float32)
    return dict(w1=w1, b1=b1, g1=g1, bt1=bt1, w2=w2, b2=b2, g2=g2, bt2=bt2)


# ---------------------------------------------------------------------------
# Pure-JAX references
# ---------------------------------------------------------------------------
def double_conv_ref(x_nchw, p):
    """Exact PyTorch semantics (f32, with conv bias, no intermediate rounding)."""
    x = jnp.transpose(x_nchw, (0, 2, 3, 1))

    def block(a, w, b, gamma, beta):
        y = jax.lax.conv_general_dilated(
            a, w.astype(jnp.float32), window_strides=(1, 1), padding="SAME",
            dimension_numbers=("NHWC", "HWIO", "NHWC")) + b
        mean = jnp.mean(y, axis=(0, 1, 2))
        var = jnp.mean((y - mean) ** 2, axis=(0, 1, 2))
        return jnp.maximum((y - mean) * jax.lax.rsqrt(var + _BN_EPS) * gamma
                           + beta, 0.0)

    y = block(x, p["w1"], p["b1"], p["g1"], p["bt1"])
    y = block(y, p["w2"], p["b2"], p["g2"], p["bt2"])
    return jnp.transpose(y, (0, 3, 1, 2))


def double_conv_ref_policy(x_nchw, p, matmul_dtype=jnp.bfloat16,
                           store_dtype=_STORE_DTYPE):
    """Mirror of the kernel's numerical policy: no conv bias (cancels under
    training-mode BN), bf16 matmul operands + intermediates, f32 BN math with
    stats from the unrounded conv output."""
    x = jnp.transpose(x_nchw, (0, 2, 3, 1))

    def block(a, w, gamma, beta):
        y = jax.lax.conv_general_dilated(
            a.astype(matmul_dtype).astype(jnp.float32),
            w.astype(matmul_dtype).astype(jnp.float32),
            window_strides=(1, 1), padding="SAME",
            dimension_numbers=("NHWC", "HWIO", "NHWC"))
        mean = jnp.mean(y, axis=(0, 1, 2))
        var = jnp.mean(y * y, axis=(0, 1, 2)) - mean * mean
        scale = gamma * jax.lax.rsqrt(var + _BN_EPS)
        shift = beta - mean * scale
        yq = y.astype(store_dtype).astype(jnp.float32)
        return jnp.maximum(yq * scale + shift, 0.0)

    a1 = block(x, p["w1"], p["g1"], p["bt1"])
    a2 = block(a1, p["w2"], p["g2"], p["bt2"])
    return jnp.transpose(a2, (0, 3, 1, 2))


if __name__ == "__main__":
    key = jax.random.PRNGKey(0)
    kx, kp = jax.random.split(key)

    N, Cin, H, W = 2, 4, 16, 16
    Cout = 8

    x = jax.random.normal(kx, (N, Cin, H, W), dtype=jnp.float32)  # NCHW
    params = init_double_conv_params(kp, Cin, Cout)

    fwd = jax.jit(double_conv_forward)
    out = jax.block_until_ready(fwd(x, params))
    assert out.shape == (N, Cout, H, W), out.shape

    # Tight check against a reference with the same numerical policy
    # (bf16 matmul operands / intermediates, f32 accumulation and BN math).
    ref_pol = jax.block_until_ready(double_conv_ref_policy(x, params))
    err = float(jnp.max(jnp.abs(out - ref_pol)))
    assert err < 2e-3, err

    # Loose sanity check against exact f32 PyTorch semantics (with conv bias):
    # only bf16 rounding of operands / intermediates separates the two.
    ref_f32 = jax.block_until_ready(double_conv_ref(x, params))
    err32 = float(jnp.max(jnp.abs(out - ref_f32)))
    assert err32 < 5e-2, err32

    print("KERNEL_OK")
</pallas_src>

<mosaic_0001>
module attributes {stable_mosaic.version = 11 : i64} {
  func.func @_conv_stats_kernel(%arg0: i32, %arg1: i32, %arg2: i32, %arg3: memref<1x1x16x4xbf16, #tpu.memory_space<vmem>>, %arg4: memref<1x16x16x4xbf16, #tpu.memory_space<vmem>>, %arg5: memref<1x1x16x4xbf16, #tpu.memory_space<vmem>>, %arg6: memref<36x128xbf16, #tpu.memory_space<vmem>>, %arg7: memref<1x16x16x128xbf16, #tpu.memory_space<vmem>>, %arg8: memref<1x1x2x128xf32, #tpu.memory_space<vmem>>, %arg9: memref<18x18x4xbf16, #tpu.memory_space<vmem>>) attributes {dimension_semantics = [#tpu.dimension_semantics<parallel>, #tpu.dimension_semantics<parallel>, #tpu.dimension_semantics<arbitrary>], iteration_bounds = array<i64: 2, 1, 1>, scalar_prefetch = 0 : i64, scratch_operands = 1 : i64, tpu.core_type = #tpu.core_type<tc>, window_params = [{transform_indices = @transform_0, window_bounds = array<i64: 1, 1, 16, 4>}, {transform_indices = @transform_1, window_bounds = array<i64: 1, 16, 16, 4>}, {transform_indices = @transform_2, window_bounds = array<i64: 1, 1, 16, 4>}, {transform_indices = @transform_3, window_bounds = array<i64: 36, 128>}, {transform_indices = @transform_4, window_bounds = array<i64: 1, 16, 16, 128>}, {transform_indices = @transform_5, window_bounds = array<i64: 1, 1, 2, 128>}]} {
    %c0_i32 = arith.constant 0 : i32
    %0 = arith.cmpi eq, %arg2, %c0_i32 : i32
    %1 = arith.extui %0 : i1 to i32
    %c0_i32_0 = arith.constant 0 : i32
    %2 = arith.cmpi ne, %1, %c0_i32_0 : i32
    scf.if %2 {
      %c0_46 = arith.constant 0 : index
      %c0_47 = arith.constant 0 : index
      %c0_48 = arith.constant 0 : index
      %c0_49 = arith.constant 0 : index
      %63 = vector.load %arg3[%c0_46, %c0_47, %c0_48, %c0_49] : memref<1x1x16x4xbf16, #tpu.memory_space<vmem>>, vector<1x1x16x4xbf16>
      %64 = vector.shape_cast %63 : vector<1x1x16x4xbf16> to vector<1x16x4xbf16>
      %c0_50 = arith.constant 0 : index
      %c0_51 = arith.constant 0 : index
      %c0_52 = arith.constant 0 : index
      %c0_53 = arith.constant 0 : index
      %65 = vector.load %arg5[%c0_50, %c0_51, %c0_52, %c0_53] : memref<1x1x16x4xbf16, #tpu.memory_space<vmem>>, vector<1x1x16x4xbf16>
      %66 = vector.shape_cast %65 : vector<1x1x16x4xbf16> to vector<1x16x4xbf16>
      %c0_i32_54 = arith.constant 0 : i32
      %67 = arith.cmpi eq, %arg1, %c0_i32_54 : i32
      %cst_55 = arith.constant 0.000000e+00 : bf16
      %68 = vector.broadcast %cst_55 : bf16 to vector<1x16x4xbf16>
      %69 = arith.select %67, %68, %64 : vector<1x16x4xbf16>
      %c0_i32_56 = arith.constant 0 : i32
      %70 = arith.cmpi eq, %arg1, %c0_i32_56 : i32
      %cst_57 = arith.constant 0.000000e+00 : bf16
      %71 = vector.broadcast %cst_57 : bf16 to vector<1x16x4xbf16>
      %72 = arith.select %70, %71, %66 : vector<1x16x4xbf16>
      %c0_58 = arith.constant 0 : index
      %c0_59 = arith.constant 0 : index
      %c0_60 = arith.constant 0 : index
      %c0_61 = arith.constant 0 : index
      %73 = vector.load %arg4[%c0_58, %c0_59, %c0_60, %c0_61] : memref<1x16x16x4xbf16, #tpu.memory_space<vmem>>, vector<1x16x16x4xbf16>
      %74 = vector.shape_cast %73 : vector<1x16x16x4xbf16> to vector<16x16x4xbf16>
      %75 = tpu.concatenate %69, %74, %72 in 0 : vector<1x16x4xbf16>, vector<16x16x4xbf16>, vector<1x16x4xbf16> -> vector<18x16x4xbf16>
      %cst_62 = arith.constant 0.000000e+00 : bf16
      %76 = vector.broadcast %cst_62 : bf16 to vector<18x1x4xbf16>
      %77 = tpu.concatenate %76, %75, %76 in 1 : vector<18x1x4xbf16>, vector<18x16x4xbf16>, vector<18x1x4xbf16> -> vector<18x18x4xbf16>
      %c0_63 = arith.constant 0 : index
      %c0_64 = arith.constant 0 : index
      %c0_65 = arith.constant 0 : index
      %78 = vector.load %arg9[%c0_63, %c0_64, %c0_65] : memref<18x18x4xbf16, #tpu.memory_space<vmem>>, vector<18x18x4xbf16>
      tpu.vector_store %arg9[%c0_63, %c0_64, %c0_65], %77 {strides = array<i32>} : memref<18x18x4xbf16, #tpu.memory_space<vmem>>, vector<18x18x4xbf16>,
    } else {
    }
    %c0 = arith.constant 0 : index
    %c0_1 = arith.constant 0 : index
    %3 = vector.load %arg6[%c0, %c0_1] : memref<36x128xbf16, #tpu.memory_space<vmem>>, vector<36x128xbf16>
    %cst = arith.constant 0.000000e+00 : f32
    %4 = vector.broadcast %cst : f32 to vector<256x128xf32>
    %c0_2 = arith.constant 0 : index
    %c0_3 = arith.constant 0 : index
    %c0_4 = arith.constant 0 : index
    %5 = vector.load %arg9[%c0_2, %c0_3, %c0_4] : memref<18x18x4xbf16, #tpu.memory_space<vmem>>, vector<16x16x4xbf16>
    %6 = vector.shape_cast %5 : vector<16x16x4xbf16> to vector<256x4xbf16>
    %7 = vector.extract_strided_slice %3 {offsets = [0, 0], sizes = [4, 128], strides = [1, 1]} : vector<36x128xbf16> to vector<4x128xbf16>
    %cst_5 = arith.constant dense<0.000000e+00> : vector<256x128xf32>
    %8 = tpu.matmul %6, %7, %cst_5 {dimension_numbers = #tpu.dot_dimension_numbers<[1], [0], [0], [1], [0, 0, 1, 1], [], []>} : vector<256x4xbf16>, vector<4x128xbf16>, vector<256x128xf32> -> vector<256x128xf32>
    %9 = arith.addf %4, %8 : vector<256x128xf32>
    %c0_6 = arith.constant 0 : index
    %c1 = arith.constant 1 : index
    %c0_7 = arith.constant 0 : index
    %10 = vector.load %arg9[%c0_6, %c1, %c0_7] : memref<18x18x4xbf16, #tpu.memory_space<vmem>>, vector<16x16x4xbf16>
    %11 = vector.shape_cast %10 : vector<16x16x4xbf16> to vector<256x4xbf16>
    %12 = vector.extract_strided_slice %3 {offsets = [4, 0], sizes = [4, 128], strides = [1, 1]} : vector<36x128xbf16> to vector<4x128xbf16>
    %cst_8 = arith.constant dense<0.000000e+00> : vector<256x128xf32>
    %13 = tpu.matmul %11, %12, %cst_8 {dimension_numbers = #tpu.dot_dimension_numbers<[1], [0], [0], [1], [0, 0, 1, 1], [], []>} : vector<256x4xbf16>, vector<4x128xbf16>, vector<256x128xf32> -> vector<256x128xf32>
    %14 = arith.addf %9, %13 : vector<256x128xf32>
    %c0_9 = arith.constant 0 : index
    %c2 = arith.constant 2 : index
    %c0_10 = arith.constant 0 : index
    %15 = vector.load %arg9[%c0_9, %c2, %c0_10] : memref<18x18x4xbf16, #tpu.memory_space<vmem>>, vector<16x16x4xbf16>
    %16 = vector.shape_cast %15 : vector<16x16x4xbf16> to vector<256x4xbf16>
    %17 = vector.extract_strided_slice %3 {offsets = [8, 0], sizes = [4, 128], strides = [1, 1]} : vector<36x128xbf16> to vector<4x128xbf16>
    %cst_11 = arith.constant dense<0.000000e+00> : vector<256x128xf32>
    %18 = tpu.matmul %16, %17, %cst_11 {dimension_numbers = #tpu.dot_dimension_numbers<[1], [0], [0], [1], [0, 0, 1, 1], [], []>} : vector<256x4xbf16>, vector<4x128xbf16>, vector<256x128xf32> -> vector<256x128xf32>
    %19 = arith.addf %14, %18 : vector<256x128xf32>
    %c1_12 = arith.constant 1 : index
    %c0_13 = arith.constant 0 : index
    %c0_14 = arith.constant 0 : index
    %20 = vector.load %arg9[%c1_12, %c0_13, %c0_14] : memref<18x18x4xbf16, #tpu.memory_space<vmem>>, vector<16x16x4xbf16>
    %21 = vector.shape_cast %20 : vector<16x16x4xbf16> to vector<256x4xbf16>
    %22 = vector.extract_strided_slice %3 {offsets = [12, 0], sizes = [4, 128], strides = [1, 1]} : vector<36x128xbf16> to vector<4x128xbf16>
    %cst_15 = arith.constant dense<0.000000e+00> : vector<256x128xf32>
    %23 = tpu.matmul %21, %22, %cst_15 {dimension_numbers = #tpu.dot_dimension_numbers<[1], [0], [0], [1], [0, 0, 1, 1], [], []>} : vector<256x4xbf16>, vector<4x128xbf16>, vector<256x128xf32> -> vector<256x128xf32>
    %24 = arith.addf %19, %23 : vector<256x128xf32>
    %c1_16 = arith.constant 1 : index
    %c1_17 = arith.constant 1 : index
    %c0_18 = arith.constant 0 : index
    %25 = vector.load %arg9[%c1_16, %c1_17, %c0_18] : memref<18x18x4xbf16, #tpu.memory_space<vmem>>, vector<16x16x4xbf16>
    %26 = vector.shape_cast %25 : vector<16x16x4xbf16> to vector<256x4xbf16>
    %27 = vector.extract_strided_slice %3 {offsets = [16, 0], sizes = [4, 128], strides = [1, 1]} : vector<36x128xbf16> to vector<4x128xbf16>
    %cst_19 = arith.constant dense<0.000000e+00> : vector<256x128xf32>
    %28 = tpu.matmul %26, %27, %cst_19 {dimension_numbers = #tpu.dot_dimension_numbers<[1], [0], [0], [1], [0, 0, 1, 1], [], []>} : vector<256x4xbf16>, vector<4x128xbf16>, vector<256x128xf32> -> vector<256x128xf32>
    %29 = arith.addf %24, %28 : vector<256x128xf32>
    %c1_20 = arith.constant 1 : index
    %c2_21 = arith.constant 2 : index
    %c0_22 = arith.constant 0 : index
    %30 = vector.load %arg9[%c1_20, %c2_21, %c0_22] : memref<18x18x4xbf16, #tpu.memory_space<vmem>>, vector<16x16x4xbf16>
    %31 = vector.shape_cast %30 : vector<16x16x4xbf16> to vector<256x4xbf16>
    %32 = vector.extract_strided_slice %3 {offsets = [20, 0], sizes = [4, 128], strides = [1, 1]} : vector<36x128xbf16> to vector<4x128xbf16>
    %cst_23 = arith.constant dense<0.000000e+00> : vector<256x128xf32>
    %33 = tpu.matmul %31, %32, %cst_23 {dimension_numbers = #tpu.dot_dimension_numbers<[1], [0], [0], [1], [0, 0, 1, 1], [], []>} : vector<256x4xbf16>, vector<4x128xbf16>, vector<256x128xf32> -> vector<256x128xf32>
    %34 = arith.addf %29, %33 : vector<256x128xf32>
    %c2_24 = arith.constant 2 : index
    %c0_25 = arith.constant 0 : index
    %c0_26 = arith.constant 0 : index
    %35 = vector.load %arg9[%c2_24, %c0_25, %c0_26] : memref<18x18x4xbf16, #tpu.memory_space<vmem>>, vector<16x16x4xbf16>
    %36 = vector.shape_cast %35 : vector<16x16x4xbf16> to vector<256x4xbf16>
    %37 = vector.extract_strided_slice %3 {offsets = [24, 0], sizes = [4, 128], strides = [1, 1]} : vector<36x128xbf16> to vector<4x128xbf16>
    %cst_27 = arith.constant dense<0.000000e+00> : vector<256x128xf32>
    %38 = tpu.matmul %36, %37, %cst_27 {dimension_numbers = #tpu.dot_dimension_numbers<[1], [0], [0], [1], [0, 0, 1, 1], [], []>} : vector<256x4xbf16>, vector<4x128xbf16>, vector<256x128xf32> -> vector<256x128xf32>
    %39 = arith.addf %34, %38 : vector<256x128xf32>
    %c2_28 = arith.constant 2 : index
    %c1_29 = arith.constant 1 : index
    %c0_30 = arith.constant 0 : index
    %40 = vector.load %arg9[%c2_28, %c1_29, %c0_30] : memref<18x18x4xbf16, #tpu.memory_space<vmem>>, vector<16x16x4xbf16>
    %41 = vector.shape_cast %40 : vector<16x16x4xbf16> to vector<256x4xbf16>
    %42 = vector.extract_strided_slice %3 {offsets = [28, 0], sizes = [4, 128], strides = [1, 1]} : vector<36x128xbf16> to vector<4x128xbf16>
    %cst_31 = arith.constant dense<0.000000e+00> : vector<256x128xf32>
    %43 = tpu.matmul %41, %42, %cst_31 {dimension_numbers = #tpu.dot_dimension_numbers<[1], [0], [0], [1], [0, 0, 1, 1], [], []>} : vector<256x4xbf16>, vector<4x128xbf16>, vector<256x128xf32> -> vector<256x128xf32>
    %44 = arith.addf %39, %43 : vector<256x128xf32>
    %c2_32 = arith.constant 2 : index
    %c2_33 = arith.constant 2 : index
    %c0_34 = arith.constant 0 : index
    %45 = vector.load %arg9[%c2_32, %c2_33, %c0_34] : memref<18x18x4xbf16, #tpu.memory_space<vmem>>, vector<16x16x4xbf16>
    %46 = vector.shape_cast %45 : vector<16x16x4xbf16> to vector<256x4xbf16>
    %47 = vector.extract_strided_slice %3 {offsets = [32, 0], sizes = [4, 128], strides = [1, 1]} : vector<36x128xbf16> to vector<4x128xbf16>
    %cst_35 = arith.constant dense<0.000000e+00> : vector<256x128xf32>
    %48 = tpu.matmul %46, %47, %cst_35 {dimension_numbers = #tpu.dot_dimension_numbers<[1], [0], [0], [1], [0, 0, 1, 1], [], []>} : vector<256x4xbf16>, vector<4x128xbf16>, vector<256x128xf32> -> vector<256x128xf32>
    %49 = arith.addf %44, %48 : vector<256x128xf32>
    %50 = vector.shape_cast %49 : vector<256x128xf32> to vector<16x16x128xf32>
    %51 = arith.truncf %50 : vector<16x16x128xf32> to vector<16x16x128xbf16>
    %c0_36 = arith.constant 0 : index
    %c0_37 = arith.constant 0 : index
    %c0_38 = arith.constant 0 : index
    %c0_39 = arith.constant 0 : index
    %52 = vector.load %arg7[%c0_36, %c0_37, %c0_38, %c0_39] : memref<1x16x16x128xbf16, #tpu.memory_space<vmem>>, vector<1x16x16x128xbf16>
    %53 = vector.shape_cast %52 : vector<1x16x16x128xbf16> to vector<16x16x128xbf16>
    %54 = vector.shape_cast %51 : vector<16x16x128xbf16> to vector<1x16x16x128xbf16>
    tpu.vector_store %arg7[%c0_36, %c0_37, %c0_38, %c0_39], %54 {strides = array<i32>} : memref<1x16x16x128xbf16, #tpu.memory_space<vmem>>, vector<1x16x16x128xbf16>,
    %cst_40 = arith.constant dense<0.000000e+00> : vector<128xf32>
    %55 = vector.multi_reduction <add>, %49, %cst_40 [0] : vector<256x128xf32> to vector<128xf32>
    %56 = arith.mulf %49, %49 : vector<256x128xf32>
    %cst_41 = arith.constant dense<0.000000e+00> : vector<128xf32>
    %57 = vector.multi_reduction <add>, %56, %cst_41 [0] : vector<256x128xf32> to vector<128xf32>
    %58 = vector.shape_cast %55 : vector<128xf32> to vector<1x128xf32>
    %59 = vector.shape_cast %57 : vector<128xf32> to vector<1x128xf32>
    %60 = tpu.concatenate %58, %59 in 0 : vector<1x128xf32>, vector<1x128xf32> -> vector<2x128xf32>
    %61 = vector.shape_cast %60 : vector<2x128xf32> to vector<1x1x2x128xf32>
    %c0_42 = arith.constant 0 : index
    %c0_43 = arith.constant 0 : index
    %c0_44 = arith.constant 0 : index
    %c0_45 = arith.constant 0 : index
    %62 = vector.load %arg8[%c0_42, %c0_43, %c0_44, %c0_45] : memref<1x1x2x128xf32, #tpu.memory_space<vmem>>, vector<1x1x2x128xf32>
    tpu.vector_store %arg8[%c0_42, %c0_43, %c0_44, %c0_45], %61 {strides = array<i32>} : memref<1x1x2x128xf32, #tpu.memory_space<vmem>>, vector<1x1x2x128xf32>,
    return
  }
  func.func @transform_0(%arg0: i32, %arg1: i32, %arg2: i32) -> (i32, i32, i32, i32) {
    %c16_i32 = arith.constant 16 : i32
    %0 = arith.muli %arg1, %c16_i32 : i32
    %c1_i32 = arith.constant 1 : i32
    %1 = arith.subi %0, %c1_i32 : i32
    %c0_i32 = arith.constant 0 : i32
    %2 = arith.maxsi %1, %c0_i32 : i32
    %c0_i32_0 = arith.constant 0 : i32
    %c0_i32_1 = arith.constant 0 : i32
    %c0_i32_2 = arith.constant 0 : i32
    return %arg0, %2, %c0_i32_0, %c0_i32_1 : i32, i32, i32, i32
  }
  func.func @transform_1(%arg0: i32, %arg1: i32, %arg2: i32) -> (i32, i32, i32, i32) {
    %c0_i32 = arith.constant 0 : i32
    %c0_i32_0 = arith.constant 0 : i32
    %c0_i32_1 = arith.constant 0 : i32
    return %arg0, %arg1, %c0_i32, %c0_i32_0 : i32, i32, i32, i32
  }
  func.func @transform_2(%arg0: i32, %arg1: i32, %arg2: i32) -> (i32, i32, i32, i32) {
    %c16_i32 = arith.constant 16 : i32
    %0 = arith.muli %arg1, %c16_i32 : i32
    %c16_i32_0 = arith.constant 16 : i32
    %1 = arith.addi %0, %c16_i32_0 : i32
    %c15_i32 = arith.constant 15 : i32
    %2 = arith.minsi %1, %c15_i32 : i32
    %c0_i32 = arith.constant 0 : i32
    %c0_i32_1 = arith.constant 0 : i32
    %c0_i32_2 = arith.constant 0 : i32
    return %arg0, %2, %c0_i32, %c0_i32_1 : i32, i32, i32, i32
  }
  func.func @transform_3(%arg0: i32, %arg1: i32, %arg2: i32) -> (i32, i32) {
    %c0_i32 = arith.constant 0 : i32
    %c0_i32_0 = arith.constant 0 : i32
    return %c0_i32, %arg2 : i32, i32
  }
  func.func @transform_4(%arg0: i32, %arg1: i32, %arg2: i32) -> (i32, i32, i32, i32) {
    %c0_i32 = arith.constant 0 : i32
    %c0_i32_0 = arith.constant 0 : i32
    return %arg0, %arg1, %c0_i32, %arg2 : i32, i32, i32, i32
  }
  func.func @transform_5(%arg0: i32, %arg1: i32, %arg2: i32) -> (i32, i32, i32, i32) {
    %c0_i32 = arith.constant 0 : i32
    %c0_i32_0 = arith.constant 0 : i32
    return %arg0, %arg1, %c0_i32, %arg2 : i32, i32, i32, i32
  }
}

module attributes {stable_mosaic.version = 11 : i64} {
  func.func @_bn_relu_conv_stats_kernel(%arg0: i32, %arg1: i32, %arg2: i32, %arg3: memref<1x1x16x128xbf16, #tpu.memory_space<vmem>>, %arg4: memref<1x16x16x128xbf16, #tpu.memory_space<vmem>>, %arg5: memref<1x1x16x128xbf16, #tpu.memory_space<vmem>>, %arg6: memref<1x128xf32, #tpu.memory_space<vmem>>, %arg7: memref<1x128xf32, #tpu.memory_space<vmem>>, %arg8: memref<1152x128xbf16, #tpu.memory_space<vmem>>, %arg9: memref<1x16x16x128xbf16, #tpu.memory_space<vmem>>, %arg10: memref<1x1x2x128xf32, #tpu.memory_space<vmem>>, %arg11: memref<18x18x128xbf16, #tpu.memory_space<vmem>>) attributes {dimension_semantics = [#tpu.dimension_semantics<parallel>, #tpu.dimension_semantics<parallel>, #tpu.dimension_semantics<arbitrary>], iteration_bounds = array<i64: 2, 1, 1>, scalar_prefetch = 0 : i64, scratch_operands = 1 : i64, tpu.core_type = #tpu.core_type<tc>, window_params = [{transform_indices = @transform_0, window_bounds = array<i64: 1, 1, 16, 128>}, {transform_indices = @transform_1, window_bounds = array<i64: 1, 16, 16, 128>}, {transform_indices = @transform_2, window_bounds = array<i64: 1, 1, 16, 128>}, {pipeline_mode = #tpu.pipeline_mode<synchronous>, transform_indices = @transform_3, window_bounds = array<i64: 1, 128>}, {pipeline_mode = #tpu.pipeline_mode<synchronous>, transform_indices = @transform_4, window_bounds = array<i64: 1, 128>}, {transform_indices = @transform_5, window_bounds = array<i64: 1152, 128>}, {transform_indices = @transform_6, window_bounds = array<i64: 1, 16, 16, 128>}, {transform_indices = @transform_7, window_bounds = array<i64: 1, 1, 2, 128>}]} {
    %c0_i32 = arith.constant 0 : i32
    %0 = arith.cmpi eq, %arg2, %c0_i32 : i32
    %1 = arith.extui %0 : i1 to i32
    %c0_i32_0 = arith.constant 0 : i32
    %2 = arith.cmpi ne, %1, %c0_i32_0 : i32
    scf.if %2 {
      %c0_46 = arith.constant 0 : index
      %c0_47 = arith.constant 0 : index
      %63 = vector.load %arg6[%c0_46, %c0_47] : memref<1x128xf32, #tpu.memory_space<vmem>>, vector<1x128xf32>
      %64 = vector.shape_cast %63 : vector<1x128xf32> to vector<1x1x128xf32>
      %c0_48 = arith.constant 0 : index
      %c0_49 = arith.constant 0 : index
      %65 = vector.load %arg7[%c0_48, %c0_49] : memref<1x128xf32, #tpu.memory_space<vmem>>, vector<1x128xf32>
      %66 = vector.shape_cast %65 : vector<1x128xf32> to vector<1x1x128xf32>
      %c0_50 = arith.constant 0 : index
      %c0_51 = arith.constant 0 : index
      %c0_52 = arith.constant 0 : index
      %c0_53 = arith.constant 0 : index
      %67 = vector.load %arg3[%c0_50, %c0_51, %c0_52, %c0_53] : memref<1x1x16x128xbf16, #tpu.memory_space<vmem>>, vector<1x1x16x128xbf16>
      %68 = vector.shape_cast %67 : vector<1x1x16x128xbf16> to vector<1x16x128xbf16>
      %69 = arith.extf %68 : vector<1x16x128xbf16> to vector<1x16x128xf32>
      %70 = vector.broadcast %64 : vector<1x1x128xf32> to vector<1x16x128xf32>
      %71 = arith.mulf %69, %70 : vector<1x16x128xf32>
      %72 = vector.broadcast %66 : vector<1x1x128xf32> to vector<1x16x128xf32>
      %73 = arith.addf %71, %72 : vector<1x16x128xf32>
      %cst_54 = arith.constant 0.000000e+00 : f32
      %74 = vector.broadcast %cst_54 : f32 to vector<1x16x128xf32>
      %75 = arith.maximumf %73, %74 : vector<1x16x128xf32>
      %76 = arith.truncf %75 : vector<1x16x128xf32> to vector<1x16x128xbf16>
      %c0_55 = arith.constant 0 : index
      %c0_56 = arith.constant 0 : index
      %c0_57 = arith.constant 0 : index
      %c0_58 = arith.constant 0 : index
      %77 = vector.load %arg5[%c0_55, %c0_56, %c0_57, %c0_58] : memref<1x1x16x128xbf16, #tpu.memory_space<vmem>>, vector<1x1x16x128xbf16>
      %78 = vector.shape_cast %77 : vector<1x1x16x128xbf16> to vector<1x16x128xbf16>
      %79 = arith.extf %78 : vector<1x16x128xbf16> to vector<1x16x128xf32>
      %80 = vector.broadcast %64 : vector<1x1x128xf32> to vector<1x16x128xf32>
      %81 = arith.mulf %79, %80 : vector<1x16x128xf32>
      %82 = vector.broadcast %66 : vector<1x1x128xf32> to vector<1x16x128xf32>
      %83 = arith.addf %81, %82 : vector<1x16x128xf32>
      %cst_59 = arith.constant 0.000000e+00 : f32
      %84 = vector.broadcast %cst_59 : f32 to vector<1x16x128xf32>
      %85 = arith.maximumf %83, %84 : vector<1x16x128xf32>
      %86 = arith.truncf %85 : vector<1x16x128xf32> to vector<1x16x128xbf16>
      %c0_i32_60 = arith.constant 0 : i32
      %87 = arith.cmpi eq, %arg1, %c0_i32_60 : i32
      %cst_61 = arith.constant 0.000000e+00 : bf16
      %88 = vector.broadcast %cst_61 : bf16 to vector<1x16x128xbf16>
      %89 = arith.select %87, %88, %76 : vector<1x16x128xbf16>
      %c0_i32_62 = arith.constant 0 : i32
      %90 = arith.cmpi eq, %arg1, %c0_i32_62 : i32
      %cst_63 = arith.constant 0.000000e+00 : bf16
      %91 = vector.broadcast %cst_63 : bf16 to vector<1x16x128xbf16>
      %92 = arith.select %90, %91, %86 : vector<1x16x128xbf16>
      %c0_64 = arith.constant 0 : index
      %c0_65 = arith.constant 0 : index
      %c0_66 = arith.constant 0 : index
      %c0_67 = arith.constant 0 : index
      %93 = vector.load %arg4[%c0_64, %c0_65, %c0_66, %c0_67] : memref<1x16x16x128xbf16, #tpu.memory_space<vmem>>, vector<1x16x16x128xbf16>
      %94 = vector.shape_cast %93 : vector<1x16x16x128xbf16> to vector<16x16x128xbf16>
      %95 = arith.extf %94 : vector<16x16x128xbf16> to vector<16x16x128xf32>
      %96 = vector.broadcast %64 : vector<1x1x128xf32> to vector<16x16x128xf32>
      %97 = arith.mulf %95, %96 : vector<16x16x128xf32>
      %98 = vector.broadcast %66 : vector<1x1x128xf32> to vector<16x16x128xf32>
      %99 = arith.addf %97, %98 : vector<16x16x128xf32>
      %cst_68 = arith.constant 0.000000e+00 : f32
      %100 = vector.broadcast %cst_68 : f32 to vector<16x16x128xf32>
      %101 = arith.maximumf %99, %100 : vector<16x16x128xf32>
      %102 = arith.truncf %101 : vector<16x16x128xf32> to vector<16x16x128xbf16>
      %103 = tpu.concatenate %89, %102, %92 in 0 : vector<1x16x128xbf16>, vector<16x16x128xbf16>, vector<1x16x128xbf16> -> vector<18x16x128xbf16>
      %cst_69 = arith.constant 0.000000e+00 : bf16
      %104 = vector.broadcast %cst_69 : bf16 to vector<18x1x128xbf16>
      %105 = tpu.concatenate %104, %103, %104 in 1 : vector<18x1x128xbf16>, vector<18x16x128xbf16>, vector<18x1x128xbf16> -> vector<18x18x128xbf16>
      %c0_70 = arith.constant 0 : index
      %c0_71 = arith.constant 0 : index
      %c0_72 = arith.constant 0 : index
      %106 = vector.load %arg11[%c0_70, %c0_71, %c0_72] : memref<18x18x128xbf16, #tpu.memory_space<vmem>>, vector<18x18x128xbf16>
      tpu.vector_store %arg11[%c0_70, %c0_71, %c0_72], %105 {strides = array<i32>} : memref<18x18x128xbf16, #tpu.memory_space<vmem>>, vector<18x18x128xbf16>,
    } else {
    }
    %c0 = arith.constant 0 : index
    %c0_1 = arith.constant 0 : index
    %3 = vector.load %arg8[%c0, %c0_1] : memref<1152x128xbf16, #tpu.memory_space<vmem>>, vector<1152x128xbf16>
    %cst = arith.constant 0.000000e+00 : f32
    %4 = vector.broadcast %cst : f32 to vector<256x128xf32>
    %c0_2 = arith.constant 0 : index
    %c0_3 = arith.constant 0 : index
    %c0_4 = arith.constant 0 : index
    %5 = vector.load %arg11[%c0_2, %c0_3, %c0_4] : memref<18x18x128xbf16, #tpu.memory_space<vmem>>, vector<16x16x128xbf16>
    %6 = vector.shape_cast %5 : vector<16x16x128xbf16> to vector<256x128xbf16>
    %7 = vector.extract_strided_slice %3 {offsets = [0, 0], sizes = [128, 128], strides = [1, 1]} : vector<1152x128xbf16> to vector<128x128xbf16>
    %cst_5 = arith.constant dense<0.000000e+00> : vector<256x128xf32>
    %8 = tpu.matmul %6, %7, %cst_5 {dimension_numbers = #tpu.dot_dimension_numbers<[1], [0], [0], [1], [0, 0, 1, 1], [], []>} : vector<256x128xbf16>, vector<128x128xbf16>, vector<256x128xf32> -> vector<256x128xf32>
    %9 = arith.addf %4, %8 : vector<256x128xf32>
    %c0_6 = arith.constant 0 : index
    %c1 = arith.constant 1 : index
    %c0_7 = arith.constant 0 : index
    %10 = vector.load %arg11[%c0_6, %c1, %c0_7] : memref<18x18x128xbf16, #tpu.memory_space<vmem>>, vector<16x16x128xbf16>
    %11 = vector.shape_cast %10 : vector<16x16x128xbf16> to vector<256x128xbf16>
    %12 = vector.extract_strided_slice %3 {offsets = [128, 0], sizes = [128, 128], strides = [1, 1]} : vector<1152x128xbf16> to vector<128x128xbf16>
    %cst_8 = arith.constant dense<0.000000e+00> : vector<256x128xf32>
    %13 = tpu.matmul %11, %12, %cst_8 {dimension_numbers = #tpu.dot_dimension_numbers<[1], [0], [0], [1], [0, 0, 1, 1], [], []>} : vector<256x128xbf16>, vector<128x128xbf16>, vector<256x128xf32> -> vector<256x128xf32>
    %14 = arith.addf %9, %13 : vector<256x128xf32>
    %c0_9 = arith.constant 0 : index
    %c2 = arith.constant 2 : index
    %c0_10 = arith.constant 0 : index
    %15 = vector.load %arg11[%c0_9, %c2, %c0_10] : memref<18x18x128xbf16, #tpu.memory_space<vmem>>, vector<16x16x128xbf16>
    %16 = vector.shape_cast %15 : vector<16x16x128xbf16> to vector<256x128xbf16>
    %17 = vector.extract_strided_slice %3 {offsets = [256, 0], sizes = [128, 128], strides = [1, 1]} : vector<1152x128xbf16> to vector<128x128xbf16>
    %cst_11 = arith.constant dense<0.000000e+00> : vector<256x128xf32>
    %18 = tpu.matmul %16, %17, %cst_11 {dimension_numbers = #tpu.dot_dimension_numbers<[1], [0], [0], [1], [0, 0, 1, 1], [], []>} : vector<256x128xbf16>, vector<128x128xbf16>, vector<256x128xf32> -> vector<256x128xf32>
    %19 = arith.addf %14, %18 : vector<256x128xf32>
    %c1_12 = arith.constant 1 : index
    %c0_13 = arith.constant 0 : index
    %c0_14 = arith.constant 0 : index
    %20 = vector.load %arg11[%c1_12, %c0_13, %c0_14] : memref<18x18x128xbf16, #tpu.memory_space<vmem>>, vector<16x16x128xbf16>
    %21 = vector.shape_cast %20 : vector<16x16x128xbf16> to vector<256x128xbf16>
    %22 = vector.extract_strided_slice %3 {offsets = [384, 0], sizes = [128, 128], strides = [1, 1]} : vector<1152x128xbf16> to vector<128x128xbf16>
    %cst_15 = arith.constant dense<0.000000e+00> : vector<256x128xf32>
    %23 = tpu.matmul %21, %22, %cst_15 {dimension_numbers = #tpu.dot_dimension_numbers<[1], [0], [0], [1], [0, 0, 1, 1], [], []>} : vector<256x128xbf16>, vector<128x128xbf16>, vector<256x128xf32> -> vector<256x128xf32>
    %24 = arith.addf %19, %23 : vector<256x128xf32>
    %c1_16 = arith.constant 1 : index
    %c1_17 = arith.constant 1 : index
    %c0_18 = arith.constant 0 : index
    %25 = vector.load %arg11[%c1_16, %c1_17, %c0_18] : memref<18x18x128xbf16, #tpu.memory_space<vmem>>, vector<16x16x128xbf16>
    %26 = vector.shape_cast %25 : vector<16x16x128xbf16> to vector<256x128xbf16>
    %27 = vector.extract_strided_slice %3 {offsets = [512, 0], sizes = [128, 128], strides = [1, 1]} : vector<1152x128xbf16> to vector<128x128xbf16>
    %cst_19 = arith.constant dense<0.000000e+00> : vector<256x128xf32>
    %28 = tpu.matmul %26, %27, %cst_19 {dimension_numbers = #tpu.dot_dimension_numbers<[1], [0], [0], [1], [0, 0, 1, 1], [], []>} : vector<256x128xbf16>, vector<128x128xbf16>, vector<256x128xf32> -> vector<256x128xf32>
    %29 = arith.addf %24, %28 : vector<256x128xf32>
    %c1_20 = arith.constant 1 : index
    %c2_21 = arith.constant 2 : index
    %c0_22 = arith.constant 0 : index
    %30 = vector.load %arg11[%c1_20, %c2_21, %c0_22] : memref<18x18x128xbf16, #tpu.memory_space<vmem>>, vector<16x16x128xbf16>
    %31 = vector.shape_cast %30 : vector<16x16x128xbf16> to vector<256x128xbf16>
    %32 = vector.extract_strided_slice %3 {offsets = [640, 0], sizes = [128, 128], strides = [1, 1]} : vector<1152x128xbf16> to vector<128x128xbf16>
    %cst_23 = arith.constant dense<0.000000e+00> : vector<256x128xf32>
    %33 = tpu.matmul %31, %32, %cst_23 {dimension_numbers = #tpu.dot_dimension_numbers<[1], [0], [0], [1], [0, 0, 1, 1], [], []>} : vector<256x128xbf16>, vector<128x128xbf16>, vector<256x128xf32> -> vector<256x128xf32>
    %34 = arith.addf %29, %33 : vector<256x128xf32>
    %c2_24 = arith.constant 2 : index
    %c0_25 = arith.constant 0 : index
    %c0_26 = arith.constant 0 : index
    %35 = vector.load %arg11[%c2_24, %c0_25, %c0_26] : memref<18x18x128xbf16, #tpu.memory_space<vmem>>, vector<16x16x128xbf16>
    %36 = vector.shape_cast %35 : vector<16x16x128xbf16> to vector<256x128xbf16>
    %37 = vector.extract_strided_slice %3 {offsets = [768, 0], sizes = [128, 128], strides = [1, 1]} : vector<1152x128xbf16> to vector<128x128xbf16>
    %cst_27 = arith.constant dense<0.000000e+00> : vector<256x128xf32>
    %38 = tpu.matmul %36, %37, %cst_27 {dimension_numbers = #tpu.dot_dimension_numbers<[1], [0], [0], [1], [0, 0, 1, 1], [], []>} : vector<256x128xbf16>, vector<128x128xbf16>, vector<256x128xf32> -> vector<256x128xf32>
    %39 = arith.addf %34, %38 : vector<256x128xf32>
    %c2_28 = arith.constant 2 : index
    %c1_29 = arith.constant 1 : index
    %c0_30 = arith.constant 0 : index
    %40 = vector.load %arg11[%c2_28, %c1_29, %c0_30] : memref<18x18x128xbf16, #tpu.memory_space<vmem>>, vector<16x16x128xbf16>
    %41 = vector.shape_cast %40 : vector<16x16x128xbf16> to vector<256x128xbf16>
    %42 = vector.extract_strided_slice %3 {offsets = [896, 0], sizes = [128, 128], strides = [1, 1]} : vector<1152x128xbf16> to vector<128x128xbf16>
    %cst_31 = arith.constant dense<0.000000e+00> : vector<256x128xf32>
    %43 = tpu.matmul %41, %42, %cst_31 {dimension_numbers = #tpu.dot_dimension_numbers<[1], [0], [0], [1], [0, 0, 1, 1], [], []>} : vector<256x128xbf16>, vector<128x128xbf16>, vector<256x128xf32> -> vector<256x128xf32>
    %44 = arith.addf %39, %43 : vector<256x128xf32>
    %c2_32 = arith.constant 2 : index
    %c2_33 = arith.constant 2 : index
    %c0_34 = arith.constant 0 : index
    %45 = vector.load %arg11[%c2_32, %c2_33, %c0_34] : memref<18x18x128xbf16, #tpu.memory_space<vmem>>, vector<16x16x128xbf16>
    %46 = vector.shape_cast %45 : vector<16x16x128xbf16> to vector<256x128xbf16>
    %47 = vector.extract_strided_slice %3 {offsets = [1024, 0], sizes = [128, 128], strides = [1, 1]} : vector<1152x128xbf16> to vector<128x128xbf16>
    %cst_35 = arith.constant dense<0.000000e+00> : vector<256x128xf32>
    %48 = tpu.matmul %46, %47, %cst_35 {dimension_numbers = #tpu.dot_dimension_numbers<[1], [0], [0], [1], [0, 0, 1, 1], [], []>} : vector<256x128xbf16>, vector<128x128xbf16>, vector<256x128xf32> -> vector<256x128xf32>
    %49 = arith.addf %44, %48 : vector<256x128xf32>
    %50 = vector.shape_cast %49 : vector<256x128xf32> to vector<16x16x128xf32>
    %51 = arith.truncf %50 : vector<16x16x128xf32> to vector<16x16x128xbf16>
    %c0_36 = arith.constant 0 : index
    %c0_37 = arith.constant 0 : index
    %c0_38 = arith.constant 0 : index
    %c0_39 = arith.constant 0 : index
    %52 = vector.load %arg9[%c0_36, %c0_37, %c0_38, %c0_39] : memref<1x16x16x128xbf16, #tpu.memory_space<vmem>>, vector<1x16x16x128xbf16>
    %53 = vector.shape_cast %52 : vector<1x16x16x128xbf16> to vector<16x16x128xbf16>
    %54 = vector.shape_cast %51 : vector<16x16x128xbf16> to vector<1x16x16x128xbf16>
    tpu.vector_store %arg9[%c0_36, %c0_37, %c0_38, %c0_39], %54 {strides = array<i32>} : memref<1x16x16x128xbf16, #tpu.memory_space<vmem>>, vector<1x16x16x128xbf16>,
    %cst_40 = arith.constant dense<0.000000e+00> : vector<128xf32>
    %55 = vector.multi_reduction <add>, %49, %cst_40 [0] : vector<256x128xf32> to vector<128xf32>
    %56 = arith.mulf %49, %49 : vector<256x128xf32>
    %cst_41 = arith.constant dense<0.000000e+00> : vector<128xf32>
    %57 = vector.multi_reduction <add>, %56, %cst_41 [0] : vector<256x128xf32> to vector<128xf32>
    %58 = vector.shape_cast %55 : vector<128xf32> to vector<1x128xf32>
    %59 = vector.shape_cast %57 : vector<128xf32> to vector<1x128xf32>
    %60 = tpu.concatenate %58, %59 in 0 : vector<1x128xf32>, vector<1x128xf32> -> vector<2x128xf32>
    %61 = vector.shape_cast %60 : vector<2x128xf32> to vector<1x1x2x128xf32>
    %c0_42 = arith.constant 0 : index
    %c0_43 = arith.constant 0 : index
    %c0_44 = arith.constant 0 : index
    %c0_45 = arith.constant 0 : index
    %62 = vector.load %arg10[%c0_42, %c0_43, %c0_44, %c0_45] : memref<1x1x2x128xf32, #tpu.memory_space<vmem>>, vector<1x1x2x128xf32>
    tpu.vector_store %arg10[%c0_42, %c0_43, %c0_44, %c0_45], %61 {strides = array<i32>} : memref<1x1x2x128xf32, #tpu.memory_space<vmem>>, vector<1x1x2x128xf32>,
    return
  }
  func.func @transform_0(%arg0: i32, %arg1: i32, %arg2: i32) -> (i32, i32, i32, i32) {
    %c16_i32 = arith.constant 16 : i32
    %0 = arith.muli %arg1, %c16_i32 : i32
    %c1_i32 = arith.constant 1 : i32
    %1 = arith.subi %0, %c1_i32 : i32
    %c0_i32 = arith.constant 0 : i32
    %2 = arith.maxsi %1, %c0_i32 : i32
    %c0_i32_0 = arith.constant 0 : i32
    %c0_i32_1 = arith.constant 0 : i32
    %c0_i32_2 = arith.constant 0 : i32
    return %arg0, %2, %c0_i32_0, %c0_i32_1 : i32, i32, i32, i32
  }
  func.func @transform_1(%arg0: i32, %arg1: i32, %arg2: i32) -> (i32, i32, i32, i32) {
    %c0_i32 = arith.constant 0 : i32
    %c0_i32_0 = arith.constant 0 : i32
    %c0_i32_1 = arith.constant 0 : i32
    return %arg0, %arg1, %c0_i32, %c0_i32_0 : i32, i32, i32, i32
  }
  func.func @transform_2(%arg0: i32, %arg1: i32, %arg2: i32) -> (i32, i32, i32, i32) {
    %c16_i32 = arith.constant 16 : i32
    %0 = arith.muli %arg1, %c16_i32 : i32
    %c16_i32_0 = arith.constant 16 : i32
    %1 = arith.addi %0, %c16_i32_0 : i32
    %c15_i32 = arith.constant 15 : i32
    %2 = arith.minsi %1, %c15_i32 : i32
    %c0_i32 = arith.constant 0 : i32
    %c0_i32_1 = arith.constant 0 : i32
    %c0_i32_2 = arith.constant 0 : i32
    return %arg0, %2, %c0_i32, %c0_i32_1 : i32, i32, i32, i32
  }
  func.func @transform_3(%arg0: i32, %arg1: i32, %arg2: i32) -> (i32, i32) {
    %c0_i32 = arith.constant 0 : i32
    %c0_i32_0 = arith.constant 0 : i32
    %c0_i32_1 = arith.constant 0 : i32
    return %c0_i32, %c0_i32_0 : i32, i32
  }
  func.func @transform_4(%arg0: i32, %arg1: i32, %arg2: i32) -> (i32, i32) {
    %c0_i32 = arith.constant 0 : i32
    %c0_i32_0 = arith.constant 0 : i32
    %c0_i32_1 = arith.constant 0 : i32
    return %c0_i32, %c0_i32_0 : i32, i32
  }
  func.func @transform_5(%arg0: i32, %arg1: i32, %arg2: i32) -> (i32, i32) {
    %c0_i32 = arith.constant 0 : i32
    %c0_i32_0 = arith.constant 0 : i32
    return %c0_i32, %arg2 : i32, i32
  }
  func.func @transform_6(%arg0: i32, %arg1: i32, %arg2: i32) -> (i32, i32, i32, i32) {
    %c0_i32 = arith.constant 0 : i32
    %c0_i32_0 = arith.constant 0 : i32
    return %arg0, %arg1, %c0_i32, %arg2 : i32, i32, i32, i32
  }
  func.func @transform_7(%arg0: i32, %arg1: i32, %arg2: i32) -> (i32, i32, i32, i32) {
    %c0_i32 = arith.constant 0 : i32
    %c0_i32_0 = arith.constant 0 : i32
    return %arg0, %arg1, %c0_i32, %arg2 : i32, i32, i32, i32
  }
}

module attributes {stable_mosaic.version = 11 : i64} {
  func.func @_bn_relu_nchw_kernel(%arg0: i32, %arg1: i32, %arg2: i32, %arg3: memref<1x16x16x128xbf16, #tpu.memory_space<vmem>>, %arg4: memref<1x128xf32, #tpu.memory_space<vmem>>, %arg5: memref<1x128xf32, #tpu.memory_space<vmem>>, %arg6: memref<1x128x256xf32, #tpu.memory_space<vmem>>) attributes {dimension_semantics = [#tpu.dimension_semantics<parallel>, #tpu.dimension_semantics<parallel>, #tpu.dimension_semantics<parallel>], iteration_bounds = array<i64: 2, 1, 1>, scalar_prefetch = 0 : i64, scratch_operands = 0 : i64, tpu.core_type = #tpu.core_type<tc>, window_params = [{transform_indices = @transform_0, window_bounds = array<i64: 1, 16, 16, 128>}, {transform_indices = @transform_1, window_bounds = array<i64: 1, 128>}, {transform_indices = @transform_2, window_bounds = array<i64: 1, 128>}, {transform_indices = @transform_3, window_bounds = array<i64: 1, 128, 256>}]} {
    %c0 = arith.constant 0 : index
    %c0_0 = arith.constant 0 : index
    %c0_1 = arith.constant 0 : index
    %c0_2 = arith.constant 0 : index
    %0 = vector.load %arg3[%c0, %c0_0, %c0_1, %c0_2] : memref<1x16x16x128xbf16, #tpu.memory_space<vmem>>, vector<1x16x16x128xbf16>
    %1 = vector.shape_cast %0 : vector<1x16x16x128xbf16> to vector<16x16x128xbf16>
    %2 = vector.shape_cast %1 : vector<16x16x128xbf16> to vector<256x128xbf16>
    %3 = arith.extf %2 : vector<256x128xbf16> to vector<256x128xf32>
    %c0_3 = arith.constant 0 : index
    %c0_4 = arith.constant 0 : index
    %4 = vector.load %arg4[%c0_3, %c0_4] : memref<1x128xf32, #tpu.memory_space<vmem>>, vector<1x128xf32>
    %5 = vector.broadcast %4 : vector<1x128xf32> to vector<256x128xf32>
    %6 = arith.mulf %3, %5 : vector<256x128xf32>
    %c0_5 = arith.constant 0 : index
    %c0_6 = arith.constant 0 : index
    %7 = vector.load %arg5[%c0_5, %c0_6] : memref<1x128xf32, #tpu.memory_space<vmem>>, vector<1x128xf32>
    %8 = vector.broadcast %7 : vector<1x128xf32> to vector<256x128xf32>
    %9 = arith.addf %6, %8 : vector<256x128xf32>
    %cst = arith.constant 0.000000e+00 : f32
    %10 = vector.broadcast %cst : f32 to vector<256x128xf32>
    %11 = arith.maximumf %9, %10 : vector<256x128xf32>
    %12 = tpu.transpose %11, [1, 0] : vector<256x128xf32> -> vector<128x256xf32>
    %c0_7 = arith.constant 0 : index
    %c0_8 = arith.constant 0 : index
    %c0_9 = arith.constant 0 : index
    %13 = vector.load %arg6[%c0_7, %c0_8, %c0_9] : memref<1x128x256xf32, #tpu.memory_space<vmem>>, vector<1x128x256xf32>
    %14 = vector.shape_cast %13 : vector<1x128x256xf32> to vector<128x256xf32>
    %15 = vector.shape_cast %12 : vector<128x256xf32> to vector<1x128x256xf32>
    tpu.vector_store %arg6[%c0_7, %c0_8, %c0_9], %15 {strides = array<i32>} : memref<1x128x256xf32, #tpu.memory_space<vmem>>, vector<1x128x256xf32>,
    return
  }
  func.func @transform_0(%arg0: i32, %arg1: i32, %arg2: i32) -> (i32, i32, i32, i32) {
    %c0_i32 = arith.constant 0 : i32
    %c0_i32_0 = arith.constant 0 : i32
    return %arg0, %arg1, %c0_i32, %arg2 : i32, i32, i32, i32
  }
  func.func @transform_1(%arg0: i32, %arg1: i32, %arg2: i32) -> (i32, i32) {
    %c0_i32 = arith.constant 0 : i32
    %c0_i32_0 = arith.constant 0 : i32
    return %c0_i32, %arg2 : i32, i32
  }
  func.func @transform_2(%arg0: i32, %arg1: i32, %arg2: i32) -> (i32, i32) {
    %c0_i32 = arith.constant 0 : i32
    %c0_i32_0 = arith.constant 0 : i32
    return %c0_i32, %arg2 : i32, i32
  }
  func.func @transform_3(%arg0: i32, %arg1: i32, %arg2: i32) -> (i32, i32, i32) {
    %c0_i32 = arith.constant 0 : i32
    return %arg0, %arg2, %arg1 : i32, i32, i32
  }
}

</mosaic_0001>

<bundles_post_ra>
// kernel: double_conv_forward.5
= control target key start
LH: loop header
LB: loop body
LE: loop exit
PB: predicated region body
PF: predicated region fallthrough
CT: control target
= control target key end

     0   :  { %s845_s12 = smov 0   ;;  %s847_s13 = smov 0   ;;  %s1008_s0 = inlined_call_operand.vmem [shape: bf16[2,16,16,128], index: 0, kind: input, shape index: {}]   ;;  %s1009_s1 = inlined_call_operand.vmem [shape: f32[1,128], index: 1, kind: input, shape index: {}]   ;;  %s1010_s2 = inlined_call_operand.vmem [shape: f32[1,128], index: 2, kind: input, shape index: {}]   ;;  %s1011_s3 = inlined_call_operand.vmem [shape: f32[2,128,256], index: 3, kind: output, shape index: {}]  }
   0x1   :  { %s849_s14 = smov 0  }
   0x2 LB: > { %s32_s15 = sadd.s32 1, %s819_s13  ;;  %p687_p0 = scmp.ge.s32.totalorder %s823_s14, 1  ;;  %s823_s14 = sphi %s849_s14, %s13_s14   ;;  %s819_s13 = sphi %s847_s13, %s1013_s13   ;;  %s815_s12 = sphi %s845_s12, %s1012_s12  }
   0x3   : > { %p34_p1 = scmp.ge.s32.totalorder %s32_s15, 2  ;;  %p189_p2 = scmp.lt.s32.totalorder %s823_s14, 3 }
   0x5   : > { %s1015_s15 = smov (%p34_p1, %s32_s15), 0  ;;  %p190_p3 = pnand %p687_p0, %p189_p2 }
   0x6   : > { %p237_p4 = scmp.lt.s32.totalorder (!%p190_p3), %s815_s12, 1  ;;  %v874_v0 = vld [vmem:[%s1009_s1] ss:$0 sm:$0xff] (!%p190_p3) }
   0x7   : > { %193 = sbr.rel (%p190_p3) target bundleno = 217 (0xd9), region = 32  ;;  %v883_v9 = vld [vmem:[%s1010_s2] ss:$0 sm:$0xff] (!%p190_p3) }
   0xe   : > { %s1017_s12 = smov (!%p237_p4, %s815_s12), 1 }
   0xf   : > { %s696_s16 = sshll.u32 %s1017_s12, 7  ;;  %s697_s24 = sshll.u32 %s1017_s12, 8 }
  0x10   : > { %s869_s19 = scalar_lea.vmem %s1008_s0, %s696_s16  ;;  %s965_s27 = scalar_lea.vmem %s1011_s3, %s697_s24 }
  0x11   : > { %v769_v1 = vld [vmem:[%s869_s19 + $0x40] sm:$0xff]   ;;  %v770_v3 = vld [vmem:[%s869_s19 + $0x48] sm:$0xff]   ;;  %v771_v24 = vld [vmem:[%s869_s19 + $0x50] sm:$0xff]  }
  0x12   : > { %v699_v2 = vld [vmem:[%s869_s19] sm:$0xff]   ;;  %v732_v4 = vunpack.c.l.bf16 %v769_v1  ;;  %v733_v6 = vunpack.c.h.bf16 %v769_v1  ;;  %v762_v8 = vld [vmem:[%s869_s19 + $0x8] sm:$0xff]   ;;  %v736_v10 = vunpack.c.l.bf16 %v770_v3  ;;  %v737_v18 = vunpack.c.h.bf16 %v770_v3  ;;  %v763_v25 = vld [vmem:[%s869_s19 + $0x10] sm:$0xff]  }
  0x13   : > { %v700_v5 = vunpack.c.l.bf16 %v699_v2  ;;  %v701_v7 = vunpack.c.h.bf16 %v699_v2  ;;  %v704_v11 = vunpack.c.l.bf16 %v762_v8  ;;  %v705_v19 = vunpack.c.h.bf16 %v762_v8  ;;  %v772_v44 = vld [vmem:[%s869_s19 + $0x58] sm:$0xff]   ;;  %v773_v62 = vld [vmem:[%s869_s19 + $0x60] sm:$0xff]  }
  0x14   : > { %v359_v12 = vmul.f32 %v732_v4, %v874_v0  ;;  %v360_v14 = vmul.f32 %v733_v6, %v874_v0  ;;  %v361_v16 = vmul.f32 %v736_v10, %v874_v0  ;;  %v362_v30 = vmul.f32 %v737_v18, %v874_v0  ;;  %v764_v45 = vld [vmem:[%s869_s19 + $0x18] sm:$0xff]   ;;  %v765_v63 = vld [vmem:[%s869_s19 + $0x20] sm:$0xff]   ;;  %v774_v18 = vld [vmem:[%s869_s19 + $0x68] sm:$0xff]  }
  0x15   : > { %v343_v13 = vmul.f32 %v700_v5, %v874_v0  ;;  %v344_v15 = vmul.f32 %v701_v7, %v874_v0  ;;  %v345_v17 = vmul.f32 %v704_v11, %v874_v0  ;;  %v346_v31 = vmul.f32 %v705_v19, %v874_v0  ;;  %v766_v19 = vld [vmem:[%s869_s19 + $0x28] sm:$0xff]  }
  0x16   : > { %v398_v20 = vadd.f32 %v883_v9, %v359_v12  ;;  %v399_v22 = vadd.f32 %v883_v9, %v360_v14  ;;  %v400_v28 = vadd.f32 %v883_v9, %v361_v16  ;;  %v740_v34 = vunpack.c.l.bf16 %v771_v24 }
  0x17   : > { %v382_v21 = vadd.f32 %v883_v9, %v343_v13  ;;  %v383_v23 = vadd.f32 %v883_v9, %v344_v15  ;;  %v384_v29 = vadd.f32 %v883_v9, %v345_v17  ;;  %v708_v35 = vunpack.c.l.bf16 %v763_v25 }
  0x18   : > { %v430_v26 = vmax.f32 %v398_v20, 0.0  ;;  %v431_v32 = vmax.f32 %v399_v22, 0.0  ;;  %v432_v36 = vmax.f32 %v400_v28, 0.0  ;;  %v401_v37 = vadd.f32 %v883_v9, %v362_v30 }
  0x19   : > { %v414_v27 = vmax.f32 %v382_v21, 0.0  ;;  %v415_v33 = vmax.f32 %v383_v23, 0.0  ;;  %v385_v38 = vadd.f32 %v883_v9, %v346_v31  ;;  %v741_v39 = vunpack.c.h.bf16 %v771_v24 }
  0x1a   : > { %478 = vxpose.xlu1.b32.start [1/16] %v430_v26, 128  ;;  %v416_v40 = vmax.f32 %v384_v29, 0.0  ;;  %v363_v41 = vmul.f32 %v740_v34, %v874_v0  ;;  %v347_v42 = vmul.f32 %v708_v35, %v874_v0  ;;  %v709_v43 = vunpack.c.h.bf16 %v763_v25 }
  0x1b   : > { %446 = vxpose.xlu0.b32.start [1/16] %v414_v27, 128  ;;  %v433_v46 = vmax.f32 %v401_v37, 0.0  ;;  %v364_v47 = vmul.f32 %v741_v39, %v874_v0  ;;  %v744_v48 = vunpack.c.l.bf16 %v772_v44  ;;  %v712_v49 = vunpack.c.l.bf16 %v764_v45  ;;  %v767_v37 = vld [vmem:[%s869_s19 + $0x30] sm:$0xff]  }
  0x1c   : > { %v417_v50 = vmax.f32 %v385_v38, 0.0  ;;  %v402_v51 = vadd.f32 %v883_v9, %v363_v41  ;;  %v386_v52 = vadd.f32 %v883_v9, %v347_v42  ;;  %v348_v53 = vmul.f32 %v709_v43, %v874_v0 }
  0x1d   : > { %v365_v54 = vmul.f32 %v744_v48, %v874_v0  ;;  %v349_v55 = vmul.f32 %v712_v49, %v874_v0  ;;  %v745_v56 = vunpack.c.h.bf16 %v772_v44  ;;  %v713_v57 = vunpack.c.h.bf16 %v764_v45 }
  0x1e   : > { %479 = vxpose.xlu1.b32.cont [2/16] %v431_v32, 128  ;;  %v434_v58 = vmax.f32 %v402_v51, 0.0  ;;  %v418_v59 = vmax.f32 %v386_v52, 0.0  ;;  %v403_v60 = vadd.f32 %v883_v9, %v364_v47  ;;  %v387_v61 = vadd.f32 %v883_v9, %v348_v53 }
  0x1f   : > { %447 = vxpose.xlu0.b32.cont [2/16] %v415_v33, 128  ;;  %v404_v1 = vadd.f32 %v883_v9, %v365_v54  ;;  %v366_v2 = vmul.f32 %v745_v56, %v874_v0  ;;  %v350_v3 = vmul.f32 %v713_v57, %v874_v0  ;;  %v748_v4 = vunpack.c.l.bf16 %v773_v62  ;;  %v776_v54 = vld [vmem:[%s869_s19 + $0x78] sm:$0xff]  }
  0x20   : > { %v435_v5 = vmax.f32 %v403_v60, 0.0  ;;  %v419_v6 = vmax.f32 %v387_v61, 0.0  ;;  %v388_v7 = vadd.f32 %v883_v9, %v349_v55  ;;  %v716_v8 = vunpack.c.l.bf16 %v765_v63  ;;  %v768_v55 = vld [vmem:[%s869_s19 + $0x38] sm:$0xff]  }
  0x21   : > { %v436_v10 = vmax.f32 %v404_v1, 0.0  ;;  %v405_v11 = vadd.f32 %v883_v9, %v366_v2  ;;  %v389_v12 = vadd.f32 %v883_v9, %v350_v3  ;;  %v367_v13 = vmul.f32 %v748_v4, %v874_v0 }
  0x22   : > { %480 = vxpose.xlu1.b32.cont [3/16] %v432_v36, 128  ;;  %v420_v14 = vmax.f32 %v388_v7, 0.0  ;;  %v351_v15 = vmul.f32 %v716_v8, %v874_v0  ;;  %v749_v16 = vunpack.c.h.bf16 %v773_v62  ;;  %v717_v17 = vunpack.c.h.bf16 %v765_v63  ;;  %v775_v36 = vld [vmem:[%s869_s19 + $0x70] sm:$0xff]  }
  0x23   : > { %448 = vxpose.xlu0.b32.cont [3/16] %v416_v40, 128  ;;  %v437_v20 = vmax.f32 %v405_v11, 0.0  ;;  %v406_v21 = vadd.f32 %v883_v9, %v367_v13  ;;  %v752_v22 = vunpack.c.l.bf16 %v774_v18  ;;  %v720_v23 = vunpack.c.l.bf16 %v766_v19 }
  0x24   : > { %v421_v24 = vmax.f32 %v389_v12, 0.0  ;;  %v390_v25 = vadd.f32 %v883_v9, %v351_v15  ;;  %v368_v26 = vmul.f32 %v749_v16, %v874_v0  ;;  %v352_v27 = vmul.f32 %v717_v17, %v874_v0 }
  0x25   : > { %v369_v28 = vmul.f32 %v752_v22, %v874_v0  ;;  %v353_v29 = vmul.f32 %v720_v23, %v874_v0  ;;  %v753_v30 = vunpack.c.h.bf16 %v774_v18  ;;  %v721_v31 = vunpack.c.h.bf16 %v766_v19 }
  0x26   : > { %481 = vxpose.xlu1.b32.cont [4/16] %v433_v46, 128  ;;  %v438_v32 = vmax.f32 %v406_v21, 0.0  ;;  %v422_v33 = vmax.f32 %v390_v25, 0.0  ;;  %v407_v34 = vadd.f32 %v883_v9, %v368_v26  ;;  %v391_v35 = vadd.f32 %v883_v9, %v352_v27 }
  0x27   : > { %449 = vxpose.xlu0.b32.cont [4/16] %v417_v50, 128  ;;  %v408_v38 = vadd.f32 %v883_v9, %v369_v28  ;;  %v370_v39 = vmul.f32 %v753_v30, %v874_v0  ;;  %v354_v40 = vmul.f32 %v721_v31, %v874_v0  ;;  %v756_v41 = vunpack.c.l.bf16 %v775_v36 }
  0x28   : > { %v439_v42 = vmax.f32 %v407_v34, 0.0  ;;  %v423_v43 = vmax.f32 %v391_v35, 0.0  ;;  %v392_v44 = vadd.f32 %v883_v9, %v353_v29  ;;  %v724_v45 = vunpack.c.l.bf16 %v767_v37 }
  0x29   : > { %v440_v46 = vmax.f32 %v408_v38, 0.0  ;;  %v409_v47 = vadd.f32 %v883_v9, %v370_v39  ;;  %v393_v48 = vadd.f32 %v883_v9, %v354_v40  ;;  %v371_v49 = vmul.f32 %v756_v41, %v874_v0 }
  0x2a   : > { %482 = vxpose.xlu1.b32.cont [5/16] %v434_v58, 128  ;;  %v424_v50 = vmax.f32 %v392_v44, 0.0  ;;  %v355_v51 = vmul.f32 %v724_v45, %v874_v0  ;;  %v757_v52 = vunpack.c.h.bf16 %v775_v36  ;;  %v725_v53 = vunpack.c.h.bf16 %v767_v37 }
  0x2b   : > { %450 = vxpose.xlu0.b32.cont [5/16] %v418_v59, 128  ;;  %v441_v56 = vmax.f32 %v409_v47, 0.0  ;;  %v410_v57 = vadd.f32 %v883_v9, %v371_v49  ;;  %v760_v58 = vunpack.c.l.bf16 %v776_v54  ;;  %v728_v59 = vunpack.c.l.bf16 %v768_v55 }
  0x2c   : > { %v425_v60 = vmax.f32 %v393_v48, 0.0  ;;  %v394_v61 = vadd.f32 %v883_v9, %v355_v51  ;;  %v372_v62 = vmul.f32 %v757_v52, %v874_v0  ;;  %v356_v63 = vmul.f32 %v725_v53, %v874_v0 }
  0x2d   : > { %v373_v1 = vmul.f32 %v760_v58, %v874_v0  ;;  %v357_v2 = vmul.f32 %v728_v59, %v874_v0  ;;  %v761_v3 = vunpack.c.h.bf16 %v776_v54  ;;  %v729_v4 = vunpack.c.h.bf16 %v768_v55 }
  0x2e   : > { %483 = vxpose.xlu1.b32.cont [6/16] %v435_v5, 128  ;;  %v442_v5 = vmax.f32 %v410_v57, 0.0  ;;  %v411_v7 = vadd.f32 %v883_v9, %v372_v62  ;;  %v395_v8 = vadd.f32 %v883_v9, %v356_v63 }
  0x2f   : > { %451 = vxpose.xlu0.b32.cont [6/16] %v419_v6, 128  ;;  %v426_v6 = vmax.f32 %v394_v61, 0.0  ;;  %v358_v11 = vmul.f32 %v729_v4, %v874_v0  ;;  %v396_v15 = vadd.f32 %v883_v9, %v357_v2 }
  0x30   : > { %v443_v12 = vmax.f32 %v411_v7, 0.0  ;;  %v427_v13 = vmax.f32 %v395_v8, 0.0 }
  0x31   : > { %v428_v17 = vmax.f32 %v396_v15, 0.0  ;;  %v397_v19 = vadd.f32 %v883_v9, %v358_v11 }
  0x32   : > { %484 = vxpose.xlu1.b32.cont [7/16] %v436_v10, 128  ;;  %v374_v10 = vmul.f32 %v761_v3, %v874_v0 }
  0x33   : > { %452 = vxpose.xlu0.b32.cont [7/16] %v420_v14, 128  ;;  %v412_v14 = vadd.f32 %v883_v9, %v373_v1 }
  0x34   : > { %v413_v18 = vadd.f32 %v883_v9, %v374_v10 }
  0x35   : > { %v444_v16 = vmax.f32 %v412_v14, 0.0 }
  0x36   : > { %485 = vxpose.xlu1.b32.cont [8/16] %v437_v20, 128  ;;  %v445_v0 = vmax.f32 %v413_v18, 0.0  ;;  %v429_v20 = vmax.f32 %v397_v19, 0.0 }
  0x37   : > { %453 = vxpose.xlu0.b32.cont [8/16] %v421_v24, 128 }
  0x3a   : > { %486 = vxpose.xlu1.b32.cont [9/16] %v438_v32, 128 }
  0x3b   : > { %454 = vxpose.xlu0.b32.cont [9/16] %v422_v33, 128 }
  0x3e   : > { %487 = vxpose.xlu1.b32.cont [10/16] %v439_v42, 128 }
  0x3f   : > { %455 = vxpose.xlu0.b32.cont [10/16] %v423_v43, 128 }
  0x42   : > { %488 = vxpose.xlu1.b32.cont [11/16] %v440_v46, 128 }
  0x43   : > { %456 = vxpose.xlu0.b32.cont [11/16] %v424_v50, 128 }
  0x46   : > { %489 = vxpose.xlu1.b32.cont [12/16] %v441_v56, 128 }
  0x47   : > { %457 = vxpose.xlu0.b32.cont [12/16] %v425_v60, 128 }
  0x4a   : > { %490 = vxpose.xlu1.b32.cont [13/16] %v442_v5, 128 }
  0x4b   : > { %458 = vxpose.xlu0.b32.cont [13/16] %v426_v6, 128 }
  0x4e   : > { %491 = vxpose.xlu1.b32.cont [14/16] %v443_v12, 128 }
  0x4f   : > { %459 = vxpose.xlu0.b32.cont [14/16] %v427_v13, 128 }
  0x52   : > { %492 = vxpose.xlu1.b32.cont [15/16] %v444_v16, 128 }
  0x53   : > { %460 = vxpose.xlu0.b32.cont [15/16] %v428_v17, 128 }
  0x56   : > { %493 = vxpose.xlu1.b32.end [16/16] %v445_v0, 128 }
  0x57   : > { %461 = vxpose.xlu0.b32.end [16/16] %v429_v20, 128 }
  0x9a   : > { %v494_v9 = vpop.trf.xlu1 }
  0x9b   : > { %v462_v21 = vpop.trf.xlu0  ;;  %511 = vst [vmem:[%s965_s27 + $0x8] sm:$0xff] %v494_v9 }
  0x9c   : > { %510 = vst [vmem:[%s965_s27] sm:$0xff] %v462_v21 }
  0x9e   : > { %v495_v22 = vpop.trf.xlu1 }
  0x9f   : > { %v463_v23 = vpop.trf.xlu0  ;;  %513 = vst [vmem:[%s965_s27 + $0x18] sm:$0xff] %v495_v22 }
  0xa0   : > { %512 = vst [vmem:[%s965_s27 + $0x10] sm:$0xff] %v463_v23 }
  0xa2   : > { %v496_v24 = vpop.trf.xlu1 }
  0xa3   : > { %v464_v25 = vpop.trf.xlu0  ;;  %515 = vst [vmem:[%s965_s27 + $0x28] sm:$0xff] %v496_v24 }
  0xa4   : > { %514 = vst [vmem:[%s965_s27 + $0x20] sm:$0xff] %v464_v25 }
  0xa6   : > { %v497_v26 = vpop.trf.xlu1 }
  0xa7   : > { %v465_v27 = vpop.trf.xlu0  ;;  %517 = vst [vmem:[%s965_s27 + $0x38] sm:$0xff] %v497_v26 }
  0xa8   : > { %516 = vst [vmem:[%s965_s27 + $0x30] sm:$0xff] %v465_v27 }
  0xaa   : > { %v498_v28 = vpop.trf.xlu1 }
  0xab   : > { %v466_v29 = vpop.trf.xlu0  ;;  %519 = vst [vmem:[%s965_s27 + $0x48] sm:$0xff] %v498_v28 }
  0xac   : > { %518 = vst [vmem:[%s965_s27 + $0x40] sm:$0xff] %v466_v29 }
  0xae   : > { %v499_v30 = vpop.trf.xlu1 }
  0xaf   : > { %v467_v31 = vpop.trf.xlu0  ;;  %521 = vst [vmem:[%s965_s27 + $0x58] sm:$0xff] %v499_v30 }
  0xb0   : > { %520 = vst [vmem:[%s965_s27 + $0x50] sm:$0xff] %v467_v31 }
  0xb2   : > { %v500_v32 = vpop.trf.xlu1 }
  0xb3   : > { %v468_v33 = vpop.trf.xlu0  ;;  %523 = vst [vmem:[%s965_s27 + $0x68] sm:$0xff] %v500_v32 }
  0xb4   : > { %522 = vst [vmem:[%s965_s27 + $0x60] sm:$0xff] %v468_v33 }
  0xb6   : > { %v501_v34 = vpop.trf.xlu1 }
  0xb7   : > { %v469_v35 = vpop.trf.xlu0  ;;  %525 = vst [vmem:[%s965_s27 + $0x78] sm:$0xff] %v501_v34 }
  0xb8   : > { %524 = vst [vmem:[%s965_s27 + $0x70] sm:$0xff] %v469_v35 }
  0xba   : > { %v502_v36 = vpop.trf.xlu1 }
  0xbb   : > { %v470_v37 = vpop.trf.xlu0  ;;  %527 = vst [vmem:[%s965_s27 + $0x88] sm:$0xff] %v502_v36 }
  0xbc   : > { %526 = vst [vmem:[%s965_s27 + $0x80] sm:$0xff] %v470_v37 }
  0xbe   : > { %v503_v38 = vpop.trf.xlu1 }
  0xbf   : > { %v471_v39 = vpop.trf.xlu0  ;;  %529 = vst [vmem:[%s965_s27 + $0x98] sm:$0xff] %v503_v38 }
  0xc0   : > { %528 = vst [vmem:[%s965_s27 + $0x90] sm:$0xff] %v471_v39 }
  0xc2   : > { %v504_v40 = vpop.trf.xlu1 }
  0xc3   : > { %v472_v41 = vpop.trf.xlu0  ;;  %531 = vst [vmem:[%s965_s27 + $0xa8] sm:$0xff] %v504_v40 }
  0xc4   : > { %530 = vst [vmem:[%s965_s27 + $0xa0] sm:$0xff] %v472_v41 }
  0xc6   : > { %v505_v42 = vpop.trf.xlu1 }
  0xc7   : > { %v473_v43 = vpop.trf.xlu0  ;;  %533 = vst [vmem:[%s965_s27 + $0xb8] sm:$0xff] %v505_v42 }
  0xc8   : > { %532 = vst [vmem:[%s965_s27 + $0xb0] sm:$0xff] %v473_v43 }
  0xca   : > { %v506_v44 = vpop.trf.xlu1 }
  0xcb   : > { %v474_v45 = vpop.trf.xlu0  ;;  %535 = vst [vmem:[%s965_s27 + $0xc8] sm:$0xff] %v506_v44 }
  0xcc   : > { %534 = vst [vmem:[%s965_s27 + $0xc0] sm:$0xff] %v474_v45 }
  0xce   : > { %v507_v46 = vpop.trf.xlu1 }
  0xcf   : > { %v475_v47 = vpop.trf.xlu0  ;;  %537 = vst [vmem:[%s965_s27 + $0xd8] sm:$0xff] %v507_v46 }
  0xd0   : > { %536 = vst [vmem:[%s965_s27 + $0xd0] sm:$0xff] %v475_v47 }
  0xd2   : > { %v508_v48 = vpop.trf.xlu1 }
  0xd3   : > { %v476_v49 = vpop.trf.xlu0  ;;  %539 = vst [vmem:[%s965_s27 + $0xe8] sm:$0xff] %v508_v48 }
  0xd4   : > { %538 = vst [vmem:[%s965_s27 + $0xe0] sm:$0xff] %v476_v49 }
  0xd6   : > { %v509_v50 = vpop.trf.xlu1 }
  0xd7   : > { %v477_v51 = vpop.trf.xlu0  ;;  %541 = vst [vmem:[%s965_s27 + $0xf8] sm:$0xff] %v509_v50 }
  0xd8   : > { %540 = vst [vmem:[%s965_s27 + $0xf0] sm:$0xff] %v477_v51 }
  0xd9 PF: > { %s13_s14 = sadd.s32 1, %s823_s14   ;;  %s1012_s12 = smov %s819_s13 }
  0xda   : > { %p10_p5 = scmp.ge.s32.totalorder %s13_s14, 4   ;;  %s1013_s13 = smov %s1015_s15 }
  0xdc   :  { %12 = sbr.rel (!%p10_p5) target bundleno = 2 (0x2), region = 68 }

// kernel: double_conv_forward.4
= control target key start
LH: loop header
LB: loop body
LE: loop exit
PB: predicated region body
PF: predicated region fallthrough
CT: control target
= control target key end

     0   :  { %s8256_s23 = smov 0   ;;  %s8258_s24 = smov 0   ;;  %s10120_s0 = inlined_call_operand.vmem [shape: bf16[2,16,16,128], index: 0, kind: input, shape index: {}, may-alias: {0,1,2}]   ;;  %s10121_s1 = inlined_call_operand.vmem [shape: bf16[2,16,16,128], index: 1, kind: input, shape index: {}, may-alias: {0,1,2}]   ;;  %s10122_s2 = inlined_call_operand.vmem [shape: bf16[2,16,16,128], index: 2, kind: input, shape index: {}, may-alias: {0,1,2}]   ;;  %s10123_s3 = inlined_call_operand.vmem [shape: f32[1,128], index: 3, kind: input, shape index: {}]   ;;  %s10124_s4 = inlined_call_operand.vmem [shape: f32[1,128], index: 4, kind: input, shape index: {}]   ;;  %s10125_s5 = inlined_call_operand.vmem [shape: bf16[1152,128], index: 5, kind: input, shape index: {}]   ;;  %s10126_s6 = inlined_call_operand.vmem [shape: bf16[2,16,16,128], index: 6, kind: output, shape index: {0}]   ;;  %s10127_s7 = inlined_call_operand.vmem [shape: f32[2,1,2,128], index: 7, kind: output, shape index: {1}]  }
   0x1   :  { %s8260_s2 = smov 0  }
   0x2 LB: > { %s37_s25 = sadd.s32 1, %s8209_s24  ;;  %p6474_p0 = scmp.ge.s32.totalorder %s8213_s2, 1  ;;  %s8213_s2 = sphi %s8260_s2, %s18_s2   ;;  %s8209_s24 = sphi %s8258_s24, %s10198_s24   ;;  %s8205_s23 = sphi %s8256_s23, %s10197_s23  }
   0x3   : > { %p39_p1 = scmp.ge.s32.totalorder %s37_s25, 2  ;;  %p348_p2 = scmp.lt.s32.totalorder %s8213_s2, 3 }
   0x5   : > { %s10200_s25 = smov (%p39_p1, %s37_s25), 0  ;;  %p349_p3 = pnand %p6474_p0, %p348_p2 }
   0x7   : > { %352 = sbr.rel (%p349_p3) target bundleno = 694 (0x2b6), region = 44 }
   0xe   : > { %v7994_v0 = vld [vmem:[%s10125_s5 + $0x40] sm:$0xff]   ;;  %v7996_v2 = vld [vmem:[%s10125_s5 + $0x48] sm:$0xff]   ;;  %v7998_v4 = vld [vmem:[%s10125_s5 + $0x50] sm:$0xff]   ;;  %p451_p4 = scmp.lt.s32.totalorder %s8205_s23, 1  ;;  %v8215_v10 = vmov 0   ;;  %vm891_vm0 = vcmask 1040384  }
   0xf   : > { %v7995_v1 = vld [vmem:[%s10125_s5 + $0x100] sm:$0xff]   ;;  %7265 = vmatprep.subr.bf16.mxu1 %v7994_v0  ;;  %v7997_v3 = vld [vmem:[%s10125_s5 + $0x108] sm:$0xff]   ;;  %v7999_v5 = vld [vmem:[%s10125_s5 + $0x110] sm:$0xff]   ;;  %v732_v11 = vrot.slane %v8215_v10, 7  ;;  %vm892_vm1 = vsmask.f32 256 }
  0x10   : > { %7457 = vmatprep.subr.bf16.mxu0 %v7995_v1  ;;  %7266 = vmatpush3.bf16.msra.mxu1 %v7994_v0  ;;  %v8000_v6 = vld [vmem:[%s10125_s5 + $0x58] sm:$0xff]   ;;  %s10202_s23 = smov (!%p451_p4, %s8205_s23), 1  ;;  %v8002_v8 = vld [vmem:[%s10125_s5 + $0x60] sm:$0xff]   ;;  %v8004_v12 = vld [vmem:[%s10125_s5 + $0x68] sm:$0xff]   ;;  %vm1374_vm3 = vsmask.f32 3328 }
  0x11   : > { %7458 = vmatpush3.bf16.msra.mxu0 %v7995_v1  ;;  %7267 = vmatprep.subr.bf16.mxu1 %v7996_v2  ;;  %v8001_v7 = vld [vmem:[%s10125_s5 + $0x118] sm:$0xff]   ;;  %s6839_s21 = sshll.u32 %s10202_s23, 7  ;;  %v8003_v9 = vld [vmem:[%s10125_s5 + $0x120] sm:$0xff]   ;;  %v8005_v13 = vld [vmem:[%s10125_s5 + $0x128] sm:$0xff]   ;;  %vm1375_vm4 = vsmask.f32 7440 }
  0x12   : > { %7459 = vmatprep.subr.bf16.mxu0 %v7997_v3  ;;  %s8312_s28 = scalar_lea.vmem %s10121_s1, %s6839_s21  ;;  %vm8321_vm2 = vmand %vm891_vm0, %vm892_vm1  ;;  %v8328_v15 = vld [vmem:[%s10123_s3] ss:$0 sm:$0xff]  ;;  %v8006_v19 = vld [vmem:[%s10125_s5 + $0x70] sm:$0xff]   ;;  %vm2387_vm6 = vcmask 1042432   ;;  %vm2388_vm7 = vcmask 1046532   ;;  %s10084_s27 = scalar_lea.vmem %s10126_s6, %s6839_s21 }
  0x13   : > { %v894_v16 = vsel %vm8321_vm2, 0, %v732_v11  ;;  %v912_v17 = vsel %vm8321_vm2, %v732_v11, 0  ;;  %v6876_v18 = vld [vmem:[%s8312_s28] sm:$0xff]   ;;  %v7019_v26 = vld [vmem:[%s8312_s28 + $0x8] sm:$0xff]   ;;  %v8007_v27 = vld [vmem:[%s10125_s5 + $0x130] sm:$0xff]   ;;  %s6483_s21 = sshll.u32 %s10202_s23, 1 }
  0x14   : > { %7268 = vmatpush3.bf16.msra.mxu1 %v7996_v2  ;;  %v6486_v20 = vcombine.low %v894_v16, %v894_v16  ;;  %v6487_v21 = vcombine.high %v894_v16, %v894_v16  ;;  %v6488_v22 = vcombine.low %v912_v17, %v912_v17  ;;  %v6877_v23 = vunpack.c.l.bf16 %v6876_v18  ;;  %v8341_v24 = vld [vmem:[%s10124_s4] ss:$0 sm:$0xff]  ;;  %v7020_v32 = vld [vmem:[%s8312_s28 + $0x10] sm:$0xff]   ;;  %v8008_v37 = vld [vmem:[%s10125_s5 + $0x78] sm:$0xff]   ;;  %s505_s8 = scalar_lea.vmem %s10127_s7, %s6483_s21 }
  0x15   : > { %7460 = vmatpush3.bf16.msra.mxu0 %v7997_v3  ;;  %7269 = vmatprep.subr.bf16.mxu1 %v7998_v4  ;;  %v6878_v25 = vunpack.c.h.bf16 %v6876_v18  ;;  %v6881_v29 = vunpack.c.l.bf16 %v7019_v26  ;;  %v6882_v30 = vunpack.c.h.bf16 %v7019_v26  ;;  %v6885_v36 = vunpack.c.l.bf16 %v7020_v32  ;;  %v7021_v40 = vld [vmem:[%s8312_s28 + $0x18] sm:$0xff]   ;;  %v8365_v46 = vld [vmem:[%s8312_s28 + $0x20] sm:$0xff]   ;;  %vm8388_vm5 = vmor %vm1374_vm3, %vm1375_vm4 }
  0x16   : > { %7461 = vmatprep.subr.bf16.mxu0 %v7999_v5  ;;  %1128 = vst [vmem:[#allocation2] sm:$0xf] %v6486_v20  ;;  %1129 = vst [vmem:[#allocation2 + $0x4] sm:$0xf] %v6487_v21  ;;  %v617_v28 = vmul.f32 %v6877_v23, %v8328_v15  ;;  %v6886_v39 = vunpack.c.h.bf16 %v7020_v32  ;;  %v8009_v41 = vld [vmem:[%s10125_s5 + $0x138] sm:$0xff]   ;;  %v8370_v48 = vld [vmem:[%s10125_s5] sm:$0xff]   ;;  %v6889_v50 = vunpack.c.l.bf16 %v7021_v40  ;;  %v6890_v54 = vunpack.c.h.bf16 %v7021_v40 }
  0x17   : > { %1130 = vst [vmem:[#allocation2 + $0x8] sm:$0x1] %v6488_v22  ;;  %1179 = vst [vmem:[#allocation2 + $0xcc] sm:$0xf] %v6486_v20  ;;  %v618_v31 = vmul.f32 %v6878_v25, %v8328_v15  ;;  %v619_v34 = vmul.f32 %v6881_v29, %v8328_v15  ;;  %v620_v35 = vmul.f32 %v6882_v30, %v8328_v15  ;;  %v6893_v61 = vunpack.c.l.bf16 %v8365_v46  ;;  %v8380_v2 = vld [vmem:[%s10125_s5 + $0x140] sm:$0xff]  }
  0x18   : > { %7270 = vmatpush3.bf16.msra.mxu1 %v7998_v4  ;;  %1180 = vst [vmem:[#allocation2 + $0xd0] sm:$0xf] %v6487_v21  ;;  %1181 = vst [vmem:[#allocation2 + $0xd4] sm:$0x1] %v6488_v22  ;;  %v649_v33 = vadd.f32 %v8341_v24, %v617_v28  ;;  %v621_v45 = vmul.f32 %v6885_v36, %v8328_v15  ;;  %v622_v49 = vmul.f32 %v6886_v39, %v8328_v15  ;;  %v7023_v39 = vld [vmem:[%s8312_s28 + $0x28] sm:$0xff]  }
  0x19   : > { %7462 = vmatpush3.bf16.msra.mxu0 %v7999_v5  ;;  %7271 = vmatprep.subr.bf16.mxu1 %v8000_v6  ;;  %v650_v38 = vadd.f32 %v8341_v24, %v618_v31  ;;  %v651_v43 = vadd.f32 %v8341_v24, %v619_v34  ;;  %v652_v44 = vadd.f32 %v8341_v24, %v620_v35  ;;  %vm8548_vm8 = vmor %vm2387_vm6, %vm2388_vm7 }
  0x1a   : > { %7463 = vmatprep.subr.bf16.mxu0 %v8001_v7  ;;  %v681_v42 = vmax.f32 %v649_v33, 0.0  ;;  %v653_v53 = vadd.f32 %v8341_v24, %v621_v45  ;;  %v654_v59 = vadd.f32 %v8341_v24, %v622_v49  ;;  %v623_v60 = vmul.f32 %v6889_v50, %v8328_v15 }
  0x1b   : > { %v682_v47 = vmax.f32 %v650_v38, 0.0  ;;  %v683_v51 = vmax.f32 %v651_v43, 0.0  ;;  %v684_v52 = vmax.f32 %v652_v44, 0.0  ;;  %v624_v20 = vmul.f32 %v6890_v54, %v8328_v15 }
  0x1c   : > { %7272 = vmatpush3.bf16.msra.mxu1 %v8000_v6  ;;  %v6894_v6 = vunpack.c.h.bf16 %v8365_v46  ;;  %v685_v16 = vmax.f32 %v653_v53, 0.0  ;;  %v655_v33 = vadd.f32 %v8341_v24, %v623_v60  ;;  %v8417_v60 = vld [vmem:[%s8312_s28 + $0x30] sm:$0xff]  }
  0x1d   : > { %7464 = vmatpush3.bf16.msra.mxu0 %v8001_v7  ;;  %7273 = vmatprep.subr.bf16.mxu1 %v8002_v8  ;;  %v1326_v55 = vld [vmem:[#allocation2] sm:$0xf]  ;;  %v1327_v56 = vld [vmem:[#allocation2 + $0x4] sm:$0xf]  ;;  %v713_v58 = vpack.c.bf16 %v682_v47, %v681_v42  ;;  %v656_v34 = vadd.f32 %v8341_v24, %v624_v20 }
  0x1e   : > { %7465 = vmatprep.subr.bf16.mxu0 %v8003_v9  ;;  %v1358_v57 = vld [vmem:[#allocation2 + $0x8] sm:$0x1]  ;;  %v1378_v62 = vshrl.u32 %v1326_v55, 16  ;;  %v1381_v63 = vshll.u32 %v1326_v55, 16  ;;  %v1387_v0 = vshll.u32 %v1327_v56, 16  ;;  %v1391_v1 = vshrl.u32 %v1327_v56, 16 }
  0x1f   : > { %v1397_v3 = vshll.u32 %v1358_v57, 16  ;;  %v737_v4 = vshrl.u32 %v713_v58, 16  ;;  %v740_v5 = vshll.u32 %v713_v58, 16  ;;  %v687_v46 = vmax.f32 %v655_v33, 0.0 }
  0x20   : > { %7274 = vmatpush3.bf16.msra.mxu1 %v8002_v8  ;;  %v1380_v7 = vrot.slane %v1378_v62, 4  ;;  %v1383_v8 = vrot.slane %v1381_v63, 5  ;;  %v1393_v10 = vrot.slane %v1391_v1, 4  ;;  %v688_v47 = vmax.f32 %v656_v34, 0.0 }
  0x21   : > { %7466 = vmatpush3.bf16.msra.mxu0 %v8003_v9  ;;  %7275 = vmatprep.subr.bf16.mxu1 %v8004_v12  ;;  %v1389_v9 = vrot.slane %v1387_v0, 5  ;;  %v1399_v11 = vrot.slane %v1397_v3, 5  ;;  %v6897_v56 = vunpack.c.l.bf16 %v7023_v39  ;;  %v6898_v0 = vunpack.c.h.bf16 %v7023_v39 }
  0x22   : > { %7467 = vmatprep.subr.bf16.mxu0 %v8005_v13  ;;  %v1384_v17 = vor.u32 %v1383_v8, %v1380_v7  ;;  %v8409_v55 = vpack.c.bf16 %v688_v47, %v687_v46 }
  0x23   : > { %v1394_v18 = vor.u32 %v1393_v10, %v1389_v9  ;;  %v627_v7 = vmul.f32 %v6897_v56, %v8328_v15 }
  0x24   : > { %7276 = vmatpush3.bf16.msra.mxu1 %v8004_v12  ;;  %v739_v12 = vrot.slane %v737_v4, 7  ;;  %v758_v62 = vshrl.u32 %v8409_v55, 16  ;;  %v761_v63 = vshll.u32 %v8409_v55, 16  ;;  %v8017_v55 = vld [vmem:[%s10125_s5 + $0x160] sm:$0xff]  }
  0x25   : > { %7468 = vmatpush3.bf16.msra.mxu0 %v8005_v13  ;;  %7277 = vmatprep.subr.bf16.mxu1 %v8006_v19  ;;  %v714_v13 = vpack.c.bf16 %v684_v52, %v683_v51  ;;  %v1395_v28 = vrot.slane %v1394_v18, 4  ;;  %v625_v51 = vmul.f32 %v6893_v61, %v8328_v15  ;;  %v626_v52 = vmul.f32 %v6894_v6, %v8328_v15 }
  0x26   : > { %7469 = vmatprep.subr.bf16.mxu0 %v8007_v27  ;;  %v742_v22 = vor.u32 %v740_v5, %v739_v12  ;;  %v913_v23 = vsel %vm8321_vm2, %v739_v12, 0  ;;  %v8437_v20 = vadd.f32 %v8341_v24, %v627_v7 }
  0x27   : > { %v744_v25 = vshrl.u32 %v714_v13, 16  ;;  %v747_v26 = vshll.u32 %v714_v13, 16  ;;  %v6491_v29 = vcombine.low %v913_v23, %v913_v23  ;;  %v1400_v36 = vsel %vm8388_vm5, %v1395_v28, %v1399_v11 }
  0x28   : > { %7278 = vmatpush3.bf16.msra.mxu1 %v8006_v19  ;;  %v686_v19 = vmax.f32 %v654_v59, 0.0  ;;  %v895_v31 = vsel %vm8321_vm2, 0, %v742_v22  ;;  %v8414_v59 = vadd.f32 %v8341_v24, %v625_v51  ;;  %v8426_v5 = vadd.f32 %v8341_v24, %v626_v52 }
  0x29   : > { %7470 = vmatpush3.bf16.msra.mxu0 %v8007_v27  ;;  %7279 = vmatprep.subr.bf16.mxu1 %v8008_v37  ;;  %v1385_v27 = vrot.slane %v1384_v17, 4  ;;  %v746_v32 = vrot.slane %v744_v25, 7  ;;  %v6490_v38 = vcombine.high %v895_v31, %v895_v31  ;;  %1133 = vst [vmem:[#allocation2 + $0x14] sm:$0x1] %v6491_v29  ;;  %v6901_v11 = vunpack.c.l.bf16 %v8417_v60 }
  0x2a   : > { %7471 = vmatprep.subr.bf16.mxu0 %v8009_v41  ;;  %v715_v30 = vpack.c.bf16 %v686_v19, %v685_v16  ;;  %v689_v6 = vmax.f32 %v8414_v59, 0.0  ;;  %v8434_v19 = vmul.f32 %v6898_v0, %v8328_v15  ;;  %v8026_v59 = vld [vmem:[%s10125_s5 + $0x30] sm:$0xff]  }
  0x2b   : > { %v1390_v35 = vsel %vm8388_vm5, %v1385_v27, %v1389_v9  ;;  %v914_v42 = vsel %vm8321_vm2, %v746_v32, 0  ;;  %1132 = vst [vmem:[#allocation2 + $0x10] sm:$0xf] %v6490_v38 }
  0x2c   : > { %7280 = vmatpush3.bf16.msra.mxu1 %v8008_v37  ;;  %v6489_v37 = vcombine.low %v895_v31, %v895_v31  ;;  %v6540_v40 = vcombine.low %v1390_v35, %v1400_v36  ;;  %v751_v43 = vshrl.u32 %v715_v30, 16  ;;  %v6494_v44 = vcombine.low %v914_v42, %v914_v42 }
  0x2d   : > { %7472 = vmatpush3.bf16.msra.mxu0 %v8009_v41  ;;  %7313 = vmatprep.subr.bf16.mxu1 %v8370_v48  ;;  %v749_v41 = vor.u32 %v747_v26, %v746_v32  ;;  %v754_v45 = vshll.u32 %v715_v30, 16 }
  0x2e   : > { %7505 = vmatprep.subr.bf16.mxu0 %v8380_v2  ;;  %1131 = vst [vmem:[#allocation2 + $0xc] sm:$0xf] %v6489_v37  ;;  %7281 = vmatprep.mubr.bf16.mxu1 %v6540_v40  ;;  %v753_v50 = vrot.slane %v751_v43, 7  ;;  %1136 = vst [vmem:[#allocation2 + $0x20] sm:$0x1] %v6494_v44 }
  0x2f   : > { %v896_v49 = vsel %vm8321_vm2, 0, %v749_v41 }
  0x30   : > { %v6492_v53 = vcombine.low %v896_v49, %v896_v49  ;;  %v6493_v54 = vcombine.high %v896_v49, %v896_v49  ;;  %v756_v57 = vor.u32 %v754_v45, %v753_v50  ;;  %v915_v58 = vsel %vm8321_vm2, %v753_v50, 0  ;;  %v1359_v1 = vld [vmem:[#allocation2 + $0x14] sm:$0x1] }
  0x31   : > { %v6497_v61 = vcombine.low %v915_v58, %v915_v58  ;;  %v8421_v3 = vld [vmem:[#allocation2 + $0x14] sm:$0x1]  ;;  %v1421_v8 = vshll.u32 %v1359_v1, 16 }
  0x32   : > { %1134 = vst [vmem:[#allocation2 + $0x18] sm:$0xf] %v6492_v53  ;;  %1135 = vst [vmem:[#allocation2 + $0x1c] sm:$0xf] %v6493_v54  ;;  %v897_v4 = vsel %vm8321_vm2, 0, %v756_v57  ;;  %v3245_v9 = vshll.u32 %v8421_v3, 16 }
  0x33   : > { %v3983_v10 = vrot.slane %v8421_v3, 5  ;;  %1139 = vst [vmem:[#allocation2 + $0x2c] sm:$0x1] %v6497_v61  ;;  %v1329_v13 = vld [vmem:[#allocation2 + $0x10] sm:$0xf]  ;;  %v6495_v17 = vcombine.low %v897_v4, %v897_v4  ;;  %v6496_v18 = vcombine.high %v897_v4, %v897_v4  ;;  %v1423_v28 = vrot.slane %v1421_v8, 5 }
  0x34   : > { %v1411_v25 = vshll.u32 %v1329_v13, 16  ;;  %v1415_v26 = vshrl.u32 %v1329_v13, 16  ;;  %v8439_v27 = vld [vmem:[#allocation2 + $0x10] sm:$0xf]  ;;  %v3247_v43 = vrot.slane %v3245_v9, 5 }
  0x35   : > { %v1328_v12 = vld [vmem:[#allocation2 + $0xc] sm:$0xf]  ;;  %v3235_v31 = vshll.u32 %v8439_v27, 16  ;;  %1137 = vst [vmem:[#allocation2 + $0x24] sm:$0xf] %v6495_v17  ;;  %v3239_v39 = vshrl.u32 %v8439_v27, 16 }
  0x36   : > { %v3177_v16 = vld [vmem:[#allocation2 + $0xc] sm:$0xf]  ;;  %v1402_v22 = vshrl.u32 %v1328_v12, 16  ;;  %v1405_v23 = vshll.u32 %v1328_v12, 16  ;;  %1138 = vst [vmem:[#allocation2 + $0x28] sm:$0xf] %v6496_v18 }
  0x37   : > { %v3226_v29 = vshrl.u32 %v3177_v16, 16  ;;  %v3229_v30 = vshll.u32 %v3177_v16, 16  ;;  %v1413_v34 = vrot.slane %v1411_v25, 5  ;;  %v1417_v35 = vrot.slane %v1415_v26, 4  ;;  %v8445_v49 = vld [vmem:[#allocation2 + $0x20] sm:$0x1] }
  0x38   : > { %v1404_v32 = vrot.slane %v1402_v22, 4  ;;  %v1407_v33 = vrot.slane %v1405_v23, 5  ;;  %v3237_v38 = vrot.slane %v3235_v31, 5  ;;  %v3241_v47 = vrot.slane %v3239_v39, 4  ;;  %v8013_v22 = vld [vmem:[%s10125_s5 + $0x8] sm:$0xff]  }
  0x39   : > { %v3228_v36 = vrot.slane %v3226_v29, 4  ;;  %v3231_v37 = vrot.slane %v3229_v30, 5  ;;  %v3180_v40 = vld [vmem:[#allocation2 + $0x18] sm:$0xf]  ;;  %v1418_v42 = vor.u32 %v1417_v35, %v1413_v34  ;;  %v8443_v44 = vld [vmem:[#allocation2 + $0x1c] sm:$0xf] }
  0x3a   : > { %v1408_v41 = vor.u32 %v1407_v33, %v1404_v32  ;;  %v3250_v45 = vshrl.u32 %v3180_v40, 16  ;;  %v3253_v50 = vshll.u32 %v3180_v40, 16  ;;  %v3259_v51 = vshll.u32 %v8443_v44, 16  ;;  %v1330_v9 = vld [vmem:[#allocation2 + $0x18] sm:$0xf] }
  0x3b   : > { %v3232_v46 = vor.u32 %v3231_v37, %v3228_v36  ;;  %v1419_v53 = vrot.slane %v1418_v42, 4  ;;  %v3263_v56 = vshrl.u32 %v8443_v44, 16  ;;  %v3242_v58 = vor.u32 %v3241_v47, %v3237_v38  ;;  %v1331_v18 = vld [vmem:[#allocation2 + $0x1c] sm:$0xf]  ;;  %v1360_v29 = vld [vmem:[#allocation2 + $0x20] sm:$0x1] }
  0x3c   : > { %v1409_v52 = vrot.slane %v1408_v41, 4  ;;  %v3252_v54 = vrot.slane %v3250_v45, 4  ;;  %v3255_v61 = vrot.slane %v3253_v50, 5  ;;  %v3261_v0 = vrot.slane %v3259_v51, 5  ;;  %v1361_v40 = vld [vmem:[#allocation2 + $0x2c] sm:$0x1] }
  0x3d   : > { %v3233_v57 = vrot.slane %v3232_v46, 4  ;;  %v1424_v4 = vsel %vm8388_vm5, %v1419_v53, %v1423_v28  ;;  %v3265_v7 = vrot.slane %v3263_v56, 4  ;;  %v3269_v8 = vshll.u32 %v8445_v49, 16  ;;  %v1333_v39 = vld [vmem:[#allocation2 + $0x28] sm:$0xf] }
  0x3e   : > { %v1414_v1 = vsel %vm8388_vm5, %v1409_v52, %v1413_v34  ;;  %v3243_v16 = vrot.slane %v3242_v58, 4  ;;  %v3256_v17 = vor.u32 %v3255_v61, %v3252_v54  ;;  %v3987_v26 = vrot.slane %v8443_v44, 5  ;;  %v1332_v34 = vld [vmem:[#allocation2 + $0x24] sm:$0xf]  ;;  %v8012_v50 = vld [vmem:[%s10125_s5 + $0x148] sm:$0xff]  }
  0x3f   : > { %v6541_v12 = vcombine.low %v1414_v1, %v1424_v4  ;;  %v3238_v13 = vsel %vm8388_vm5, %v3233_v57, %v3237_v38  ;;  %v3266_v23 = vor.u32 %v3265_v7, %v3261_v0  ;;  %v3271_v25 = vrot.slane %v3269_v8, 5  ;;  %v3183_v46 = vld [vmem:[#allocation2 + $0x24] sm:$0xf]  ;;  %v3184_v61 = vld [vmem:[#allocation2 + $0x28] sm:$0xf] }
  0x40   : > { %v3990_v28 = vrot.slane %v8445_v49, 5  ;;  %v3248_v30 = vsel %vm8388_vm5, %v3243_v16, %v3247_v43  ;;  %v3257_v31 = vrot.slane %v3256_v17, 4  ;;  %v1426_v32 = vshrl.u32 %v1330_v9, 16  ;;  %v3185_v8 = vld [vmem:[#allocation2 + $0x2c] sm:$0x1]  ;;  %v8014_v17 = vld [vmem:[%s10125_s5 + $0x150] sm:$0xff]  }
  0x41   : > { %7282 = vmatmul.mubr.bf16.vlgmr.msra.gmra.mrb[0].mxu1 %v6541_v12  ;;  %v1429_v33 = vshll.u32 %v1330_v9, 16  ;;  %v6652_v35 = vcombine.low %v3238_v13, %v3248_v30  ;;  %v3267_v36 = vrot.slane %v3266_v23, 4  ;;  %v8466_v37 = vrot.slane %v3987_v26, 4 }
  0x42   : > { %7314 = vmatpush3.bf16.msra.mxu1 %v8370_v48  ;;  %v1435_v38 = vshll.u32 %v1331_v18, 16  ;;  %v3262_v41 = vsel %vm8388_vm5, %v3257_v31, %v3261_v0  ;;  %v1428_v42 = vrot.slane %v1426_v32, 4  ;;  %v1439_v45 = vshrl.u32 %v1331_v18, 16  ;;  %v8016_v48 = vld [vmem:[%s10125_s5 + $0x10] sm:$0xff]   ;;  %v8019_v18 = vld [vmem:[%s10125_s5 + $0x18] sm:$0xff]  }
  0x43   : > { %v1431_v43 = vrot.slane %v1429_v33, 5  ;;  %7315 = vmatprep.subr.bf16.mxu1 %v8013_v22  ;;  %7473 = vmatprep.mubr.bf16.mxu0 %v6652_v35  ;;  %v3272_v47 = vsel %vm8388_vm5, %v3267_v36, %v3271_v25  ;;  %v1445_v52 = vshll.u32 %v1360_v29, 16  ;;  %v1450_v53 = vshrl.u32 %v1332_v34, 16 }
  0x44   : > { %v1437_v51 = vrot.slane %v1435_v38, 5  ;;  %v6653_v54 = vcombine.low %v3262_v41, %v3272_v47  ;;  %v1441_v57 = vrot.slane %v1439_v45, 4  ;;  %v1453_v58 = vshll.u32 %v1332_v34, 16 }
  0x45   : > { %v1432_v56 = vor.u32 %v1431_v43, %v1428_v42  ;;  %v1447_v0 = vrot.slane %v1445_v52, 5  ;;  %v1452_v1 = vrot.slane %v1450_v53, 4  ;;  %v1459_v4 = vshll.u32 %v1333_v39, 16  ;;  %v8022_v42 = vld [vmem:[%s10125_s5 + $0x20] sm:$0xff]  }
  0x46   : > { %v1463_v7 = vshrl.u32 %v1333_v39, 16  ;;  %7316 = vmatpush3.bf16.msra.mxu1 %v8013_v22  ;;  %7474 = vmatmul.mubr.bf16.vlgmr.msra.gmra.mrb[0].mxu0 %v6653_v54  ;;  %v1442_v12 = vor.u32 %v1441_v57, %v1437_v51  ;;  %v1455_v13 = vrot.slane %v1453_v58, 5  ;;  %v1469_v16 = vshll.u32 %v1361_v40, 16  ;;  %v8015_v54 = vld [vmem:[%s10125_s5 + $0x158] sm:$0xff]  }
  0x47   : > { %v1433_v9 = vrot.slane %v1432_v56, 4  ;;  %7317 = vmatprep.subr.bf16.mxu1 %v8016_v48  ;;  %7506 = vmatpush3.bf16.msra.mxu0 %v8380_v2  ;;  %v1461_v23 = vrot.slane %v1459_v4, 5  ;;  %v3274_v29 = vshrl.u32 %v3183_v46, 16  ;;  %v3277_v22 = vshll.u32 %v3183_v46, 16  ;;  %v8024_v4 = vld [vmem:[%s10125_s5 + $0x28] sm:$0xff]  }
  0x48   : > { %v1465_v25 = vrot.slane %v1463_v7, 4  ;;  %7507 = vmatprep.subr.bf16.mxu0 %v8012_v50  ;;  %v1443_v31 = vrot.slane %v1442_v12, 4  ;;  %v1456_v32 = vor.u32 %v1455_v13, %v1452_v1  ;;  %v1471_v33 = vrot.slane %v1469_v16, 5 }
  0x49   : > { %v1438_v30 = vsel %vm8388_vm5, %v1433_v9, %v1437_v51  ;;  %v3276_v35 = vrot.slane %v3274_v29, 4  ;;  %v3279_v36 = vrot.slane %v3277_v22, 5  ;;  %v3283_v38 = vshll.u32 %v3184_v61, 16  ;;  %v8531_v29 = vld [vmem:[%s10125_s5 + $0x168] sm:$0xff]  }
  0x4a   : > { %v1466_v34 = vor.u32 %v1465_v25, %v1461_v23  ;;  %7318 = vmatpush3.bf16.msra.mxu1 %v8016_v48  ;;  %v1448_v39 = vsel %vm8388_vm5, %v1443_v31, %v1447_v0  ;;  %v1457_v2 = vrot.slane %v1456_v32, 4  ;;  %v3287_v40 = vshrl.u32 %v3184_v61, 16 }
  0x4b   : > { %v3293_v41 = vshll.u32 %v3185_v8, 16  ;;  %7319 = vmatprep.subr.bf16.mxu1 %v8019_v18  ;;  %7508 = vmatpush3.bf16.msra.mxu0 %v8012_v50  ;;  %v6542_v43 = vcombine.low %v1438_v30, %v1448_v39  ;;  %v3280_v46 = vor.u32 %v3279_v36, %v3276_v35  ;;  %v3285_v47 = vrot.slane %v3283_v38, 5  ;;  %v7025_v8 = vld [vmem:[%s8312_s28 + $0x38] sm:$0xff]   ;;  %v8538_v35 = vld [vmem:[%s8312_s28 + $0x40] sm:$0xff]  }
  0x4c   : > { %v1467_v45 = vrot.slane %v1466_v34, 4  ;;  %v1462_v48 = vsel %vm8388_vm5, %v1457_v2, %v1461_v23  ;;  %v3289_v51 = vrot.slane %v3287_v40, 4  ;;  %7509 = vmatprep.subr.bf16.mxu0 %v8014_v17  ;;  %v760_v53 = vrot.slane %v758_v62, 7 }
  0x4d   : > { %v3295_v52 = vrot.slane %v3293_v41, 5  ;;  %7285 = vmatprep.mubr.bf16.mxu1 %v6542_v43  ;;  %v3281_v56 = vrot.slane %v3280_v46, 4  ;;  %v690_v57 = vmax.f32 %v8426_v5, 0.0  ;;  %v660_v58 = vadd.f32 %v8341_v24, %v8434_v19 }
  0x4e   : > { %v1472_v50 = vsel %vm8388_vm5, %v1467_v45, %v1471_v33  ;;  %7320 = vmatpush3.bf16.msra.mxu1 %v8019_v18  ;;  %v3290_v0 = vor.u32 %v3289_v51, %v3285_v47  ;;  %v763_v62 = vor.u32 %v761_v63, %v760_v53  ;;  %v916_v1 = vsel %vm8321_vm2, %v760_v53, 0 }
  0x4f   : > { %v6543_v61 = vcombine.low %v1462_v48, %v1472_v50  ;;  %7321 = vmatprep.subr.bf16.mxu1 %v8022_v42  ;;  %v3286_v5 = vsel %vm8388_vm5, %v3281_v56, %v3285_v47  ;;  %v6500_v7 = vcombine.low %v916_v1, %v916_v1  ;;  %7510 = vmatpush3.bf16.msra.mxu0 %v8014_v17  ;;  %v691_v63 = vmax.f32 %v8437_v20, 0.0 }
  0x50   : > { %v717_v19 = vpack.c.bf16 %v690_v57, %v689_v6  ;;  %v3291_v9 = vrot.slane %v3290_v0, 4  ;;  %v898_v12 = vsel %vm8321_vm2, 0, %v763_v62  ;;  %7511 = vmatprep.subr.bf16.mxu0 %v8015_v54  ;;  %v692_v13 = vmax.f32 %v660_v58, 0.0 }
  0x51   : > { %7286 = vmatmul.mubr.bf16.gmra.mrb[4].mxu1 %v6543_v61  ;;  %v6902_v16 = vunpack.c.h.bf16 %v8417_v60  ;;  %v6498_v6 = vcombine.low %v898_v12, %v898_v12  ;;  %v6499_v17 = vcombine.high %v898_v12, %v898_v12  ;;  %1142 = vst [vmem:[#allocation2 + $0x38] sm:$0x1] %v6500_v7  ;;  %v629_v22 = vmul.f32 %v6901_v11, %v8328_v15 }
  0x52   : > { %v765_v18 = vshrl.u32 %v717_v19, 16  ;;  %v768_v20 = vshll.u32 %v717_v19, 16  ;;  %7322 = vmatpush3.bf16.msra.mxu1 %v8022_v42  ;;  %v3296_v23 = vsel %vm8388_vm5, %v3291_v9, %v3295_v52  ;;  %v718_v25 = vpack.c.bf16 %v692_v13, %v691_v63 }
  0x53   : > { %v630_v30 = vmul.f32 %v6902_v16, %v8328_v15  ;;  %7323 = vmatprep.subr.bf16.mxu1 %v8024_v4  ;;  %v6654_v31 = vcombine.low %v3286_v5, %v3296_v23  ;;  %1140 = vst [vmem:[#allocation2 + $0x30] sm:$0xf] %v6498_v6  ;;  %1141 = vst [vmem:[#allocation2 + $0x34] sm:$0xf] %v6499_v17  ;;  %7512 = vmatpush3.bf16.msra.mxu0 %v8015_v54  ;;  %v6905_v33 = vunpack.c.l.bf16 %v7025_v8  ;;  %v8562_v54 = vld [vmem:[%s8312_s28 + $0x48] sm:$0xff]  }
  0x54   : > { %v767_v32 = vrot.slane %v765_v18, 7  ;;  %v6906_v34 = vunpack.c.h.bf16 %v7025_v8  ;;  %7513 = vmatprep.subr.bf16.mxu0 %v8017_v55  ;;  %v772_v36 = vshrl.u32 %v718_v25, 16  ;;  %v775_v38 = vshll.u32 %v718_v25, 16 }
  0x55   : > { %v661_v39 = vadd.f32 %v8341_v24, %v629_v22  ;;  %v662_v60 = vadd.f32 %v8341_v24, %v630_v30  ;;  %7477 = vmatprep.mubr.bf16.mxu0 %v6654_v31  ;;  %v631_v40 = vmul.f32 %v6905_v33, %v8328_v15  ;;  %v6909_v53 = vunpack.c.l.bf16 %v8538_v35 }
  0x56   : > { %v770_v11 = vor.u32 %v768_v20, %v767_v32  ;;  %v917_v2 = vsel %vm8321_vm2, %v767_v32, 0  ;;  %v632_v41 = vmul.f32 %v6906_v34, %v8328_v15  ;;  %7324 = vmatpush3.bf16.msra.mxu1 %v8024_v4  ;;  %v774_v43 = vrot.slane %v772_v36, 7 }
  0x57   : > { %v6503_v42 = vcombine.low %v917_v2, %v917_v2  ;;  %v693_v45 = vmax.f32 %v661_v39, 0.0  ;;  %v694_v46 = vmax.f32 %v662_v60, 0.0  ;;  %7325 = vmatprep.subr.bf16.mxu1 %v8026_v59  ;;  %7514 = vmatpush3.bf16.msra.mxu0 %v8017_v55  ;;  %v8555_v51 = vadd.f32 %v8341_v24, %v631_v40 }
  0x58   : > { %v899_v48 = vsel %vm8321_vm2, 0, %v770_v11  ;;  %v8558_v52 = vadd.f32 %v8341_v24, %v632_v41  ;;  %v8564_v50 = vld [vmem:[#allocation2 + $0x38] sm:$0x1]  ;;  %v777_v61 = vor.u32 %v775_v38, %v774_v43  ;;  %v918_v0 = vsel %vm8321_vm2, %v774_v43, 0  ;;  %7515 = vmatprep.subr.bf16.mxu0 %v8531_v29  ;;  %v8020_v24 = vld [vmem:[%s10125_s5 + $0x170] sm:$0xff]  }
  0x59   : > { %v1362_v56 = vld [vmem:[#allocation2 + $0x38] sm:$0x1]  ;;  %v6501_v57 = vcombine.low %v899_v48, %v899_v48  ;;  %v6502_v58 = vcombine.high %v899_v48, %v899_v48  ;;  %1145 = vst [vmem:[#allocation2 + $0x44] sm:$0x1] %v6503_v42  ;;  %v3317_v62 = vshll.u32 %v8564_v50, 16  ;;  %v6506_v4 = vcombine.low %v918_v0, %v918_v0  ;;  %v8603_v42 = vld [vmem:[%s10125_s5 + $0x180] sm:$0xff]  }
  0x5a   : > { %v1493_v1 = vshll.u32 %v1362_v56, 16  ;;  %v8573_v5 = vpack.c.bf16 %v694_v46, %v693_v45  ;;  %7326 = vmatpush3.bf16.msra.mxu1 %v8026_v59  ;;  %v3186_v7 = vld [vmem:[#allocation2 + $0x30] sm:$0xf]  ;;  %v8575_v19 = vld [vmem:[#allocation2 + $0x34] sm:$0xf]  ;;  %v6910_v63 = vunpack.c.h.bf16 %v8538_v35  ;;  %v8579_v8 = vmul.f32 %v6909_v53, %v8328_v15 }
  0x5b   : > { %v1334_v55 = vld [vmem:[#allocation2 + $0x30] sm:$0xf]  ;;  %1143 = vst [vmem:[#allocation2 + $0x3c] sm:$0xf] %v6501_v57  ;;  %1144 = vst [vmem:[#allocation2 + $0x40] sm:$0xf] %v6502_v58  ;;  %v8586_v9 = vsel %vm8548_vm8, %v8466_v37, %v3990_v28  ;;  %v6913_v12 = vunpack.c.l.bf16 %v8562_v54  ;;  %7516 = vmatpush3.bf16.msra.mxu0 %v8531_v29 }
  0x5c   : > { %v3298_v13 = vshrl.u32 %v3186_v7, 16  ;;  %v3301_v16 = vshll.u32 %v3186_v7, 16  ;;  %v3307_v59 = vshll.u32 %v8575_v19, 16  ;;  %v3311_v6 = vshrl.u32 %v8575_v19, 16  ;;  %v1335_v17 = vld [vmem:[#allocation2 + $0x34] sm:$0xf]  ;;  %7517 = vmatprep.subr.bf16.mxu0 %v8020_v24 }
  0x5d   : > { %1148 = vst [vmem:[#allocation2 + $0x50] sm:$0x1] %v6506_v4  ;;  %v3319_v15 = vrot.slane %v3317_v62, 5  ;;  %v1474_v18 = vshrl.u32 %v1334_v55, 16  ;;  %v1477_v49 = vshll.u32 %v1334_v55, 16  ;;  %v1483_v20 = vshll.u32 %v1335_v17, 16 }
  0x5e   : > { %v8021_v28 = vld [vmem:[%s10125_s5 + $0x178] sm:$0xff]   ;;  %v3300_v37 = vrot.slane %v3298_v13, 4  ;;  %v3303_v23 = vrot.slane %v3301_v16, 5  ;;  %v3309_v25 = vrot.slane %v3307_v59, 5  ;;  %v3313_v22 = vrot.slane %v3311_v6, 4 }
  0x5f   : > { %v1476_v30 = vrot.slane %v1474_v18, 4  ;;  %v1479_v31 = vrot.slane %v1477_v49, 5  ;;  %v1485_v32 = vrot.slane %v1483_v20, 5  ;;  %v1487_v33 = vshrl.u32 %v1335_v17, 16  ;;  %7518 = vmatpush3.bf16.msra.mxu0 %v8020_v24  ;;  %v8028_v24 = vld [vmem:[%s10125_s5 + $0x38] sm:$0xff]  }
  0x60   : > { %v3304_v34 = vor.u32 %v3303_v23, %v3300_v37  ;;  %v3314_v36 = vor.u32 %v3313_v22, %v3309_v25  ;;  %v1495_v29 = vrot.slane %v1493_v1, 5  ;;  %v1363_v38 = vld [vmem:[#allocation2 + $0x44] sm:$0x1]  ;;  %v900_v60 = vsel %vm8321_vm2, 0, %v777_v61  ;;  %7519 = vmatprep.subr.bf16.mxu0 %v8021_v28  ;;  %7327 = vmatprep.subr.bf16.mxu1 %v8028_v24 }
  0x61   : > { %v8595_v39 = vld [vmem:[#allocation2 + $0x44] sm:$0x1]  ;;  %v1480_v11 = vor.u32 %v1479_v31, %v1476_v30  ;;  %v1489_v2 = vrot.slane %v1487_v33, 4  ;;  %v1517_v40 = vshll.u32 %v1363_v38, 16  ;;  %v6504_v53 = vcombine.low %v900_v60, %v900_v60  ;;  %7328 = vmatpush3.bf16.msra.mxu1 %v8028_v24 }
  0x62   : > { %v3341_v41 = vshll.u32 %v8595_v39, 16  ;;  %v3305_v43 = vrot.slane %v3304_v34, 4  ;;  %v3315_v45 = vrot.slane %v3314_v36, 4  ;;  %v1336_v46 = vld [vmem:[#allocation2 + $0x3c] sm:$0xf]  ;;  %v6505_v56 = vcombine.high %v900_v60, %v900_v60 }
  0x63   : > { %v1337_v48 = vld [vmem:[#allocation2 + $0x40] sm:$0xf]  ;;  %v1481_v57 = vrot.slane %v1480_v11, 4  ;;  %v1490_v58 = vor.u32 %v1489_v2, %v1485_v32  ;;  %v1498_v61 = vshrl.u32 %v1336_v46, 16  ;;  %v1501_v0 = vshll.u32 %v1336_v46, 16  ;;  %7520 = vmatpush3.bf16.msra.mxu0 %v8021_v28 }
  0x64   : > { %v3310_v62 = vsel %vm8388_vm5, %v3305_v43, %v3309_v25  ;;  %v3320_v1 = vsel %vm8388_vm5, %v3315_v45, %v3319_v15  ;;  %v1507_v4 = vshll.u32 %v1337_v48, 16  ;;  %v1511_v7 = vshrl.u32 %v1337_v48, 16  ;;  %v3189_v55 = vld [vmem:[#allocation2 + $0x3c] sm:$0xf]  ;;  %v8612_v13 = vld [vmem:[#allocation2 + $0x40] sm:$0xf]  ;;  %7553 = vmatprep.subr.bf16.mxu0 %v8603_v42 }
  0x65   : > { %1146 = vst [vmem:[#allocation2 + $0x48] sm:$0xf] %v6504_v53  ;;  %1147 = vst [vmem:[#allocation2 + $0x4c] sm:$0xf] %v6505_v56  ;;  %v6655_v16 = vcombine.low %v3310_v62, %v3320_v1  ;;  %v1486_v59 = vsel %vm8388_vm5, %v1481_v57, %v1485_v32  ;;  %v1491_v6 = vrot.slane %v1490_v58, 4  ;;  %v1500_v17 = vrot.slane %v1498_v61, 4 }
  0x66   : > { %v1503_v18 = vrot.slane %v1501_v0, 5  ;;  %v1509_v49 = vrot.slane %v1507_v4, 5  ;;  %v1513_v15 = vrot.slane %v1511_v7, 4  ;;  %v1519_v20 = vrot.slane %v1517_v40, 5  ;;  %v8617_v37 = vld [vmem:[#allocation2 + $0x50] sm:$0x1] }
  0x67   : > { %7478 = vmatmul.mubr.bf16.gmra.mrb[4].mxu0 %v6655_v16  ;;  %v1496_v28 = vsel %vm8388_vm5, %v1491_v6, %v1495_v29  ;;  %v3322_v23 = vshrl.u32 %v3189_v55, 16  ;;  %v3325_v25 = vshll.u32 %v3189_v55, 16  ;;  %v3331_v22 = vshll.u32 %v8612_v13, 16  ;;  %v8629_v48 = vld [vmem:[%s10123_s3] ss:$0 sm:$0xff] }
  0x68   : > { %v6544_v30 = vcombine.low %v1486_v59, %v1496_v28  ;;  %v1504_v31 = vor.u32 %v1503_v18, %v1500_v17  ;;  %v1514_v32 = vor.u32 %v1513_v15, %v1509_v49  ;;  %v3335_v33 = vshrl.u32 %v8612_v13, 16  ;;  %v8032_v62 = vld [vmem:[%s10125_s5 + $0x80] sm:$0xff]   ;;  %v1364_v55 = vld [vmem:[#allocation2 + $0x50] sm:$0x1] }
  0x69   : > { %v3324_v34 = vrot.slane %v3322_v23, 4  ;;  %v3327_v36 = vrot.slane %v3325_v25, 5  ;;  %v3333_v38 = vrot.slane %v3331_v22, 5  ;;  %v3343_v60 = vrot.slane %v3341_v41, 5  ;;  %v8637_v41 = vld [vmem:[%s10124_s4] ss:$0 sm:$0xff]  ;;  %7361 = vmatprep.subr.bf16.mxu1 %v8032_v62 }
  0x6a   : > { %7289 = vmatprep.mubr.bf16.mxu1 %v6544_v30  ;;  %v1505_v11 = vrot.slane %v1504_v31, 4  ;;  %v1515_v2 = vrot.slane %v1514_v32, 4  ;;  %v3337_v40 = vrot.slane %v3335_v33, 4  ;;  %v3365_v43 = vshll.u32 %v8617_v37, 16 }
  0x6b   : > { %v3328_v29 = vor.u32 %v3327_v36, %v3324_v34  ;;  %v634_v53 = vmul.f32 %v8629_v48, %v6910_v63  ;;  %v8641_v56 = vadd.f32 %v8637_v41, %v8579_v8  ;;  %v6914_v57 = vunpack.c.h.bf16 %v8562_v54 }
  0x6c   : > { %v3192_v45 = vld [vmem:[#allocation2 + $0x48] sm:$0xf]  ;;  %v8624_v46 = vld [vmem:[#allocation2 + $0x4c] sm:$0xf]  ;;  %v1510_v58 = vsel %vm8388_vm5, %v1505_v11, %v1509_v49  ;;  %v1520_v61 = vsel %vm8388_vm5, %v1515_v2, %v1519_v20  ;;  %v3338_v35 = vor.u32 %v3337_v40, %v3333_v38  ;;  %v3367_v17 = vrot.slane %v3365_v43, 5 }
  0x6d   : > { %v3346_v0 = vshrl.u32 %v3192_v45, 16  ;;  %v1338_v63 = vld [vmem:[#allocation2 + $0x48] sm:$0xf]  ;;  %v1339_v24 = vld [vmem:[#allocation2 + $0x4c] sm:$0xf]  ;;  %v6545_v1 = vcombine.low %v1510_v58, %v1520_v61  ;;  %v3329_v4 = vrot.slane %v3328_v29, 4 }
  0x6e   : > { %v3349_v8 = vshll.u32 %v3192_v45, 16  ;;  %v3355_v7 = vshll.u32 %v8624_v46, 16  ;;  %v3339_v16 = vrot.slane %v3338_v35, 4  ;;  %v3359_v6 = vshrl.u32 %v8624_v46, 16  ;;  %v3914_v35 = vld [vmem:[#allocation2 + $0xc] sm:$0xe] }
  0x6f   : > { %v3348_v59 = vrot.slane %v3346_v0, 4  ;;  %7290 = vmatmul.mubr.bf16.gmra.mrb[8].mxu1 %v6545_v1  ;;  %v3334_v18 = vsel %vm8388_vm5, %v3329_v4, %v3333_v38  ;;  %v1522_v20 = vshrl.u32 %v1338_v63, 16  ;;  %v1525_v25 = vshll.u32 %v1338_v63, 16 }
  0x70   : > { %v3351_v49 = vrot.slane %v3349_v8, 5  ;;  %v3357_v15 = vrot.slane %v3355_v7, 5  ;;  %v3344_v28 = vsel %vm8388_vm5, %v3339_v16, %v3343_v60  ;;  %v3361_v23 = vrot.slane %v3359_v6, 4 }
  0x71   : > { %v1531_v22 = vshll.u32 %v1339_v24, 16  ;;  %v6656_v30 = vcombine.low %v3334_v18, %v3344_v28  ;;  %v1524_v32 = vrot.slane %v1522_v20, 4  ;;  %v1535_v33 = vshrl.u32 %v1339_v24, 16 }
  0x72   : > { %v3352_v31 = vor.u32 %v3351_v49, %v3348_v59  ;;  %v3362_v34 = vor.u32 %v3361_v23, %v3357_v15  ;;  %v1527_v36 = vrot.slane %v1525_v25, 5  ;;  %v1541_v2 = vshll.u32 %v1364_v55, 16  ;;  %v3915_v59 = vld [vmem:[#allocation2 + $0x18] sm:$0xe] }
  0x73   : > { %v1533_v11 = vrot.slane %v1531_v22, 5  ;;  %7481 = vmatprep.mubr.bf16.mxu0 %v6656_v30  ;;  %v1537_v38 = vrot.slane %v1535_v33, 4  ;;  %v779_v43 = vshrl.u32 %v8573_v5, 16  ;;  %v782_v29 = vshll.u32 %v8573_v5, 16  ;;  %v7028_v22 = vld [vmem:[%s8312_s28 + $0x50] sm:$0xff]  }
  0x74   : > { %v3353_v40 = vrot.slane %v3352_v31, 4  ;;  %v3363_v45 = vrot.slane %v3362_v34, 4  ;;  %v1528_v60 = vor.u32 %v1527_v36, %v1524_v32  ;;  %v1543_v58 = vrot.slane %v1541_v2, 5 }
  0x75   : > { %v695_v61 = vmax.f32 %v8555_v51, 0.0  ;;  %v1538_v63 = vor.u32 %v1537_v38, %v1533_v11  ;;  %v781_v24 = vrot.slane %v779_v43, 7  ;;  %v696_v62 = vmax.f32 %v8558_v52, 0.0 }
  0x76   : > { %v3358_v0 = vsel %vm8388_vm5, %v3353_v40, %v3357_v15  ;;  %v3368_v1 = vsel %vm8388_vm5, %v3363_v45, %v3367_v17  ;;  %v1529_v4 = vrot.slane %v1528_v60, 4  ;;  %v666_v8 = vadd.f32 %v8637_v41, %v634_v53 }
  0x77   : > { %v697_v5 = vmax.f32 %v8641_v56, 0.0  ;;  %v6657_v7 = vcombine.low %v3358_v0, %v3368_v1  ;;  %v1539_v55 = vrot.slane %v1538_v63, 4  ;;  %v784_v16 = vor.u32 %v782_v29, %v781_v24  ;;  %v8715_v0 = vld [vmem:[%s8312_s28 + $0x58] sm:$0xff]  }
  0x78   : > { %v919_v51 = vsel %vm8321_vm2, %v781_v24, 0  ;;  %v1534_v6 = vsel %vm8388_vm5, %v1529_v4, %v1533_v11  ;;  %v720_v18 = vpack.c.bf16 %v696_v62, %v695_v61  ;;  %v698_v49 = vmax.f32 %v666_v8, 0.0 }
  0x79   : > { %v6509_v52 = vcombine.low %v919_v51, %v919_v51  ;;  %7482 = vmatmul.mubr.bf16.gmra.mrb[8].mxu0 %v6657_v7  ;;  %v1544_v53 = vsel %vm8388_vm5, %v1539_v55, %v1543_v58  ;;  %v901_v56 = vsel %vm8321_vm2, 0, %v784_v16  ;;  %v6676_v17 = vrot.slane %v3914_v35, 9 }
  0x7a   : > { %v3980_v15 = vrot.slane %v8439_v27, 5  ;;  %v6546_v20 = vcombine.low %v1534_v6, %v1544_v53  ;;  %v6507_v28 = vcombine.low %v901_v56, %v901_v56  ;;  %v6508_v23 = vcombine.high %v901_v56, %v901_v56 }
  0x7b   : > { %1151 = vst [vmem:[#allocation2 + $0x5c] sm:$0x1] %v6509_v52  ;;  %v786_v25 = vshrl.u32 %v720_v18, 16  ;;  %v789_v30 = vshll.u32 %v720_v18, 16  ;;  %v721_v31 = vpack.c.bf16 %v698_v49, %v697_v5  ;;  %v6677_v36 = vrot.slane %v3915_v59, 9 }
  0x7c   : > { %v8679_v32 = vsel %vm8548_vm8, %v6676_v17, %v3980_v15  ;;  %v3982_v33 = vrot.slane %v3980_v15, 4  ;;  %7293 = vmatprep.mubr.bf16.mxu1 %v6546_v20  ;;  %1149 = vst [vmem:[#allocation2 + $0x54] sm:$0xf] %v6507_v28  ;;  %1150 = vst [vmem:[#allocation2 + $0x58] sm:$0xf] %v6508_v23  ;;  %v635_v27 = vmul.f32 %v8629_v48, %v6913_v12  ;;  %v6917_v43 = vunpack.c.l.bf16 %v7028_v22 }
  0x7d   : > { %v788_v34 = vrot.slane %v786_v25, 7  ;;  %v636_v11 = vmul.f32 %v8629_v48, %v6914_v57  ;;  %v793_v2 = vshrl.u32 %v721_v31, 16  ;;  %v796_v40 = vshll.u32 %v721_v31, 16 }
  0x7e   : > { %v8691_v38 = vsel %vm8548_vm8, %v3982_v33, %v3983_v10  ;;  %v8701_v54 = vsel %vm8548_vm8, %v6677_v36, %v3987_v26  ;;  %v8706_v60 = vadd.f32 %v8637_v41, %v635_v27  ;;  %v6918_v35 = vunpack.c.h.bf16 %v7028_v22 }
  0x7f   : > { %v791_v29 = vor.u32 %v789_v30, %v788_v34  ;;  %v920_v45 = vsel %vm8321_vm2, %v788_v34, 0  ;;  %v6692_v12 = vcombine.low %v8679_v32, %v8691_v38  ;;  %v795_v3 = vrot.slane %v793_v2, 7 }
  0x80   : > { %v6512_v57 = vcombine.low %v920_v45, %v920_v45  ;;  %v6693_v10 = vcombine.low %v8701_v54, %v8586_v9  ;;  %v8711_v61 = vadd.f32 %v8637_v41, %v636_v11  ;;  %v637_v44 = vmul.f32 %v8629_v48, %v6917_v43 }
  0x81   : > { %v902_v58 = vsel %vm8321_vm2, 0, %v791_v29  ;;  %v798_v1 = vor.u32 %v796_v40, %v795_v3  ;;  %v921_v4 = vsel %vm8321_vm2, %v795_v3, 0  ;;  %v699_v55 = vmax.f32 %v8706_v60, 0.0  ;;  %v8117_v60 = vld [vmem:[#allocation2 + $0x2c] sm:$0x1] }
  0x82   : > { %v1365_v26 = vld [vmem:[#allocation2 + $0x5c] sm:$0x1]  ;;  %v6510_v24 = vcombine.low %v902_v58, %v902_v58  ;;  %v6511_v62 = vcombine.high %v902_v58, %v902_v58  ;;  %1154 = vst [vmem:[#allocation2 + $0x68] sm:$0x1] %v6512_v57  ;;  %v6515_v7 = vcombine.low %v921_v4, %v921_v4  ;;  %v8724_v6 = vmul.f32 %v8629_v48, %v6918_v35 }
  0x83   : > { %v8717_v63 = vld [vmem:[#allocation2 + $0x5c] sm:$0x1]  ;;  %v1565_v8 = vshll.u32 %v1365_v26, 16  ;;  %v1340_v16 = vld [vmem:[#allocation2 + $0x54] sm:$0xf]  ;;  %v8727_v52 = vadd.f32 %v8637_v41, %v637_v44  ;;  %v6921_v18 = vunpack.c.l.bf16 %v8715_v0  ;;  %v6922_v49 = vunpack.c.h.bf16 %v8715_v0 }
  0x84   : > { %v3389_v5 = vshll.u32 %v8717_v63, 16  ;;  %v1341_v51 = vld [vmem:[#allocation2 + $0x58] sm:$0xf]  ;;  %v3195_v59 = vld [vmem:[#allocation2 + $0x54] sm:$0xf]  ;;  %v1546_v53 = vshrl.u32 %v1340_v16, 16 }
  0x85   : > { %1152 = vst [vmem:[#allocation2 + $0x60] sm:$0xf] %v6510_v24  ;;  %1153 = vst [vmem:[#allocation2 + $0x64] sm:$0xf] %v6511_v62  ;;  %v1549_v56 = vshll.u32 %v1340_v16, 16  ;;  %v1555_v17 = vshll.u32 %v1341_v51, 16 }
  0x86   : > { %v1559_v15 = vshrl.u32 %v1341_v51, 16  ;;  %v8731_v20 = vld [vmem:[#allocation2 + $0x58] sm:$0xf]  ;;  %1157 = vst [vmem:[#allocation2 + $0x74] sm:$0x1] %v6515_v7  ;;  %v1567_v28 = vrot.slane %v1565_v8, 5 }
  0x87   : > { %v3370_v23 = vshrl.u32 %v3195_v59, 16  ;;  %v3373_v25 = vshll.u32 %v3195_v59, 16  ;;  %v3379_v22 = vshll.u32 %v8731_v20, 16  ;;  %v1548_v30 = vrot.slane %v1546_v53, 4 }
  0x88   : > { %v1551_v31 = vrot.slane %v1549_v56, 5  ;;  %v1557_v33 = vrot.slane %v1555_v17, 5  ;;  %v1561_v34 = vrot.slane %v1559_v15, 4  ;;  %v3383_v2 = vshrl.u32 %v8731_v20, 16 }
  0x89   : > { %v3372_v36 = vrot.slane %v3370_v23, 4  ;;  %v3375_v27 = vrot.slane %v3373_v25, 5  ;;  %v3381_v11 = vrot.slane %v3379_v22, 5  ;;  %v3391_v29 = vrot.slane %v3389_v5, 5  ;;  %v8735_v45 = vld [vmem:[#allocation2 + $0x68] sm:$0x1] }
  0x8a   : > { %v1552_v40 = vor.u32 %v1551_v31, %v1548_v30  ;;  %v1562_v43 = vor.u32 %v1561_v34, %v1557_v33  ;;  %v1366_v57 = vld [vmem:[#allocation2 + $0x68] sm:$0x1]  ;;  %v903_v3 = vsel %vm8321_vm2, 0, %v798_v1  ;;  %v3385_v35 = vrot.slane %v3383_v2, 4 }
  0x8b   : > { %v3376_v58 = vor.u32 %v3375_v27, %v3372_v36  ;;  %v3413_v44 = vshll.u32 %v8735_v45, 16  ;;  %v1589_v26 = vshll.u32 %v1366_v57, 16  ;;  %v6513_v7 = vcombine.low %v903_v3, %v903_v3 }
  0x8c   : > { %v1553_v24 = vrot.slane %v1552_v40, 4  ;;  %v1563_v62 = vrot.slane %v1562_v43, 4  ;;  %v3198_v4 = vld [vmem:[#allocation2 + $0x60] sm:$0xf]  ;;  %v8740_v8 = vld [vmem:[#allocation2 + $0x64] sm:$0xf]  ;;  %v6514_v16 = vcombine.high %v903_v3, %v903_v3  ;;  %v3386_v5 = vor.u32 %v3385_v35, %v3381_v11 }
  0x8d   : > { %v3377_v51 = vrot.slane %v3376_v58, 4  ;;  %v3394_v59 = vshrl.u32 %v3198_v4, 16  ;;  %v3397_v53 = vshll.u32 %v3198_v4, 16  ;;  %v3403_v17 = vshll.u32 %v8740_v8, 16  ;;  %v1342_v23 = vld [vmem:[#allocation2 + $0x60] sm:$0xf] }
  0x8e   : > { %v1558_v56 = vsel %vm8388_vm5, %v1553_v24, %v1557_v33  ;;  %v1568_v1 = vsel %vm8388_vm5, %v1563_v62, %v1567_v28  ;;  %v3407_v15 = vshrl.u32 %v8740_v8, 16  ;;  %v1343_v25 = vld [vmem:[#allocation2 + $0x64] sm:$0xf]  ;;  %1155 = vst [vmem:[#allocation2 + $0x6c] sm:$0xf] %v6513_v7  ;;  %v3387_v31 = vrot.slane %v3386_v5, 4 }
  0x8f   : > { %1156 = vst [vmem:[#allocation2 + $0x70] sm:$0xf] %v6514_v16  ;;  %v6547_v22 = vcombine.low %v1558_v56, %v1568_v1  ;;  %v3382_v30 = vsel %vm8388_vm5, %v3377_v51, %v3381_v11  ;;  %v3396_v34 = vrot.slane %v3394_v59, 4  ;;  %v3399_v36 = vrot.slane %v3397_v53, 5  ;;  %v1367_v40 = vld [vmem:[#allocation2 + $0x74] sm:$0x1] }
  0x90   : > { %v3405_v27 = vrot.slane %v3403_v17, 5  ;;  %v3409_v33 = vrot.slane %v3407_v15, 4  ;;  %v3415_v2 = vrot.slane %v3413_v44, 5  ;;  %v3392_v28 = vsel %vm8388_vm5, %v3387_v31, %v3391_v29 }
  0x91   : > { %7294 = vmatmul.mubr.bf16.gmra.mrb[12].mxu1 %v6547_v22  ;;  %v1570_v43 = vshrl.u32 %v1342_v23, 16  ;;  %v1573_v57 = vshll.u32 %v1342_v23, 16  ;;  %v1579_v3 = vshll.u32 %v1343_v25, 16  ;;  %v6658_v58 = vcombine.low %v3382_v30, %v3392_v28 }
  0x92   : > { %v3400_v35 = vor.u32 %v3399_v36, %v3396_v34  ;;  %v3410_v24 = vor.u32 %v3409_v33, %v3405_v27  ;;  %v1583_v62 = vshrl.u32 %v1343_v25, 16  ;;  %v1591_v16 = vrot.slane %v1589_v26, 5  ;;  %v3916_v33 = vld [vmem:[#allocation2 + $0x24] sm:$0xe] }
  0x93   : > { %v1572_v4 = vrot.slane %v1570_v43, 4  ;;  %v1575_v11 = vrot.slane %v1573_v57, 5  ;;  %v1581_v7 = vrot.slane %v1579_v3, 5  ;;  %7485 = vmatprep.mubr.bf16.mxu0 %v6658_v58  ;;  %v1613_v59 = vshll.u32 %v1367_v40, 16 }
  0x94   : > { %v3401_v51 = vrot.slane %v3400_v35, 4  ;;  %v3411_v5 = vrot.slane %v3410_v24, 4  ;;  %v1585_v44 = vrot.slane %v1583_v62, 4  ;;  %v700_v29 = vmax.f32 %v8711_v61, 0.0 }
  0x95   : > { %v1576_v53 = vor.u32 %v1575_v11, %v1572_v4  ;;  %v1344_v56 = vld [vmem:[#allocation2 + $0x6c] sm:$0xf]  ;;  %v670_v17 = vadd.f32 %v8637_v41, %v8724_v6  ;;  %v701_v15 = vmax.f32 %v8727_v52, 0.0  ;;  %v1615_v43 = vrot.slane %v1613_v59, 5  ;;  %v3917_v6 = vld [vmem:[#allocation2 + $0x30] sm:$0xe] }
  0x96   : > { %v1345_v1 = vld [vmem:[#allocation2 + $0x70] sm:$0xf]  ;;  %v3406_v23 = vsel %vm8388_vm5, %v3401_v51, %v3405_v27  ;;  %v3416_v26 = vsel %vm8388_vm5, %v3411_v5, %v3415_v2  ;;  %v1586_v25 = vor.u32 %v1585_v44, %v1581_v7  ;;  %v1594_v22 = vshrl.u32 %v1344_v56, 16  ;;  %v8116_v44 = vld [vmem:[#allocation2 + $0x28] sm:$0xf] }
  0x97   : > { %v6659_v30 = vcombine.low %v3406_v23, %v3416_v26  ;;  %v1577_v31 = vrot.slane %v1576_v53, 4  ;;  %v1597_v34 = vshll.u32 %v1344_v56, 16  ;;  %v1603_v36 = vshll.u32 %v1345_v1, 16 }
  0x98   : > { %v1587_v40 = vrot.slane %v1586_v25, 4  ;;  %v1596_v61 = vrot.slane %v1594_v22, 4  ;;  %v1607_v28 = vshrl.u32 %v1345_v1, 16  ;;  %v722_v2 = vpack.c.bf16 %v700_v29, %v699_v55 }
  0x99   : > { %7486 = vmatmul.mubr.bf16.gmra.mrb[12].mxu0 %v6659_v30  ;;  %v1582_v52 = vsel %vm8388_vm5, %v1577_v31, %v1581_v7  ;;  %v1599_v27 = vrot.slane %v1597_v34, 5  ;;  %v1605_v57 = vrot.slane %v1603_v36, 5  ;;  %v702_v35 = vmax.f32 %v670_v17, 0.0  ;;  %v8025_v17 = vld [vmem:[%s10125_s5 + $0x188] sm:$0xff]   ;;  %v7030_v34 = vld [vmem:[%s8312_s28 + $0x60] sm:$0xff]  }
  0x9a   : > { %v1592_v3 = vsel %vm8388_vm5, %v1587_v40, %v1591_v16  ;;  %v1609_v58 = vrot.slane %v1607_v28, 4  ;;  %7521 = vmatprep.mubr.bf16.mxu0 %v6692_v12  ;;  %v6678_v24 = vrot.slane %v3916_v33, 9  ;;  %v800_v11 = vshrl.u32 %v722_v2, 16 }
  0x9b   : > { %v6548_v62 = vcombine.low %v1582_v52, %v1592_v3  ;;  %v1600_v4 = vor.u32 %v1599_v27, %v1596_v61  ;;  %v803_v51 = vshll.u32 %v722_v2, 16  ;;  %v723_v5 = vpack.c.bf16 %v702_v35, %v701_v15  ;;  %v3918_v27 = vld [vmem:[#allocation2 + $0x3c] sm:$0xe] }
  0x9c   : > { %v1610_v7 = vor.u32 %v1609_v58, %v1605_v57  ;;  %v3994_v59 = vrot.slane %v8116_v44, 5  ;;  %v3997_v55 = vrot.slane %v8117_v60, 5  ;;  %v802_v16 = vrot.slane %v800_v11, 7 }
  0x9d   : > { %7297 = vmatprep.mubr.bf16.mxu1 %v6548_v62  ;;  %v1601_v53 = vrot.slane %v1600_v4, 4  ;;  %v6679_v56 = vrot.slane %v3917_v6, 9  ;;  %v4001_v32 = vrot.slane %v8575_v19, 5  ;;  %v807_v12 = vshrl.u32 %v723_v5, 16  ;;  %v3919_v4 = vld [vmem:[#allocation2 + $0x48] sm:$0xe] }
  0x9e   : > { %v1611_v38 = vrot.slane %v1610_v7, 4  ;;  %v810_v1 = vshll.u32 %v723_v5, 16  ;;  %v3995_v29 = vsel %vm8548_vm8, %v6678_v24, %v3994_v59  ;;  %v805_v23 = vor.u32 %v803_v51, %v802_v16  ;;  %v8029_v7 = vld [vmem:[%s10125_s5 + $0x198] sm:$0xff]  }
  0x9f   : > { %v1606_v15 = vsel %vm8388_vm5, %v1601_v53, %v1605_v57  ;;  %v922_v26 = vsel %vm8321_vm2, %v802_v16, 0  ;;  %v3996_v25 = vrot.slane %v3994_v59, 4  ;;  %v809_v30 = vrot.slane %v807_v12, 7 }
  0xa0   : > { %v1616_v19 = vsel %vm8388_vm5, %v1611_v38, %v1615_v43  ;;  %v6518_v22 = vcombine.low %v922_v26, %v922_v26  ;;  %v4002_v31 = vsel %vm8548_vm8, %v6679_v56, %v4001_v32  ;;  %v904_v33 = vsel %vm8321_vm2, 0, %v805_v23 }
  0xa1   : > { %v6549_v36 = vcombine.low %v1606_v15, %v1616_v19  ;;  %7522 = vmatmul.mubr.bf16.vlgmr.msra.gmra.mrb[0].mxu0 %v6693_v10  ;;  %v3998_v40 = vsel %vm8548_vm8, %v3996_v25, %v3997_v55  ;;  %v4003_v61 = vrot.slane %v4001_v32, 4  ;;  %v6516_v28 = vcombine.low %v904_v33, %v904_v33  ;;  %v8820_v32 = vld [vmem:[%s8312_s28 + $0x68] sm:$0xff]  }
  0xa2   : > { %7554 = vmatpush3.bf16.msra.mxu0 %v8603_v42  ;;  %v6517_v43 = vcombine.high %v904_v33, %v904_v33  ;;  %1160 = vst [vmem:[#allocation2 + $0x80] sm:$0x1] %v6518_v22  ;;  %v812_v6 = vor.u32 %v810_v1, %v809_v30  ;;  %v923_v52 = vsel %vm8321_vm2, %v809_v30, 0  ;;  %v6694_v54 = vcombine.low %v3995_v29, %v3998_v40  ;;  %v8027_v42 = vld [vmem:[%s10125_s5 + $0x190] sm:$0xff]  }
  0xa3   : > { %7298 = vmatmul.mubr.bf16.gmra.mrb[16].mxu1 %v6549_v36  ;;  %v6521_v9 = vcombine.low %v923_v52, %v923_v52  ;;  %7555 = vmatprep.subr.bf16.mxu0 %v8025_v17  ;;  %v4004_v10 = vrot.slane %v8564_v50, 5  ;;  %v639_v57 = vmul.f32 %v8629_v48, %v6921_v18  ;;  %1158 = vst [vmem:[#allocation2 + $0x78] sm:$0xf] %v6516_v28  ;;  %v6925_v58 = vunpack.c.l.bf16 %v7030_v34 }
  0xa4   : > { %1159 = vst [vmem:[#allocation2 + $0x7c] sm:$0xf] %v6517_v43  ;;  %v905_v2 = vsel %vm8321_vm2, 0, %v812_v6  ;;  %v640_v3 = vmul.f32 %v8629_v48, %v6922_v49  ;;  %v6926_v35 = vunpack.c.h.bf16 %v7030_v34  ;;  %7525 = vmatprep.mubr.bf16.mxu0 %v6694_v54  ;;  %v6680_v44 = vrot.slane %v3918_v27, 9  ;;  %v8037_v27 = vld [vmem:[%s10125_s5 + $0x1a8] sm:$0xff]  }
  0xa5   : > { %v6519_v50 = vcombine.low %v905_v2, %v905_v2  ;;  %v6520_v24 = vcombine.high %v905_v2, %v905_v2  ;;  %1163 = vst [vmem:[#allocation2 + $0x8c] sm:$0x1] %v6521_v9  ;;  %v4005_v18 = vsel %vm8548_vm8, %v4003_v61, %v4004_v10  ;;  %v671_v62 = vadd.f32 %v8637_v41, %v639_v57 }
  0xa6   : > { %v6695_v11 = vcombine.low %v4002_v31, %v4005_v18  ;;  %7556 = vmatpush3.bf16.msra.mxu0 %v8025_v17  ;;  %v672_v51 = vadd.f32 %v8637_v41, %v640_v3  ;;  %v641_v0 = vmul.f32 %v8629_v48, %v6925_v58  ;;  %v642_v49 = vmul.f32 %v8629_v48, %v6926_v35  ;;  %v8033_v31 = vld [vmem:[%s10125_s5 + $0x1a0] sm:$0xff]  }
  0xa7   : > { %1161 = vst [vmem:[#allocation2 + $0x84] sm:$0xf] %v6519_v50  ;;  %1162 = vst [vmem:[#allocation2 + $0x88] sm:$0xf] %v6520_v24  ;;  %v703_v5 = vmax.f32 %v671_v62, 0.0  ;;  %v4008_v59 = vrot.slane %v8612_v13, 5  ;;  %7557 = vmatprep.subr.bf16.mxu0 %v8027_v42  ;;  %v6929_v30 = vunpack.c.l.bf16 %v8820_v32 }
  0xa8   : > { %v4011_v60 = vrot.slane %v8595_v39, 5  ;;  %v704_v55 = vmax.f32 %v672_v51, 0.0  ;;  %v673_v53 = vadd.f32 %v8637_v41, %v641_v0  ;;  %v674_v16 = vadd.f32 %v8637_v41, %v642_v49 }
  0xa9   : > { %v6681_v56 = vrot.slane %v3919_v4, 9  ;;  %v1368_v38 = vld [vmem:[#allocation2 + $0x80] sm:$0x1]  ;;  %7526 = vmatmul.mubr.bf16.gmra.mrb[4].mxu0 %v6695_v11  ;;  %v8824_v12 = vsel %vm8548_vm8, %v6680_v44, %v4008_v59  ;;  %v4010_v1 = vrot.slane %v4008_v59, 4  ;;  %v4015_v13 = vrot.slane %v8624_v46, 5 }
  0xaa   : > { %v4018_v39 = vrot.slane %v8617_v37, 5  ;;  %v1637_v29 = vshll.u32 %v1368_v38, 16  ;;  %v724_v17 = vpack.c.bf16 %v704_v55, %v703_v5  ;;  %v705_v15 = vmax.f32 %v673_v53, 0.0  ;;  %7558 = vmatpush3.bf16.msra.mxu0 %v8027_v42  ;;  %v8828_v26 = vld [vmem:[#allocation2 + $0x78] sm:$0xf] }
  0xab   : > { %v706_v23 = vmax.f32 %v674_v16, 0.0  ;;  %v8830_v25 = vld [vmem:[#allocation2 + $0x7c] sm:$0xf]  ;;  %v8834_v19 = vsel %vm8548_vm8, %v4010_v1, %v4011_v60  ;;  %v8838_v22 = vsel %vm8548_vm8, %v6681_v56, %v4015_v13  ;;  %v4017_v46 = vrot.slane %v4015_v13, 4  ;;  %7559 = vmatprep.subr.bf16.mxu0 %v8029_v7  ;;  %v8041_v56 = vld [vmem:[%s10125_s5 + $0x1b0] sm:$0xff]  }
  0xac   : > { %v1618_v34 = vshrl.u32 %v8828_v26, 16  ;;  %v1621_v36 = vshll.u32 %v8828_v26, 16  ;;  %v1627_v33 = vshll.u32 %v8830_v25, 16  ;;  %v1631_v40 = vshrl.u32 %v8830_v25, 16  ;;  %v1369_v61 = vld [vmem:[#allocation2 + $0x8c] sm:$0x1] }
  0xad   : > { %v1639_v28 = vrot.slane %v1637_v29, 5  ;;  %v1661_v43 = vshll.u32 %v1369_v61, 16  ;;  %v814_v6 = vshrl.u32 %v724_v17, 16  ;;  %v817_v52 = vshll.u32 %v724_v17, 16 }
  0xae   : > { %v1620_v9 = vrot.slane %v1618_v34, 4  ;;  %v1623_v54 = vrot.slane %v1621_v36, 5  ;;  %v1629_v10 = vrot.slane %v1627_v33, 5  ;;  %v1633_v57 = vrot.slane %v1631_v40, 4  ;;  %v8851_v42 = vld [vmem:[#allocation2 + $0x84] sm:$0xf]  ;;  %7560 = vmatpush3.bf16.msra.mxu0 %v8029_v7 }
  0xaf   : > { %v8853_v2 = vld [vmem:[#allocation2 + $0x88] sm:$0xf]  ;;  %v1642_v3 = vshrl.u32 %v8851_v42, 16  ;;  %v1645_v58 = vshll.u32 %v8851_v42, 16  ;;  %v1663_v35 = vrot.slane %v1661_v43, 5  ;;  %v816_v50 = vrot.slane %v814_v6, 7  ;;  %7561 = vmatprep.subr.bf16.mxu0 %v8033_v31 }
  0xb0   : > { %v1624_v24 = vor.u32 %v1623_v54, %v1620_v9  ;;  %v1634_v18 = vor.u32 %v1633_v57, %v1629_v10  ;;  %v1651_v62 = vshll.u32 %v8853_v2, 16  ;;  %v1655_v4 = vshrl.u32 %v8853_v2, 16  ;;  %v7032_v33 = vld [vmem:[%s8312_s28 + $0x70] sm:$0xff]  }
  0xb1   : > { %v1644_v11 = vrot.slane %v1642_v3, 4  ;;  %v1647_v51 = vrot.slane %v1645_v58, 5  ;;  %v819_v0 = vor.u32 %v817_v52, %v816_v50  ;;  %v924_v49 = vsel %vm8321_vm2, %v816_v50, 0 }
  0xb2   : > { %v1625_v7 = vrot.slane %v1624_v24, 4  ;;  %v1635_v5 = vrot.slane %v1634_v18, 4  ;;  %v1653_v44 = vrot.slane %v1651_v62, 5  ;;  %v1657_v59 = vrot.slane %v1655_v4, 4  ;;  %7562 = vmatpush3.bf16.msra.mxu0 %v8033_v31  ;;  %v8902_v18 = vld [vmem:[%s10125_s5 + $0x1c0] sm:$0xff]  }
  0xb3   : > { %v1648_v60 = vor.u32 %v1647_v51, %v1644_v11  ;;  %v906_v55 = vsel %vm8321_vm2, 0, %v819_v0  ;;  %v6524_v53 = vcombine.low %v924_v49, %v924_v49  ;;  %v725_v16 = vpack.c.bf16 %v706_v23, %v705_v15  ;;  %7563 = vmatprep.subr.bf16.mxu0 %v8037_v27 }
  0xb4   : > { %v1630_v38 = vsel %vm8388_vm5, %v1625_v7, %v1629_v10  ;;  %v1640_v1 = vsel %vm8388_vm5, %v1635_v5, %v1639_v28  ;;  %v1658_v13 = vor.u32 %v1657_v59, %v1653_v44  ;;  %v6522_v29 = vcombine.low %v906_v55, %v906_v55 }
  0xb5   : > { %v6550_v17 = vcombine.low %v1630_v38, %v1640_v1  ;;  %v1649_v31 = vrot.slane %v1648_v60, 4  ;;  %v6523_v34 = vcombine.high %v906_v55, %v906_v55  ;;  %1166 = vst [vmem:[#allocation2 + $0x98] sm:$0x1] %v6524_v53  ;;  %v821_v36 = vshrl.u32 %v725_v16, 16  ;;  %v3921_v1 = vld [vmem:[#allocation2 + $0x60] sm:$0xe] }
  0xb6   : > { %v1659_v15 = vrot.slane %v1658_v13, 4  ;;  %1164 = vst [vmem:[#allocation2 + $0x90] sm:$0xf] %v6522_v29  ;;  %v824_v23 = vshll.u32 %v725_v16, 16  ;;  %v6696_v40 = vcombine.low %v8824_v12, %v8834_v19  ;;  %v4019_v61 = vsel %vm8548_vm8, %v4017_v46, %v4018_v39  ;;  %7564 = vmatpush3.bf16.msra.mxu0 %v8037_v27  ;;  %v8045_v12 = vld [vmem:[%s10125_s5 + $0x1b8] sm:$0xff]  }
  0xb7   : > { %7301 = vmatprep.mubr.bf16.mxu1 %v6550_v17  ;;  %v1654_v28 = vsel %vm8388_vm5, %v1649_v31, %v1653_v44  ;;  %1165 = vst [vmem:[#allocation2 + $0x94] sm:$0xf] %v6523_v34  ;;  %v823_v43 = vrot.slane %v821_v36, 7  ;;  %v6697_v6 = vcombine.low %v8838_v22, %v4019_v61  ;;  %v6930_v52 = vunpack.c.h.bf16 %v8820_v32  ;;  %7565 = vmatprep.subr.bf16.mxu0 %v8041_v56  ;;  %v3920_v27 = vld [vmem:[#allocation2 + $0x54] sm:$0xe] }
  0xb8   : > { %v1664_v37 = vsel %vm8388_vm5, %v1659_v15, %v1663_v35  ;;  %7529 = vmatprep.mubr.bf16.mxu0 %v6696_v40  ;;  %v643_v39 = vmul.f32 %v8629_v48, %v6929_v30  ;;  %v6933_v19 = vunpack.c.l.bf16 %v7032_v33  ;;  %v6934_v46 = vunpack.c.h.bf16 %v7032_v33 }
  0xb9   : > { %v6551_v9 = vcombine.low %v1654_v28, %v1664_v37  ;;  %v826_v22 = vor.u32 %v824_v23, %v823_v43  ;;  %v925_v54 = vsel %vm8321_vm2, %v823_v43, 0  ;;  %7530 = vmatmul.mubr.bf16.gmra.mrb[8].mxu0 %v6697_v6  ;;  %v644_v10 = vmul.f32 %v8629_v48, %v6930_v52 }
  0xba   : > { %v6527_v57 = vcombine.low %v925_v54, %v925_v54  ;;  %v675_v3 = vadd.f32 %v8637_v41, %v643_v39  ;;  %v645_v58 = vmul.f32 %v8629_v48, %v6933_v19  ;;  %v646_v32 = vmul.f32 %v8629_v48, %v6934_v46  ;;  %7566 = vmatpush3.bf16.msra.mxu0 %v8041_v56 }
  0xbb   : > { %7302 = vmatmul.mubr.bf16.gmra.mrb[20].mxu1 %v6551_v9  ;;  %v907_v30 = vsel %vm8321_vm2, 0, %v826_v22  ;;  %v676_v35 = vadd.f32 %v8637_v41, %v644_v10  ;;  %v6682_v50 = vrot.slane %v3920_v27, 9  ;;  %v4022_v24 = vrot.slane %v8731_v20, 5  ;;  %7567 = vmatprep.subr.bf16.mxu0 %v8045_v12 }
  0xbc   : > { %v1370_v62 = vld [vmem:[#allocation2 + $0x98] sm:$0x1]  ;;  %v6525_v4 = vcombine.low %v907_v30, %v907_v30  ;;  %v6526_v11 = vcombine.high %v907_v30, %v907_v30  ;;  %1169 = vst [vmem:[#allocation2 + $0xa4] sm:$0x1] %v6527_v57  ;;  %v707_v48 = vmax.f32 %v675_v3, 0.0  ;;  %v677_v51 = vadd.f32 %v8637_v41, %v645_v58 }
  0xbd   : > { %v8905_v0 = vld [vmem:[#allocation2 + $0x90] sm:$0xf]  ;;  %v1685_v49 = vshll.u32 %v1370_v62, 16  ;;  %v708_v7 = vmax.f32 %v676_v35, 0.0  ;;  %v678_v5 = vadd.f32 %v8637_v41, %v646_v32  ;;  %v4023_v20 = vsel %vm8548_vm8, %v6682_v50, %v4022_v24 }
  0xbe   : > { %v8910_v44 = vld [vmem:[#allocation2 + $0x94] sm:$0xf]  ;;  %v1666_v59 = vshrl.u32 %v8905_v0, 16  ;;  %v1669_v60 = vshll.u32 %v8905_v0, 16  ;;  %1167 = vst [vmem:[#allocation2 + $0x9c] sm:$0xf] %v6525_v4  ;;  %7568 = vmatpush3.bf16.msra.mxu0 %v8045_v12 }
  0xbf   : > { %1168 = vst [vmem:[#allocation2 + $0xa0] sm:$0xf] %v6526_v11  ;;  %v709_v55 = vmax.f32 %v677_v51, 0.0  ;;  %v4024_v53 = vrot.slane %v4022_v24, 4  ;;  %v1675_v16 = vshll.u32 %v8910_v44, 16  ;;  %v1679_v56 = vshrl.u32 %v8910_v44, 16  ;;  %7601 = vmatprep.subr.bf16.mxu0 %v8902_v18 }
  0xc0   : > { %v1687_v38 = vrot.slane %v1685_v49, 5  ;;  %v726_v41 = vpack.c.bf16 %v708_v7, %v707_v48  ;;  %v1668_v13 = vrot.slane %v1666_v59, 4  ;;  %v1671_v29 = vrot.slane %v1669_v60, 5  ;;  %v3922_v24 = vld [vmem:[#allocation2 + $0x6c] sm:$0xe] }
  0xc1   : > { %v710_v17 = vmax.f32 %v678_v5, 0.0  ;;  %v4025_v31 = vrot.slane %v8717_v63, 5  ;;  %v1677_v34 = vrot.slane %v1675_v16, 5  ;;  %v1681_v36 = vrot.slane %v1679_v56, 4 }
  0xc2   : > { %v828_v33 = vshrl.u32 %v726_v41, 16  ;;  %v831_v15 = vshll.u32 %v726_v41, 16  ;;  %v1672_v23 = vor.u32 %v1671_v29, %v1668_v13  ;;  %v6683_v28 = vrot.slane %v3921_v1, 9 }
  0xc3   : > { %v727_v40 = vpack.c.bf16 %v710_v17, %v709_v55  ;;  %v4026_v61 = vsel %vm8548_vm8, %v4024_v53, %v4025_v31  ;;  %v1682_v43 = vor.u32 %v1681_v36, %v1677_v34  ;;  %v1371_v6 = vld [vmem:[#allocation2 + $0xa4] sm:$0x1]  ;;  %v4029_v37 = vrot.slane %v8740_v8, 5  ;;  %v3202_v53 = vld [vmem:[#allocation2 + $0x70] sm:$0xf] }
  0xc4   : > { %v830_v52 = vrot.slane %v828_v33, 7  ;;  %v6698_v12 = vcombine.low %v4023_v20, %v4026_v61  ;;  %v1673_v39 = vrot.slane %v1672_v23, 4  ;;  %v1709_v19 = vshll.u32 %v1371_v6, 16  ;;  %v3923_v61 = vld [vmem:[#allocation2 + $0x78] sm:$0xe] }
  0xc5   : > { %v835_v46 = vshrl.u32 %v727_v40, 16  ;;  %v838_v63 = vshll.u32 %v727_v40, 16  ;;  %v1683_v27 = vrot.slane %v1682_v43, 4  ;;  %v8921_v9 = vld [vmem:[#allocation2 + $0x9c] sm:$0xf]  ;;  %v4030_v50 = vsel %vm8548_vm8, %v6683_v28, %v4029_v37 }
  0xc6   : > { %v8923_v22 = vld [vmem:[#allocation2 + $0xa0] sm:$0xf]  ;;  %v833_v54 = vor.u32 %v831_v15, %v830_v52  ;;  %v926_v10 = vsel %vm8321_vm2, %v830_v52, 0  ;;  %7533 = vmatprep.mubr.bf16.mxu0 %v6698_v12  ;;  %v1678_v57 = vsel %vm8388_vm5, %v1673_v39, %v1677_v34  ;;  %v1690_v3 = vshrl.u32 %v8921_v9, 16  ;;  %v8948_v40 = vld [vmem:[#allocation2 + $0x7c] sm:$0xf] }
  0xc7   : > { %v1693_v8 = vshll.u32 %v8921_v9, 16  ;;  %v1699_v58 = vshll.u32 %v8923_v22, 16  ;;  %v1688_v32 = vsel %vm8388_vm5, %v1683_v27, %v1687_v38  ;;  %v1703_v30 = vshrl.u32 %v8923_v22, 16  ;;  %v3203_v38 = vld [vmem:[#allocation2 + $0x74] sm:$0x1] }
  0xc8   : > { %v908_v35 = vsel %vm8321_vm2, 0, %v833_v54  ;;  %v6552_v62 = vcombine.low %v1678_v57, %v1688_v32  ;;  %v1692_v4 = vrot.slane %v1690_v3, 4  ;;  %v6530_v5 = vcombine.low %v926_v10, %v926_v10  ;;  %v8954_v39 = vld [vmem:[#allocation2 + $0x80] sm:$0x1] }
  0xc9   : > { %v1695_v11 = vrot.slane %v1693_v8, 5  ;;  %v1701_v48 = vrot.slane %v1699_v58, 5  ;;  %v1705_v51 = vrot.slane %v1703_v30, 4  ;;  %v6528_v49 = vcombine.low %v908_v35, %v908_v35 }
  0xca   : > { %v6529_v7 = vcombine.high %v908_v35, %v908_v35  ;;  %7305 = vmatprep.mubr.bf16.mxu1 %v6552_v62  ;;  %v837_v59 = vrot.slane %v835_v46, 7  ;;  %v4031_v60 = vrot.slane %v4029_v37, 4  ;;  %v4032_v55 = vrot.slane %v8735_v45, 5  ;;  %1172 = vst [vmem:[#allocation2 + $0xb0] sm:$0x1] %v6530_v5 }
  0xcb   : > { %v1696_v20 = vor.u32 %v1695_v11, %v1692_v4  ;;  %v1706_v16 = vor.u32 %v1705_v51, %v1701_v48  ;;  %v1711_v56 = vrot.slane %v1709_v19, 5  ;;  %1170 = vst [vmem:[#allocation2 + $0xa8] sm:$0xf] %v6528_v49  ;;  %v6684_v41 = vrot.slane %v3922_v24, 9 }
  0xcc   : > { %1171 = vst [vmem:[#allocation2 + $0xac] sm:$0xf] %v6529_v7  ;;  %v840_v13 = vor.u32 %v838_v63, %v837_v59  ;;  %v927_v29 = vsel %vm8321_vm2, %v837_v59, 0  ;;  %v4033_v17 = vsel %vm8548_vm8, %v4031_v60, %v4032_v55  ;;  %v4036_v45 = vrot.slane %v3202_v53, 5 }
  0xcd   : > { %v1697_v1 = vrot.slane %v1696_v20, 4  ;;  %v1707_v31 = vrot.slane %v1706_v16, 4  ;;  %v6533_v34 = vcombine.low %v927_v29, %v927_v29  ;;  %v6699_v36 = vcombine.low %v4030_v50, %v4033_v17  ;;  %v3208_v50 = vld [vmem:[#allocation2 + $0x88] sm:$0xf]  ;;  %v8974_v16 = vld [vmem:[#allocation2] sm:$0xf] }
  0xce   : > { %v909_v15 = vsel %vm8321_vm2, 0, %v840_v13  ;;  %v4039_v23 = vrot.slane %v3203_v38, 5  ;;  %v4038_v12 = vrot.slane %v4036_v45, 4  ;;  %v4037_v37 = vsel %vm8548_vm8, %v6684_v41, %v4036_v45  ;;  %v3925_v17 = vld [vmem:[#allocation2 + $0x90] sm:$0xe] }
  0xcf   : > { %v1702_v33 = vsel %vm8388_vm5, %v1697_v1, %v1701_v48  ;;  %v1712_v28 = vsel %vm8388_vm5, %v1707_v31, %v1711_v56  ;;  %v6531_v43 = vcombine.low %v909_v15, %v909_v15  ;;  %v6532_v6 = vcombine.high %v909_v15, %v909_v15  ;;  %1175 = vst [vmem:[#allocation2 + $0xbc] sm:$0x1] %v6533_v34  ;;  %v3924_v48 = vld [vmem:[#allocation2 + $0x84] sm:$0xe]  ;;  %v3209_v1 = vld [vmem:[#allocation2 + $0x8c] sm:$0x1] }
  0xd0   : > { %7534 = vmatmul.mubr.bf16.gmra.mrb[12].mxu0 %v6699_v36  ;;  %v6553_v52 = vcombine.low %v1702_v33, %v1712_v28  ;;  %v6685_v19 = vrot.slane %v3923_v61, 9  ;;  %v4043_v46 = vrot.slane %v8948_v40, 5  ;;  %v4040_v10 = vsel %vm8548_vm8, %v4038_v12, %v4039_v23  ;;  %v8976_v56 = vld [vmem:[#allocation2 + $0x4] sm:$0xf]  ;;  %v3211_v33 = vld [vmem:[#allocation2 + $0x94] sm:$0xf] }
  0xd1   : > { %1173 = vst [vmem:[#allocation2 + $0xb4] sm:$0xf] %v6531_v43  ;;  %1174 = vst [vmem:[#allocation2 + $0xb8] sm:$0xf] %v6532_v6  ;;  %v1372_v54 = vld [vmem:[#allocation2 + $0xb0] sm:$0x1]  ;;  %v6700_v30 = vcombine.low %v4037_v37, %v4040_v10  ;;  %v6564_v38 = vcombine.low %v8974_v16, %v8976_v56 }
  0xd2   : > { %7306 = vmatmul.mubr.bf16.gmra.mrb[24].mxu1 %v6553_v52  ;;  %v8957_v63 = vld [vmem:[#allocation2 + $0xa8] sm:$0xf]  ;;  %v1733_v32 = vshll.u32 %v1372_v54, 16  ;;  %v4046_v35 = vrot.slane %v8954_v39, 5  ;;  %v4045_v7 = vrot.slane %v4043_v46, 4  ;;  %v4044_v60 = vsel %vm8548_vm8, %v6685_v19, %v4043_v46 }
  0xd3   : > { %v8959_v27 = vld [vmem:[#allocation2 + $0xac] sm:$0xf]  ;;  %v1714_v57 = vshrl.u32 %v8957_v63, 16  ;;  %v1717_v3 = vshll.u32 %v8957_v63, 16  ;;  %7537 = vmatprep.mubr.bf16.mxu0 %v6700_v30  ;;  %v6686_v13 = vrot.slane %v3924_v48, 9  ;;  %v4050_v29 = vrot.slane %v3208_v50, 5 }
  0xd4   : > { %v1723_v8 = vshll.u32 %v8959_v27, 16  ;;  %v1727_v58 = vshrl.u32 %v8959_v27, 16  ;;  %v1735_v51 = vrot.slane %v1733_v32, 5  ;;  %v4047_v41 = vsel %vm8548_vm8, %v4045_v7, %v4046_v35  ;;  %v3212_v15 = vld [vmem:[#allocation2 + $0x98] sm:$0x1] }
  0xd5   : > { %v1716_v24 = vrot.slane %v1714_v57, 4  ;;  %v1719_v62 = vrot.slane %v1717_v3, 5  ;;  %v6701_v43 = vcombine.low %v4044_v60, %v4047_v41  ;;  %v3926_v6 = vld [vmem:[#allocation2 + $0x9c] sm:$0xe]  ;;  %v4051_v57 = vsel %vm8548_vm8, %v6686_v13, %v4050_v29  ;;  %v3214_v3 = vld [vmem:[#allocation2 + $0xa0] sm:$0xf] }
  0xd6   : > { %v1725_v4 = vrot.slane %v1723_v8, 5  ;;  %v1729_v11 = vrot.slane %v1727_v58, 4  ;;  %v1373_v49 = vld [vmem:[#allocation2 + $0xbc] sm:$0x1]  ;;  %v3215_v8 = vld [vmem:[#allocation2 + $0xa4] sm:$0x1] }
  0xd7   : > { %v1720_v5 = vor.u32 %v1719_v62, %v1716_v24  ;;  %v1757_v59 = vshll.u32 %v1373_v49, 16  ;;  %v4052_v32 = vrot.slane %v4050_v29, 4  ;;  %v4053_v30 = vrot.slane %v3209_v1, 5  ;;  %v3217_v50 = vld [vmem:[#allocation2 + $0xac] sm:$0xf] }
  0xd8   : > { %v1730_v20 = vor.u32 %v1729_v11, %v1725_v4  ;;  %v8970_v55 = vld [vmem:[#allocation2 + $0xb4] sm:$0xf]  ;;  %v8972_v53 = vld [vmem:[#allocation2 + $0xb8] sm:$0xf]  ;;  %7538 = vmatmul.mubr.bf16.gmra.mrb[16].mxu0 %v6701_v43  ;;  %v6687_v35 = vrot.slane %v3925_v17, 9  ;;  %v4057_v62 = vrot.slane %v3211_v33, 5 }
  0xd9   : > { %v1721_v31 = vrot.slane %v1720_v5, 4  ;;  %v1738_v36 = vshrl.u32 %v8970_v55, 16  ;;  %v1741_v45 = vshll.u32 %v8970_v55, 16  ;;  %v1747_v23 = vshll.u32 %v8972_v53, 16  ;;  %v3927_v48 = vld [vmem:[#allocation2 + $0xa8] sm:$0xe] }
  0xda   : > { %v1731_v34 = vrot.slane %v1730_v20, 4  ;;  %v1751_v61 = vshrl.u32 %v8972_v53, 16  ;;  %v1759_v28 = vrot.slane %v1757_v59, 5  ;;  %v6688_v11 = vrot.slane %v3926_v6, 9  ;;  %v3218_v20 = vld [vmem:[#allocation2 + $0xb0] sm:$0x1] }
  0xdb   : > { %v1726_v52 = vsel %vm8388_vm5, %v1721_v31, %v1725_v4  ;;  %v1740_v37 = vrot.slane %v1738_v36, 4  ;;  %v1743_v19 = vrot.slane %v1741_v45, 5  ;;  %v1749_v54 = vrot.slane %v1747_v23, 5  ;;  %v7033_v36 = vld [vmem:[%s8312_s28 + $0x78] sm:$0xff]   ;;  %v3928_v43 = vld [vmem:[#allocation2 + $0xb4] sm:$0xe] }
  0xdc   : > { %v1736_v12 = vsel %vm8388_vm5, %v1731_v34, %v1735_v51  ;;  %v1753_v10 = vrot.slane %v1751_v61, 4  ;;  %v4060_v4 = vrot.slane %v3212_v15, 5  ;;  %v4054_v49 = vsel %vm8548_vm8, %v4052_v32, %v4053_v30  ;;  %v3221_v34 = vld [vmem:[#allocation2 + $0xbc] sm:$0x1]  ;;  %v3220_v61 = vld [vmem:[#allocation2 + $0xb8] sm:$0xf] }
  0xdd   : > { %v6554_v46 = vcombine.low %v1726_v52, %v1736_v12  ;;  %v1744_v58 = vor.u32 %v1743_v19, %v1740_v37  ;;  %v4064_v7 = vrot.slane %v3214_v3, 5  ;;  %v4067_v5 = vrot.slane %v3215_v8, 5  ;;  %v8120_v32 = vld [vmem:[%s10123_s3] ss:$0 sm:$0xff]  ;;  %v8121_v16 = vld [vmem:[#allocation2 + $0xc] sm:$0xf] }
  0xde   : > { %v1754_v24 = vor.u32 %v1753_v10, %v1749_v54  ;;  %v6702_v60 = vcombine.low %v4051_v57, %v4054_v49  ;;  %v4058_v41 = vsel %vm8548_vm8, %v6687_v35, %v4057_v62  ;;  %v4059_v1 = vrot.slane %v4057_v62, 4  ;;  %v9027_v49 = vld [vmem:[#allocation2 + $0x1c] sm:$0xf] }
  0xdf   : > { %7309 = vmatprep.mubr.bf16.mxu1 %v6554_v46  ;;  %v1745_v51 = vrot.slane %v1744_v58, 4  ;;  %v4065_v29 = vsel %vm8548_vm8, %v6688_v11, %v4064_v7  ;;  %v4066_v17 = vrot.slane %v4064_v7, 4  ;;  %v6689_v31 = vrot.slane %v3927_v48, 9  ;;  %v8123_v11 = vld [vmem:[%s10124_s4] ss:$0 sm:$0xff] }
  0xe0   : > { %v1755_v59 = vrot.slane %v1754_v24, 4  ;;  %7541 = vmatprep.mubr.bf16.mxu0 %v6702_v60  ;;  %v4061_v33 = vsel %vm8548_vm8, %v4059_v1, %v4060_v4  ;;  %v4071_v15 = vrot.slane %v3217_v50, 5  ;;  %v4074_v23 = vrot.slane %v3218_v20, 5  ;;  %v8036_v20 = vld [vmem:[%s10125_s5 + $0x88] sm:$0xff]   ;;  %v8126_v1 = vld [vmem:[%s10125_s5 + $0x80] sm:$0xff]  }
  0xe1   : > { %v1750_v13 = vsel %vm8388_vm5, %v1745_v51, %v1749_v54  ;;  %v6703_v52 = vcombine.low %v4058_v41, %v4061_v33  ;;  %v4068_v12 = vsel %vm8548_vm8, %v4066_v17, %v4067_v5  ;;  %v6690_v46 = vrot.slane %v3928_v43, 9  ;;  %v8124_v51 = vld [vmem:[#allocation2 + $0x18] sm:$0xf]  ;;  %v8129_v33 = vld [vmem:[#allocation2 + $0x30] sm:$0xf] }
  0xe2   : > { %v1760_v45 = vsel %vm8388_vm5, %v1755_v59, %v1759_v28  ;;  %v6704_v37 = vcombine.low %v4065_v29, %v4068_v12  ;;  %v4073_v19 = vrot.slane %v4071_v15, 4  ;;  %v4078_v54 = vrot.slane %v3220_v61, 5  ;;  %v8040_v29 = vld [vmem:[%s10125_s5 + $0x90] sm:$0xff]   ;;  %v8044_v43 = vld [vmem:[%s10125_s5 + $0x98] sm:$0xff]  }
  0xe3   : > { %v6555_v6 = vcombine.low %v1750_v13, %v1760_v45  ;;  %7542 = vmatmul.mubr.bf16.gmra.mrb[20].mxu0 %v6703_v52  ;;  %v4081_v28 = vrot.slane %v3221_v34, 5  ;;  %v6937_v10 = vunpack.c.l.bf16 %v7033_v36  ;;  %v4072_v57 = vsel %vm8548_vm8, %v6689_v31, %v4071_v15  ;;  %v8127_v34 = vld [vmem:[#allocation2 + $0x24] sm:$0xf]  ;;  %v9042_v15 = vld [vmem:[#allocation2 + $0x34] sm:$0xf] }
  0xe4   : > { %7545 = vmatprep.mubr.bf16.mxu0 %v6704_v37  ;;  %v4075_v3 = vsel %vm8548_vm8, %v4073_v19, %v4074_v23  ;;  %v6938_v8 = vunpack.c.h.bf16 %v7033_v36  ;;  %v4080_v58 = vrot.slane %v4078_v54, 4  ;;  %v4079_v35 = vsel %vm8548_vm8, %v6690_v46, %v4078_v54  ;;  %v9039_v36 = vld [vmem:[#allocation2 + $0x28] sm:$0xf]  ;;  %v8048_v54 = vld [vmem:[%s10125_s5 + $0xa0] sm:$0xff]  }
  0xe5   : > { %7310 = vmatmul.mubr.bf16.gmra.mrb[28].mxu1 %v6555_v6  ;;  %v647_v30 = vmul.f32 %v8120_v32, %v6937_v10  ;;  %v6705_v62 = vcombine.low %v4072_v57, %v4075_v3  ;;  %v6566_v7 = vcombine.low %v8124_v51, %v9027_v49  ;;  %v6567_v45 = vcombine.low %v8127_v34, %v9039_v36  ;;  %v9055_v10 = vld [vmem:[#allocation2 + $0x40] sm:$0xf]  ;;  %v8133_v3 = vld [vmem:[#allocation2 + $0x48] sm:$0xf]  ;;  %v2340_v34 = vld [vmem:[#allocation2 + $0xc] sm:$0xe] }
  0xe6   : > { %7329 = vmatprep.mubr.bf16.mxu1 %v6564_v38  ;;  %v648_v50 = vmul.f32 %v8120_v32, %v6938_v8  ;;  %v9019_v38 = vld [vmem:[#allocation2 + $0x10] sm:$0xf]  ;;  %v4082_v4 = vsel %vm8548_vm8, %v4080_v58, %v4081_v28  ;;  %v6568_v23 = vcombine.low %v8129_v33, %v9042_v15  ;;  %v8131_v28 = vld [vmem:[#allocation2 + $0x3c] sm:$0xf]  ;;  %v9058_v8 = vld [vmem:[#allocation2 + $0x4c] sm:$0xf] }
  0xe7   : > { %v6565_v24 = vcombine.low %v8121_v16, %v9019_v38  ;;  %v679_v48 = vadd.f32 %v8123_v11, %v647_v30  ;;  %v6706_v59 = vcombine.low %v4079_v35, %v4082_v4  ;;  %v6569_v57 = vcombine.low %v8131_v28, %v9055_v10  ;;  %v8054_v58 = vld [vmem:[%s10125_s5 + $0xa8] sm:$0xff]   ;;  %v8060_v30 = vld [vmem:[%s10125_s5 + $0xb0] sm:$0xff]   ;;  %v8137_v51 = vld [vmem:[#allocation2 + $0x60] sm:$0xf] }
  0xe8   : > { %v680_v5 = vadd.f32 %v8123_v11, %v648_v50  ;;  %v6570_v14 = vcombine.low %v8133_v3, %v9058_v8  ;;  %v8135_v16 = vld [vmem:[#allocation2 + $0x54] sm:$0xf]  ;;  %v2406_v33 = vrot.slane %v9027_v49, 5  ;;  %v6589_v49 = vrot.slane %v2340_v34, 9  ;;  %v2342_v3 = vld [vmem:[#allocation2 + $0x24] sm:$0xe] }
  0xe9   : > { %v711_v60 = vmax.f32 %v679_v48, 0.0  ;;  %v6578_v34 = vcombine.low %v8957_v63, %v8959_v27 }
  0xea   : > { %v712_v41 = vmax.f32 %v680_v5, 0.0 }
  0xeb   : > { %7546 = vmatmul.mubr.bf16.gmra.mrb[24].mxu0 %v6705_v62 }
  0xec   : > { %v728_v13 = vpack.c.bf16 %v712_v41, %v711_v60  ;;  %7549 = vmatprep.mubr.bf16.mxu0 %v6706_v59  ;;  %v3455_v59 = vshrl.u32 %v8948_v40, 16 }
  0xed   : > { %7330 = vmatmul.mubr.bf16.vlgmr.msra.gmra.mrb[0].mxu1 %v6565_v24  ;;  %v9067_v24 = vld [vmem:[#allocation2 + $0x58] sm:$0xf] }
  0xee   : > { %7362 = vmatpush3.bf16.msra.mxu1 %v8126_v1  ;;  %7333 = vmatprep.mubr.bf16.mxu1 %v6566_v7  ;;  %v842_v17 = vshrl.u32 %v728_v13, 16  ;;  %v845_v31 = vshll.u32 %v728_v13, 16  ;;  %v6571_v62 = vcombine.low %v8135_v16, %v9067_v24  ;;  %v9070_v7 = vld [vmem:[#allocation2 + $0x64] sm:$0xf]  ;;  %v8066_v1 = vld [vmem:[%s10125_s5 + $0xb8] sm:$0xff]  }
  0xef   : > { %7363 = vmatprep.subr.bf16.mxu1 %v8036_v20  ;;  %v6572_v5 = vcombine.low %v8137_v51, %v9070_v7  ;;  %v8049_v13 = vld [vmem:[#allocation2 + $0x18] sm:$0xff]   ;;  %v6591_v51 = vrot.slane %v2342_v3, 9 }
  0xf0   : > { %v844_v61 = vrot.slane %v842_v17, 7  ;;  %v2339_v17 = vld [vmem:[#allocation2] sm:$0xe] }
  0xf2   : > { %7364 = vmatpush3.bf16.msra.mxu1 %v8036_v20  ;;  %v847_v6 = vor.u32 %v845_v31, %v844_v61  ;;  %v928_v52 = vsel %vm8321_vm2, %v844_v61, 0  ;;  %v3451_v20 = vshll.u32 %v8948_v40, 16  ;;  %v2392_v31 = vrot.slane %v8976_v56, 5  ;;  %v2341_v56 = vld [vmem:[#allocation2 + $0x18] sm:$0xe] }
  0xf3   : > { %7365 = vmatprep.subr.bf16.mxu1 %v8040_v29  ;;  %v6536_v12 = vcombine.low %v928_v52, %v928_v52  ;;  %v2399_v40 = vrot.slane %v9019_v38, 5  ;;  %v9087_v61 = vrot.slane %v3455_v59, 4  ;;  %v8139_v52 = vld [vmem:[#allocation2 + $0x8] sm:$0x1] }
  0xf4   : > { %v910_v37 = vsel %vm8321_vm2, 0, %v847_v6  ;;  %v9093_v6 = vld [vmem:[%s10125_s5 + $0xc0] sm:$0xff]   ;;  %v2395_v38 = vrot.slane %v8139_v52, 5 }
  0xf5   : > { %7334 = vmatmul.mubr.bf16.gmra.mrb[4].mxu1 %v6567_v45  ;;  %v6534_v19 = vcombine.low %v910_v37, %v910_v37  ;;  %v6535_v46 = vcombine.high %v910_v37, %v910_v37  ;;  %1178 = vst [vmem:[#allocation2 + $0xc8] sm:$0x1] %v6536_v12  ;;  %10146 = vst [vmem:[#allocation4_spill] sm:$0xff] %v9087_v61  ;;  %v8140_v12 = vld [vmem:[#allocation2 + $0x14] sm:$0x1] }
  0xf6   : > { %7337 = vmatprep.mubr.bf16.mxu1 %v6568_v23  ;;  %7366 = vmatpush3.bf16.msra.mxu1 %v8040_v29  ;;  %v9085_v23 = vrot.slane %v3451_v20, 5  ;;  %v2402_v37 = vrot.slane %v8140_v12, 5  ;;  %v8055_v20 = vld [vmem:[#allocation2 + $0x30] sm:$0xff]  }
  0xf7   : > { %7367 = vmatprep.subr.bf16.mxu1 %v8044_v43  ;;  %1176 = vst [vmem:[#allocation2 + $0xc0] sm:$0xf] %v6534_v19  ;;  %1177 = vst [vmem:[#allocation2 + $0xc4] sm:$0xf] %v6535_v46  ;;  %v6588_v19 = vrot.slane %v2339_v17, 9 }
  0xf8   : > { %10145 = vst [vmem:[#allocation3_spill] sm:$0xff] %v9085_v23  ;;  %v8141_v46 = vld [vmem:[#allocation2 + $0x6c] sm:$0xf]  ;;  %v4780_v23 = vld [vmem:[#allocation2 + $0x54] sm:$0xf] }
  0xfa   : > { %7368 = vmatpush3.bf16.msra.mxu1 %v8044_v43  ;;  %v3461_v43 = vshll.u32 %v8954_v39, 16  ;;  %v2394_v39 = vrot.slane %v2392_v31, 4 }
  0xfb   : > { %7369 = vmatprep.subr.bf16.mxu1 %v8048_v54 }
  0xfc   : > { %v3224_v32 = vld [vmem:[#allocation2 + $0xc8] sm:$0x1] }
  0xfd   : > { %7338 = vmatmul.mubr.bf16.gmra.mrb[8].mxu1 %v6569_v57  ;;  %v4088_v48 = vrot.slane %v3224_v32, 5  ;;  %v2401_v57 = vrot.slane %v2399_v40, 4  ;;  %v6590_v32 = vrot.slane %v2341_v56, 9  ;;  %v4765_v56 = vld [vmem:[#allocation2 + $0x18] sm:$0xf] }
  0xfe   : > { %7341 = vmatprep.mubr.bf16.mxu1 %v6570_v14  ;;  %7370 = vmatpush3.bf16.msra.mxu1 %v8048_v54  ;;  %v3223_v35 = vld [vmem:[#allocation2 + $0xc4] sm:$0xf]  ;;  %v3929_v50 = vld [vmem:[#allocation2 + $0xc0] sm:$0xe]  ;;  %v9095_v54 = vld [vmem:[#allocation2 + $0x70] sm:$0xf] }
  0xff   : > { %7371 = vmatprep.subr.bf16.mxu1 %v8054_v58  ;;  %v6691_v4 = vrot.slane %v3929_v50, 9  ;;  %v4085_v11 = vrot.slane %v3223_v35, 5  ;;  %v6573_v28 = vcombine.low %v8141_v46, %v9095_v54  ;;  %v2413_v14 = vrot.slane %v9039_v36, 5  ;;  %v8143_v35 = vld [vmem:[#allocation2 + $0x20] sm:$0x1]  ;;  %v8051_v36 = vld [vmem:[#allocation2 + $0x24] sm:$0xff]  }
 0x100   : > { %v2409_v50 = vrot.slane %v8143_v35, 5  ;;  %v8146_v46 = vld [vmem:[#allocation2 + $0x44] sm:$0x1]  ;;  %v8057_v35 = vld [vmem:[#allocation2 + $0x3c] sm:$0xff]  }
 0x101   : > { %v4086_v60 = vsel %vm8548_vm8, %v6691_v4, %v4085_v11  ;;  %v4087_v41 = vrot.slane %v4085_v11, 4  ;;  %v6575_v4 = vcombine.low %v8851_v42, %v8853_v2  ;;  %v2343_v11 = vld [vmem:[#allocation2 + $0x30] sm:$0xe]  ;;  %v9120_v42 = vsel %vm8548_vm8, %v2394_v39, %v2395_v38  ;;  %v9162_v39 = vld [vmem:[#allocation2 + $0x54] sm:$0xe] }
 0x102   : > { %7372 = vmatpush3.bf16.msra.mxu1 %v8054_v58  ;;  %v6574_v58 = vcombine.low %v8828_v26, %v8830_v25  ;;  %v6576_v26 = vcombine.low %v8905_v0, %v8910_v44  ;;  %v9112_v25 = vsel %vm8548_vm8, %v6588_v19, %v2392_v31  ;;  %v9124_v2 = vsel %vm8548_vm8, %v2401_v57, %v2402_v37  ;;  %v9153_v37 = vld [vmem:[#allocation2 + $0x48] sm:$0xe]  ;;  %v8145_v19 = vld [vmem:[#allocation2 + $0x38] sm:$0x1]  ;;  %v4766_v57 = vld [vmem:[#allocation2 + $0x1c] sm:$0xf] }
 0x103   : > { %7373 = vmatprep.subr.bf16.mxu1 %v8060_v30  ;;  %v4089_v29 = vsel %vm8548_vm8, %v4087_v41, %v4088_v48  ;;  %v9116_v48 = vsel %vm8548_vm8, %v6589_v49, %v2399_v40  ;;  %v2415_v59 = vrot.slane %v2413_v14, 4  ;;  %v6592_v31 = vrot.slane %v2343_v11, 9 }
 0x104   : > { %v6707_v45 = vcombine.low %v4086_v60, %v4089_v29  ;;  %v8144_v60 = vld [vmem:[#allocation2 + $0x2c] sm:$0x1]  ;;  %v9133_v29 = vsel %vm8548_vm8, %v6590_v32, %v2406_v33  ;;  %v2420_v40 = vrot.slane %v9042_v15, 5  ;;  %v9151_v12 = vsel %vm8548_vm8, %v6591_v51, %v2413_v14 }
 0x105   : > { %7342 = vmatmul.mubr.bf16.gmra.mrb[12].mxu1 %v6571_v62  ;;  %v9103_v62 = vrot.slane %v3461_v43, 5  ;;  %v2416_v41 = vrot.slane %v8144_v60, 5  ;;  %v2427_v43 = vrot.slane %v9055_v10, 5  ;;  %v2423_v49 = vrot.slane %v8145_v19, 5 }
 0x106   : > { %7345 = vmatprep.mubr.bf16.mxu1 %v6572_v5  ;;  %7374 = vmatpush3.bf16.msra.mxu1 %v8060_v30  ;;  %v2408_v30 = vrot.slane %v2406_v33, 4  ;;  %v2344_v5 = vld [vmem:[#allocation2 + $0x3c] sm:$0xe]  ;;  %v9169_v3 = vsel %vm8548_vm8, %v6592_v31, %v2420_v40  ;;  %v2434_v14 = vrot.slane %v9058_v8, 5  ;;  %v4817_v32 = vshll.u32 %v4765_v56, 16 }
 0x107   : > { %7375 = vmatprep.subr.bf16.mxu1 %v8066_v1  ;;  %7550 = vmatmul.mubr.bf16.gmra.mrb[28].mxu0 %v6707_v45  ;;  %10147 = vst [vmem:[#allocation5_spill] sm:$0xff] %v9103_v62  ;;  %v6593_v45 = vrot.slane %v2344_v5, 9  ;;  %v9160_v10 = vsel %vm8548_vm8, %v2415_v59, %v2416_v41  ;;  %v6594_v51 = vrot.slane %v9153_v37, 9  ;;  %v2347_v5 = vld [vmem:[#allocation2 + $0x60] sm:$0xe]  ;;  %v2441_v60 = vrot.slane %v9067_v24, 5 }
 0x108   : > { %7569 = vmatprep.mubr.bf16.mxu0 %v8049_v13  ;;  %v6577_v13 = vcombine.low %v8921_v9, %v8923_v22  ;;  %v9137_v17 = vsel %vm8548_vm8, %v2408_v30, %v2409_v50  ;;  %v4768_v30 = vld [vmem:[#allocation2 + $0x24] sm:$0xf]  ;;  %v2422_v50 = vrot.slane %v2420_v40, 4  ;;  %v2448_v41 = vrot.slane %v9070_v7, 5  ;;  %v2348_v8 = vld [vmem:[#allocation2 + $0x6c] sm:$0xe] }
 0x109   : > { %v9174_v11 = vsel %vm8548_vm8, %v6593_v45, %v2427_v43  ;;  %v2455_v31 = vrot.slane %v9095_v54, 5  ;;  %v8061_v40 = vld [vmem:[#allocation2 + $0x48] sm:$0xff]   ;;  %v4827_v19 = vshrl.u32 %v4766_v57, 16  ;;  %v4838_v45 = vshrl.u32 %v4768_v30, 16  ;;  %v8068_v24 = vld [vmem:[%s10125_s5 + $0x1d8] sm:$0xff]  }
 0x10a   : > { %7376 = vmatpush3.bf16.msra.mxu1 %v8066_v1  ;;  %v8056_v1 = vld [vmem:[%s10125_s5 + $0x1c8] sm:$0xff]   ;;  %v2436_v7 = vrot.slane %v2434_v14, 4  ;;  %v2443_v15 = vrot.slane %v2441_v60, 4  ;;  %v2450_v0 = vrot.slane %v2448_v41, 4 }
 0x10b   : > { %7409 = vmatprep.subr.bf16.mxu1 %v9093_v6  ;;  %v2457_v44 = vrot.slane %v2455_v31, 4  ;;  %v4769_v33 = vld [vmem:[#allocation2 + $0x28] sm:$0xf] }
 0x10c   : > { %v8076_v9 = vld [vmem:[%s10125_s5 + $0x1e8] sm:$0xff]  }
 0x10d   : > { %7346 = vmatmul.mubr.bf16.gmra.mrb[16].mxu1 %v6573_v28  ;;  %v2430_v28 = vrot.slane %v8146_v46, 5  ;;  %v4841_v46 = vshll.u32 %v4768_v30, 16  ;;  %v6597_v30 = vrot.slane %v2348_v8, 9 }
 0x10e   : > { %7349 = vmatprep.mubr.bf16.mxu1 %v6574_v58  ;;  %v4814_v58 = vshrl.u32 %v4765_v56, 16  ;;  %v4823_v56 = vshll.u32 %v4766_v57, 16  ;;  %v8149_v57 = vld [vmem:[#allocation2 + $0x68] sm:$0x1] }
 0x10f   : > { %7570 = vmatmul.mubr.bf16.vlgmr.msra.gmra.mrb[0].mxu0 %v8051_v36  ;;  %v2429_v36 = vrot.slane %v2427_v43, 4  ;;  %v6595_v43 = vrot.slane %v9162_v39, 9  ;;  %v2451_v16 = vrot.slane %v8149_v57, 5  ;;  %v4829_v39 = vrot.slane %v4827_v19, 4 }
 0x110   : > { %7602 = vmatpush3.bf16.msra.mxu0 %v8902_v18  ;;  %7573 = vmatprep.mubr.bf16.mxu0 %v8055_v20  ;;  %v8062_v18 = vld [vmem:[%s10125_s5 + $0x1d0] sm:$0xff]   ;;  %v4816_v54 = vrot.slane %v4814_v58, 4  ;;  %v9187_v52 = vrot.slane %v4823_v56, 5  ;;  %v4840_v58 = vrot.slane %v4838_v45, 4 }
 0x111   : > { %7603 = vmatprep.subr.bf16.mxu0 %v8056_v1  ;;  %v8147_v20 = vld [vmem:[#allocation2 + $0x50] sm:$0x1]  ;;  %v9198_v8 = vsel %vm8548_vm8, %v2429_v36, %v2430_v28  ;;  %v9210_v45 = vsel %vm8548_vm8, %v6595_v43, %v2441_v60  ;;  %v9222_v36 = vsel %vm8548_vm8, %v2450_v0, %v2451_v16 }
 0x112   : > { %v2437_v59 = vrot.slane %v8147_v20, 5  ;;  %v6596_v20 = vrot.slane %v2347_v5, 9  ;;  %v8072_v5 = vld [vmem:[%s10125_s5 + $0x1e0] sm:$0xff]   ;;  %v4830_v60 = vor.u32 %v4829_v39, %v9187_v52 }
 0x114   : > { %7604 = vmatpush3.bf16.msra.mxu0 %v8056_v1  ;;  %v8148_v1 = vld [vmem:[#allocation2 + $0x5c] sm:$0x1]  ;;  %v9206_v19 = vsel %vm8548_vm8, %v2436_v7, %v2437_v59  ;;  %v4770_v59 = vld [vmem:[#allocation2 + $0x2c] sm:$0x1]  ;;  %v9260_v0 = vrot.slane %v4830_v60, 4 }
 0x115   : > { %7350 = vmatmul.mubr.bf16.gmra.mrb[20].mxu1 %v6575_v4  ;;  %7605 = vmatprep.subr.bf16.mxu0 %v8062_v18  ;;  %v4819_v4 = vrot.slane %v4817_v32, 5  ;;  %v2444_v37 = vrot.slane %v8148_v1, 5  ;;  %v4843_v32 = vrot.slane %v4841_v46, 5  ;;  %v8063_v46 = vld [vmem:[#allocation2 + $0x54] sm:$0xff]   ;;  %v4857_v43 = vshll.u32 %v4770_v59, 16 }
 0x116   : > { %7353 = vmatprep.mubr.bf16.mxu1 %v6576_v26  ;;  %v8150_v26 = vld [vmem:[#allocation2 + $0x74] sm:$0x1] }
 0x117   : > { %7574 = vmatmul.mubr.bf16.gmra.mrb[4].mxu0 %v8057_v35  ;;  %v2458_v38 = vrot.slane %v8150_v26, 5  ;;  %v9194_v35 = vsel %vm8548_vm8, %v2422_v50, %v2423_v49  ;;  %v4820_v56 = vor.u32 %v4819_v4, %v4816_v54  ;;  %v4847_v49 = vshll.u32 %v4769_v33, 16  ;;  %v4771_v54 = vld [vmem:[#allocation2 + $0x30] sm:$0xf] }
 0x118   : > { %7577 = vmatprep.mubr.bf16.mxu0 %v8061_v40  ;;  %7606 = vmatpush3.bf16.msra.mxu0 %v8062_v18  ;;  %v9202_v18 = vsel %vm8548_vm8, %v6594_v51, %v2434_v14  ;;  %v4767_v40 = vld [vmem:[#allocation2 + $0x20] sm:$0x1]  ;;  %v4851_v50 = vshrl.u32 %v4769_v33, 16  ;;  %v9214_v28 = vsel %vm8548_vm8, %v2443_v15, %v2444_v37  ;;  %v9218_v14 = vsel %vm8548_vm8, %v6596_v20, %v2448_v41  ;;  %v8151_v20 = vld [vmem:[#allocation2 + $0x7c] sm:$0xf] }
 0x119   : > { %7607 = vmatprep.subr.bf16.mxu0 %v8068_v24  ;;  %v9226_v51 = vsel %vm8548_vm8, %v6597_v30, %v2455_v31  ;;  %v8067_v33 = vld [vmem:[#allocation2 + $0x60] sm:$0xff]   ;;  %v9233_v15 = vsel %vm8548_vm8, %v2457_v44, %v2458_v38  ;;  %v4833_v41 = vshll.u32 %v4767_v40, 16  ;;  %v4844_v16 = vor.u32 %v4843_v32, %v4840_v58  ;;  %v4772_v30 = vld [vmem:[#allocation2 + $0x34] sm:$0xf]  ;;  %v4774_v58 = vld [vmem:[#allocation2 + $0x3c] sm:$0xf] }
 0x11a   : > { %v9248_v38 = vrot.slane %v4820_v56, 4  ;;  %v4853_v7 = vrot.slane %v4851_v50, 4  ;;  %v2462_v57 = vrot.slane %v8151_v20, 5  ;;  %v8080_v32 = vld [vmem:[%s10125_s5 + $0x1f0] sm:$0xff]   ;;  %v8152_v56 = vld [vmem:[#allocation2 + $0x80] sm:$0x1] }
 0x11b   : > { %v9262_v44 = vrot.slane %v4833_v41, 5  ;;  %v9264_v26 = vrot.slane %v4844_v16, 4  ;;  %v4862_v50 = vshrl.u32 %v4771_v54, 16  ;;  %v4871_v60 = vshll.u32 %v4772_v30, 16  ;;  %v4775_v16 = vld [vmem:[#allocation2 + $0x40] sm:$0xf] }
 0x11c   : > { %7608 = vmatpush3.bf16.msra.mxu0 %v8068_v24  ;;  %v2349_v24 = vld [vmem:[#allocation2 + $0x78] sm:$0xe]  ;;  %v4826_v40 = vsel %vm8388_vm5, %v9248_v38, %v9187_v52  ;;  %v4875_v41 = vshrl.u32 %v4772_v30, 16  ;;  %v2464_v20 = vrot.slane %v2462_v57, 4  ;;  %v8153_v37 = vld [vmem:[#allocation2 + $0x88] sm:$0xf]  ;;  %v10148_v52 = vcombine.low %v8970_v55, %v8972_v53 }
 0x11d   : > { %7354 = vmatmul.mubr.bf16.gmra.mrb[24].mxu1 %v6577_v13  ;;  %7609 = vmatprep.subr.bf16.mxu0 %v8072_v5  ;;  %v6598_v39 = vrot.slane %v2349_v24, 9  ;;  %v8069_v24 = vld [vmem:[#allocation2 + $0x6c] sm:$0xff]   ;;  %v2469_v1 = vrot.slane %v8153_v37, 5  ;;  %v4886_v4 = vshrl.u32 %v4774_v58, 16  ;;  %v4889_v63 = vshll.u32 %v4774_v58, 16  ;;  %v8071_v38 = vld [vmem:[#allocation2 + $0x78] sm:$0xff]  }
 0x11e   : > { %7357 = vmatprep.mubr.bf16.mxu1 %v6578_v34  ;;  %v9252_v34 = vrot.slane %v4847_v49, 5  ;;  %v2350_v49 = vld [vmem:[#allocation2 + $0x84] sm:$0xe]  ;;  %v10149_v30 = vcombine.low %v9112_v25, %v9120_v42  ;;  %v4864_v58 = vrot.slane %v4862_v50, 4  ;;  %v4773_v31 = vld [vmem:[#allocation2 + $0x38] sm:$0x1] }
 0x11f   : > { %7578 = vmatmul.mubr.bf16.gmra.mrb[8].mxu0 %v8063_v46  ;;  %v4865_v46 = vshll.u32 %v4771_v54, 16  ;;  %v9292_v55 = vsel %vm8548_vm8, %v6598_v39, %v2462_v57  ;;  %v6599_v37 = vrot.slane %v2350_v49, 9  ;;  %v8154_v54 = vld [vmem:[#allocation2 + $0x8c] sm:$0x1]  ;;  %v9301_v57 = vrot.slane %v4871_v60, 5 }
 0x120   : > { %7581 = vmatprep.mubr.bf16.mxu0 %v8067_v33  ;;  %7610 = vmatpush3.bf16.msra.mxu0 %v8072_v5  ;;  %v2465_v5 = vrot.slane %v8152_v56, 5  ;;  %v4854_v59 = vor.u32 %v4853_v7, %v9252_v34  ;;  %v9274_v33 = vrot.slane %v4857_v43, 5  ;;  %v8084_v7 = vld [vmem:[%s10125_s5 + $0x1f8] sm:$0xff]   ;;  %v4836_v43 = vsel %vm8388_vm5, %v9260_v0, %v9262_v44  ;;  %v9297_v44 = vld [vmem:[#allocation2 + $0x4c] sm:$0xf] }
 0x121   : > { %7611 = vmatprep.subr.bf16.mxu0 %v8076_v9  ;;  %v4867_v56 = vrot.slane %v4865_v46, 5  ;;  %v4899_v0 = vshrl.u32 %v4775_v16, 16  ;;  %10150 = vst [vmem:[#allocation6_spill] sm:$0xff] %v9297_v44  ;;  %v2472_v22 = vrot.slane %v8154_v54, 5  ;;  %v4877_v39 = vrot.slane %v4875_v41, 4 }
 0x122   : > { %v9299_v13 = vrot.slane %v4854_v59, 4  ;;  %v9305_v25 = vsel %vm8548_vm8, %v2464_v20, %v2465_v5  ;;  %v2471_v42 = vrot.slane %v2469_v1, 4  ;;  %v4776_v49 = vld [vmem:[#allocation2 + $0x44] sm:$0x1]  ;;  %v4888_v50 = vrot.slane %v4886_v4, 4  ;;  %v8074_v5 = vld [vmem:[%s10125_s5 + $0xc8] sm:$0xff]  }
 0x123   : > { %v4891_v46 = vrot.slane %v4889_v63, 5  ;;  %v4923_v54 = vshrl.u32 %v9297_v44, 16  ;;  %v4868_v60 = vor.u32 %v4867_v56, %v4864_v58  ;;  %v4881_v41 = vshll.u32 %v4773_v31, 16  ;;  %v9319_v63 = vld [vmem:[%s10125_s5 + $0x200] sm:$0xff]   ;;  %v2351_v56 = vld [vmem:[#allocation2 + $0x90] sm:$0xe] }
 0x124   : > { %7612 = vmatpush3.bf16.msra.mxu0 %v8076_v9  ;;  %v4777_v9 = vld [vmem:[#allocation2 + $0x48] sm:$0xf]  ;;  %v4901_v62 = vrot.slane %v4899_v0, 4  ;;  %v9314_v4 = vcombine.low %v4826_v40, %v4836_v43  ;;  %10151 = vst [vmem:[#allocation7_spill] sm:$0xff] %v9319_v63  ;;  %v4878_v31 = vor.u32 %v4877_v39, %v9301_v57  ;;  %v4905_v20 = vshll.u32 %v4776_v49, 16 }
 0x125   : > { %7358 = vmatmul.mubr.bf16.gmra.mrb[28].mxu1 %v10148_v52  ;;  %7613 = vmatprep.subr.bf16.mxu0 %v8080_v32  ;;  %v4895_v52 = vshll.u32 %v4775_v16, 16  ;;  %v4910_v16 = vshrl.u32 %v4777_v9, 16  ;;  %v4913_v59 = vshll.u32 %v4777_v9, 16  ;;  %v8075_v9 = vld [vmem:[#allocation2 + $0x90] sm:$0xff]   ;;  %v4892_v58 = vor.u32 %v4891_v46, %v4888_v50 }
 0x126   : > { %7377 = vmatprep.mubr.bf16.mxu1 %v10149_v30  ;;  %v4919_v30 = vshll.u32 %v9297_v44, 16  ;;  %v4925_v44 = vrot.slane %v4923_v54, 4  ;;  %v10153_v43 = vcombine.low %v9133_v29, %v9137_v17  ;;  %v8078_v50 = vld [vmem:[%s10125_s5 + $0xd0] sm:$0xff]   ;;  %v4907_v29 = vrot.slane %v4905_v20, 5  ;;  %v9356_v54 = vld [vmem:[#allocation2 + $0x58] sm:$0xf] }
 0x127   : > { %7582 = vmatmul.mubr.bf16.gmra.mrb[12].mxu0 %v8069_v24  ;;  %v9309_v24 = vrot.slane %v4895_v52, 5  ;;  %v8155_v52 = vld [vmem:[#allocation2 + $0x94] sm:$0xf]  ;;  %v4915_v39 = vrot.slane %v4913_v59, 5  ;;  %v6600_v17 = vrot.slane %v2351_v56, 9  ;;  %10155 = vst [vmem:[#allocation9_spill] sm:$0xff] %v9356_v54 }
 0x128   : > { %7585 = vmatprep.mubr.bf16.mxu0 %v8071_v38  ;;  %7614 = vmatpush3.bf16.msra.mxu0 %v8080_v32  ;;  %v9323_v32 = vsel %vm8548_vm8, %v6599_v37, %v2469_v1  ;;  %v8073_v38 = vld [vmem:[#allocation2 + $0x84] sm:$0xff]   ;;  %v2476_v0 = vrot.slane %v8155_v52, 5  ;;  %v10152_v1 = vcombine.low %v9116_v48, %v9124_v2  ;;  %v4912_v37 = vrot.slane %v4910_v16, 4  ;;  %v9353_v16 = vld [vmem:[#allocation2 + $0x50] sm:$0x1] }
 0x129   : > { %7615 = vmatprep.subr.bf16.mxu0 %v8084_v7  ;;  %v9335_v49 = vrot.slane %v4919_v30, 5  ;;  %v9346_v48 = vsel %vm8548_vm8, %v2471_v42, %v2472_v22  ;;  %v9348_v2 = vrot.slane %v4868_v60, 4  ;;  %v4902_v46 = vor.u32 %v4901_v62, %v9309_v24  ;;  %10154 = vst [vmem:[#allocation8_spill] sm:$0xff] %v9353_v16  ;;  %v8156_v59 = vld [vmem:[#allocation2 + $0xa0] sm:$0xf] }
 0x12a   : > { %v2483_v30 = vrot.slane %v8156_v59, 5  ;;  %v2478_v22 = vrot.slane %v2476_v0, 4  ;;  %v8157_v42 = vld [vmem:[#allocation2 + $0x98] sm:$0x1]  ;;  %v4937_v52 = vshll.u32 %v4780_v23, 16  ;;  %v4893_v62 = vrot.slane %v4892_v58, 4 }
 0x12b   : > { %v2479_v60 = vrot.slane %v8157_v42, 5  ;;  %v4926_v40 = vor.u32 %v4925_v44, %v9335_v49  ;;  %v4874_v20 = vsel %vm8388_vm5, %v9348_v2, %v9301_v57  ;;  %v4943_v56 = vshll.u32 %v9356_v54, 16  ;;  %v8158_v58 = vld [vmem:[#allocation2 + $0xa4] sm:$0x1]  ;;  %v8077_v57 = vld [vmem:[#allocation2 + $0x9c] sm:$0xff]  }
 0x12c   : > { %7616 = vmatpush3.bf16.msra.mxu0 %v8084_v7  ;;  %v9350_v7 = vrot.slane %v4881_v41, 5  ;;  %v2352_v41 = vld [vmem:[#allocation2 + $0x9c] sm:$0xe]  ;;  %v4947_v59 = vshrl.u32 %v9356_v54, 16  ;;  %v9371_v44 = vsel %vm8548_vm8, %v6600_v17, %v2476_v0  ;;  %v4939_v54 = vrot.slane %v4937_v52, 5  ;;  %v8079_v17 = vld [vmem:[#allocation2 + $0xa8] sm:$0xff]  }
 0x12d   : > { %7378 = vmatmul.mubr.bf16.vlgmr.msra.gmra.mrb[0].mxu1 %v10152_v1  ;;  %7649 = vmatprep.subr.bf16.mxu0 %v9319_v63  ;;  %v4916_v1 = vor.u32 %v4915_v39, %v4912_v37  ;;  %v2486_v37 = vrot.slane %v8158_v58, 5  ;;  %v9373_v39 = vld [vmem:[#allocation2 + $0x5c] sm:$0x1]  ;;  %v10156_v0 = vcombine.low %v9151_v12, %v9160_v10  ;;  %v4927_v63 = vrot.slane %v4926_v40, 4 }
 0x12e   : > { %7410 = vmatpush3.bf16.msra.mxu1 %v9093_v6  ;;  %7381 = vmatprep.mubr.bf16.mxu1 %v10153_v43  ;;  %v4879_v6 = vrot.slane %v4878_v31, 4  ;;  %v4934_v43 = vshrl.u32 %v4780_v23, 16  ;;  %v4929_v31 = vshll.u32 %v9353_v16, 16  ;;  %v8082_v23 = vld [vmem:[%s10125_s5 + $0xd8] sm:$0xff]   ;;  %v2353_v16 = vld [vmem:[#allocation2 + $0xa8] sm:$0xe] }
 0x12f   : > { %7411 = vmatprep.subr.bf16.mxu1 %v8074_v5  ;;  %7586 = vmatmul.mubr.bf16.gmra.mrb[16].mxu0 %v8073_v38  ;;  %v4903_v38 = vrot.slane %v4902_v46, 4  ;;  %v9380_v46 = vsel %vm8548_vm8, %v2478_v22, %v2479_v60  ;;  %v4917_v58 = vrot.slane %v4916_v1, 4  ;;  %v9393_v22 = vrot.slane %v4943_v56, 5  ;;  %v9433_v1 = vld [vmem:[#allocation2 + $0x64] sm:$0xf] }
 0x130   : > { %7589 = vmatprep.mubr.bf16.mxu0 %v8075_v9  ;;  %v2485_v9 = vrot.slane %v2483_v30, 4  ;;  %v4884_v2 = vsel %vm8388_vm5, %v4879_v6, %v9350_v7  ;;  %v4936_v42 = vrot.slane %v4934_v43, 4  ;;  %v4931_v61 = vrot.slane %v4929_v31, 5 }
 0x131   : > { %v10157_v7 = vcombine.low %v9169_v3, %v9194_v35  ;;  %v4908_v6 = vsel %vm8388_vm5, %v4903_v38, %v4907_v29  ;;  %v4949_v12 = vrot.slane %v4947_v59, 4  ;;  %v4953_v10 = vshll.u32 %v9373_v39, 16  ;;  %v8159_v38 = vld [vmem:[#allocation2 + $0xb0] sm:$0x1]  ;;  %v4786_v59 = vld [vmem:[#allocation2 + $0x6c] sm:$0xf] }
 0x132   : > { %7412 = vmatpush3.bf16.msra.mxu1 %v8074_v5  ;;  %v6601_v5 = vrot.slane %v2352_v41, 9  ;;  %v4898_v41 = vsel %vm8388_vm5, %v4893_v62, %v9309_v24  ;;  %v8086_v24 = vld [vmem:[%s10125_s5 + $0xe0] sm:$0xff]   ;;  %v9405_v3 = vsel %vm8548_vm8, %v2485_v9, %v2486_v37  ;;  %v6602_v35 = vrot.slane %v2353_v16, 9  ;;  %v4789_v37 = vld [vmem:[#allocation2 + $0x78] sm:$0xf] }
 0x133   : > { %7413 = vmatprep.subr.bf16.mxu1 %v8078_v50  ;;  %10159 = vst [vmem:[#allocation11_spill] sm:$0xff] %v9405_v3  ;;  %v10160_v29 = vsel %vm8388_vm5, %v9299_v13, %v9274_v33  ;;  %v10161_v60 = vsel %vm8388_vm5, %v9264_v26, %v9252_v34  ;;  %v9422_v52 = vcombine.low %v4874_v20, %v4884_v2  ;;  %v4783_v26 = vld [vmem:[#allocation2 + $0x60] sm:$0xf]  ;;  %v9438_v20 = vrot.slane %v4953_v10, 5 }
 0x134   : > { %v9401_v40 = vsel %vm8548_vm8, %v6601_v5, %v2483_v30  ;;  %v9418_v30 = vcombine.low %v10161_v60, %v10160_v29  ;;  %v4940_v16 = vor.u32 %v4939_v54, %v4936_v42  ;;  %v9424_v62 = vcombine.low %v4898_v41, %v4908_v6  ;;  %v9440_v5 = vld [vmem:[#allocation2 + $0x70] sm:$0xf]  ;;  %v9454_v41 = vld [vmem:[#allocation2 + $0x7c] sm:$0xf] }
 0x135   : > { %7382 = vmatmul.mubr.bf16.gmra.mrb[4].mxu1 %v10156_v0  ;;  %10158 = vst [vmem:[#allocation10_spill] sm:$0xff] %v9401_v40  ;;  %v4922_v33 = vsel %vm8388_vm5, %v4917_v58, %v9335_v49  ;;  %v4932_v34 = vsel %vm8388_vm5, %v4927_v63, %v4931_v61  ;;  %v4950_v31 = vor.u32 %v4949_v12, %v9393_v22  ;;  %v2493_v56 = vrot.slane %v8159_v38, 5  ;;  %v8088_v61 = vld [vmem:[%s10125_s5 + $0xe8] sm:$0xff]  }
 0x136   : > { %7385 = vmatprep.mubr.bf16.mxu1 %v10157_v7  ;;  %7414 = vmatpush3.bf16.msra.mxu1 %v8078_v50  ;;  %v2490_v50 = vrot.slane %v8959_v27, 5  ;;  %v2354_v27 = vld [vmem:[#allocation2 + $0xb4] sm:$0xe]  ;;  %v2497_v9 = vrot.slane %v8972_v53, 5  ;;  %v9450_v2 = vcombine.low %v4922_v33, %v4932_v34  ;;  %v9452_v42 = vrot.slane %v4940_v16, 4  ;;  %10162 = vst [vmem:[#allocation12_spill] sm:$0xff] %v9454_v41 }
 0x137   : > { %7415 = vmatprep.subr.bf16.mxu1 %v8082_v23  ;;  %7590 = vmatmul.mubr.bf16.gmra.mrb[20].mxu0 %v8077_v57  ;;  %v8081_v57 = vld [vmem:[#allocation2 + $0xb4] sm:$0xff]   ;;  %v4958_v0 = vshrl.u32 %v4783_v26, 16  ;;  %v10163_v58 = vcombine.low %v9174_v11, %v9198_v8  ;;  %v8083_v7 = vld [vmem:[#allocation2 + $0xc0] sm:$0xff]   ;;  %v4967_v6 = vshll.u32 %v9433_v1, 16  ;;  %v4971_v12 = vshrl.u32 %v9433_v1, 16 }
 0x138   : > { %7593 = vmatprep.mubr.bf16.mxu0 %v8079_v17  ;;  %v9447_v63 = vsel %vm8548_vm8, %v6602_v35, %v2490_v50  ;;  %v2492_v49 = vrot.slane %v2490_v50, 4  ;;  %v4961_v17 = vshll.u32 %v4783_v26, 16  ;;  %v4982_v53 = vshrl.u32 %v4786_v59, 16  ;;  %v8090_v11 = vld [vmem:[%s10125_s5 + $0xf0] sm:$0xff]   ;;  %v9484_v26 = vld [vmem:[#allocation2 + $0x68] sm:$0x1] }
 0x139   : > { %v4985_v10 = vshll.u32 %v4786_v59, 16  ;;  %v10164_v35 = vcombine.low %v9202_v18, %v9206_v19  ;;  %v4991_v50 = vshll.u32 %v9440_v5, 16  ;;  %v4995_v29 = vshrl.u32 %v9440_v5, 16  ;;  %v4792_v59 = vld [vmem:[#allocation2 + $0x84] sm:$0xf] }
 0x13a   : > { %7416 = vmatpush3.bf16.msra.mxu1 %v8082_v23  ;;  %v6603_v23 = vrot.slane %v2354_v27, 9  ;;  %v5006_v60 = vshrl.u32 %v4789_v37, 16  ;;  %v5009_v16 = vshll.u32 %v4789_v37, 16  ;;  %v9469_v8 = vrot.slane %v4950_v31, 4  ;;  %v9471_v27 = vld [vmem:[#allocation2 + $0xbc] sm:$0x1] }
 0x13b   : > { %7417 = vmatprep.subr.bf16.mxu1 %v8086_v24  ;;  %v5015_v18 = vshll.u32 %v9454_v41, 16  ;;  %v5019_v19 = vshrl.u32 %v9454_v41, 16  ;;  %v4960_v31 = vrot.slane %v4958_v0, 4  ;;  %v4963_v38 = vrot.slane %v4961_v17, 5  ;;  %v8092_v37 = vld [vmem:[%s10125_s5 + $0xf8] sm:$0xff]  }
 0x13c   : > { %v9482_v34 = vsel %vm8548_vm8, %v6603_v23, %v2497_v9  ;;  %v9493_v23 = vld [vmem:[#allocation2 + $0x74] sm:$0x1]  ;;  %v9495_v54 = vrot.slane %v4991_v50, 5  ;;  %v4997_v0 = vrot.slane %v4995_v29, 4  ;;  %v5008_v17 = vrot.slane %v5006_v60, 4 }
 0x13d   : > { %7386 = vmatmul.mubr.bf16.gmra.mrb[8].mxu1 %v10163_v58  ;;  %v9489_v58 = vrot.slane %v4967_v6, 5  ;;  %v5011_v13 = vrot.slane %v5009_v16, 5  ;;  %v9499_v43 = vrot.slane %v5015_v18, 5  ;;  %v5021_v6 = vrot.slane %v5019_v19, 4  ;;  %v9522_v41 = vld [vmem:[#allocation2 + $0x94] sm:$0xf] }
 0x13e   : > { %7389 = vmatprep.mubr.bf16.mxu1 %v10164_v35  ;;  %7418 = vmatpush3.bf16.msra.mxu1 %v8086_v24  ;;  %v9478_v24 = vsel %vm8548_vm8, %v2492_v49, %v2493_v56  ;;  %v4984_v35 = vrot.slane %v4982_v53, 4  ;;  %v4987_v56 = vrot.slane %v4985_v10, 5  ;;  %v9491_v49 = vld [vmem:[#allocation2 + $0x88] sm:$0xf]  ;;  %v5030_v33 = vshrl.u32 %v4792_v59, 16  ;;  %v8085_v53 = vld [vmem:[#allocation2 + $0xcc] sm:$0xff]  }
 0x13f   : > { %7419 = vmatprep.subr.bf16.mxu1 %v8088_v61  ;;  %7594 = vmatmul.mubr.bf16.gmra.mrb[24].mxu0 %v8081_v57  ;;  %v4973_v57 = vrot.slane %v4971_v12, 4  ;;  %10165 = vst [vmem:[#allocation13_spill] sm:$0xff] %v9491_v49  ;;  %v5033_v12 = vshll.u32 %v4792_v59, 16  ;;  %v2499_v10 = vrot.slane %v2497_v9, 4  ;;  %v5039_v50 = vshll.u32 %v9491_v49, 16 }
 0x140   : > { %7597 = vmatprep.mubr.bf16.mxu0 %v8083_v7  ;;  %v9497_v7 = vld [vmem:[#allocation2 + $0x80] sm:$0x1]  ;;  %v5043_v29 = vshrl.u32 %v9491_v49, 16  ;;  %v10166_v60 = vcombine.low %v9210_v45, %v9214_v28  ;;  %v4964_v18 = vor.u32 %v4963_v38, %v4960_v31  ;;  %v4977_v19 = vshll.u32 %v9484_v26, 16  ;;  %v9525_v40 = vld [vmem:[#allocation2 + $0x8c] sm:$0x1] }
 0x141   : > { %v5001_v59 = vshll.u32 %v9493_v23, 16  ;;  %v10167_v9 = vcombine.low %v9218_v14, %v9222_v36  ;;  %v4974_v49 = vor.u32 %v4973_v57, %v9489_v58  ;;  %v4988_v45 = vor.u32 %v4987_v56, %v4984_v35 }
 0x142   : > { %7420 = vmatpush3.bf16.msra.mxu1 %v8088_v61  ;;  %v4795_v61 = vld [vmem:[#allocation2 + $0x90] sm:$0xf]  ;;  %v4998_v28 = vor.u32 %v4997_v0, %v9495_v54  ;;  %v5012_v31 = vor.u32 %v5011_v13, %v5008_v17  ;;  %v5022_v38 = vor.u32 %v5021_v6, %v9499_v43  ;;  %v5032_v16 = vrot.slane %v5030_v33, 4 }
 0x143   : > { %7421 = vmatprep.subr.bf16.mxu1 %v8090_v11  ;;  %v5035_v3 = vrot.slane %v5033_v12, 5  ;;  %v9527_v14 = vrot.slane %v5039_v50, 5  ;;  %v5045_v36 = vrot.slane %v5043_v29, 4  ;;  %v5057_v57 = vshll.u32 %v4795_v61, 16 }
 0x144   : > { %v4965_v35 = vrot.slane %v4964_v18, 4  ;;  %v4979_v56 = vrot.slane %v4977_v19, 5  ;;  %v5063_v0 = vshll.u32 %v9522_v41, 16  ;;  %v5067_v13 = vshrl.u32 %v9522_v41, 16  ;;  %v4798_v18 = vld [vmem:[#allocation2 + $0x9c] sm:$0xf] }
 0x145   : > { %7390 = vmatmul.mubr.bf16.gmra.mrb[12].mxu1 %v10166_v60  ;;  %v5025_v60 = vshll.u32 %v9497_v7, 16  ;;  %v4975_v17 = vrot.slane %v4974_v49, 4  ;;  %v4989_v33 = vrot.slane %v4988_v45, 4  ;;  %v4999_v6 = vrot.slane %v4998_v28, 4 }
 0x146   : > { %7393 = vmatprep.mubr.bf16.mxu1 %v10167_v9  ;;  %7422 = vmatpush3.bf16.msra.mxu1 %v8090_v11  ;;  %v5054_v11 = vshrl.u32 %v4795_v61, 16  ;;  %v5003_v12 = vrot.slane %v5001_v59, 5  ;;  %v5013_v61 = vrot.slane %v5012_v31, 4  ;;  %v5049_v29 = vshll.u32 %v9525_v40, 16  ;;  %v9552_v31 = vld [vmem:[#allocation2 + $0x98] sm:$0x1] }
 0x147   : > { %7423 = vmatprep.subr.bf16.mxu1 %v8092_v37  ;;  %7598 = vmatmul.mubr.bf16.gmra.mrb[28].mxu0 %v8085_v53  ;;  %v9535_v53 = vld [vmem:[%s10125_s5 + $0x100] sm:$0xff]   ;;  %v5027_v50 = vrot.slane %v5025_v60, 5  ;;  %v5036_v19 = vor.u32 %v5035_v3, %v5032_v16  ;;  %v5046_v49 = vor.u32 %v5045_v36, %v9527_v14  ;;  %v5059_v9 = vrot.slane %v5057_v57, 5 }
 0x148   : > { %7617 = vmatprep.mubr.bf16.mxu0 %v9314_v4  ;;  %v5023_v4 = vrot.slane %v5022_v38, 4  ;;  %v10168_v59 = vcombine.low %v9226_v51, %v9233_v15  ;;  %v10169_v45 = vrot.slane %v9471_v27, 5  ;;  %v4970_v60 = vsel %vm8388_vm5, %v4965_v35, %v9489_v58  ;;  %v8089_v51 = vld [vmem:[%s10125_s5 + $0x208] sm:$0xff]   ;;  %v9576_v57 = vld [vmem:[#allocation2 + $0xa0] sm:$0xf] }
 0x149   : > { %v9554_v3 = vrot.slane %v5063_v0, 5  ;;  %v5069_v16 = vrot.slane %v5067_v13, 4  ;;  %v10170_v38 = vcombine.low %v9292_v55, %v9305_v25  ;;  %v4980_v15 = vsel %vm8388_vm5, %v4975_v17, %v4979_v56  ;;  %v10171_v13 = vld [vmem:[#allocation4_spill] sm:$0xff]  ;;  %v10172_v17 = vld [vmem:[#allocation3_spill] sm:$0xff] }
 0x14a   : > { %7424 = vmatpush3.bf16.msra.mxu1 %v8092_v37  ;;  %v5056_v37 = vrot.slane %v5054_v11, 4  ;;  %v9547_v28 = vsel %vm8548_vm8, %v2499_v10, %v10169_v45  ;;  %v4994_v27 = vsel %vm8388_vm5, %v4989_v33, %v9495_v54  ;;  %v5078_v58 = vshrl.u32 %v4798_v18, 16 }
 0x14b   : > { %7697 = vmatprep.subr.bf16.mxu1 %v9535_v53  ;;  %v5081_v10 = vshll.u32 %v4798_v18, 16  ;;  %v5004_v36 = vsel %vm8388_vm5, %v4999_v6, %v5003_v12  ;;  %v5018_v55 = vsel %vm8388_vm5, %v5013_v61, %v9499_v43  ;;  %v5028_v25 = vsel %vm8388_vm5, %v5023_v4, %v5027_v50  ;;  %v10174_v6 = vld [vmem:[#allocation7_spill] sm:$0xff] }
 0x14c   : > { %v9574_v11 = vrot.slane %v5049_v29, 5  ;;  %v9579_v35 = vrot.slane %v5036_v19, 4  ;;  %v9581_v54 = vrot.slane %v5046_v49, 4  ;;  %v5060_v56 = vor.u32 %v5059_v9, %v5056_v37  ;;  %v9609_v29 = vld [vmem:[#allocation2 + $0xa4] sm:$0x1] }
 0x14d   : > { %7394 = vmatmul.mubr.bf16.gmra.mrb[16].mxu1 %v10168_v59  ;;  %v5073_v0 = vshll.u32 %v9552_v31, 16  ;;  %v10173_v33 = vor.u32 %v10171_v13, %v10172_v17  ;;  %v10175_v12 = vsel %vm8388_vm5, %v9469_v8, %v9438_v20  ;;  %v10176_v61 = vsel %vm8388_vm5, %v9452_v42, %v9393_v22  ;;  %v5506_v49 = vld [vmem:[#allocation2 + $0x48] sm:$0xe]  ;;  %v5508_v13 = vld [vmem:[#allocation2 + $0x60] sm:$0xe] }
 0x14e   : > { %7397 = vmatprep.mubr.bf16.mxu1 %v10170_v38  ;;  %v9604_v4 = vcombine.low %v10176_v61, %v10175_v12  ;;  %v6618_v50 = vcombine.low %v9447_v63, %v9478_v24  ;;  %v9611_v18 = vrot.slane %v5078_v58, 4  ;;  %v9613_v19 = vrot.slane %v5081_v10, 5  ;;  %v10181_v61 = vld [vmem:[#allocation9_spill] sm:$0xff]  ;;  %v9735_v63 = vld [vmem:[#allocation2 + $0xb0] sm:$0x1] }
 0x14f   : > { %7618 = vmatmul.mubr.bf16.vlgmr.msra.gmra.mrb[0].mxu0 %v9418_v30  ;;  %v9587_v43 = vrot.slane %v10173_v33, 4  ;;  %v8091_v30 = vld [vmem:[%s10125_s5 + $0x210] sm:$0xff]   ;;  %v5087_v20 = vshll.u32 %v9576_v57, 16  ;;  %v5091_v8 = vshrl.u32 %v9576_v57, 16  ;;  %v9619_v42 = vcombine.low %v4970_v60, %v4980_v15  ;;  %v9637_v60 = vld [vmem:[#allocation2 + $0xa8] sm:$0xf] }
 0x150   : > { %7650 = vmatpush3.bf16.msra.mxu0 %v10174_v6  ;;  %7621 = vmatprep.mubr.bf16.mxu0 %v9422_v52  ;;  %v5070_v52 = vor.u32 %v5069_v16, %v9554_v3  ;;  %v9621_v37 = vcombine.low %v4994_v27, %v5004_v36  ;;  %v9623_v9 = vcombine.low %v5018_v55, %v5028_v25  ;;  %v9633_v16 = vrot.slane %v5060_v56, 4  ;;  %v5507_v15 = vld [vmem:[#allocation2 + $0x54] sm:$0xe]  ;;  %v10180_v33 = vld [vmem:[#allocation8_spill] sm:$0xff] }
 0x151   : > { %7651 = vmatprep.subr.bf16.mxu0 %v8089_v51  ;;  %v9635_v38 = vrot.slane %v5073_v0, 5  ;;  %v10177_v27 = vcombine.low %v9323_v32, %v9346_v48  ;;  %v5097_v10 = vshll.u32 %v9609_v29, 16  ;;  %v6768_v36 = vrot.slane %v5506_v49, 9  ;;  %v10178_v55 = vld [vmem:[#allocation6_spill] sm:$0xff]  ;;  %v8093_v0 = vld [vmem:[%s10125_s5 + $0x218] sm:$0xff]  }
 0x152   : > { %v9642_v58 = vrot.slane %v5070_v52, 4  ;;  %v5596_v25 = vrot.slane %v10178_v55, 5  ;;  %v10179_v56 = vcombine.low %v9371_v44, %v9380_v46  ;;  %v5084_v32 = vor.u32 %v9613_v19, %v9611_v18 }
 0x153   : > { %v9654_v48 = vrot.slane %v5087_v20, 5  ;;  %v5599_v6 = vrot.slane %v10180_v33, 5  ;;  %v6769_v46 = vrot.slane %v5507_v15, 9  ;;  %v5603_v52 = vrot.slane %v10181_v61, 5 }
 0x154   : > { %7652 = vmatpush3.bf16.msra.mxu0 %v8089_v51  ;;  %v9656_v51 = vrot.slane %v5091_v8, 4  ;;  %v9661_v12 = vsel %vm8548_vm8, %v6768_v36, %v5596_v25  ;;  %v5598_v44 = vrot.slane %v5596_v25, 4  ;;  %v5102_v49 = vshrl.u32 %v9637_v60, 16  ;;  %v5509_v8 = vld [vmem:[#allocation2 + $0x6c] sm:$0xe] }
 0x155   : > { %7398 = vmatmul.mubr.bf16.gmra.mrb[20].mxu1 %v10177_v27  ;;  %7653 = vmatprep.subr.bf16.mxu0 %v8091_v30  ;;  %v5606_v18 = vrot.slane %v9373_v39, 5  ;;  %v6770_v19 = vrot.slane %v5508_v13, 9  ;;  %v5610_v20 = vrot.slane %v9433_v1, 5  ;;  %v9669_v27 = vld [vmem:[#allocation2 + $0xac] sm:$0xf]  ;;  %v5105_v36 = vshll.u32 %v9637_v60, 16 }
 0x156   : > { %7401 = vmatprep.mubr.bf16.mxu1 %v10179_v56  ;;  %v9674_v15 = vsel %vm8548_vm8, %v5598_v44, %v5599_v6  ;;  %v5605_v39 = vrot.slane %v5603_v52, 4  ;;  %v8096_v1 = vld [vmem:[%s10125_s5 + $0x220] sm:$0xff]   ;;  %v5613_v55 = vrot.slane %v9484_v26, 5  ;;  %v6771_v13 = vrot.slane %v5509_v8, 9  ;;  %v3204_v26 = vld [vmem:[#allocation2 + $0x78] sm:$0xf] }
 0x157   : > { %7622 = vmatmul.mubr.bf16.gmra.mrb[4].mxu0 %v9424_v62  ;;  %v9678_v62 = vsel %vm8548_vm8, %v6769_v46, %v5603_v52  ;;  %v5612_v60 = vrot.slane %v5610_v20, 4  ;;  %v5617_v56 = vrot.slane %v9440_v5, 5  ;;  %v5620_v33 = vrot.slane %v9493_v23, 5  ;;  %v10182_v52 = vld [vmem:[#allocation10_spill] sm:$0xff]  ;;  %v10185_v5 = vld [vmem:[#allocation5_spill] sm:$0xff] }
 0x158   : > { %7625 = vmatprep.mubr.bf16.mxu0 %v9450_v2  ;;  %7654 = vmatpush3.bf16.msra.mxu0 %v8091_v30  ;;  %v9687_v30 = vsel %vm8548_vm8, %v6770_v19, %v5610_v20  ;;  %v9692_v25 = vsel %vm8548_vm8, %v5605_v39, %v5606_v18  ;;  %v5111_v6 = vshll.u32 %v9669_v27, 16  ;;  %v5115_v44 = vshrl.u32 %v9669_v27, 16  ;;  %v10183_v18 = vld [vmem:[#allocation11_spill] sm:$0xff]  ;;  %v9711_v23 = vld [vmem:[#allocation2 + $0xb4] sm:$0xf] }
 0x159   : > { %7655 = vmatprep.subr.bf16.mxu0 %v8093_v0  ;;  %v9702_v61 = vsel %vm8548_vm8, %v5612_v60, %v5613_v55  ;;  %v10184_v19 = vcombine.low %v10182_v52, %v10183_v18  ;;  %v9717_v8 = vsel %vm8548_vm8, %v6771_v13, %v5617_v56  ;;  %v5619_v39 = vrot.slane %v5617_v56, 4  ;;  %v8099_v60 = vld [vmem:[%s10125_s5 + $0x228] sm:$0xff]   ;;  %v5510_v52 = vld [vmem:[#allocation2 + $0x78] sm:$0xe] }
 0x15a   : > { %v9729_v55 = vrot.slane %v5084_v32, 4  ;;  %v5094_v13 = vor.u32 %v9656_v51, %v9654_v48  ;;  %v9733_v56 = vrot.slane %v5097_v10, 5  ;;  %v5104_v24 = vrot.slane %v5102_v49, 4  ;;  %v5511_v51 = vld [vmem:[#allocation2 + $0x84] sm:$0xe] }
 0x15b   : > { %v3442_v18 = vshrl.u32 %v3204_v26, 16  ;;  %v5107_v20 = vrot.slane %v5105_v36, 5  ;;  %v9742_v32 = vrot.slane %v5111_v6, 5  ;;  %v5117_v46 = vrot.slane %v5115_v44, 4  ;;  %v8102_v6 = vld [vmem:[%s10125_s5 + $0x230] sm:$0xff]  }
 0x15c   : > { %7656 = vmatpush3.bf16.msra.mxu0 %v8093_v0  ;;  %v5121_v36 = vshll.u32 %v9735_v63, 16  ;;  %v5126_v44 = vshrl.u32 %v9711_v23, 16  ;;  %v6773_v10 = vrot.slane %v5511_v51, 9  ;;  %v5129_v59 = vshll.u32 %v9711_v23, 16 }
 0x15d   : > { %7402 = vmatmul.mubr.bf16.gmra.mrb[24].mxu1 %v10184_v19  ;;  %7657 = vmatprep.subr.bf16.mxu0 %v8096_v1  ;;  %v3445_v19 = vshll.u32 %v3204_v26, 16  ;;  %v3444_v49 = vrot.slane %v3442_v18, 4  ;;  %v6772_v26 = vrot.slane %v5510_v52, 9  ;;  %v9758_v18 = vld [vmem:[#allocation2 + $0xb8] sm:$0xf]  ;;  %v5634_v52 = vrot.slane %v9525_v40, 5 }
 0x15e   : > { %7405 = vmatprep.mubr.bf16.mxu1 %v6618_v50  ;;  %v9739_v50 = vsel %vm8548_vm8, %v5619_v39, %v5620_v33  ;;  %v3464_v33 = vsel %vm8388_vm5, %v9587_v43, %v10185_v5  ;;  %v5627_v39 = vrot.slane %v9497_v7, 5  ;;  %v10187_v43 = vld [vmem:[#allocation13_spill] sm:$0xff]  ;;  %v5108_v0 = vor.u32 %v5107_v20, %v5104_v24 }
 0x15f   : > { %7626 = vmatmul.mubr.bf16.gmra.mrb[8].mxu0 %v9604_v4  ;;  %v3447_v2 = vrot.slane %v3445_v19, 5  ;;  %v8094_v4 = vld [vmem:[#allocation2 + $0xc] sm:$0xff]   ;;  %v5631_v5 = vrot.slane %v10187_v43, 5  ;;  %v5118_v7 = vor.u32 %v5117_v46, %v9742_v32  ;;  %v9775_v23 = vrot.slane %v5094_v13, 4  ;;  %v9809_v43 = vld [vmem:[#allocation2 + $0xbc] sm:$0x1] }
 0x160   : > { %7629 = vmatprep.mubr.bf16.mxu0 %v9619_v42  ;;  %7658 = vmatpush3.bf16.msra.mxu0 %v8096_v1  ;;  %v10186_v42 = vld [vmem:[#allocation12_spill] sm:$0xff]  ;;  %v5128_v20 = vrot.slane %v5126_v44, 4  ;;  %v5135_v24 = vshll.u32 %v9758_v18, 16  ;;  %v5139_v46 = vshrl.u32 %v9758_v18, 16 }
 0x161   : > { %7659 = vmatprep.subr.bf16.mxu0 %v8099_v60  ;;  %v5624_v1 = vrot.slane %v10186_v42, 5  ;;  %v3448_v19 = vor.u32 %v3447_v2, %v3444_v49  ;;  %v10188_v42 = vcombine.low %v9482_v34, %v9547_v28  ;;  %v9773_v51 = vsel %vm8548_vm8, %v6773_v10, %v5631_v5  ;;  %v4807_v49 = vld [vmem:[#allocation2 + $0xc0] sm:$0xf]  ;;  %v8105_v34 = vld [vmem:[%s10125_s5 + $0x238] sm:$0xff]  }
 0x162   : > { %v5633_v40 = vrot.slane %v5631_v5, 4  ;;  %v5150_v5 = vshrl.u32 %v4807_v49, 16 }
 0x163   : > { %v9765_v45 = vsel %vm8548_vm8, %v6772_v26, %v5624_v1  ;;  %v5626_v22 = vrot.slane %v5624_v1, 4  ;;  %v3449_v2 = vrot.slane %v3448_v19, 4  ;;  %v9807_v19 = vrot.slane %v5121_v36, 5 }
 0x164   : > { %7660 = vmatpush3.bf16.msra.mxu0 %v8099_v60  ;;  %v9786_v60 = vld [vmem:[#allocation2 + $0xc4] sm:$0xf]  ;;  %v9795_v26 = vsel %vm8548_vm8, %v5633_v40, %v5634_v52  ;;  %v4810_v40 = vld [vmem:[#allocation2 + $0xcc] sm:$0xf] }
 0x165   : > { %7406 = vmatmul.mubr.bf16.gmra.mrb[28].mxu1 %v10188_v42  ;;  %7661 = vmatprep.subr.bf16.mxu0 %v8102_v6  ;;  %v9783_v28 = vsel %vm8548_vm8, %v5626_v22, %v5627_v39  ;;  %v3454_v13 = vsel %vm8388_vm5, %v3449_v2, %v10172_v17  ;;  %v5131_v22 = vrot.slane %v5129_v59, 5  ;;  %v6789_v1 = vcombine.low %v9773_v51, %v9795_v26  ;;  %v8095_v39 = vld [vmem:[#allocation2 + $0x18] sm:$0xff]  }
 0x166   : > { %7425 = vmatprep.mubr.bf16.mxu1 %v8094_v4  ;;  %v6788_v10 = vcombine.low %v9765_v45, %v9783_v28  ;;  %v9798_v4 = vrot.slane %v5108_v0, 4  ;;  %v9800_v44 = vcombine.low %v3454_v13, %v3464_v33  ;;  %v9805_v17 = vrot.slane %v5118_v7, 4  ;;  %v8162_v13 = vld [vmem:[%s10125_s5 + $0x108] sm:$0xff]  }
 0x167   : > { %7630 = vmatmul.mubr.bf16.gmra.mrb[12].mxu0 %v9621_v37  ;;  %v10189_v37 = vsel %vm8388_vm5, %v9581_v54, %v9574_v11  ;;  %v10190_v59 = vsel %vm8388_vm5, %v9579_v35, %v9527_v14  ;;  %v5153_v33 = vshll.u32 %v4807_v49, 16  ;;  %v5159_v36 = vshll.u32 %v9786_v60, 16  ;;  %v9856_v49 = vld [vmem:[#allocation2 + $0xd0] sm:$0xf] }
 0x168   : > { %7633 = vmatprep.mubr.bf16.mxu0 %v9623_v9  ;;  %7662 = vmatpush3.bf16.msra.mxu0 %v8102_v6  ;;  %v6749_v0 = vcombine.low %v10190_v59, %v10189_v37  ;;  %v8097_v9 = vld [vmem:[#allocation2 + $0x24] sm:$0xff]   ;;  %v5163_v52 = vshrl.u32 %v9786_v60, 16  ;;  %v5512_v6 = vld [vmem:[#allocation2 + $0x90] sm:$0xe]  ;;  %v10191_v42 = vsel %vm8388_vm5, %v9642_v58, %v9635_v38  ;;  %v10192_v11 = vsel %vm8388_vm5, %v9633_v16, %v9554_v3  ;;  %v5513_v58 = vld [vmem:[#allocation2 + $0x9c] sm:$0xe] }
 0x169   : > { %7663 = vmatprep.subr.bf16.mxu0 %v8105_v34  ;;  %v6750_v14 = vcombine.low %v10192_v11, %v10191_v42  ;;  %v5090_v35 = vsel %vm8388_vm5, %v9729_v55, %v9654_v48  ;;  %v9837_v54 = vrot.slane %v5135_v24, 5  ;;  %v5141_v7 = vrot.slane %v5139_v46, 4  ;;  %v8163_v42 = vld [vmem:[%s10125_s5 + $0x110] sm:$0xff]  }
 0x16a   : > { %v5100_v2 = vsel %vm8388_vm5, %v9775_v23, %v9733_v56  ;;  %v5114_v38 = vsel %vm8388_vm5, %v9798_v4, %v9742_v32  ;;  %v5132_v3 = vor.u32 %v5131_v22, %v5128_v20  ;;  %v5145_v16 = vshll.u32 %v9809_v43, 16  ;;  %v9863_v4 = vld [vmem:[#allocation2 + $0xc8] sm:$0x1] }
 0x16b   : > { %v5124_v48 = vsel %vm8388_vm5, %v9805_v17, %v9807_v19  ;;  %v5152_v55 = vrot.slane %v5150_v5, 4  ;;  %v6774_v24 = vrot.slane %v5512_v6, 9  ;;  %v5638_v56 = vrot.slane %v9522_v41, 5  ;;  %v8098_v5 = vld [vmem:[#allocation2 + $0x30] sm:$0xff]  }
 0x16c   : > { %7664 = vmatpush3.bf16.msra.mxu0 %v8105_v34  ;;  %v5155_v32 = vrot.slane %v5153_v33, 5  ;;  %v9854_v23 = vrot.slane %v5159_v36, 5  ;;  %v5165_v20 = vrot.slane %v5163_v52, 4  ;;  %v5641_v46 = vrot.slane %v9552_v31, 5  ;;  %v8100_v36 = vld [vmem:[#allocation2 + $0x3c] sm:$0xff]  }
 0x16d   : > { %7426 = vmatmul.mubr.bf16.vlgmr.msra.gmra.mrb[0].mxu1 %v8095_v39  ;;  %v5142_v34 = vor.u32 %v5141_v7, %v9837_v54  ;;  %v9867_v41 = vsel %vm8548_vm8, %v6774_v24, %v5638_v56  ;;  %v6775_v22 = vrot.slane %v5513_v58, 9  ;;  %v5133_v39 = vrot.slane %v5132_v3, 4  ;;  %v9888_v24 = vld [vmem:[#allocation2 + $0xd4] sm:$0x1] }
 0x16e   : > { %7705 = vmatpush3.bf16.msra.mxu1 %v9535_v53  ;;  %7429 = vmatprep.mubr.bf16.mxu1 %v8097_v9  ;;  %v5640_v53 = vrot.slane %v5638_v56, 4  ;;  %v5174_v17 = vshrl.u32 %v4810_v40, 16  ;;  %v5177_v19 = vshll.u32 %v4810_v40, 16  ;;  %v5645_v31 = vrot.slane %v9576_v57, 5 }
 0x16f   : > { %7698 = vmatprep.subr.bf16.mxu1 %v8162_v13  ;;  %7634 = vmatmul.mubr.bf16.gmra.mrb[16].mxu0 %v6749_v0  ;;  %v5183_v37 = vshll.u32 %v9856_v49, 16  ;;  %v5187_v59 = vshrl.u32 %v9856_v49, 16  ;;  %v5648_v33 = vrot.slane %v9609_v29, 5  ;;  %v5156_v0 = vor.u32 %v5155_v32, %v5152_v55 }
 0x170   : > { %7637 = vmatprep.mubr.bf16.mxu0 %v6750_v14  ;;  %v9874_v9 = vsel %vm8548_vm8, %v5640_v53, %v5641_v46  ;;  %v5166_v52 = vor.u32 %v5165_v20, %v9854_v23  ;;  %v5169_v6 = vshll.u32 %v9863_v4, 16  ;;  %v5143_v11 = vrot.slane %v5142_v34, 4  ;;  %v8164_v34 = vld [vmem:[%s10125_s5 + $0x118] sm:$0xff]  }
 0x171   : > { %v6790_v57 = vcombine.low %v9867_v41, %v9874_v9  ;;  %v5147_v14 = vrot.slane %v5145_v16, 5  ;;  %v9886_v29 = vsel %vm8548_vm8, %v6775_v22, %v5645_v31  ;;  %v5647_v7 = vrot.slane %v5645_v31, 4  ;;  %v8101_v31 = vld [vmem:[#allocation2 + $0x48] sm:$0xff]  }
 0x172   : > { %7706 = vmatpush3.bf16.msra.mxu1 %v8162_v13  ;;  %v6751_v3 = vcombine.low %v5090_v35, %v5100_v2  ;;  %v5176_v58 = vrot.slane %v5174_v17, 4  ;;  %v5179_v55 = vrot.slane %v5177_v19, 5  ;;  %v6752_v40 = vcombine.low %v5114_v38, %v5124_v48  ;;  %v5514_v2 = vld [vmem:[#allocation2 + $0xa8] sm:$0xe]  ;;  %v5502_v17 = vld [vmem:[#allocation2 + $0x18] sm:$0xe] }
 0x173   : > { %7699 = vmatprep.subr.bf16.mxu1 %v8163_v42  ;;  %v9890_v56 = vrot.slane %v5183_v37, 5  ;;  %v5189_v32 = vrot.slane %v5187_v59, 4  ;;  %v9894_v20 = vsel %vm8548_vm8, %v5647_v7, %v5648_v33  ;;  %v5157_v16 = vrot.slane %v5156_v0, 4  ;;  %v5515_v19 = vld [vmem:[#allocation2 + $0xb4] sm:$0xe] }
 0x174   : > { %v5167_v46 = vrot.slane %v5166_v52, 4  ;;  %v5171_v13 = vrot.slane %v5169_v6, 5  ;;  %v6791_v35 = vcombine.low %v9886_v29, %v9894_v20  ;;  %v5138_v38 = vsel %vm8388_vm5, %v5133_v39, %v9837_v54  ;;  %v8103_v33 = vld [vmem:[#allocation2 + $0x54] sm:$0xff]   ;;  %v8165_v52 = vld [vmem:[#allocation2 + $0x1c] sm:$0xf] }
 0x175   : > { %7430 = vmatmul.mubr.bf16.gmra.mrb[4].mxu1 %v8098_v5  ;;  %v5148_v48 = vsel %vm8388_vm5, %v5143_v11, %v5147_v14  ;;  %v5180_v53 = vor.u32 %v5179_v55, %v5176_v58  ;;  %v5193_v22 = vshll.u32 %v9888_v24, 16  ;;  %v5190_v5 = vor.u32 %v5189_v32, %v9890_v56  ;;  %v8190_v9 = vld [vmem:[#allocation2 + $0xc8] sm:$0x1] }
 0x176   : > { %7433 = vmatprep.mubr.bf16.mxu1 %v8100_v36  ;;  %7707 = vmatpush3.bf16.msra.mxu1 %v8163_v42  ;;  %v6776_v37 = vrot.slane %v5514_v2, 9  ;;  %v5652_v54 = vrot.slane %v9669_v27, 5  ;;  %v5655_v39 = vrot.slane %v9735_v63, 5  ;;  %v6753_v59 = vcombine.low %v5138_v38, %v5148_v48  ;;  %v8166_v42 = vld [vmem:[%s10125_s5 + $0x120] sm:$0xff]  }
 0x177   : > { %7700 = vmatprep.subr.bf16.mxu1 %v8164_v34  ;;  %7638 = vmatmul.mubr.bf16.gmra.mrb[20].mxu0 %v6751_v3  ;;  %v5162_v36 = vsel %vm8388_vm5, %v5157_v16, %v9854_v23  ;;  %v5172_v0 = vsel %vm8388_vm5, %v5167_v46, %v5171_v13  ;;  %v5568_v6 = vrot.slane %v8165_v52, 5  ;;  %v6764_v27 = vrot.slane %v5502_v17, 9  ;;  %v8167_v23 = vld [vmem:[#allocation2 + $0x20] sm:$0x1]  ;;  %v5503_v17 = vld [vmem:[#allocation2 + $0x24] sm:$0xe] }
 0x178   : > { %7641 = vmatprep.mubr.bf16.mxu0 %v6752_v40  ;;  %v9920_v63 = vsel %vm8548_vm8, %v6776_v37, %v5652_v54  ;;  %v5654_v11 = vrot.slane %v5652_v54, 4  ;;  %v6777_v14 = vrot.slane %v5515_v19, 9  ;;  %v5195_v7 = vrot.slane %v5193_v22, 5  ;;  %v8169_v19 = vld [vmem:[#allocation2 + $0x28] sm:$0xf]  ;;  %v8106_v54 = vld [vmem:[#allocation2 + $0x6c] sm:$0xff]  }
 0x179   : > { %v5571_v3 = vrot.slane %v8167_v23, 5  ;;  %v5659_v58 = vrot.slane %v9758_v18, 5  ;;  %v5662_v55 = vrot.slane %v9809_v43, 5  ;;  %v6754_v40 = vcombine.low %v5162_v36, %v5172_v0  ;;  %v8168_v43 = vld [vmem:[%s10125_s5 + $0x128] sm:$0xff]   ;;  %v5516_v37 = vld [vmem:[#allocation2 + $0xc0] sm:$0xe] }
 0x17a   : > { %7708 = vmatpush3.bf16.msra.mxu1 %v8164_v34  ;;  %v5181_v32 = vrot.slane %v5180_v53, 4  ;;  %v5191_v16 = vrot.slane %v5190_v5, 4  ;;  %v9926_v46 = vsel %vm8548_vm8, %v5654_v11, %v5655_v39  ;;  %v5570_v13 = vrot.slane %v5568_v6, 4  ;;  %v8104_v34 = vld [vmem:[#allocation2 + $0x60] sm:$0xff]   ;;  %v8170_v36 = vld [vmem:[#allocation2 + $0x34] sm:$0xf] }
 0x17b   : > { %7701 = vmatprep.subr.bf16.mxu1 %v8166_v42  ;;  %v6792_v2 = vcombine.low %v9920_v63, %v9926_v46  ;;  %v9932_v38 = vsel %vm8548_vm8, %v6777_v14, %v5659_v58  ;;  %v5661_v18 = vrot.slane %v5659_v58, 4  ;;  %v5569_v39 = vsel %vm8548_vm8, %v6764_v27, %v5568_v6  ;;  %v8171_v0 = vld [vmem:[%s10125_s5 + $0x130] sm:$0xff]   ;;  %v8172_v23 = vld [vmem:[#allocation2 + $0x2c] sm:$0x1] }
 0x17c   : > { %v5186_v53 = vsel %vm8388_vm5, %v5181_v32, %v9890_v56  ;;  %v5196_v22 = vsel %vm8388_vm5, %v5191_v16, %v5195_v7  ;;  %v5582_v56 = vrot.slane %v8170_v36, 5  ;;  %v6778_v11 = vrot.slane %v5516_v37, 9  ;;  %v5517_v7 = vld [vmem:[#allocation2 + $0xcc] sm:$0xe]  ;;  %v8107_v37 = vld [vmem:[#allocation2 + $0x78] sm:$0xff]  }
 0x17d   : > { %7434 = vmatmul.mubr.bf16.gmra.mrb[8].mxu1 %v8101_v31  ;;  %v9939_v48 = vsel %vm8548_vm8, %v5661_v18, %v5662_v55  ;;  %v5575_v31 = vrot.slane %v8169_v19, 5  ;;  %v6755_v52 = vcombine.low %v5186_v53, %v5196_v22  ;;  %v5666_v14 = vrot.slane %v9786_v60, 5  ;;  %v5505_v53 = vld [vmem:[#allocation2 + $0x3c] sm:$0xe]  ;;  %v3201_v22 = vld [vmem:[#allocation2 + $0x6c] sm:$0xf] }
 0x17e   : > { %7437 = vmatprep.mubr.bf16.mxu1 %v8103_v33  ;;  %7709 = vmatpush3.bf16.msra.mxu1 %v8166_v42  ;;  %v6793_v5 = vcombine.low %v9932_v38, %v9939_v48  ;;  %v5504_v33 = vld [vmem:[#allocation2 + $0x30] sm:$0xe]  ;;  %v6765_v42 = vrot.slane %v5503_v17, 9  ;;  %v5584_v55 = vrot.slane %v5582_v56, 4  ;;  %v5669_v18 = vrot.slane %v9863_v4, 5 }
 0x17f   : > { %7702 = vmatprep.subr.bf16.mxu1 %v8168_v43  ;;  %7642 = vmatmul.mubr.bf16.gmra.mrb[24].mxu0 %v6753_v59  ;;  %v5572_v59 = vsel %vm8548_vm8, %v5570_v13, %v5571_v3  ;;  %v5577_v27 = vrot.slane %v5575_v31, 4  ;;  %v5578_v3 = vrot.slane %v8172_v23, 5  ;;  %v6766_v58 = vrot.slane %v5504_v33, 9  ;;  %v8174_v13 = vld [vmem:[%s10125_s5 + $0x138] sm:$0xff]   ;;  %v8175_v4 = vld [vmem:[#allocation2 + $0x40] sm:$0xf] }
 0x180   : > { %7645 = vmatprep.mubr.bf16.mxu0 %v6754_v40  ;;  %v6780_v6 = vcombine.low %v5569_v39, %v5572_v59  ;;  %v8173_v40 = vld [vmem:[#allocation2 + $0x38] sm:$0x1]  ;;  %v5668_v16 = vrot.slane %v5666_v14, 4  ;;  %v9961_v60 = vsel %vm8548_vm8, %v6778_v11, %v5666_v14  ;;  %v5673_v17 = vrot.slane %v9856_v49, 5  ;;  %v8176_v14 = vld [vmem:[#allocation2 + $0x70] sm:$0xf] }
 0x181   : > { %v5585_v32 = vrot.slane %v8173_v40, 5  ;;  %v5676_v19 = vrot.slane %v9888_v24, 5  ;;  %v5583_v39 = vsel %vm8548_vm8, %v6766_v58, %v5582_v56  ;;  %v5589_v59 = vrot.slane %v8175_v4, 5  ;;  %v8177_v58 = vld [vmem:[#allocation2 + $0x44] sm:$0x1] }
 0x182   : > { %7710 = vmatpush3.bf16.msra.mxu1 %v8168_v43  ;;  %v6779_v43 = vrot.slane %v5517_v7, 9  ;;  %v9974_v33 = vsel %vm8548_vm8, %v5668_v16, %v5669_v18  ;;  %v6767_v56 = vrot.slane %v5505_v53, 9  ;;  %v3427_v7 = vshll.u32 %v8176_v14, 16 }
 0x183   : > { %7703 = vmatprep.subr.bf16.mxu1 %v8171_v0  ;;  %v5586_v49 = vsel %vm8548_vm8, %v5584_v55, %v5585_v32  ;;  %v6794_v24 = vcombine.low %v9961_v60, %v9974_v33  ;;  %v5592_v55 = vrot.slane %v8177_v58, 5 }
 0x184   : > { %v9982_v36 = vsel %vm8548_vm8, %v6779_v43, %v5673_v17  ;;  %v6782_v23 = vcombine.low %v5583_v39, %v5586_v49  ;;  %v8109_v43 = vld [vmem:[#allocation2 + $0x90] sm:$0xff]  }
 0x185   : > { %7438 = vmatmul.mubr.bf16.gmra.mrb[12].mxu1 %v8104_v34  ;;  %v5576_v34 = vsel %vm8548_vm8, %v6765_v42, %v5575_v31  ;;  %v8108_v31 = vld [vmem:[#allocation2 + $0x84] sm:$0xff]   ;;  %v3421_v42 = vshll.u32 %v3201_v22, 16  ;;  %v8178_v39 = vld [vmem:[#allocation2 + $0x74] sm:$0x1] }
 0x186   : > { %7441 = vmatprep.mubr.bf16.mxu1 %v8106_v54  ;;  %7711 = vmatpush3.bf16.msra.mxu1 %v8171_v0  ;;  %v5579_v54 = vsel %vm8548_vm8, %v5577_v27, %v5578_v3  ;;  %v5675_v0 = vrot.slane %v5673_v17, 4  ;;  %v5591_v3 = vrot.slane %v5589_v59, 4  ;;  %v3207_v17 = vld [vmem:[#allocation2 + $0x84] sm:$0xf]  ;;  %v3437_v4 = vshll.u32 %v8178_v39, 16 }
 0x187   : > { %7704 = vmatprep.subr.bf16.mxu1 %v8174_v13  ;;  %7646 = vmatmul.mubr.bf16.gmra.mrb[28].mxu0 %v6755_v52  ;;  %v3418_v52 = vshrl.u32 %v3201_v22, 16  ;;  %v6781_v11 = vcombine.low %v5576_v34, %v5579_v54  ;;  %v3423_v16 = vrot.slane %v3421_v42, 5  ;;  %v5590_v34 = vsel %vm8548_vm8, %v6767_v56, %v5589_v59  ;;  %v8110_v22 = vld [vmem:[#allocation2 + $0x9c] sm:$0xff]   ;;  %v8111_v56 = vld [vmem:[#allocation2 + $0xa8] sm:$0xff]  }
 0x188   : > { %7665 = vmatprep.mubr.bf16.mxu0 %v6780_v6  ;;  %v3431_v6 = vshrl.u32 %v8176_v14, 16  ;;  %v9986_v27 = vsel %vm8548_vm8, %v5675_v0, %v5676_v19  ;;  %v5593_v53 = vsel %vm8548_vm8, %v5591_v3, %v5592_v55  ;;  %v3469_v49 = vshll.u32 %v3207_v17, 16  ;;  %v8179_v0 = vld [vmem:[#allocation2 + $0x88] sm:$0xf]  ;;  %v3210_v14 = vld [vmem:[#allocation2 + $0x90] sm:$0xf] }
 0x189   : > { %v6795_v40 = vcombine.low %v9982_v36, %v9986_v27  ;;  %v3420_v32 = vrot.slane %v3418_v52, 4  ;;  %v3475_v52 = vshll.u32 %v8179_v0, 16  ;;  %v3479_v42 = vshrl.u32 %v8179_v0, 16 }
 0x18a   : > { %7712 = vmatpush3.bf16.msra.mxu1 %v8174_v13  ;;  %v3429_v13 = vrot.slane %v3427_v7, 5  ;;  %v3433_v18 = vrot.slane %v3431_v6, 4  ;;  %v3439_v47 = vrot.slane %v3437_v4, 5  ;;  %v10193_v7 = vcombine.low %v9661_v12, %v9674_v15  ;;  %v8112_v6 = vld [vmem:[#allocation2 + $0xb4] sm:$0xff]  }
 0x18b   : > { %v3424_v19 = vor.u32 %v3423_v16, %v3420_v32  ;;  %v3471_v3 = vrot.slane %v3469_v49, 5  ;;  %v9997_v58 = vrot.slane %v3475_v52, 5  ;;  %v3481_v55 = vrot.slane %v3479_v42, 4  ;;  %v8113_v42 = vld [vmem:[#allocation2 + $0xc0] sm:$0xff]  }
 0x18c   : > { %v3434_v54 = vor.u32 %v3433_v18, %v3429_v13  ;;  %v3490_v32 = vshrl.u32 %v3210_v14, 16  ;;  %v3493_v16 = vshll.u32 %v3210_v14, 16  ;;  %v3213_v18 = vld [vmem:[#allocation2 + $0x9c] sm:$0xf]  ;;  %v10194_v52 = vcombine.low %v9678_v62, %v9692_v25  ;;  %v8183_v25 = vld [vmem:[#allocation2 + $0x98] sm:$0x1] }
 0x18d   : > { %7442 = vmatmul.mubr.bf16.gmra.mrb[16].mxu1 %v8107_v37  ;;  %v6783_v37 = vcombine.low %v5590_v34, %v5593_v53  ;;  %v8180_v53 = vld [vmem:[#allocation2 + $0x8c] sm:$0x1]  ;;  %v3482_v49 = vor.u32 %v3481_v55, %v9997_v58  ;;  %v3216_v55 = vld [vmem:[#allocation2 + $0xa8] sm:$0xf] }
 0x18e   : > { %7445 = vmatprep.mubr.bf16.mxu1 %v8108_v31  ;;  %v3466_v31 = vshrl.u32 %v3207_v17, 16  ;;  %v3435_v59 = vrot.slane %v3434_v54, 4  ;;  %v8181_v17 = vld [vmem:[#allocation2 + $0x94] sm:$0xf]  ;;  %v8182_v54 = vld [vmem:[#allocation2 + $0xa0] sm:$0xf] }
 0x18f   : > { %7666 = vmatmul.mubr.bf16.vlgmr.msra.gmra.mrb[0].mxu0 %v6781_v11  ;;  %v3425_v11 = vrot.slane %v3424_v19, 4  ;;  %v3499_v12 = vshll.u32 %v8181_v17, 16  ;;  %v3503_v15 = vshrl.u32 %v8181_v17, 16  ;;  %v3514_v19 = vshrl.u32 %v3213_v18, 16 }
 0x190   : > { %7669 = vmatprep.mubr.bf16.mxu0 %v6782_v23  ;;  %v3468_v23 = vrot.slane %v3466_v31, 4  ;;  %v3440_v34 = vsel %vm8388_vm5, %v3435_v59, %v3439_v47  ;;  %v3523_v39 = vshll.u32 %v8182_v54, 16  ;;  %v3527_v4 = vshrl.u32 %v8182_v54, 16 }
 0x191   : > { %v3492_v0 = vrot.slane %v3490_v32, 4  ;;  %v10007_v59 = vrot.slane %v3499_v12, 5  ;;  %v3505_v47 = vrot.slane %v3503_v15, 4  ;;  %v3541_v17 = vshll.u32 %v3216_v55, 16  ;;  %v3219_v12 = vld [vmem:[#allocation2 + $0xb4] sm:$0xf] }
 0x192   : > { %v3472_v31 = vor.u32 %v3471_v3, %v3468_v23  ;;  %v10012_v23 = vrot.slane %v3523_v39, 5  ;;  %v3529_v3 = vrot.slane %v3527_v4, 4  ;;  %v8185_v15 = vld [vmem:[#allocation2 + $0xac] sm:$0xf] }
 0x194   : > { %v3473_v32 = vrot.slane %v3472_v31, 4 }
 0x195   : > { %7446 = vmatmul.mubr.bf16.gmra.mrb[20].mxu1 %v8109_v43  ;;  %v3430_v43 = vsel %vm8388_vm5, %v3425_v11, %v3429_v13  ;;  %v3495_v13 = vrot.slane %v3493_v16, 5  ;;  %v3483_v16 = vrot.slane %v3482_v49, 4  ;;  %v3562_v49 = vshrl.u32 %v3219_v12, 16 }
 0x196   : > { %7449 = vmatprep.mubr.bf16.mxu1 %v8110_v22  ;;  %v3485_v22 = vshll.u32 %v8180_v53, 16  ;;  %v6660_v11 = vcombine.low %v3430_v43, %v3440_v34  ;;  %v3506_v43 = vor.u32 %v3505_v47, %v10007_v59  ;;  %v8184_v34 = vld [vmem:[#allocation2 + $0xa4] sm:$0x1]  ;;  %v3478_v54 = vsel %vm8388_vm5, %v3473_v32, %v9997_v58 }
 0x197   : > { %7670 = vmatmul.mubr.bf16.gmra.mrb[4].mxu0 %v6783_v37  ;;  %v3517_v37 = vshll.u32 %v3213_v18, 16  ;;  %v3496_v62 = vor.u32 %v3495_v13, %v3492_v0  ;;  %v3509_v18 = vshll.u32 %v8183_v25, 16  ;;  %v3533_v53 = vshll.u32 %v8184_v34, 16  ;;  %v8186_v13 = vld [vmem:[#allocation2 + $0xb8] sm:$0xf] }
 0x198   : > { %7673 = vmatprep.mubr.bf16.mxu0 %v10193_v7  ;;  %v3487_v14 = vrot.slane %v3485_v22, 5  ;;  %v3516_v7 = vrot.slane %v3514_v19, 4  ;;  %v3538_v22 = vshrl.u32 %v3216_v55, 16  ;;  %v3547_v19 = vshll.u32 %v8185_v15, 16  ;;  %v3222_v34 = vld [vmem:[#allocation2 + $0xc0] sm:$0xf] }
 0x199   : > { %v3497_v4 = vrot.slane %v3496_v62, 4  ;;  %v3511_v31 = vrot.slane %v3509_v18, 5  ;;  %v3565_v0 = vshll.u32 %v3219_v12, 16  ;;  %v10196_v47 = vcombine.low %v9717_v8, %v9739_v50 }
 0x19a   : > { %v3488_v39 = vsel %vm8388_vm5, %v3483_v16, %v3487_v14  ;;  %v3564_v16 = vrot.slane %v3562_v49, 4  ;;  %v3589_v12 = vshll.u32 %v3222_v34, 16 }
 0x19b   : > { %v6662_v32 = vcombine.low %v3478_v54, %v3488_v39  ;;  %v3567_v62 = vrot.slane %v3565_v0, 5  ;;  %v3502_v8 = vsel %vm8388_vm5, %v3497_v4, %v10007_v59  ;;  %v8188_v59 = vld [vmem:[#allocation2 + $0xc4] sm:$0xf] }
 0x19c   : > { %v3591_v0 = vrot.slane %v3589_v12, 5 }
 0x19d   : > { %7450 = vmatmul.mubr.bf16.gmra.mrb[24].mxu1 %v8111_v56  ;;  %v10195_v56 = vcombine.low %v9687_v30, %v9702_v61  ;;  %v3530_v61 = vor.u32 %v3529_v3, %v10012_v23  ;;  %v3549_v3 = vrot.slane %v3547_v19, 5 }
 0x19e   : > { %7453 = vmatprep.mubr.bf16.mxu1 %v8112_v6  ;;  %v3519_v6 = vrot.slane %v3517_v37, 5  ;;  %v3551_v37 = vshrl.u32 %v8185_v15, 16  ;;  %v3568_v15 = vor.u32 %v3567_v62, %v3564_v16 }
 0x19f   : > { %7674 = vmatmul.mubr.bf16.gmra.mrb[8].mxu0 %v10194_v52  ;;  %v3571_v52 = vshll.u32 %v8186_v13, 16  ;;  %v3531_v14 = vrot.slane %v3530_v61, 4  ;;  %v3599_v61 = vshrl.u32 %v8188_v59, 16 }
 0x1a0   : > { %7677 = vmatprep.mubr.bf16.mxu0 %v10195_v56  ;;  %v3520_v30 = vor.u32 %v3519_v6, %v3516_v7  ;;  %v3507_v56 = vrot.slane %v3506_v43, 4  ;;  %v3540_v7 = vrot.slane %v3538_v22, 4  ;;  %v3543_v6 = vrot.slane %v3541_v17, 5  ;;  %v8187_v43 = vld [vmem:[#allocation2 + $0xb0] sm:$0x1] }
 0x1a1   : > { %v3553_v55 = vrot.slane %v3551_v37, 4  ;;  %v3573_v25 = vrot.slane %v3571_v52, 5  ;;  %v3557_v45 = vshll.u32 %v8187_v43, 16  ;;  %v3586_v17 = vshrl.u32 %v3222_v34, 16  ;;  %v8189_v37 = vld [vmem:[#allocation2 + $0xbc] sm:$0x1] }
 0x1a2   : > { %v3521_v58 = vrot.slane %v3520_v30, 4  ;;  %v3512_v50 = vsel %vm8388_vm5, %v3507_v56, %v3511_v31  ;;  %v3595_v30 = vshll.u32 %v8188_v59, 16  ;;  %v3581_v54 = vshll.u32 %v8189_v37, 16 }
 0x1a3   : > { %v3554_v22 = vor.u32 %v3553_v55, %v3549_v3  ;;  %v3559_v31 = vrot.slane %v3557_v45, 5  ;;  %v3588_v49 = vrot.slane %v3586_v17, 4  ;;  %v3601_v52 = vrot.slane %v3599_v61, 4 }
 0x1a4   : > { %v3526_v28 = vsel %vm8388_vm5, %v3521_v58, %v10012_v23  ;;  %v3583_v56 = vrot.slane %v3581_v54, 5 }
 0x1a5   : > { %7454 = vmatmul.mubr.bf16.gmra.mrb[28].mxu1 %v8113_v42  ;;  %v3575_v42 = vshrl.u32 %v8186_v13, 16  ;;  %v3555_v4 = vrot.slane %v3554_v22, 4  ;;  %v3597_v13 = vrot.slane %v3595_v30, 5 }
 0x1a6   : > { %7489 = vmatprep.mubr.bf16.mxu1 %v6660_v11  ;;  %v3535_v11 = vrot.slane %v3533_v53, 5  ;;  %v3544_v53 = vor.u32 %v3543_v6, %v3540_v7 }
 0x1a7   : > { %7678 = vmatmul.mubr.bf16.gmra.mrb[12].mxu0 %v10196_v47  ;;  %v3577_v18 = vrot.slane %v3575_v42, 4  ;;  %v3569_v42 = vrot.slane %v3568_v15, 4  ;;  %v3560_v26 = vsel %vm8388_vm5, %v3555_v4, %v3559_v31  ;;  %v3602_v41 = vor.u32 %v3601_v52, %v3597_v13 }
 0x1a8   : > { %7681 = vmatprep.mubr.bf16.mxu0 %v6788_v10  ;;  %v3536_v10 = vsel %vm8388_vm5, %v3531_v14, %v3535_v11  ;;  %v3545_v39 = vrot.slane %v3544_v53, 4 }
 0x1a9   : > { %v3578_v19 = vor.u32 %v3577_v18, %v3573_v25  ;;  %v6664_v23 = vcombine.low %v3526_v28, %v3536_v10  ;;  %v3574_v11 = vsel %vm8388_vm5, %v3569_v42, %v3573_v25 }
 0x1aa   : > { %v3550_v51 = vsel %vm8388_vm5, %v3545_v39, %v3549_v3  ;;  %v3603_v3 = vrot.slane %v3602_v41, 4 }
 0x1ab   : > { %v3579_v47 = vrot.slane %v3578_v19, 4  ;;  %v6665_v6 = vcombine.low %v3550_v51, %v3560_v26 }
 0x1ad   : > { %7490 = vmatmul.mubr.bf16.vlgmr.msra.gmra.mrb[16].mxu1 %v9800_v44  ;;  %v6663_v44 = vcombine.low %v3502_v8, %v3512_v50  ;;  %v3584_v7 = vsel %vm8388_vm5, %v3579_v47, %v3583_v56 }
 0x1ae   : > { %7493 = vmatprep.mubr.bf16.mxu1 %v6662_v32  ;;  %v6666_v58 = vcombine.low %v3574_v11, %v3584_v7 }
 0x1af   : > { %7682 = vmatmul.mubr.bf16.gmra.mrb[16].mxu0 %v6789_v1  ;;  %v3592_v1 = vor.u32 %v3591_v0, %v3588_v49 }
 0x1b0   : > { %7685 = vmatprep.mubr.bf16.mxu0 %v6790_v57  ;;  %v3605_v57 = vshll.u32 %v8190_v9, 16 }
 0x1b1   : > { %v3593_v14 = vrot.slane %v3592_v1, 4 }
 0x1b2   : > { %v3607_v55 = vrot.slane %v3605_v57, 5 }
 0x1b3   : > { %v3598_v32 = vsel %vm8388_vm5, %v3593_v14, %v3597_v13 }
 0x1b4   : > { %v3608_v16 = vsel %vm8388_vm5, %v3603_v3, %v3607_v55 }
 0x1b5   : > { %7494 = vmatmul.mubr.bf16.gmra.mrb[20].mxu1 %v6663_v44  ;;  %v6667_v29 = vcombine.low %v3598_v32, %v3608_v16 }
 0x1b6   : > { %7497 = vmatprep.mubr.bf16.mxu1 %v6664_v23 }
 0x1b7   : > { %7686 = vmatmul.mubr.bf16.gmra.mrb[20].mxu0 %v6791_v35 }
 0x1b8   : > { %7689 = vmatprep.mubr.bf16.mxu0 %v6792_v2 }
 0x1bd   : > { %7498 = vmatmul.mubr.bf16.gmra.mrb[24].mxu1 %v6665_v6 }
 0x1be   : > { %7501 = vmatprep.mubr.bf16.mxu1 %v6666_v58 }
 0x1bf   : > { %7690 = vmatmul.mubr.bf16.gmra.mrb[24].mxu0 %v6793_v5 }
 0x1c0   : > { %7693 = vmatprep.mubr.bf16.mxu0 %v6794_v24 }
 0x1c5   : > { %7502 = vmatmul.mubr.bf16.gmra.mrb[28].mxu1 %v6667_v29 }
 0x1c7   : > { %7694 = vmatmul.mubr.bf16.gmra.mrb[28].mxu0 %v6795_v40 }
 0x240   : > { %v7427_v20 = vpop.f32.mrb[0].mxu1 }
 0x241   : > { %v3018_v35 = vpop.f32.mrb[1].mxu1 }
 0x242   : > { %v7428_v63 = vpop.f32.mrb[2].mxu1 }
 0x243   : > { %v3021_v46 = vpop.f32.mrb[3].mxu1 }
 0x248   : > { %v7431_v21 = vpop.f32.mrb[4].mxu1 }
 0x249   : > { %v3034_v2 = vpop.f32.mrb[5].mxu1 }
 0x24a   : > { %v7432_v62 = vpop.f32.mrb[6].mxu1 }
 0x24b   : > { %v3037_v25 = vpop.f32.mrb[7].mxu1 }
 0x250   : > { %v7435_v38 = vpop.f32.mrb[8].mxu1 }
 0x251   : > { %v3050_v48 = vpop.f32.mrb[9].mxu1 }
 0x252   : > { %v7436_v5 = vpop.f32.mrb[10].mxu1 }
 0x253   : > { %v3053_v18 = vpop.f32.mrb[11].mxu1 }
 0x258   : > { %v10071_v60 = vpop.f32.mrb[12].mxu1 }
 0x259   : > { %v10073_v33 = vpop.f32.mrb[13].mxu1 }
 0x25a   : > { %v10075_v24 = vpop.f32.mrb[14].mxu1 }
 0x25b   : > { %v10077_v36 = vpop.f32.mrb[15].mxu1 }
 0x262   : > { %v7667_v27 = vpop.f32.mrb[0].mxu0 }
 0x263   : > { %v7713_v40 = vadd.f32 %v7667_v27, %v7427_v20  ;;  %v5824_v34 = vpop.f32.mrb[1].mxu0 }
 0x264   : > { %v7714_v8 = vadd.f32 %v5824_v34, %v3018_v35  ;;  %v7668_v50 = vpop.f32.mrb[2].mxu0 }
 0x265   : > { %v7715_v43 = vadd.f32 %v7668_v50, %v7428_v63  ;;  %v5827_v45 = vpop.f32.mrb[3].mxu0  ;;  %v6182_v59 = vmul.f32 %v7713_v40, %v7713_v40 }
 0x266   : > { %v7716_v28 = vadd.f32 %v5827_v45, %v3021_v46  ;;  %v6180_v53 = vmul.f32 %v7714_v8, %v7714_v8 }
 0x267   : > { %v6947_v10 = vpack.c.bf16 %v7715_v43, %v7713_v40  ;;  %v6183_v54 = vmul.f32 %v7715_v43, %v7715_v43 }
 0x268   : > { %v6942_v22 = vpack.c.bf16 %v7716_v28, %v7714_v8  ;;  %v6143_v17 = vadd.f32 %v7716_v28, %v7714_v8  ;;  %v6181_v12 = vmul.f32 %v7716_v28, %v7716_v28 }
 0x269   : > { %7034 = vst [vmem:[%s10084_s27 + $0x8] sm:$0xff] %v6947_v10  }
 0x26a   : > { %6943 = vst [vmem:[%s10084_s27] sm:$0xff] %v6942_v22   ;;  %v6144_v30 = vadd.f32 %v7713_v40, %v6143_v17  ;;  %v6212_v61 = vadd.f32 %v6181_v12, %v6180_v53  ;;  %v7671_v15 = vpop.f32.mrb[4].mxu0 }
 0x26b   : > { %v7717_v19 = vadd.f32 %v7671_v15, %v7431_v21  ;;  %v5840_v37 = vpop.f32.mrb[5].mxu0 }
 0x26c   : > { %v6213_v44 = vadd.f32 %v6212_v61, %v6182_v59  ;;  %v7718_v23 = vadd.f32 %v5840_v37, %v3034_v2  ;;  %v6145_v39 = vadd.f32 %v7715_v43, %v6144_v30  ;;  %v7672_v4 = vpop.f32.mrb[6].mxu0 }
 0x26d   : > { %v7719_v31 = vadd.f32 %v7672_v4, %v7432_v62  ;;  %v5843_v49 = vpop.f32.mrb[7].mxu0  ;;  %v6186_v41 = vmul.f32 %v7717_v19, %v7717_v19 }
 0x26e   : > { %v6146_v0 = vadd.f32 %v7718_v23, %v6145_v39  ;;  %v6184_v13 = vmul.f32 %v7718_v23, %v7718_v23  ;;  %v6214_v52 = vadd.f32 %v6213_v44, %v6183_v54  ;;  %v7720_v42 = vadd.f32 %v5843_v49, %v3037_v25 }
 0x26f   : > { %v6957_v47 = vpack.c.bf16 %v7719_v31, %v7717_v19  ;;  %v6187_v58 = vmul.f32 %v7719_v31, %v7719_v31 }
 0x270   : > { %v6215_v56 = vadd.f32 %v6214_v52, %v6184_v13  ;;  %v6952_v51 = vpack.c.bf16 %v7720_v42, %v7718_v23  ;;  %v6147_v26 = vadd.f32 %v7720_v42, %v6146_v0  ;;  %v6185_v1 = vmul.f32 %v7720_v42, %v7720_v42 }
 0x271   : > { %7036 = vst [vmem:[%s10084_s27 + $0x18] sm:$0xff] %v6957_v47  }
 0x272   : > { %7035 = vst [vmem:[%s10084_s27 + $0x10] sm:$0xff] %v6952_v51   ;;  %v6148_v9 = vadd.f32 %v7717_v19, %v6147_v26  ;;  %v6216_v57 = vadd.f32 %v6215_v56, %v6185_v1  ;;  %v7675_v11 = vpop.f32.mrb[8].mxu0 }
 0x273   : > { %v7721_v7 = vadd.f32 %v7675_v11, %v7435_v38  ;;  %v5856_v6 = vpop.f32.mrb[9].mxu0 }
 0x274   : > { %v6217_v14 = vadd.f32 %v6216_v57, %v6186_v41  ;;  %v7722_v3 = vadd.f32 %v5856_v6, %v3050_v48  ;;  %v6149_v55 = vadd.f32 %v7719_v31, %v6148_v9  ;;  %v7676_v32 = vpop.f32.mrb[10].mxu0 }
 0x275   : > { %v7723_v16 = vadd.f32 %v7676_v32, %v7436_v5  ;;  %v5859_v29 = vpop.f32.mrb[11].mxu0  ;;  %v6190_v38 = vmul.f32 %v7721_v7, %v7721_v7 }
 0x276   : > { %v6150_v20 = vadd.f32 %v7722_v3, %v6149_v55  ;;  %v6188_v35 = vmul.f32 %v7722_v3, %v7722_v3  ;;  %v6218_v63 = vadd.f32 %v6217_v14, %v6187_v58  ;;  %v7724_v46 = vadd.f32 %v5859_v29, %v3053_v18 }
 0x277   : > { %v6967_v21 = vpack.c.bf16 %v7723_v16, %v7721_v7  ;;  %v6191_v5 = vmul.f32 %v7723_v16, %v7723_v16 }
 0x278   : > { %v6219_v2 = vadd.f32 %v6218_v63, %v6188_v35  ;;  %v6962_v62 = vpack.c.bf16 %v7724_v46, %v7722_v3  ;;  %v6151_v25 = vadd.f32 %v7724_v46, %v6150_v20  ;;  %v6189_v27 = vmul.f32 %v7724_v46, %v7724_v46 }
 0x279   : > { %7038 = vst [vmem:[%s10084_s27 + $0x28] sm:$0xff] %v6967_v21  }
 0x27a   : > { %7037 = vst [vmem:[%s10084_s27 + $0x20] sm:$0xff] %v6962_v62   ;;  %v6152_v40 = vadd.f32 %v7721_v7, %v6151_v25  ;;  %v6220_v34 = vadd.f32 %v6219_v2, %v6189_v27  ;;  %v7679_v48 = vpop.f32.mrb[12].mxu0 }
 0x27b   : > { %v7725_v8 = vadd.f32 %v7679_v48, %v10071_v60  ;;  %v5872_v50 = vpop.f32.mrb[13].mxu0 }
 0x27c   : > { %v6221_v43 = vadd.f32 %v6220_v34, %v6190_v38  ;;  %v7726_v45 = vadd.f32 %v5872_v50, %v10073_v33  ;;  %v6153_v18 = vadd.f32 %v7723_v16, %v6152_v40  ;;  %v7680_v28 = vpop.f32.mrb[14].mxu0 }
 0x27d   : > { %v7727_v10 = vadd.f32 %v7680_v28, %v10075_v24  ;;  %v5875_v53 = vpop.f32.mrb[15].mxu0  ;;  %v6194_v44 = vmul.f32 %v7725_v8, %v7725_v8 }
 0x27e   : > { %v6154_v22 = vadd.f32 %v7726_v45, %v6153_v18  ;;  %v6192_v17 = vmul.f32 %v7726_v45, %v7726_v45  ;;  %v6222_v12 = vadd.f32 %v6221_v43, %v6191_v5  ;;  %v7728_v59 = vadd.f32 %v5875_v53, %v10077_v36 }
 0x27f   : > { %v6977_v30 = vpack.c.bf16 %v7727_v10, %v7725_v8  ;;  %v6195_v0 = vmul.f32 %v7727_v10, %v7727_v10 }
 0x280   : > { %v7491_v61 = vpop.f32.mrb[16].mxu1  ;;  %v6223_v60 = vadd.f32 %v6222_v12, %v6192_v17  ;;  %v6972_v15 = vpack.c.bf16 %v7728_v59, %v7726_v45  ;;  %v6155_v19 = vadd.f32 %v7728_v59, %v6154_v22  ;;  %v6193_v37 = vmul.f32 %v7728_v59, %v7728_v59 }
 0x281   : > { %v3819_v54 = vpop.f32.mrb[17].mxu1  ;;  %7040 = vst [vmem:[%s10084_s27 + $0x38] sm:$0xff] %v6977_v30  }
 0x282   : > { %v7492_v33 = vpop.f32.mrb[18].mxu1  ;;  %7039 = vst [vmem:[%s10084_s27 + $0x30] sm:$0xff] %v6972_v15   ;;  %v6156_v23 = vadd.f32 %v7725_v8, %v6155_v19  ;;  %v6224_v24 = vadd.f32 %v6223_v60, %v6193_v37  ;;  %v7683_v39 = vpop.f32.mrb[16].mxu0 }
 0x283   : > { %v3822_v4 = vpop.f32.mrb[19].mxu1  ;;  %v7729_v31 = vadd.f32 %v7683_v39, %v7491_v61  ;;  %v5888_v49 = vpop.f32.mrb[17].mxu0 }
 0x284   : > { %v6225_v13 = vadd.f32 %v6224_v24, %v6194_v44  ;;  %v7730_v36 = vadd.f32 %v5888_v49, %v3819_v54  ;;  %v6157_v52 = vadd.f32 %v7727_v10, %v6156_v23  ;;  %v7684_v42 = vpop.f32.mrb[18].mxu0 }
 0x285   : > { %v7731_v47 = vadd.f32 %v7684_v42, %v7492_v33  ;;  %v5891_v56 = vpop.f32.mrb[19].mxu0  ;;  %v6198_v55 = vmul.f32 %v7729_v31, %v7729_v31 }
 0x286   : > { %v6158_v51 = vadd.f32 %v7730_v36, %v6157_v52  ;;  %v6196_v26 = vmul.f32 %v7730_v36, %v7730_v36  ;;  %v6226_v1 = vadd.f32 %v6225_v13, %v6195_v0  ;;  %v7732_v41 = vadd.f32 %v5891_v56, %v3822_v4 }
 0x287   : > { %v6987_v9 = vpack.c.bf16 %v7731_v47, %v7729_v31  ;;  %v6199_v46 = vmul.f32 %v7731_v47, %v7731_v47 }
 0x288   : > { %v7495_v57 = vpop.f32.mrb[20].mxu1  ;;  %v6227_v11 = vadd.f32 %v6226_v1, %v6196_v26  ;;  %v6982_v7 = vpack.c.bf16 %v7732_v41, %v7730_v36  ;;  %v6159_v6 = vadd.f32 %v7732_v41, %v6158_v51  ;;  %v6197_v58 = vmul.f32 %v7732_v41, %v7732_v41 }
 0x289   : > { %v3835_v14 = vpop.f32.mrb[21].mxu1  ;;  %7042 = vst [vmem:[%s10084_s27 + $0x48] sm:$0xff] %v6987_v9  }
 0x28a   : > { %v7496_v3 = vpop.f32.mrb[22].mxu1  ;;  %7041 = vst [vmem:[%s10084_s27 + $0x40] sm:$0xff] %v6982_v7   ;;  %v6160_v32 = vadd.f32 %v7729_v31, %v6159_v6  ;;  %v6228_v16 = vadd.f32 %v6227_v11, %v6197_v58  ;;  %v7687_v29 = vpop.f32.mrb[20].mxu0 }
 0x28b   : > { %v3838_v20 = vpop.f32.mrb[23].mxu1  ;;  %v7733_v35 = vadd.f32 %v7687_v29, %v7495_v57  ;;  %v5904_v63 = vpop.f32.mrb[21].mxu0 }
 0x28c   : > { %v6229_v21 = vadd.f32 %v6228_v16, %v6198_v55  ;;  %v7734_v2 = vadd.f32 %v5904_v63, %v3835_v14  ;;  %v6161_v62 = vadd.f32 %v7731_v47, %v6160_v32  ;;  %v7688_v25 = vpop.f32.mrb[22].mxu0 }
 0x28d   : > { %v7735_v27 = vadd.f32 %v7688_v25, %v7496_v3  ;;  %v5907_v38 = vpop.f32.mrb[23].mxu0  ;;  %v6202_v22 = vmul.f32 %v7733_v35, %v7733_v35 }
 0x28e   : > { %v6162_v40 = vadd.f32 %v7734_v2, %v6161_v62  ;;  %v6200_v34 = vmul.f32 %v7734_v2, %v7734_v2  ;;  %v6230_v48 = vadd.f32 %v6229_v21, %v6199_v46  ;;  %v7736_v8 = vadd.f32 %v5907_v38, %v3838_v20 }
 0x28f   : > { %v6997_v50 = vpack.c.bf16 %v7735_v27, %v7733_v35  ;;  %v6203_v15 = vmul.f32 %v7735_v27, %v7735_v27 }
 0x290   : > { %v7499_v5 = vpop.f32.mrb[24].mxu1  ;;  %v6231_v43 = vadd.f32 %v6230_v48, %v6200_v34  ;;  %v6992_v45 = vpack.c.bf16 %v7736_v8, %v7734_v2  ;;  %v6163_v18 = vadd.f32 %v7736_v8, %v6162_v40  ;;  %v6201_v28 = vmul.f32 %v7736_v8, %v7736_v8 }
 0x291   : > { %v3851_v10 = vpop.f32.mrb[25].mxu1  ;;  %7044 = vst [vmem:[%s10084_s27 + $0x58] sm:$0xff] %v6997_v50  }
 0x292   : > { %v7500_v53 = vpop.f32.mrb[26].mxu1  ;;  %7043 = vst [vmem:[%s10084_s27 + $0x50] sm:$0xff] %v6992_v45   ;;  %v6164_v17 = vadd.f32 %v7733_v35, %v6163_v18  ;;  %v6232_v12 = vadd.f32 %v6231_v43, %v6201_v28  ;;  %v7691_v59 = vpop.f32.mrb[24].mxu0 }
 0x293   : > { %v3854_v30 = vpop.f32.mrb[27].mxu1  ;;  %v7737_v61 = vadd.f32 %v7691_v59, %v7499_v5  ;;  %v5920_v60 = vpop.f32.mrb[25].mxu0 }
 0x294   : > { %v6233_v19 = vadd.f32 %v6232_v12, %v6202_v22  ;;  %v7738_v37 = vadd.f32 %v5920_v60, %v3851_v10  ;;  %v6165_v54 = vadd.f32 %v7735_v27, %v6164_v17  ;;  %v7692_v33 = vpop.f32.mrb[26].mxu0 }
 0x295   : > { %v7739_v44 = vadd.f32 %v7692_v33, %v7500_v53  ;;  %v5923_v23 = vpop.f32.mrb[27].mxu0  ;;  %v6206_v51 = vmul.f32 %v7737_v61, %v7737_v61 }
 0x296   : > { %v6166_v24 = vadd.f32 %v7738_v37, %v6165_v54  ;;  %v6204_v39 = vmul.f32 %v7738_v37, %v7738_v37  ;;  %v6234_v4 = vadd.f32 %v6233_v19, %v6203_v15  ;;  %v7740_v31 = vadd.f32 %v5923_v23, %v3854_v30 }
 0x297   : > { %v7007_v49 = vpack.c.bf16 %v7739_v44, %v7737_v61  ;;  %v6207_v7 = vmul.f32 %v7739_v44, %v7739_v44 }
 0x298   : > { %v7503_v0 = vpop.f32.mrb[28].mxu1  ;;  %v6235_v13 = vadd.f32 %v6234_v4, %v6204_v39  ;;  %v7002_v36 = vpack.c.bf16 %v7740_v31, %v7738_v37  ;;  %v6167_v52 = vadd.f32 %v7740_v31, %v6166_v24  ;;  %v6205_v42 = vmul.f32 %v7740_v31, %v7740_v31 }
 0x299   : > { %v3867_v47 = vpop.f32.mrb[29].mxu1  ;;  %7046 = vst [vmem:[%s10084_s27 + $0x68] sm:$0xff] %v7007_v49  }
 0x29a   : > { %v7504_v56 = vpop.f32.mrb[30].mxu1  ;;  %7045 = vst [vmem:[%s10084_s27 + $0x60] sm:$0xff] %v7002_v36   ;;  %v6168_v26 = vadd.f32 %v7737_v61, %v6167_v52  ;;  %v6236_v1 = vadd.f32 %v6235_v13, %v6205_v42  ;;  %v7695_v41 = vpop.f32.mrb[28].mxu0 }
 0x29b   : > { %v3870_v9 = vpop.f32.mrb[31].mxu1  ;;  %v7741_v57 = vadd.f32 %v7695_v41, %v7503_v0  ;;  %v5936_v11 = vpop.f32.mrb[29].mxu0 }
 0x29c   : > { %v6237_v6 = vadd.f32 %v6236_v1, %v6206_v51  ;;  %v7742_v58 = vadd.f32 %v5936_v11, %v3867_v47  ;;  %v6169_v14 = vadd.f32 %v7739_v44, %v6168_v26  ;;  %v7696_v3 = vpop.f32.mrb[30].mxu0 }
 0x29d   : > { %v7743_v55 = vadd.f32 %v7696_v3, %v7504_v56  ;;  %v5939_v32 = vpop.f32.mrb[31].mxu0  ;;  %v6210_v25 = vmul.f32 %v7741_v57, %v7741_v57 }
 0x29e   : > { %v6170_v16 = vadd.f32 %v7742_v58, %v6169_v14  ;;  %v6208_v29 = vmul.f32 %v7742_v58, %v7742_v58  ;;  %v6238_v20 = vadd.f32 %v6237_v6, %v6207_v7  ;;  %v7744_v35 = vadd.f32 %v5939_v32, %v3870_v9 }
 0x29f   : > { %v7017_v63 = vpack.c.bf16 %v7743_v55, %v7741_v57  ;;  %v6211_v40 = vmul.f32 %v7743_v55, %v7743_v55 }
 0x2a0   : > { %v6239_v46 = vadd.f32 %v6238_v20, %v6208_v29  ;;  %v7012_v21 = vpack.c.bf16 %v7744_v35, %v7742_v58  ;;  %v6171_v2 = vadd.f32 %v7744_v35, %v6170_v16  ;;  %v6209_v62 = vmul.f32 %v7744_v35, %v7744_v35 }
 0x2a1   : > { %7048 = vst [vmem:[%s10084_s27 + $0x78] sm:$0xff] %v7017_v63  }
 0x2a2   : > { %7047 = vst [vmem:[%s10084_s27 + $0x70] sm:$0xff] %v7012_v21   ;;  %v6172_v27 = vadd.f32 %v7741_v57, %v6171_v2  ;;  %v6240_v38 = vadd.f32 %v6239_v46, %v6209_v62 }
 0x2a4   : > { %v6173_v34 = vadd.f32 %v7743_v55, %v6172_v27  ;;  %v6241_v48 = vadd.f32 %v6240_v38, %v6210_v25 }
 0x2a6   : > { %v6174_v8 = vrot.slane %v6173_v34, 4  ;;  %v6242_v50 = vadd.f32 %v6241_v48, %v6211_v40 }
 0x2a8   : > { %v6175_v5 = vadd.f32 %v6174_v8, %v6173_v34  ;;  %v6243_v43 = vrot.slane %v6242_v50, 4 }
 0x2aa   : > { %v6176_v45 = vrot.slane %v6175_v5, 2  ;;  %v6244_v18 = vadd.f32 %v6243_v43, %v6242_v50 }
 0x2ac   : > { %v6177_v28 = vadd.f32 %v6176_v45, %v6175_v5  ;;  %v6245_v10 = vrot.slane %v6244_v18, 2 }
 0x2ae   : > { %v6178_v53 = vrot.slane %v6177_v28, 1  ;;  %v6246_v22 = vadd.f32 %v6245_v10, %v6244_v18 }
 0x2b0   : > { %v6247_v17 = vrot.slane %v6246_v22, 1  ;;  %v6179_v12 = vadd.f32 %v6178_v53, %v6177_v28 }
 0x2b2   : > { %v6248_v59 = vadd.f32 %v6247_v17, %v6246_v22 }
 0x2b4   : > { %v6250_v30 = vsel %vm891_vm0, %v6179_v12, %v6248_v59 }
 0x2b5   : > { %6251 = vst [vmem:[%s505_s8] sm:$0x3] %v6250_v30 }
 0x2b6 PF: > { %s18_s2 = sadd.s32 1, %s8213_s2   ;;  %s10197_s23 = smov %s8209_s24 }
 0x2b7   : > { %p15_p5 = scmp.ge.s32.totalorder %s18_s2, 4   ;;  %s10198_s24 = smov %s10200_s25 }
 0x2b9   :  { %17 = sbr.rel (!%p15_p5) target bundleno = 2 (0x2), region = 101 }

// kernel: double_conv_forward.3
= control target key start
LH: loop header
LB: loop body
LE: loop exit
PB: predicated region body
PF: predicated region fallthrough
CT: control target
= control target key end

     0   :  { %s7600_s18 = smov 0   ;;  %s7602_s19 = smov 0   ;;  %s9295_s0 = inlined_call_operand.vmem [shape: bf16[2,16,16,4], index: 0, kind: input, shape index: {}, may-alias: {0,1,2}]   ;;  %s9296_s1 = inlined_call_operand.vmem [shape: bf16[2,16,16,4], index: 1, kind: input, shape index: {}, may-alias: {0,1,2}]   ;;  %s9297_s2 = inlined_call_operand.vmem [shape: bf16[2,16,16,4], index: 2, kind: input, shape index: {}, may-alias: {0,1,2}]   ;;  %s9298_s3 = inlined_call_operand.vmem [shape: bf16[36,128], index: 3, kind: input, shape index: {}]   ;;  %s9299_s4 = inlined_call_operand.vmem [shape: bf16[2,16,16,128], index: 4, kind: output, shape index: {0}]   ;;  %s9300_s5 = inlined_call_operand.vmem [shape: f32[2,1,2,128], index: 5, kind: output, shape index: {1}]  }
   0x1   :  { %s7604_s0 = smov 0  }
   0x2 LB: > { %s35_s2 = sadd.s32 1, %s7563_s19  ;;  %p6100_p0 = scmp.ge.s32.totalorder %s7567_s0, 1  ;;  %s7567_s0 = sphi %s7604_s0, %s16_s0   ;;  %s7563_s19 = sphi %s7602_s19, %s9396_s19   ;;  %s7559_s18 = sphi %s7600_s18, %s9395_s18  }
   0x3   : > { %p37_p1 = scmp.ge.s32.totalorder %s35_s2, 2  ;;  %p298_p2 = scmp.lt.s32.totalorder %s7567_s0, 3 }
   0x5   : > { %s9398_s2 = smov (%p37_p1, %s35_s2), 0  ;;  %p299_p3 = pnand %p6100_p0, %p298_p2 }
   0x7   : > { %302 = sbr.rel (%p299_p3) target bundleno = 654 (0x28e), region = 36 }
   0xe   : > { %v1046_v0 = vld [vmem:[%s9298_s3] sm:$0xf]  ;;  %vm1587_vm0 = vcmask 1041408   ;;  %v1048_v1 = vld [vmem:[%s9298_s3 + $0x8] sm:$0xf]  ;;  %v7569_v5 = vmov 0  }
   0xf   : > { %v6198_v2 = vcombine.low %v1046_v0, %v1046_v0  ;;  %7409 = vmatprep.subr.msk.bf16.mxu0 %vm1587_vm0, %v1048_v1  ;;  %v6392_v3 = vcombine.low %v1048_v1, %v1048_v1  ;;  %v7626_v4 = vsel %vm1587_vm0, %v1048_v1, 0  ;;  %v6110_v6 = vcombine.low %v7569_v5, %v7569_v5  ;;  %p397_p4 = scmp.lt.s32.totalorder %s7559_s18, 1  ;;  %v7695_v59 = vld [vmem:[%s9298_s3 + $0xc] sm:$0xf] }
  0x10   : > { %9322 = vst [vmem:[#allocation3_spill] sm:$0xff] %v7626_v4  ;;  %6978 = vmatpush3.bf16.msra.mxu0 %v7626_v4  ;;  %vm753_vm1 = vcmask 1040384   ;;  %vm754_vm2 = vsmask.f32 256  ;;  %vm993_vm4 = vcmask 24576   ;;  %vm990_vm5 = vcmask 27648  }
  0x11   : > { %v1537_v7 = vrot.slane %v6198_v2, 2  ;;  %v592_v8 = vshrl.u32 %v6110_v6, 16  ;;  %v595_v9 = vshll.u32 %v6110_v6, 16  ;;  %s9400_s18 = smov (!%p397_p4, %s7559_s18), 1  ;;  %v7631_v10 = vrot.slane %v6392_v3, 2  ;;  %vm7637_vm3 = vmand %vm753_vm1, %vm754_vm2 }
  0x12   : > { %s6557_s24 = sshll.u32 %s9400_s18, 7  ;;  %v7666_v31 = vsel %vm1587_vm0, %v1046_v0, 0  ;;  %vm1099_vm6 = vsmask.f32 3328  ;;  %vm1100_vm7 = vsmask.f32 7440 }
  0x13   : > { %7405 = vmatprep.subr.msk.bf16.mxu1 %vm1587_vm0, %v1537_v7  ;;  %v1589_v11 = vsel %vm1587_vm0, %v1537_v7, 0  ;;  %v594_v12 = vrot.slane %v592_v8, 7  ;;  %s7646_s27 = scalar_lea.vmem %s9296_s1, %s6557_s24  ;;  %7411 = vmatprep.subr.msk.bf16.mxu0 %vm1587_vm0, %v7631_v10  ;;  %v7689_v56 = vsel %vm1587_vm0, %v7631_v10, 0  ;;  %vm1538_vm8 = vcmask 31744   ;;  %vm7714_vm9 = vmor %vm1099_vm6, %vm1100_vm7  ;;  %s9259_s15 = scalar_lea.vmem %s9299_s4, %s6557_s24 }
  0x14   : > { %6842 = vmatpush3.bf16.msra.mxu1 %v1589_v11  ;;  %v7442_v16 = vld [vmem:[%s7646_s27] sm:$0xff]   ;;  %v7443_v18 = vld [vmem:[%s7646_s27 + $0x8] sm:$0xff]   ;;  %v7444_v22 = vld [vmem:[%s7646_s27 + $0x10] sm:$0xff]   ;;  %vm2092_vm10 = vcmask 1042432   ;;  %vm2093_vm11 = vcmask 1046532   ;;  %s6109_s16 = sshll.u32 %s9400_s18, 1 }
  0x15   : > { %v597_v14 = vor.u32 %v595_v9, %v594_v12  ;;  %v774_v15 = vsel %vm7637_vm3, %v594_v12, 0  ;;  %7406 = vmatprep.subr.msk.bf16.mxu1 %vm1587_vm0, %v1046_v0  ;;  %v599_v20 = vshrl.u32 %v7442_v16, 16  ;;  %v602_v21 = vshll.u32 %v7442_v16, 16  ;;  %v7445_v30 = vld [vmem:[%s7646_s27 + $0x18] sm:$0xff]   ;;  %v7677_v45 = vld [vmem:[%s7646_s27 + $0x20] sm:$0xff]   ;;  %vm7840_vm12 = vmor %vm2092_vm10, %vm2093_vm11  ;;  %s451_s21 = scalar_lea.vmem %s9300_s5, %s6109_s16 }
  0x16   : > { %v6130_v17 = vcombine.low %v774_v15, %v774_v15  ;;  %v606_v25 = vshrl.u32 %v7443_v18, 16  ;;  %v609_v26 = vshll.u32 %v7443_v18, 16  ;;  %v613_v28 = vshrl.u32 %v7444_v22, 16 }
  0x17   : > { %v756_v19 = vsel %vm7637_vm3, 0, %v597_v14  ;;  %v601_v27 = vrot.slane %v599_v20, 7  ;;  %v616_v29 = vshll.u32 %v7444_v22, 16  ;;  %v620_v36 = vshrl.u32 %v7445_v30, 16 }
  0x18   : > { %v6128_v23 = vcombine.low %v756_v19, %v756_v19  ;;  %v6129_v24 = vcombine.high %v756_v19, %v756_v19  ;;  %994 = vst.msk [vmem:[#allocation2 + $0x8] sm:$0x1] %vm993_vm4, %v6130_v17  ;;  %1045 = vst.msk [vmem:[#allocation2 + $0xd4] sm:$0x1] %vm993_vm4, %v6130_v17  ;;  %v608_v32 = vrot.slane %v606_v25, 7  ;;  %v615_v35 = vrot.slane %v613_v28, 7 }
  0x19   : > { %v604_v33 = vor.u32 %v602_v21, %v601_v27  ;;  %v775_v34 = vsel %vm7637_vm3, %v601_v27, 0  ;;  %v623_v40 = vshll.u32 %v7445_v30, 16  ;;  %v622_v54 = vrot.slane %v620_v36, 7 }
  0x1a   : > { %991 = vst.msk [vmem:[#allocation2] sm:$0xf] %vm990_vm5, %v6128_v23  ;;  %992 = vst.msk [vmem:[#allocation2 + $0x4] sm:$0xf] %vm990_vm5, %v6129_v24  ;;  %v6133_v37 = vcombine.low %v775_v34, %v775_v34  ;;  %v611_v38 = vor.u32 %v609_v26, %v608_v32  ;;  %v776_v39 = vsel %vm7637_vm3, %v608_v32, 0  ;;  %v618_v43 = vor.u32 %v616_v29, %v615_v35 }
  0x1b   : > { %1043 = vst.msk [vmem:[#allocation2 + $0xcc] sm:$0xf] %vm990_vm5, %v6128_v23  ;;  %1044 = vst.msk [vmem:[#allocation2 + $0xd0] sm:$0xf] %vm990_vm5, %v6129_v24  ;;  %v757_v41 = vsel %vm7637_vm3, 0, %v604_v33  ;;  %v6136_v42 = vcombine.low %v776_v39, %v776_v39  ;;  %v777_v44 = vsel %vm7637_vm3, %v615_v35, 0  ;;  %v625_v62 = vor.u32 %v623_v40, %v622_v54 }
  0x1c   : > { %v6131_v46 = vcombine.low %v757_v41, %v757_v41  ;;  %v6132_v47 = vcombine.high %v757_v41, %v757_v41  ;;  %997 = vst.msk [vmem:[#allocation2 + $0x14] sm:$0x1] %vm993_vm4, %v6133_v37  ;;  %v758_v48 = vsel %vm7637_vm3, 0, %v611_v38  ;;  %v6139_v49 = vcombine.low %v777_v44, %v777_v44 }
  0x1d   : > { %v6134_v51 = vcombine.low %v758_v48, %v758_v48  ;;  %v6135_v52 = vcombine.high %v758_v48, %v758_v48  ;;  %1000 = vst.msk [vmem:[#allocation2 + $0x20] sm:$0x1] %vm993_vm4, %v6136_v42  ;;  %v759_v53 = vsel %vm7637_vm3, 0, %v618_v43  ;;  %v778_v63 = vsel %vm7637_vm3, %v622_v54, 0 }
  0x1e   : > { %995 = vst.msk [vmem:[#allocation2 + $0xc] sm:$0xf] %vm990_vm5, %v6131_v46  ;;  %996 = vst.msk [vmem:[#allocation2 + $0x10] sm:$0xf] %vm990_vm5, %v6132_v47  ;;  %v6137_v57 = vcombine.low %v759_v53, %v759_v53  ;;  %v6138_v58 = vcombine.high %v759_v53, %v759_v53  ;;  %v627_v0 = vshrl.u32 %v7677_v45, 16  ;;  %v760_v6 = vsel %vm7637_vm3, 0, %v625_v62 }
  0x1f   : > { %v1083_v50 = vld [vmem:[#allocation2 + $0x8] sm:$0x1]  ;;  %1003 = vst.msk [vmem:[#allocation2 + $0x2c] sm:$0x1] %vm993_vm4, %v6139_v49  ;;  %v6142_v7 = vcombine.low %v778_v63, %v778_v63  ;;  %v6457_v9 = vcombine.low %v7695_v59, %v7695_v59  ;;  %v6140_v16 = vcombine.low %v760_v6, %v760_v6  ;;  %v6141_v17 = vcombine.high %v760_v6, %v760_v6 }
  0x20   : > { %v1122_v55 = vshll.u32 %v1083_v50, 16  ;;  %998 = vst.msk [vmem:[#allocation2 + $0x18] sm:$0xf] %vm990_vm5, %v6134_v51  ;;  %999 = vst.msk [vmem:[#allocation2 + $0x1c] sm:$0xf] %vm990_vm5, %v6135_v52  ;;  %v629_v8 = vrot.slane %v627_v0, 7 }
  0x21   : > { %v1051_v60 = vld [vmem:[#allocation2] sm:$0xf]  ;;  %v1052_v61 = vld [vmem:[#allocation2 + $0x4] sm:$0xf]  ;;  %1001 = vst.msk [vmem:[#allocation2 + $0x24] sm:$0xf] %vm990_vm5, %v6137_v57 }
  0x22   : > { %v1103_v1 = vshrl.u32 %v1051_v60, 16  ;;  %v1106_v2 = vshll.u32 %v1051_v60, 16  ;;  %v1112_v3 = vshll.u32 %v1052_v61, 16  ;;  %v1116_v5 = vshrl.u32 %v1052_v61, 16  ;;  %1002 = vst.msk [vmem:[#allocation2 + $0x28] sm:$0xf] %vm990_vm5, %v6138_v58 }
  0x23   : > { %v1084_v15 = vld [vmem:[#allocation2 + $0x14] sm:$0x1]  ;;  %1006 = vst.msk [vmem:[#allocation2 + $0x38] sm:$0x1] %vm993_vm4, %v6142_v7  ;;  %v630_v18 = vshll.u32 %v7677_v45, 16  ;;  %v779_v19 = vsel %vm7637_vm3, %v629_v8, 0 }
  0x24   : > { %v1105_v10 = vrot.slane %v1103_v1, 4  ;;  %v1108_v11 = vrot.slane %v1106_v2, 5  ;;  %v1114_v12 = vrot.slane %v1112_v3, 5  ;;  %v1118_v14 = vrot.slane %v1116_v5, 4  ;;  %1004 = vst.msk [vmem:[#allocation2 + $0x30] sm:$0xf] %vm990_vm5, %v6140_v16 }
  0x25   : > { %v1124_v22 = vrot.slane %v1122_v55, 5  ;;  %v1146_v23 = vshll.u32 %v1084_v15, 16  ;;  %v1053_v25 = vld [vmem:[#allocation2 + $0xc] sm:$0xf]  ;;  %v1054_v26 = vld [vmem:[#allocation2 + $0x10] sm:$0xf]  ;;  %v6145_v27 = vcombine.low %v779_v19, %v779_v19  ;;  %v7728_v40 = vor.u32 %v630_v18, %v629_v8 }
  0x26   : > { %v1109_v20 = vor.u32 %v1108_v11, %v1105_v10  ;;  %v1119_v21 = vor.u32 %v1118_v14, %v1114_v12  ;;  %1005 = vst.msk [vmem:[#allocation2 + $0x34] sm:$0xf] %vm990_vm5, %v6141_v17  ;;  %v7720_v28 = vrot.slane %v6457_v9, 2  ;;  %v7724_v29 = vsel %vm1587_vm0, %v7695_v59, 0  ;;  %v2860_v35 = vld [vmem:[#allocation2 + $0xc] sm:$0xf] }
  0x27   : > { %v1127_v33 = vshrl.u32 %v1053_v25, 16  ;;  %v1130_v34 = vshll.u32 %v1053_v25, 16  ;;  %v1136_v36 = vshll.u32 %v1054_v26, 16  ;;  %v1140_v37 = vshrl.u32 %v1054_v26, 16  ;;  %v7726_v39 = vld [vmem:[#allocation2 + $0x10] sm:$0xf] }
  0x28   : > { %v1110_v30 = vrot.slane %v1109_v20, 4  ;;  %v1120_v32 = vrot.slane %v1119_v21, 4  ;;  %v1148_v38 = vrot.slane %v1146_v23, 5  ;;  %1009 = vst.msk [vmem:[#allocation2 + $0x44] sm:$0x1] %vm993_vm4, %v6145_v27  ;;  %v2909_v49 = vshrl.u32 %v2860_v35, 16 }
  0x29   : > { %v1129_v43 = vrot.slane %v1127_v33, 4  ;;  %v1132_v44 = vrot.slane %v1130_v34, 5  ;;  %v7735_v45 = vld [vmem:[#allocation2 + $0x14] sm:$0x1]  ;;  %v1138_v47 = vrot.slane %v1136_v36, 5  ;;  %v1142_v48 = vrot.slane %v1140_v37, 4 }
  0x2a   : > { %v1115_v41 = vsel %vm7714_vm9, %v1110_v30, %v1114_v12  ;;  %v1125_v42 = vsel %vm7714_vm9, %v1120_v32, %v1124_v22  ;;  %v2912_v51 = vshll.u32 %v2860_v35, 16  ;;  %v2918_v52 = vshll.u32 %v7726_v39, 16  ;;  %v2863_v54 = vld [vmem:[#allocation2 + $0x18] sm:$0xf]  ;;  %v7742_v1 = vld [vmem:[#allocation2 + $0x1c] sm:$0xf] }
  0x2b   : > { %v6182_v46 = vcombine.low %v1115_v41, %v1125_v42  ;;  %v1133_v50 = vor.u32 %v1132_v44, %v1129_v43  ;;  %v2922_v53 = vshrl.u32 %v7726_v39, 16  ;;  %v1143_v55 = vor.u32 %v1142_v48, %v1138_v47  ;;  %v7747_v10 = vld [vmem:[#allocation2 + $0x20] sm:$0x1]  ;;  %v1055_v21 = vld [vmem:[#allocation2 + $0x18] sm:$0xf] }
  0x2c   : > { %v2911_v57 = vrot.slane %v2909_v49, 4  ;;  %v2928_v58 = vshll.u32 %v7735_v45, 16  ;;  %v3650_v60 = vrot.slane %v7726_v39, 5  ;;  %v2914_v62 = vrot.slane %v2912_v51, 5  ;;  %v1056_v27 = vld [vmem:[#allocation2 + $0x1c] sm:$0xf] }
  0x2d   : > { %6843 = vmatprep.mubr.msk.bf16.mxu1 %vm1538_vm8, %v6182_v46  ;;  %v1134_v61 = vrot.slane %v1133_v50, 4  ;;  %v2920_v63 = vrot.slane %v2918_v52, 5  ;;  %v2924_v0 = vrot.slane %v2922_v53, 4  ;;  %v1144_v2 = vrot.slane %v1143_v55, 4  ;;  %v1085_v35 = vld [vmem:[#allocation2 + $0x20] sm:$0x1] }
  0x2e   : > { %v2930_v3 = vrot.slane %v2928_v58, 5  ;;  %v3653_v5 = vrot.slane %v7735_v45, 5  ;;  %v2933_v6 = vshrl.u32 %v2863_v54, 16  ;;  %v2915_v8 = vor.u32 %v2914_v62, %v2911_v57  ;;  %v1057_v36 = vld [vmem:[#allocation2 + $0x24] sm:$0xf] }
  0x2f   : > { %v1139_v7 = vsel %vm7714_vm9, %v1134_v61, %v1138_v47  ;;  %v2925_v9 = vor.u32 %v2924_v0, %v2920_v63  ;;  %v2936_v11 = vshll.u32 %v2863_v54, 16  ;;  %v1149_v12 = vsel %vm7714_vm9, %v1144_v2, %v1148_v38  ;;  %v1058_v48 = vld [vmem:[#allocation2 + $0x28] sm:$0xf]  ;;  %v1086_v52 = vld [vmem:[#allocation2 + $0x2c] sm:$0x1] }
  0x30   : > { %v2935_v14 = vrot.slane %v2933_v6, 4  ;;  %v2942_v15 = vshll.u32 %v7742_v1, 16  ;;  %v2946_v16 = vshrl.u32 %v7742_v1, 16  ;;  %v6183_v17 = vcombine.low %v1139_v7, %v1149_v12  ;;  %v2866_v58 = vld [vmem:[#allocation2 + $0x24] sm:$0xf] }
  0x31   : > { %v2916_v18 = vrot.slane %v2915_v8, 4  ;;  %v2926_v19 = vrot.slane %v2925_v9, 4  ;;  %v2938_v20 = vrot.slane %v2936_v11, 5  ;;  %v2952_v25 = vshll.u32 %v7747_v10, 16  ;;  %v7771_v2 = vld [vmem:[#allocation2 + $0x28] sm:$0xf] }
  0x32   : > { %v2944_v22 = vrot.slane %v2942_v15, 5  ;;  %v2948_v23 = vrot.slane %v2946_v16, 4  ;;  %v3657_v26 = vrot.slane %v7742_v1, 5  ;;  %6844 = vmatmul.mubr.msk.bf16.vlgmr.msra.gmra.mrb[0].mxu1 %vm1538_vm8, %v6183_v17  ;;  %v3660_v34 = vrot.slane %v7747_v10, 5  ;;  %v7773_v9 = vld [vmem:[#allocation2 + $0x2c] sm:$0x1] }
  0x33   : > { %v2921_v30 = vsel %vm7714_vm9, %v2916_v18, %v2920_v63  ;;  %v2931_v32 = vsel %vm7714_vm9, %v2926_v19, %v2930_v3  ;;  %v2939_v33 = vor.u32 %v2938_v20, %v2935_v14  ;;  %6876 = vmatpush3.bf16.msra.mxu1 %v7666_v31  ;;  %v2954_v41 = vrot.slane %v2952_v25, 5  ;;  %v2869_v20 = vld [vmem:[#allocation2 + $0x30] sm:$0xf] }
  0x34   : > { %v6328_v37 = vcombine.low %v2921_v30, %v2931_v32  ;;  %v2949_v38 = vor.u32 %v2948_v23, %v2944_v22  ;;  %v7764_v42 = vrot.slane %v3657_v26, 4  ;;  %v1151_v44 = vshrl.u32 %v1055_v21, 16 }
  0x35   : > { %v2940_v43 = vrot.slane %v2939_v33, 4  ;;  %v1154_v46 = vshll.u32 %v1055_v21, 16  ;;  %v1160_v47 = vshll.u32 %v1056_v27, 16  ;;  %v1164_v50 = vshrl.u32 %v1056_v27, 16  ;;  %v7777_v27 = vld [vmem:[#allocation2 + $0x34] sm:$0xf] }
  0x36   : > { %6979 = vmatprep.mubr.msk.bf16.mxu0 %vm1538_vm8, %v6328_v37  ;;  %v2950_v49 = vrot.slane %v2949_v38, 4  ;;  %v1170_v51 = vshll.u32 %v1085_v35, 16  ;;  %v1175_v53 = vshrl.u32 %v1057_v36, 16  ;;  %v1153_v54 = vrot.slane %v1151_v44, 4 }
  0x37   : > { %v2945_v31 = vsel %vm7714_vm9, %v2940_v43, %v2944_v22  ;;  %v1156_v55 = vrot.slane %v1154_v46, 5  ;;  %v1162_v57 = vrot.slane %v1160_v47, 5  ;;  %v1166_v62 = vrot.slane %v1164_v50, 4  ;;  %v7788_v47 = vld [vmem:[#allocation2 + $0x38] sm:$0x1] }
  0x38   : > { %v2955_v61 = vsel %vm7714_vm9, %v2950_v49, %v2954_v41  ;;  %v1172_v63 = vrot.slane %v1170_v51, 5  ;;  %v1177_v0 = vrot.slane %v1175_v53, 4  ;;  %v1178_v7 = vshll.u32 %v1057_v36, 16 }
  0x39   : > { %v6329_v3 = vcombine.low %v2945_v31, %v2955_v61  ;;  %v1157_v6 = vor.u32 %v1156_v55, %v1153_v54  ;;  %v1184_v8 = vshll.u32 %v1058_v48, 16  ;;  %v1167_v11 = vor.u32 %v1166_v62, %v1162_v57 }
  0x3a   : > { %v1188_v12 = vshrl.u32 %v1058_v48, 16  ;;  %v1194_v14 = vshll.u32 %v1086_v52, 16  ;;  %v2957_v15 = vshrl.u32 %v2866_v58, 16  ;;  %v1180_v17 = vrot.slane %v1178_v7, 5  ;;  %v1059_v48 = vld [vmem:[#allocation2 + $0x30] sm:$0xf] }
  0x3b   : > { %6980 = vmatmul.mubr.msk.bf16.vlgmr.msra.gmra.mrb[0].mxu0 %vm1538_vm8, %v6329_v3  ;;  %v1158_v16 = vrot.slane %v1157_v6, 4  ;;  %v1186_v18 = vrot.slane %v1184_v8, 5  ;;  %v2960_v19 = vshll.u32 %v2866_v58, 16  ;;  %v1168_v21 = vrot.slane %v1167_v11, 4  ;;  %v1087_v7 = vld [vmem:[#allocation2 + $0x38] sm:$0x1] }
  0x3c   : > { %7012 = vmatpush3.bf16.msra.mxu0 %v7689_v56  ;;  %v1190_v22 = vrot.slane %v1188_v12, 4  ;;  %v1196_v23 = vrot.slane %v1194_v14, 5  ;;  %v2959_v25 = vrot.slane %v2957_v15, 4  ;;  %v1181_v32 = vor.u32 %v1180_v17, %v1177_v0  ;;  %v1047_v15 = vld [vmem:[%s9298_s3 + $0x4] sm:$0xf] }
  0x3d   : > { %v1163_v30 = vsel %vm7714_vm9, %v1158_v16, %v1162_v57  ;;  %v2962_v33 = vrot.slane %v2960_v19, 5  ;;  %v2966_v35 = vshll.u32 %v7771_v2, 16  ;;  %7412 = vmatprep.subr.msk.bf16.mxu0 %vm1587_vm0, %v7695_v59  ;;  %v1173_v36 = vsel %vm7714_vm9, %v1168_v21, %v1172_v63  ;;  %v1060_v59 = vld [vmem:[#allocation2 + $0x34] sm:$0xf]  ;;  %v7447_v21 = vld [vmem:[%s7646_s27 + $0x28] sm:$0xff]   ;;  %7407 = vmatprep.subr.msk.bf16.mxu1 %vm1587_vm0, %v1047_v15 }
  0x3e   : > { %v1191_v56 = vor.u32 %v1190_v22, %v1186_v18  ;;  %v2970_v37 = vshrl.u32 %v7771_v2, 16  ;;  %v2976_v38 = vshll.u32 %v7773_v9, 16  ;;  %v6184_v41 = vcombine.low %v1163_v30, %v1173_v36 }
  0x3f   : > { %v1182_v43 = vrot.slane %v1181_v32, 4  ;;  %v2963_v44 = vor.u32 %v2962_v33, %v2959_v25  ;;  %v2968_v46 = vrot.slane %v2966_v35, 5  ;;  %v2981_v52 = vshrl.u32 %v2869_v20, 16  ;;  %v7808_v32 = vld [vmem:[#allocation2 + $0x44] sm:$0x1] }
  0x40   : > { %v1192_v49 = vrot.slane %v1191_v56, 4  ;;  %v2972_v50 = vrot.slane %v2970_v37, 4  ;;  %v2978_v51 = vrot.slane %v2976_v38, 5  ;;  %6847 = vmatprep.mubr.msk.bf16.mxu1 %vm1538_vm8, %v6184_v41  ;;  %v2984_v54 = vshll.u32 %v2869_v20, 16  ;;  %v1088_v20 = vld [vmem:[#allocation2 + $0x44] sm:$0x1] }
  0x41   : > { %v1187_v53 = vsel %vm7714_vm9, %v1182_v43, %v1186_v18  ;;  %v2964_v31 = vrot.slane %v2963_v44, 4  ;;  %v2990_v55 = vshll.u32 %v7777_v27, 16  ;;  %v2983_v61 = vrot.slane %v2981_v52, 4  ;;  %v7448_v37 = vld [vmem:[%s7646_s27 + $0x30] sm:$0xff]  }
  0x42   : > { %v1197_v57 = vsel %vm7714_vm9, %v1192_v49, %v1196_v23  ;;  %v2973_v58 = vor.u32 %v2972_v50, %v2968_v46  ;;  %v2994_v62 = vshrl.u32 %v7777_v27, 16  ;;  %v2986_v3 = vrot.slane %v2984_v54, 5 }
  0x43   : > { %v6185_v63 = vcombine.low %v1187_v53, %v1197_v57  ;;  %v2969_v0 = vsel %vm7714_vm9, %v2964_v31, %v2968_v46  ;;  %v2992_v6 = vrot.slane %v2990_v55, 5  ;;  %v3000_v12 = vshll.u32 %v7788_v47, 16  ;;  %v7449_v46 = vld [vmem:[%s7646_s27 + $0x38] sm:$0xff]  }
  0x44   : > { %v2974_v8 = vrot.slane %v2973_v58, 4  ;;  %v2996_v11 = vrot.slane %v2994_v62, 4  ;;  %v1199_v14 = vshrl.u32 %v1059_v48, 16  ;;  %v2987_v16 = vor.u32 %v2986_v3, %v2983_v61  ;;  %v7824_v58 = vld [vmem:[%s7646_s27 + $0x40] sm:$0xff]  }
  0x45   : > { %6848 = vmatmul.mubr.msk.bf16.gmra.mrb[4].mxu1 %vm1538_vm8, %v6185_v63  ;;  %v1202_v17 = vshll.u32 %v1059_v48, 16  ;;  %v1208_v18 = vshll.u32 %v1060_v59, 16  ;;  %v1212_v19 = vshrl.u32 %v1060_v59, 16  ;;  %v3002_v25 = vrot.slane %v3000_v12, 5 }
  0x46   : > { %v2979_v22 = vsel %vm7714_vm9, %v2974_v8, %v2978_v51  ;;  %v2997_v23 = vor.u32 %v2996_v11, %v2992_v6  ;;  %v1201_v30 = vrot.slane %v1199_v14, 4  ;;  %v2988_v35 = vrot.slane %v2987_v16, 4 }
  0x47   : > { %v6330_v33 = vcombine.low %v2969_v0, %v2979_v22  ;;  %v1204_v36 = vrot.slane %v1202_v17, 5  ;;  %v1210_v56 = vrot.slane %v1208_v18, 5  ;;  %v1214_v41 = vrot.slane %v1212_v19, 4 }
  0x48   : > { %v2998_v38 = vrot.slane %v2997_v23, 4  ;;  %v1218_v43 = vshll.u32 %v1087_v7, 16  ;;  %v761_v44 = vsel %vm7637_vm3, 0, %v7728_v40  ;;  %v2993_v48 = vsel %vm7714_vm9, %v2988_v35, %v2992_v6 }
  0x49   : > { %6983 = vmatprep.mubr.msk.bf16.mxu0 %vm1538_vm8, %v6330_v33  ;;  %v1205_v49 = vor.u32 %v1204_v36, %v1201_v30  ;;  %v6143_v50 = vcombine.low %v761_v44, %v761_v44  ;;  %v6144_v51 = vcombine.high %v761_v44, %v761_v44  ;;  %v1215_v59 = vor.u32 %v1214_v41, %v1210_v56 }
  0x4a   : > { %v3003_v52 = vsel %vm7714_vm9, %v2998_v38, %v3002_v25  ;;  %v1220_v53 = vrot.slane %v1218_v43, 5  ;;  %v1242_v31 = vshll.u32 %v1088_v20, 16  ;;  %v3024_v40 = vshll.u32 %v7808_v32, 16 }
  0x4b   : > { %v6331_v54 = vcombine.low %v2993_v48, %v3003_v52  ;;  %v1206_v55 = vrot.slane %v1205_v49, 4  ;;  %1007 = vst.msk [vmem:[#allocation2 + $0x3c] sm:$0xf] %vm990_vm5, %v6143_v50  ;;  %1008 = vst.msk [vmem:[#allocation2 + $0x40] sm:$0xf] %vm990_vm5, %v6144_v51  ;;  %v634_v57 = vshrl.u32 %v7447_v21, 16 }
  0x4c   : > { %v1216_v61 = vrot.slane %v1215_v59, 4  ;;  %v7826_v62 = vrot.slane %v1242_v31, 5  ;;  %v637_v63 = vshll.u32 %v7447_v21, 16  ;;  %v641_v0 = vshrl.u32 %v7448_v37, 16 }
  0x4d   : > { %6984 = vmatmul.mubr.msk.bf16.gmra.mrb[4].mxu0 %vm1538_vm8, %v6331_v54  ;;  %v1211_v3 = vsel %vm7714_vm9, %v1206_v55, %v1210_v56  ;;  %v7831_v6 = vrot.slane %v3024_v40, 5  ;;  %v636_v7 = vrot.slane %v634_v57, 7  ;;  %v644_v8 = vshll.u32 %v7448_v37, 16 }
  0x4e   : > { %v1221_v11 = vsel %vm7714_vm9, %v1216_v61, %v1220_v53  ;;  %v643_v12 = vrot.slane %v641_v0, 7  ;;  %v648_v14 = vshrl.u32 %v7449_v46, 16  ;;  %v651_v15 = vshll.u32 %v7449_v46, 16 }
  0x4f   : > { %v6186_v16 = vcombine.low %v1211_v3, %v1221_v11  ;;  %v639_v17 = vor.u32 %v637_v63, %v636_v7  ;;  %v780_v18 = vsel %vm7637_vm3, %v636_v7, 0  ;;  %v655_v19 = vshrl.u32 %v7824_v58, 16 }
  0x50   : > { %v9327_v20 = vmov 0  ;;  %v6148_v21 = vcombine.low %v780_v18, %v780_v18  ;;  %v646_v22 = vor.u32 %v644_v8, %v643_v12  ;;  %v781_v23 = vsel %vm7637_vm3, %v643_v12, 0 }
  0x51   : > { %v9328_v20 = vsel %vm7840_vm12, 4294967295, %v9327_v20  ;;  %v7846_v25 = vrot.slane %v648_v14, 7  ;;  %6851 = vmatprep.mubr.msk.bf16.mxu1 %vm1538_vm8, %v6186_v16  ;;  %v762_v30 = vsel %vm7637_vm3, 0, %v639_v17  ;;  %v6151_v33 = vcombine.low %v781_v23, %v781_v23 }
  0x52   : > { %9329 = vst [vmem:[#allocation4_spill] sm:$0xff] %v9328_v20  ;;  %v7851_v35 = vrot.slane %v655_v19, 7  ;;  %v658_v36 = vshll.u32 %v7824_v58, 16  ;;  %v1061_v56 = vld [vmem:[#allocation2 + $0x3c] sm:$0xf]  ;;  %v6146_v41 = vcombine.low %v762_v30, %v762_v30  ;;  %v6147_v43 = vcombine.high %v762_v30, %v762_v30 }
  0x53   : > { %v1062_v37 = vld [vmem:[#allocation2 + $0x40] sm:$0xf]  ;;  %v2872_v38 = vld [vmem:[#allocation2 + $0x3c] sm:$0xf]  ;;  %1012 = vst.msk [vmem:[#allocation2 + $0x50] sm:$0x1] %vm993_vm4, %v6148_v21  ;;  %v653_v44 = vor.u32 %v651_v15, %v7846_v25  ;;  %v7861_v46 = vsel %vm7840_vm12, %v7764_v42, %v3660_v34 }
  0x54   : > { %v1223_v48 = vshrl.u32 %v1061_v56, 16  ;;  %v1226_v49 = vshll.u32 %v1061_v56, 16  ;;  %v1232_v50 = vshll.u32 %v1062_v37, 16  ;;  %v1236_v51 = vshrl.u32 %v1062_v37, 16  ;;  %v7863_v52 = vld [vmem:[#allocation2 + $0x40] sm:$0xf] }
  0x55   : > { %1015 = vst.msk [vmem:[#allocation2 + $0x5c] sm:$0x1] %vm993_vm4, %v6151_v33  ;;  %v3005_v59 = vshrl.u32 %v2872_v38, 16  ;;  %v3008_v53 = vshll.u32 %v2872_v38, 16  ;;  %v3014_v31 = vshll.u32 %v7863_v52, 16  ;;  %v3018_v54 = vshrl.u32 %v7863_v52, 16 }
  0x56   : > { %1010 = vst.msk [vmem:[#allocation2 + $0x48] sm:$0xf] %vm990_vm5, %v6146_v41  ;;  %1011 = vst.msk [vmem:[#allocation2 + $0x4c] sm:$0xf] %vm990_vm5, %v6147_v43  ;;  %v1225_v10 = vrot.slane %v1223_v48, 4  ;;  %v1228_v34 = vrot.slane %v1226_v49, 5 }
  0x57   : > { %v1234_v42 = vrot.slane %v1232_v50, 5  ;;  %v1238_v55 = vrot.slane %v1236_v51, 4  ;;  %v3007_v40 = vrot.slane %v3005_v59, 4  ;;  %v3010_v57 = vrot.slane %v3008_v53, 5 }
  0x58   : > { %v3016_v58 = vrot.slane %v3014_v31, 5  ;;  %v3020_v61 = vrot.slane %v3018_v54, 4  ;;  %v1229_v63 = vor.u32 %v1228_v34, %v1225_v10  ;;  %v763_v3 = vsel %vm7637_vm3, 0, %v646_v22 }
  0x59   : > { %v1239_v0 = vor.u32 %v1238_v55, %v1234_v42  ;;  %v764_v7 = vsel %vm7637_vm3, 0, %v653_v44  ;;  %v3011_v8 = vor.u32 %v3010_v57, %v3007_v40  ;;  %v6149_v12 = vcombine.low %v763_v3, %v763_v3 }
  0x5a   : > { %v3021_v11 = vor.u32 %v3020_v61, %v3016_v58  ;;  %v6150_v14 = vcombine.high %v763_v3, %v763_v3  ;;  %v1230_v15 = vrot.slane %v1229_v63, 4  ;;  %v7874_v17 = vld [vmem:[#allocation2 + $0x50] sm:$0x1]  ;;  %v6152_v19 = vcombine.low %v764_v7, %v764_v7 }
  0x5b   : > { %v1240_v16 = vrot.slane %v1239_v0, 4  ;;  %v1089_v18 = vld [vmem:[#allocation2 + $0x50] sm:$0x1]  ;;  %v6153_v21 = vcombine.high %v764_v7, %v764_v7  ;;  %v3012_v23 = vrot.slane %v3011_v8, 4  ;;  %v3048_v33 = vshll.u32 %v7874_v17, 16 }
  0x5c   : > { %v3022_v30 = vrot.slane %v3021_v11, 4  ;;  %v1266_v56 = vshll.u32 %v1089_v18, 16  ;;  %1013 = vst.msk [vmem:[#allocation2 + $0x54] sm:$0xf] %vm990_vm5, %v6149_v12  ;;  %1014 = vst.msk [vmem:[#allocation2 + $0x58] sm:$0xf] %vm990_vm5, %v6150_v14  ;;  %v1235_v22 = vsel %vm7714_vm9, %v1230_v15, %v1234_v42  ;;  %v7889_v44 = vor.u32 %v658_v36, %v7851_v35 }
  0x5d   : > { %v1245_v37 = vsel %vm7714_vm9, %v1240_v16, %v7826_v62  ;;  %v2875_v38 = vld [vmem:[#allocation2 + $0x48] sm:$0xf]  ;;  %v7884_v41 = vld [vmem:[#allocation2 + $0x4c] sm:$0xf]  ;;  %1016 = vst.msk [vmem:[#allocation2 + $0x60] sm:$0xf] %vm990_vm5, %v6152_v19  ;;  %v3017_v49 = vsel %vm7714_vm9, %v3012_v23, %v3016_v58 }
  0x5e   : > { %v1063_v43 = vld [vmem:[#allocation2 + $0x48] sm:$0xf]  ;;  %1017 = vst.msk [vmem:[#allocation2 + $0x64] sm:$0xf] %vm990_vm5, %v6153_v21  ;;  %v6187_v48 = vcombine.low %v1235_v22, %v1245_v37  ;;  %v3027_v50 = vsel %vm7714_vm9, %v3022_v30, %v7831_v6  ;;  %v3029_v62 = vshrl.u32 %v2875_v38, 16  ;;  %v3032_v53 = vshll.u32 %v2875_v38, 16 }
  0x5f   : > { %v1064_v51 = vld [vmem:[#allocation2 + $0x4c] sm:$0xf]  ;;  %v6332_v59 = vcombine.low %v3017_v49, %v3027_v50  ;;  %v3038_v31 = vshll.u32 %v7884_v41, 16  ;;  %v3042_v54 = vshrl.u32 %v7884_v41, 16  ;;  %v1090_v10 = vld [vmem:[#allocation2 + $0x5c] sm:$0x1] }
  0x60   : > { %6852 = vmatmul.mubr.msk.bf16.gmra.mrb[8].mxu1 %vm1538_vm8, %v6187_v48  ;;  %v3031_v36 = vrot.slane %v3029_v62, 4  ;;  %v3050_v34 = vrot.slane %v3048_v33, 5  ;;  %v1247_v42 = vshrl.u32 %v1063_v43, 16  ;;  %v1250_v55 = vshll.u32 %v1063_v43, 16 }
  0x61   : > { %6987 = vmatprep.mubr.msk.bf16.mxu0 %vm1538_vm8, %v6332_v59  ;;  %v3034_v40 = vrot.slane %v3032_v53, 5  ;;  %v3040_v57 = vrot.slane %v3038_v31, 5  ;;  %v3044_v6 = vrot.slane %v3042_v54, 4  ;;  %v1256_v58 = vshll.u32 %v1064_v51, 16 }
  0x62   : > { %v1249_v61 = vrot.slane %v1247_v42, 4  ;;  %v1252_v63 = vrot.slane %v1250_v55, 5  ;;  %v1260_v0 = vshrl.u32 %v1064_v51, 16  ;;  %v1268_v3 = vrot.slane %v1266_v56, 5 }
  0x63   : > { %v3035_v7 = vor.u32 %v3034_v40, %v3031_v36  ;;  %v3045_v8 = vor.u32 %v3044_v6, %v3040_v57  ;;  %v1258_v11 = vrot.slane %v1256_v58, 5  ;;  %v1065_v12 = vld [vmem:[#allocation2 + $0x54] sm:$0xf]  ;;  %v1066_v14 = vld [vmem:[#allocation2 + $0x58] sm:$0xf]  ;;  %v1290_v15 = vshll.u32 %v1090_v10, 16 }
  0x64   : > { %v1253_v16 = vor.u32 %v1252_v63, %v1249_v61  ;;  %v1262_v18 = vrot.slane %v1260_v0, 4  ;;  %v1271_v19 = vshrl.u32 %v1065_v12, 16  ;;  %v1274_v21 = vshll.u32 %v1065_v12, 16  ;;  %v2878_v49 = vld [vmem:[#allocation2 + $0x54] sm:$0xf] }
  0x65   : > { %v3036_v23 = vrot.slane %v3035_v7, 4  ;;  %v3046_v30 = vrot.slane %v3045_v8, 4  ;;  %v1280_v33 = vshll.u32 %v1066_v14, 16  ;;  %v1284_v22 = vshrl.u32 %v1066_v14, 16  ;;  %v7904_v59 = vld [vmem:[#allocation2 + $0x58] sm:$0xf] }
  0x66   : > { %v1254_v37 = vrot.slane %v1253_v16, 4  ;;  %v1263_v38 = vor.u32 %v1262_v18, %v1258_v11  ;;  %v1273_v43 = vrot.slane %v1271_v19, 4  ;;  %v1276_v48 = vrot.slane %v1274_v21, 5  ;;  %v7908_v36 = vld [vmem:[#allocation2 + $0x5c] sm:$0x1] }
  0x67   : > { %v3041_v56 = vsel %vm7714_vm9, %v3036_v23, %v3040_v57  ;;  %v3051_v50 = vsel %vm7714_vm9, %v3046_v30, %v3050_v34  ;;  %v1282_v62 = vrot.slane %v1280_v33, 5  ;;  %v1286_v51 = vrot.slane %v1284_v22, 4  ;;  %v2881_v57 = vld [vmem:[#allocation2 + $0x60] sm:$0xf]  ;;  %v7915_v0 = vld [vmem:[#allocation2 + $0x64] sm:$0xf] }
  0x68   : > { %v6333_v53 = vcombine.low %v3041_v56, %v3051_v50  ;;  %v1259_v31 = vsel %vm7714_vm9, %v1254_v37, %v1258_v11  ;;  %v1264_v54 = vrot.slane %v1263_v38, 4  ;;  %v1277_v10 = vor.u32 %v1276_v48, %v1273_v43  ;;  %v1067_v14 = vld [vmem:[#allocation2 + $0x60] sm:$0xf]  ;;  %v1068_v33 = vld [vmem:[#allocation2 + $0x64] sm:$0xf] }
  0x69   : > { %v1287_v42 = vor.u32 %v1286_v51, %v1282_v62  ;;  %v1292_v55 = vrot.slane %v1290_v15, 5  ;;  %v3053_v40 = vshrl.u32 %v2878_v49, 16  ;;  %v3056_v6 = vshll.u32 %v2878_v49, 16 }
  0x6a   : > { %6988 = vmatmul.mubr.msk.bf16.gmra.mrb[8].mxu0 %vm1538_vm8, %v6333_v53  ;;  %v1269_v34 = vsel %vm7714_vm9, %v1264_v54, %v1268_v3  ;;  %v1278_v58 = vrot.slane %v1277_v10, 4  ;;  %v3062_v61 = vshll.u32 %v7904_v59, 16  ;;  %v3066_v63 = vshrl.u32 %v7904_v59, 16 }
  0x6b   : > { %v6188_v7 = vcombine.low %v1259_v31, %v1269_v34  ;;  %v1288_v8 = vrot.slane %v1287_v42, 4  ;;  %v3055_v11 = vrot.slane %v3053_v40, 4  ;;  %v3058_v12 = vrot.slane %v3056_v6, 5 }
  0x6c   : > { %v1283_v15 = vsel %vm7714_vm9, %v1278_v58, %v1282_v62  ;;  %v3064_v16 = vrot.slane %v3062_v61, 5  ;;  %v3068_v18 = vrot.slane %v3066_v63, 4  ;;  %v3072_v19 = vshll.u32 %v7908_v36, 16 }
  0x6d   : > { %6855 = vmatprep.mubr.msk.bf16.mxu1 %vm1538_vm8, %v6188_v7  ;;  %v1293_v3 = vsel %vm7714_vm9, %v1288_v8, %v1292_v55  ;;  %v3059_v21 = vor.u32 %v3058_v12, %v3055_v11  ;;  %v782_v23 = vsel %vm7637_vm3, %v7846_v25, 0  ;;  %v3077_v30 = vshrl.u32 %v2881_v57, 16  ;;  %v3584_v7 = vld [vmem:[#allocation2 + $0xc] sm:$0xe] }
  0x6e   : > { %v6189_v22 = vcombine.low %v1283_v15, %v1293_v3  ;;  %v3069_v37 = vor.u32 %v3068_v18, %v3064_v16  ;;  %v3074_v38 = vrot.slane %v3072_v19, 5  ;;  %v6154_v43 = vcombine.low %v782_v23, %v782_v23  ;;  %v3585_v15 = vld [vmem:[#allocation2 + $0x18] sm:$0xe] }
  0x6f   : > { %v3060_v48 = vrot.slane %v3059_v21, 4  ;;  %v3079_v49 = vrot.slane %v3077_v30, 4  ;;  %v3080_v56 = vshll.u32 %v2881_v57, 16  ;;  %v3086_v50 = vshll.u32 %v7915_v0, 16  ;;  %v7452_v21 = vld [vmem:[%s7646_s27 + $0x48] sm:$0xff]  }
  0x70   : > { %6856 = vmatmul.mubr.msk.bf16.gmra.mrb[12].mxu1 %vm1538_vm8, %v6189_v22  ;;  %v3070_v62 = vrot.slane %v3069_v37, 4  ;;  %1018 = vst.msk [vmem:[#allocation2 + $0x68] sm:$0x1] %vm993_vm4, %v6154_v43  ;;  %v3090_v51 = vshrl.u32 %v7915_v0, 16  ;;  %v1295_v53 = vshrl.u32 %v1067_v14, 16  ;;  %v1298_v25 = vshll.u32 %v1067_v14, 16 }
  0x71   : > { %v3065_v31 = vsel %vm7714_vm9, %v3060_v48, %v3064_v16  ;;  %v3082_v54 = vrot.slane %v3080_v56, 5  ;;  %v3088_v10 = vrot.slane %v3086_v50, 5  ;;  %v1304_v42 = vshll.u32 %v1068_v33, 16  ;;  %v7453_v37 = vld [vmem:[%s7646_s27 + $0x50] sm:$0xff]  }
  0x72   : > { %v3075_v55 = vsel %vm7714_vm9, %v3070_v62, %v3074_v38  ;;  %v3092_v40 = vrot.slane %v3090_v51, 4  ;;  %v1297_v6 = vrot.slane %v1295_v53, 4  ;;  %v1300_v57 = vrot.slane %v1298_v25, 5 }
  0x73   : > { %v6334_v34 = vcombine.low %v3065_v31, %v3075_v55  ;;  %v3083_v58 = vor.u32 %v3082_v54, %v3079_v49  ;;  %v1306_v61 = vrot.slane %v1304_v42, 5  ;;  %v1308_v63 = vshrl.u32 %v1068_v33, 16 }
  0x74   : > { %v3093_v8 = vor.u32 %v3092_v40, %v3088_v10  ;;  %v1301_v11 = vor.u32 %v1300_v57, %v1297_v6  ;;  %v765_v12 = vsel %vm7637_vm3, 0, %v7889_v44  ;;  %v783_v14 = vsel %vm7637_vm3, %v7851_v35, 0 }
  0x75   : > { %6991 = vmatprep.mubr.msk.bf16.mxu0 %vm1538_vm8, %v6334_v34  ;;  %v3084_v16 = vrot.slane %v3083_v58, 4  ;;  %v1310_v18 = vrot.slane %v1308_v63, 4  ;;  %v6155_v19 = vcombine.low %v765_v12, %v765_v12  ;;  %v6156_v3 = vcombine.high %v765_v12, %v765_v12 }
  0x76   : > { %v3094_v23 = vrot.slane %v3093_v8, 4  ;;  %v1302_v30 = vrot.slane %v1301_v11, 4  ;;  %v6157_v33 = vcombine.low %v783_v14, %v783_v14  ;;  %v6360_v22 = vrot.slane %v3584_v7, 9 }
  0x77   : > { %v7943_v38 = vld [vmem:[#allocation2 + $0x68] sm:$0x1]  ;;  %v3089_v44 = vsel %vm7714_vm9, %v3084_v16, %v3088_v10  ;;  %v1311_v35 = vor.u32 %v1310_v18, %v1306_v61  ;;  %1019 = vst.msk [vmem:[#allocation2 + $0x6c] sm:$0xf] %vm990_vm5, %v6155_v19  ;;  %1020 = vst.msk [vmem:[#allocation2 + $0x70] sm:$0xf] %vm990_vm5, %v6156_v3 }
  0x78   : > { %v1091_v43 = vld [vmem:[#allocation2 + $0x68] sm:$0x1]  ;;  %v3652_v48 = vrot.slane %v3650_v60, 4  ;;  %v6361_v49 = vrot.slane %v3585_v15, 9  ;;  %v3096_v56 = vshll.u32 %v7943_v38, 16  ;;  %v1307_v50 = vsel %vm7714_vm9, %v1302_v30, %v1306_v61 }
  0x79   : > { %v1314_v62 = vshll.u32 %v1091_v43, 16  ;;  %1021 = vst.msk [vmem:[#allocation2 + $0x74] sm:$0x1] %vm993_vm4, %v6157_v33  ;;  %v3651_v51 = vsel %vm7840_vm12, %v6360_v22, %v3650_v60  ;;  %v1312_v53 = vrot.slane %v1311_v35, 4  ;;  %v662_v54 = vshrl.u32 %v7452_v21, 16 }
  0x7a   : > { %v3654_v25 = vsel %vm7840_vm12, %v3652_v48, %v3653_v5  ;;  %v7967_v31 = vsel %vm7840_vm12, %v6361_v49, %v3657_v26  ;;  %v3586_v10 = vld [vmem:[#allocation2 + $0x24] sm:$0xe]  ;;  %v3098_v42 = vrot.slane %v3096_v56, 5  ;;  %v665_v6 = vshll.u32 %v7452_v21, 16  ;;  %v3587_v49 = vld [vmem:[#allocation2 + $0x30] sm:$0xe] }
  0x7b   : > { %v1316_v55 = vrot.slane %v1314_v62, 5  ;;  %v6376_v39 = vcombine.low %v3651_v51, %v3654_v25  ;;  %v6377_v60 = vcombine.low %v7967_v31, %v7861_v46  ;;  %v664_v40 = vrot.slane %v662_v54, 7 }
  0x7c   : > { %v669_v45 = vshrl.u32 %v7453_v37, 16  ;;  %v672_v57 = vshll.u32 %v7453_v37, 16  ;;  %v3099_v5 = vsel %vm7714_vm9, %v3094_v23, %v3098_v42  ;;  %v6362_v26 = vrot.slane %v3586_v10, 9  ;;  %v7454_v37 = vld [vmem:[%s7646_s27 + $0x58] sm:$0xff]  }
  0x7d   : > { %v1317_v1 = vsel %vm7714_vm9, %v1312_v53, %v1316_v55  ;;  %v3664_v34 = vrot.slane %v7771_v2, 5  ;;  %v6335_v58 = vcombine.low %v3089_v44, %v3099_v5  ;;  %v667_v63 = vor.u32 %v665_v6, %v664_v40  ;;  %v8004_v6 = vld [vmem:[%s7646_s27 + $0x60] sm:$0xff]  }
  0x7e   : > { %v6190_v61 = vcombine.low %v1307_v50, %v1317_v1  ;;  %v784_v7 = vsel %vm7637_vm3, %v664_v40, 0  ;;  %v7978_v8 = vld [vmem:[#allocation2 + $0x6c] sm:$0xf]  ;;  %v7980_v11 = vld [vmem:[#allocation2 + $0x70] sm:$0xf]  ;;  %v671_v14 = vrot.slane %v669_v45, 7 }
  0x7f   : > { %v6160_v12 = vcombine.low %v784_v7, %v784_v7  ;;  %v3665_v15 = vsel %vm7840_vm12, %v6362_v26, %v3664_v34  ;;  %v3666_v16 = vrot.slane %v3664_v34, 4  ;;  %6992 = vmatmul.mubr.msk.bf16.gmra.mrb[12].mxu0 %vm1538_vm8, %v6335_v58  ;;  %v1319_v18 = vshrl.u32 %v7978_v8, 16 }
  0x80   : > { %6859 = vmatprep.mubr.msk.bf16.mxu1 %vm1538_vm8, %v6190_v61  ;;  %v1092_v2 = vld [vmem:[#allocation2 + $0x74] sm:$0x1]  ;;  %v1322_v19 = vshll.u32 %v7978_v8, 16  ;;  %v1328_v3 = vshll.u32 %v7980_v11, 16  ;;  %v1332_v21 = vshrl.u32 %v7980_v11, 16  ;;  %7013 = vmatprep.mubr.msk.bf16.mxu0 %vm1538_vm8, %v6376_v39  ;;  %v766_v30 = vsel %vm7637_vm3, 0, %v667_v63 }
  0x81   : > { %v1338_v23 = vshll.u32 %v1092_v2, 16  ;;  %1024 = vst.msk [vmem:[#allocation2 + $0x80] sm:$0x1] %vm993_vm4, %v6160_v12  ;;  %v674_v33 = vor.u32 %v672_v57, %v671_v14  ;;  %v785_v22 = vsel %vm7637_vm3, %v671_v14, 0  ;;  %v1321_v44 = vrot.slane %v1319_v18, 4 }
  0x82   : > { %v1324_v43 = vrot.slane %v1322_v19, 5  ;;  %v1330_v35 = vrot.slane %v1328_v3, 5  ;;  %v1334_v48 = vrot.slane %v1332_v21, 4  ;;  %v6158_v50 = vcombine.low %v766_v30, %v766_v30  ;;  %v8022_v12 = vld [vmem:[#allocation2 + $0x3c] sm:$0xe] }
  0x83   : > { %v1340_v56 = vrot.slane %v1338_v23, 5  ;;  %v6159_v62 = vcombine.high %v766_v30, %v766_v30  ;;  %v767_v51 = vsel %vm7637_vm3, 0, %v674_v33  ;;  %v6163_v42 = vcombine.low %v785_v22, %v785_v22  ;;  %v7521_v4 = vld [vmem:[#allocation2 + $0x74] sm:$0x1] }
  0x84   : > { %v1325_v53 = vor.u32 %v1324_v43, %v1321_v44  ;;  %v1335_v25 = vor.u32 %v1334_v48, %v1330_v35  ;;  %v6161_v54 = vcombine.low %v767_v51, %v767_v51  ;;  %v6162_v10 = vcombine.high %v767_v51, %v767_v51  ;;  %1022 = vst.msk [vmem:[#allocation2 + $0x78] sm:$0xf] %vm990_vm5, %v6158_v50 }
  0x85   : > { %1023 = vst.msk [vmem:[#allocation2 + $0x7c] sm:$0xf] %vm990_vm5, %v6159_v62  ;;  %v3667_v55 = vrot.slane %v7773_v9, 5  ;;  %v6363_v39 = vrot.slane %v3587_v49, 9  ;;  %v3671_v40 = vrot.slane %v7777_v27, 5  ;;  %v3674_v5 = vrot.slane %v7788_v47, 5 }
  0x86   : > { %v1326_v45 = vrot.slane %v1325_v53, 4  ;;  %v1336_v57 = vrot.slane %v1335_v25, 4  ;;  %1025 = vst.msk [vmem:[#allocation2 + $0x84] sm:$0xf] %vm990_vm5, %v6161_v54  ;;  %1026 = vst.msk [vmem:[#allocation2 + $0x88] sm:$0xf] %vm990_vm5, %v6162_v10 }
  0x87   : > { %v676_v1 = vshrl.u32 %v7454_v37, 16  ;;  %1027 = vst.msk [vmem:[#allocation2 + $0x8c] sm:$0x1] %vm993_vm4, %v6163_v42  ;;  %v3668_v26 = vsel %vm7840_vm12, %v3666_v16, %v3667_v55  ;;  %v3672_v9 = vsel %vm7840_vm12, %v6363_v39, %v3671_v40  ;;  %v3673_v27 = vrot.slane %v3671_v40, 4  ;;  %7014 = vmatmul.mubr.msk.bf16.vlgmr.msra.gmra.mrb[0].mxu0 %vm1538_vm8, %v6377_v60 }
  0x88   : > { %v679_v34 = vshll.u32 %v7454_v37, 16  ;;  %v1331_v58 = vsel %vm7714_vm9, %v1326_v45, %v1330_v35  ;;  %v1341_v61 = vsel %vm7714_vm9, %v1336_v57, %v1340_v56  ;;  %v1093_v47 = vld [vmem:[#allocation2 + $0x80] sm:$0x1]  ;;  %v6378_v63 = vcombine.low %v3665_v15, %v3668_v26  ;;  %7046 = vmatpush3.bf16.msra.mxu0 %v7724_v29 }
  0x89   : > { %v678_v7 = vrot.slane %v676_v1, 7  ;;  %v6191_v14 = vcombine.low %v1331_v58, %v1341_v61  ;;  %v1362_v16 = vshll.u32 %v1093_v47, 16  ;;  %v3675_v2 = vsel %vm7840_vm12, %v3673_v27, %v3674_v5  ;;  %7413 = vmatprep.subr.msk.bf16.mxu0 %vm1587_vm0, %v7720_v28 }
  0x8a   : > { %v683_v18 = vshrl.u32 %v8004_v6, 16  ;;  %7017 = vmatprep.mubr.msk.bf16.mxu0 %vm1538_vm8, %v6378_v63  ;;  %v686_v31 = vshll.u32 %v8004_v6, 16  ;;  %v6364_v3 = vrot.slane %v8022_v12, 9  ;;  %v6379_v30 = vcombine.low %v3672_v9, %v3675_v2 }
  0x8b   : > { %v681_v19 = vor.u32 %v679_v34, %v678_v7  ;;  %v786_v46 = vsel %vm7637_vm3, %v678_v7, 0  ;;  %6860 = vmatmul.mubr.msk.bf16.gmra.mrb[16].mxu1 %vm1538_vm8, %v6191_v14  ;;  %v1364_v29 = vrot.slane %v1362_v16, 5  ;;  %v8036_v21 = vld [vmem:[#allocation2 + $0x78] sm:$0xf]  ;;  %v3678_v22 = vrot.slane %v7863_v52, 5 }
  0x8c   : > { %v6166_v60 = vcombine.low %v786_v46, %v786_v46  ;;  %v685_v15 = vrot.slane %v683_v18, 7  ;;  %v8038_v23 = vld [vmem:[#allocation2 + $0x7c] sm:$0xf]  ;;  %v1343_v37 = vshrl.u32 %v8036_v21, 16  ;;  %v1346_v44 = vshll.u32 %v8036_v21, 16 }
  0x8d   : > { %v768_v33 = vsel %vm7637_vm3, 0, %v681_v19  ;;  %v1352_v43 = vshll.u32 %v8038_v23, 16  ;;  %v1356_v35 = vshrl.u32 %v8038_v23, 16  ;;  %v8047_v48 = vld [vmem:[#allocation2 + $0x84] sm:$0xf] }
  0x8e   : > { %1030 = vst.msk [vmem:[#allocation2 + $0x98] sm:$0x1] %vm993_vm4, %v6166_v60  ;;  %v8050_v49 = vld [vmem:[#allocation2 + $0x88] sm:$0xf]  ;;  %v1094_v56 = vld [vmem:[#allocation2 + $0x8c] sm:$0x1]  ;;  %v6164_v52 = vcombine.low %v768_v33, %v768_v33  ;;  %v6165_v51 = vcombine.high %v768_v33, %v768_v33  ;;  %v688_v5 = vor.u32 %v686_v31, %v685_v15 }
  0x8f   : > { %v1367_v50 = vshrl.u32 %v8047_v48, 16  ;;  %v1370_v62 = vshll.u32 %v8047_v48, 16  ;;  %v1345_v53 = vrot.slane %v1343_v37, 4  ;;  %v1348_v25 = vrot.slane %v1346_v44, 5  ;;  %7018 = vmatmul.mubr.msk.bf16.gmra.mrb[4].mxu0 %vm1538_vm8, %v6379_v30  ;;  %v7456_v30 = vld [vmem:[%s7646_s27 + $0x68] sm:$0xff]  }
  0x90   : > { %v1354_v54 = vrot.slane %v1352_v43, 5  ;;  %v1358_v10 = vrot.slane %v1356_v35, 4  ;;  %v1376_v39 = vshll.u32 %v8050_v49, 16  ;;  %v1380_v40 = vshrl.u32 %v8050_v49, 16  ;;  %1028 = vst.msk [vmem:[#allocation2 + $0x90] sm:$0xf] %vm990_vm5, %v6164_v52 }
  0x91   : > { %v1369_v42 = vrot.slane %v1367_v50, 4  ;;  %v1372_v55 = vrot.slane %v1370_v62, 5  ;;  %1029 = vst.msk [vmem:[#allocation2 + $0x94] sm:$0xf] %vm990_vm5, %v6165_v51  ;;  %v1349_v6 = vor.u32 %v1348_v25, %v1345_v53  ;;  %v1386_v57 = vshll.u32 %v1094_v56, 16 }
  0x92   : > { %v1359_v45 = vor.u32 %v1358_v10, %v1354_v54  ;;  %v1378_v26 = vrot.slane %v1376_v39, 5  ;;  %v1382_v9 = vrot.slane %v1380_v40, 4  ;;  %v787_v27 = vsel %vm7637_vm3, %v685_v15, 0  ;;  %v3589_v15 = vld [vmem:[#allocation2 + $0x48] sm:$0xe] }
  0x93   : > { %v1373_v1 = vor.u32 %v1372_v55, %v1369_v42  ;;  %v1350_v34 = vrot.slane %v1349_v6, 4  ;;  %v1388_v61 = vrot.slane %v1386_v57, 5  ;;  %v769_v47 = vsel %vm7637_vm3, 0, %v688_v5 }
  0x94   : > { %v1360_v58 = vrot.slane %v1359_v45, 4  ;;  %v1383_v7 = vor.u32 %v1382_v9, %v1378_v26  ;;  %v6167_v14 = vcombine.low %v769_v47, %v769_v47  ;;  %v6168_v16 = vcombine.high %v769_v47, %v769_v47 }
  0x95   : > { %v1374_v63 = vrot.slane %v1373_v1, 4  ;;  %v1095_v12 = vld [vmem:[#allocation2 + $0x98] sm:$0x1]  ;;  %v1355_v2 = vsel %vm7714_vm9, %v1350_v34, %v1354_v54  ;;  %v6169_v19 = vcombine.low %v787_v27, %v787_v27  ;;  %v3680_v43 = vrot.slane %v3678_v22, 4 }
  0x96   : > { %v1365_v18 = vsel %vm7714_vm9, %v1360_v58, %v1364_v29  ;;  %v1384_v60 = vrot.slane %v1383_v7, 4  ;;  %1031 = vst.msk [vmem:[#allocation2 + $0x9c] sm:$0xf] %vm990_vm5, %v6167_v14  ;;  %1032 = vst.msk [vmem:[#allocation2 + $0xa0] sm:$0xf] %vm990_vm5, %v6168_v16  ;;  %v1410_v44 = vshll.u32 %v1095_v12, 16  ;;  %v3679_v29 = vsel %vm7840_vm12, %v6364_v3, %v3678_v22 }
  0x97   : > { %v6192_v46 = vcombine.low %v1355_v2, %v1365_v18  ;;  %v1379_v31 = vsel %vm7714_vm9, %v1374_v63, %v1378_v26  ;;  %v8072_v33 = vld [vmem:[#allocation2 + $0x90] sm:$0xf]  ;;  %1033 = vst.msk [vmem:[#allocation2 + $0xa4] sm:$0x1] %vm993_vm4, %v6169_v19  ;;  %v3681_v53 = vrot.slane %v7808_v32, 5  ;;  %v6365_v25 = vrot.slane %v3589_v15, 9 }
  0x98   : > { %v8074_v37 = vld [vmem:[#allocation2 + $0x94] sm:$0xf]  ;;  %v1389_v35 = vsel %vm7714_vm9, %v1384_v60, %v1388_v61  ;;  %v1391_v56 = vshrl.u32 %v8072_v33, 16  ;;  %v1394_v50 = vshll.u32 %v8072_v33, 16  ;;  %v3685_v10 = vrot.slane %v7884_v41, 5 }
  0x99   : > { %6863 = vmatprep.mubr.msk.bf16.mxu1 %vm1538_vm8, %v6192_v46  ;;  %v1400_v62 = vshll.u32 %v8074_v37, 16  ;;  %v6193_v52 = vcombine.low %v1379_v31, %v1389_v35  ;;  %v1404_v51 = vshrl.u32 %v8074_v37, 16  ;;  %v3682_v55 = vsel %vm7840_vm12, %v3680_v43, %v3681_v53  ;;  %v7457_v16 = vld [vmem:[%s7646_s27 + $0x70] sm:$0xff]  }
  0x9a   : > { %v1393_v54 = vrot.slane %v1391_v56, 4  ;;  %v1396_v3 = vrot.slane %v1394_v50, 5  ;;  %v3688_v39 = vrot.slane %v7874_v17, 5  ;;  %v690_v40 = vshrl.u32 %v7456_v30, 16 }
  0x9b   : > { %v1402_v22 = vrot.slane %v1400_v62, 5  ;;  %6864 = vmatmul.mubr.msk.bf16.gmra.mrb[20].mxu1 %vm1538_vm8, %v6193_v52  ;;  %v1406_v42 = vrot.slane %v1404_v51, 4  ;;  %v1412_v45 = vrot.slane %v1410_v44, 5  ;;  %v6380_v57 = vcombine.low %v3679_v29, %v3682_v55  ;;  %v3590_v44 = vld [vmem:[#allocation2 + $0x54] sm:$0xe] }
  0x9c   : > { %v1397_v6 = vor.u32 %v1396_v3, %v1393_v54  ;;  %v3687_v5 = vrot.slane %v3685_v10, 4  ;;  %v3686_v41 = vsel %vm7840_vm12, %v6365_v25, %v3685_v10  ;;  %v692_v9 = vrot.slane %v690_v40, 7 }
  0x9d   : > { %v1407_v32 = vor.u32 %v1406_v42, %v1402_v22  ;;  %v8092_v1 = vld [vmem:[#allocation2 + $0x9c] sm:$0xf]  ;;  %v8094_v26 = vld [vmem:[#allocation2 + $0xa0] sm:$0xf]  ;;  %v693_v27 = vshll.u32 %v7456_v30, 16  ;;  %7021 = vmatprep.mubr.msk.bf16.mxu0 %vm1538_vm8, %v6380_v57  ;;  %v697_v52 = vshrl.u32 %v7457_v16, 16 }
  0x9e   : > { %v1398_v34 = vrot.slane %v1397_v6, 4  ;;  %v1096_v58 = vld [vmem:[#allocation2 + $0xa4] sm:$0x1]  ;;  %v1415_v17 = vshrl.u32 %v8092_v1, 16  ;;  %v1418_v61 = vshll.u32 %v8092_v1, 16  ;;  %v1424_v47 = vshll.u32 %v8094_v26, 16 }
  0x9f   : > { %v1408_v63 = vrot.slane %v1407_v32, 4  ;;  %v1428_v7 = vshrl.u32 %v8094_v26, 16  ;;  %v1434_v12 = vshll.u32 %v1096_v58, 16  ;;  %v3689_v14 = vsel %vm7840_vm12, %v3687_v5, %v3688_v39 }
  0xa0   : > { %v1403_v2 = vsel %vm7714_vm9, %v1398_v34, %v1402_v22  ;;  %v1417_v18 = vrot.slane %v1415_v17, 4  ;;  %v1420_v19 = vrot.slane %v1418_v61, 5  ;;  %v1426_v46 = vrot.slane %v1424_v47, 5  ;;  %v3591_v22 = vld [vmem:[#allocation2 + $0x60] sm:$0xe] }
  0xa1   : > { %v1413_v31 = vsel %vm7714_vm9, %v1408_v63, %v1412_v45  ;;  %v1430_v60 = vrot.slane %v1428_v7, 4  ;;  %v1436_v15 = vrot.slane %v1434_v12, 5  ;;  %v6381_v30 = vcombine.low %v3686_v41, %v3689_v14  ;;  %v3592_v17 = vld [vmem:[#allocation2 + $0x6c] sm:$0xe]  ;;  %v2886_v7 = vld [vmem:[#allocation2 + $0x74] sm:$0x1] }
  0xa2   : > { %v6194_v29 = vcombine.low %v1403_v2, %v1413_v31  ;;  %v1421_v43 = vor.u32 %v1420_v19, %v1417_v18  ;;  %v695_v35 = vor.u32 %v693_v27, %v692_v9  ;;  %v788_v56 = vsel %vm7637_vm3, %v692_v9, 0 }
  0xa3   : > { %v1431_v50 = vor.u32 %v1430_v60, %v1426_v46  ;;  %7022 = vmatmul.mubr.msk.bf16.gmra.mrb[8].mxu0 %vm1538_vm8, %v6381_v30  ;;  %v6172_v62 = vcombine.low %v788_v56, %v788_v56  ;;  %v700_v51 = vshll.u32 %v7457_v16, 16  ;;  %v6366_v54 = vrot.slane %v3590_v44, 9 }
  0xa4   : > { %6867 = vmatprep.mubr.msk.bf16.mxu1 %vm1538_vm8, %v6194_v29  ;;  %v1422_v53 = vrot.slane %v1421_v43, 4  ;;  %v770_v25 = vsel %vm7637_vm3, 0, %v695_v35  ;;  %v3692_v3 = vrot.slane %v7904_v59, 5  ;;  %v699_v39 = vrot.slane %v697_v52, 7  ;;  %v8158_v52 = vld [vmem:[#allocation2] sm:$0xf] }
  0xa5   : > { %v1432_v10 = vrot.slane %v1431_v50, 4  ;;  %v6170_v42 = vcombine.low %v770_v25, %v770_v25  ;;  %v6171_v55 = vcombine.high %v770_v25, %v770_v25  ;;  %1036 = vst.msk [vmem:[#allocation2 + $0xb0] sm:$0x1] %vm993_vm4, %v6172_v62  ;;  %v3695_v57 = vrot.slane %v7908_v36, 5  ;;  %v2885_v36 = vld [vmem:[#allocation2 + $0x70] sm:$0xf] }
  0xa6   : > { %v1427_v40 = vsel %vm7714_vm9, %v1422_v53, %v1426_v46  ;;  %v3693_v6 = vsel %vm7840_vm12, %v6366_v54, %v3692_v3  ;;  %v3694_v45 = vrot.slane %v3692_v3, 4  ;;  %v702_v59 = vor.u32 %v700_v51, %v699_v39  ;;  %v3593_v62 = vld [vmem:[#allocation2 + $0x78] sm:$0xe]  ;;  %v8160_v51 = vld [vmem:[#allocation2 + $0x4] sm:$0xf] }
  0xa7   : > { %v1437_v5 = vsel %vm7714_vm9, %v1432_v10, %v1436_v15  ;;  %1034 = vst.msk [vmem:[#allocation2 + $0xa8] sm:$0xf] %vm990_vm5, %v6170_v42  ;;  %1035 = vst.msk [vmem:[#allocation2 + $0xac] sm:$0xf] %vm990_vm5, %v6171_v55  ;;  %v789_v32 = vsel %vm7637_vm3, %v699_v39, 0  ;;  %v6367_v41 = vrot.slane %v3591_v22, 9  ;;  %v6215_v53 = vcombine.low %v8158_v52, %v8160_v51 }
  0xa8   : > { %v6195_v9 = vcombine.low %v1427_v40, %v1437_v5  ;;  %v6175_v27 = vcombine.low %v789_v32, %v789_v32  ;;  %v3696_v34 = vsel %vm7840_vm12, %v3694_v45, %v3695_v57  ;;  %v3699_v58 = vrot.slane %v7915_v0, 5  ;;  %v8166_v54 = vld [vmem:[#allocation2 + $0x7c] sm:$0xf]  ;;  %v8168_v3 = vld [vmem:[#allocation2 + $0x80] sm:$0x1] }
  0xa9   : > { %v771_v61 = vsel %vm7637_vm3, 0, %v702_v59  ;;  %v6382_v47 = vcombine.low %v3693_v6, %v3696_v34  ;;  %v3702_v63 = vrot.slane %v7943_v38, 5  ;;  %v6368_v0 = vrot.slane %v3592_v17, 9  ;;  %v3594_v5 = vld [vmem:[#allocation2 + $0x84] sm:$0xe] }
  0xaa   : > { %6868 = vmatmul.mubr.msk.bf16.gmra.mrb[24].mxu1 %vm1538_vm8, %v6195_v9  ;;  %v6173_v12 = vcombine.low %v771_v61, %v771_v61  ;;  %v6174_v14 = vcombine.high %v771_v61, %v771_v61  ;;  %1039 = vst.msk [vmem:[#allocation2 + $0xbc] sm:$0x1] %vm993_vm4, %v6175_v27  ;;  %v3700_v16 = vsel %vm7840_vm12, %v6367_v41, %v3699_v58  ;;  %v3701_v2 = vrot.slane %v3699_v58, 4  ;;  %v2891_v58 = vld [vmem:[#allocation2 + $0x88] sm:$0xf] }
  0xab   : > { %7025 = vmatprep.mubr.msk.bf16.mxu0 %vm1538_vm8, %v6382_v47  ;;  %v3706_v18 = vrot.slane %v2885_v36, 5  ;;  %v3709_v46 = vrot.slane %v2886_v7, 5  ;;  %v6369_v57 = vrot.slane %v3593_v62, 9  ;;  %v3713_v27 = vrot.slane %v8166_v54, 5  ;;  %v2894_v7 = vld [vmem:[#allocation2 + $0x94] sm:$0xf] }
  0xac   : > { %v8140_v19 = vld [vmem:[#allocation2 + $0xb0] sm:$0x1]  ;;  %1037 = vst.msk [vmem:[#allocation2 + $0xb4] sm:$0xf] %vm990_vm5, %v6173_v12  ;;  %1038 = vst.msk [vmem:[#allocation2 + $0xb8] sm:$0xf] %vm990_vm5, %v6174_v14  ;;  %v3703_v38 = vsel %vm7840_vm12, %v3701_v2, %v3702_v63 }
  0xad   : > { %v6383_v31 = vcombine.low %v3700_v16, %v3703_v38  ;;  %v3708_v60 = vrot.slane %v3706_v18, 4  ;;  %v1458_v44 = vshll.u32 %v8140_v19, 16  ;;  %v3707_v29 = vsel %vm7840_vm12, %v6368_v0, %v3706_v18  ;;  %v2892_v63 = vld [vmem:[#allocation2 + $0x8c] sm:$0x1]  ;;  %v3595_v0 = vld [vmem:[#allocation2 + $0x90] sm:$0xe] }
  0xae   : > { %v8146_v15 = vld [vmem:[#allocation2 + $0xa8] sm:$0xf]  ;;  %v8148_v30 = vld [vmem:[#allocation2 + $0xac] sm:$0xf]  ;;  %v3716_v34 = vrot.slane %v8168_v3, 5  ;;  %v3714_v2 = vsel %vm7840_vm12, %v6369_v57, %v3713_v27  ;;  %v3720_v62 = vrot.slane %v2891_v58, 5 }
  0xaf   : > { %v1439_v43 = vshrl.u32 %v8146_v15, 16  ;;  %v1442_v35 = vshll.u32 %v8146_v15, 16  ;;  %v1448_v56 = vshll.u32 %v8148_v30, 16  ;;  %v1452_v50 = vshrl.u32 %v8148_v30, 16  ;;  %7026 = vmatmul.mubr.msk.bf16.gmra.mrb[12].mxu0 %vm1538_vm8, %v6383_v31  ;;  %v3596_v57 = vld [vmem:[#allocation2 + $0x9c] sm:$0xe] }
  0xb0   : > { %v3710_v25 = vsel %vm7840_vm12, %v3708_v60, %v3709_v46  ;;  %v1460_v40 = vrot.slane %v1458_v44, 5  ;;  %v8220_v52 = vld [vmem:[#allocation2 + $0x10] sm:$0xf] }
  0xb1   : > { %v1441_v22 = vrot.slane %v1439_v43, 4  ;;  %v1444_v10 = vrot.slane %v1442_v35, 5  ;;  %v1450_v42 = vrot.slane %v1448_v56, 5  ;;  %v1454_v55 = vrot.slane %v1452_v50, 4  ;;  %v8170_v39 = vld [vmem:[#allocation2 + $0xbc] sm:$0x1] }
  0xb2   : > { %v1482_v6 = vshll.u32 %v8170_v39, 16  ;;  %v6384_v45 = vcombine.low %v3707_v29, %v3710_v25  ;;  %v3715_v29 = vrot.slane %v3713_v27, 4  ;;  %v6370_v43 = vrot.slane %v3594_v5, 9  ;;  %v2895_v25 = vld [vmem:[#allocation2 + $0x98] sm:$0x1] }
  0xb3   : > { %v1445_v59 = vor.u32 %v1444_v10, %v1441_v22  ;;  %v1455_v32 = vor.u32 %v1454_v55, %v1450_v42  ;;  %v8173_v41 = vld [vmem:[#allocation2 + $0xb4] sm:$0xf]  ;;  %v8175_v9 = vld [vmem:[#allocation2 + $0xb8] sm:$0xf]  ;;  %v2897_v22 = vld [vmem:[#allocation2 + $0xa0] sm:$0xf] }
  0xb4   : > { %v1463_v36 = vshrl.u32 %v8173_v41, 16  ;;  %v1466_v17 = vshll.u32 %v8173_v41, 16  ;;  %v1472_v61 = vshll.u32 %v8175_v9, 16  ;;  %v1476_v47 = vshrl.u32 %v8175_v9, 16  ;;  %7029 = vmatprep.mubr.msk.bf16.mxu0 %vm1538_vm8, %v6384_v45 }
  0xb5   : > { %v1446_v12 = vrot.slane %v1445_v59, 4  ;;  %v1456_v14 = vrot.slane %v1455_v32, 4  ;;  %v1484_v16 = vrot.slane %v1482_v6, 5  ;;  %v3717_v10 = vsel %vm7840_vm12, %v3715_v29, %v3716_v34  ;;  %v2898_v32 = vld [vmem:[#allocation2 + $0xa4] sm:$0x1] }
  0xb6   : > { %v1465_v18 = vrot.slane %v1463_v36, 4  ;;  %v1468_v38 = vrot.slane %v1466_v17, 5  ;;  %v1474_v46 = vrot.slane %v1472_v61, 5  ;;  %v1478_v31 = vrot.slane %v1476_v47, 4  ;;  %v7494_v29 = vld [vmem:[%s9298_s3 + $0x4] sm:$0xf] }
  0xb7   : > { %v1451_v60 = vsel %vm7714_vm9, %v1446_v12, %v1450_v42  ;;  %v1461_v44 = vsel %vm7714_vm9, %v1456_v14, %v1460_v40  ;;  %v3723_v55 = vrot.slane %v2892_v63, 5  ;;  %v6371_v6 = vrot.slane %v3595_v0, 9 }
  0xb8   : > { %v6196_v35 = vcombine.low %v1451_v60, %v1461_v44  ;;  %v1469_v56 = vor.u32 %v1468_v38, %v1465_v18  ;;  %v1479_v50 = vor.u32 %v1478_v31, %v1474_v46  ;;  %v3727_v45 = vrot.slane %v2894_v7, 5  ;;  %v2900_v7 = vld [vmem:[#allocation2 + $0xac] sm:$0xf]  ;;  %v3597_v18 = vld [vmem:[#allocation2 + $0xa8] sm:$0xe]  ;;  %v7459_v31 = vld [vmem:[%s7646_s27 + $0x78] sm:$0xff]  }
  0xb9   : > { %v6385_v40 = vcombine.low %v3714_v2, %v3717_v10  ;;  %v3721_v5 = vsel %vm7840_vm12, %v6370_v43, %v3720_v62  ;;  %v3722_v27 = vrot.slane %v3720_v62, 4  ;;  %v3730_v34 = vrot.slane %v2895_v25, 5  ;;  %v2903_v38 = vld [vmem:[#allocation2 + $0xb8] sm:$0xf]  ;;  %v2901_v44 = vld [vmem:[#allocation2 + $0xb0] sm:$0x1] }
  0xba   : > { %6871 = vmatprep.mubr.msk.bf16.mxu1 %vm1538_vm8, %v6196_v35  ;;  %v1470_v42 = vrot.slane %v1469_v56, 4  ;;  %v1480_v59 = vrot.slane %v1479_v50, 4  ;;  %v3728_v58 = vsel %vm7840_vm12, %v6371_v6, %v3727_v45  ;;  %v3729_v36 = vrot.slane %v3727_v45, 4  ;;  %v2904_v56 = vld [vmem:[#allocation2 + $0xbc] sm:$0x1] }
  0xbb   : > { %7030 = vmatmul.mubr.msk.bf16.gmra.mrb[16].mxu0 %vm1538_vm8, %v6385_v40  ;;  %v6372_v47 = vrot.slane %v3596_v57, 9  ;;  %v3734_v63 = vrot.slane %v2897_v22, 5  ;;  %v3724_v14 = vsel %vm7840_vm12, %v3722_v27, %v3723_v55  ;;  %v3737_v0 = vrot.slane %v2898_v32, 5  ;;  %v3598_v50 = vld [vmem:[#allocation2 + $0xb4] sm:$0xe] }
  0xbc   : > { %v1475_v17 = vsel %vm7714_vm9, %v1470_v42, %v1474_v46  ;;  %v1485_v61 = vsel %vm7714_vm9, %v1480_v59, %v1484_v16  ;;  %v3731_v2 = vsel %vm7840_vm12, %v3729_v36, %v3730_v34  ;;  %v6386_v46 = vcombine.low %v3721_v5, %v3724_v14  ;;  %v7495_v32 = vld [vmem:[#allocation2 + $0xc] sm:$0xf]  ;;  %v7497_v34 = vld [vmem:[#allocation2 + $0x18] sm:$0xf] }
  0xbd   : > { %v6197_v12 = vcombine.low %v1475_v17, %v1485_v61  ;;  %v3735_v16 = vsel %vm7840_vm12, %v6372_v47, %v3734_v63  ;;  %v3736_v60 = vrot.slane %v3734_v63, 4  ;;  %v6311_v43 = vcombine.low %v7494_v29, %v7494_v29  ;;  %v8226_v17 = vld [vmem:[#allocation2 + $0x1c] sm:$0xf] }
  0xbe   : > { %v3741_v35 = vrot.slane %v2900_v7, 5  ;;  %7033 = vmatprep.mubr.msk.bf16.mxu0 %vm1538_vm8, %v6386_v46  ;;  %v6387_v62 = vcombine.low %v3728_v58, %v3731_v2  ;;  %v6373_v22 = vrot.slane %v3597_v18, 9  ;;  %v3748_v10 = vrot.slane %v2903_v38, 5 }
  0xbf   : > { %6872 = vmatmul.mubr.msk.bf16.gmra.mrb[28].mxu1 %vm1538_vm8, %v6197_v12  ;;  %v3738_v25 = vsel %vm7840_vm12, %v3736_v60, %v3737_v0  ;;  %v3744_v45 = vrot.slane %v2901_v44, 5  ;;  %v704_v57 = vshrl.u32 %v7459_v31, 16  ;;  %v6374_v42 = vrot.slane %v3598_v50, 9  ;;  %v7499_v60 = vld [vmem:[#allocation2 + $0x24] sm:$0xf] }
  0xc0   : > { %6877 = vmatprep.mubr.msk.bf16.mxu1 %vm1538_vm8, %v6215_v53  ;;  %v6388_v55 = vcombine.low %v3735_v16, %v3738_v25  ;;  %v3743_v6 = vrot.slane %v3741_v35, 4  ;;  %v3750_v59 = vrot.slane %v3748_v10, 4  ;;  %v3751_v40 = vrot.slane %v2904_v56, 5  ;;  %v8250_v44 = vld [vmem:[#allocation2 + $0x28] sm:$0xf] }
  0xc1   : > { %v707_v5 = vshll.u32 %v7459_v31, 16  ;;  %v6216_v53 = vcombine.low %v7495_v32, %v8220_v52  ;;  %v706_v27 = vrot.slane %v704_v57, 7  ;;  %v8223_v58 = vrot.slane %v6311_v43, 2  ;;  %v8253_v43 = vld [vmem:[#allocation2 + $0x34] sm:$0xf] }
  0xc2   : > { %v2304_v36 = vsel %vm1587_vm0, %v7494_v29, 0  ;;  %v6217_v61 = vcombine.low %v7497_v34, %v8226_v17  ;;  %v3742_v47 = vsel %vm7840_vm12, %v6373_v22, %v3741_v35  ;;  %v3745_v63 = vsel %vm7840_vm12, %v3743_v6, %v3744_v45  ;;  %v7501_v29 = vld [vmem:[#allocation2 + $0x30] sm:$0xf]  ;;  %v7503_v57 = vld [vmem:[#allocation2 + $0x3c] sm:$0xf] }
  0xc3   : > { %7034 = vmatmul.mubr.msk.bf16.gmra.mrb[20].mxu0 %vm1538_vm8, %v6387_v62  ;;  %v709_v7 = vor.u32 %v707_v5, %v706_v27  ;;  %v790_v12 = vsel %vm7637_vm3, %v706_v27, 0  ;;  %v3749_v14 = vsel %vm7840_vm12, %v6374_v42, %v3748_v10  ;;  %v3752_v2 = vsel %vm7840_vm12, %v3750_v59, %v3751_v40  ;;  %v8264_v42 = vld [vmem:[#allocation2 + $0x40] sm:$0xf]  ;;  %v7505_v5 = vld [vmem:[#allocation2 + $0x48] sm:$0xf]  ;;  %v7460_v34 = vld [vmem:[#allocation2 + $0x18] sm:$0xff]  }
  0xc4   : > { %7037 = vmatprep.mubr.msk.bf16.mxu0 %vm1538_vm8, %v6388_v55  ;;  %v6178_v0 = vcombine.low %v790_v12, %v790_v12  ;;  %v6389_v38 = vcombine.low %v3742_v47, %v3745_v63  ;;  %v6390_v16 = vcombine.low %v3749_v14, %v3752_v2  ;;  %v6218_v13 = vcombine.low %v7499_v60, %v8250_v44  ;;  %v8267_v32 = vld [vmem:[#allocation2 + $0x4c] sm:$0xf]  ;;  %v7507_v63 = vld [vmem:[#allocation2 + $0x8] sm:$0x1]  ;;  %v7508_v12 = vld [vmem:[#allocation2 + $0x14] sm:$0x1] }
  0xc5   : > { %v772_v18 = vsel %vm7637_vm3, 0, %v709_v7  ;;  %v6219_v35 = vcombine.low %v7501_v29, %v8253_v43  ;;  %v3134_v56 = vshll.u32 %v8166_v54, 16  ;;  %v3138_v62 = vshrl.u32 %v8166_v54, 16  ;;  %v8284_v60 = vld [vmem:[#allocation2 + $0x58] sm:$0xf] }
  0xc6   : > { %v6176_v31 = vcombine.low %v772_v18, %v772_v18  ;;  %v6177_v46 = vcombine.high %v772_v18, %v772_v18  ;;  %1042 = vst.msk [vmem:[#allocation2 + $0xc8] sm:$0x1] %vm993_vm4, %v6178_v0  ;;  %v6220_v59 = vcombine.low %v7503_v57, %v8264_v42  ;;  %v6221_v54 = vcombine.low %v7505_v5, %v8267_v32  ;;  %v2044_v0 = vld [vmem:[#allocation2] sm:$0xe]  ;;  %v2045_v18 = vld [vmem:[#allocation2 + $0xc] sm:$0xe] }
  0xc7   : > { %6878 = vmatmul.mubr.msk.bf16.vlgmr.msra.gmra.mrb[0].mxu1 %vm1538_vm8, %v6216_v53  ;;  %v8262_v45 = vrot.slane %v3134_v56, 5  ;;  %v3140_v40 = vrot.slane %v3138_v62, 4  ;;  %v2100_v7 = vrot.slane %v7507_v63, 5  ;;  %v2107_v14 = vrot.slane %v7508_v12, 5  ;;  %v8311_v12 = vld [vmem:[%s9298_s3 + $0x10] sm:$0x3] }
  0xc8   : > { %6910 = vmatpush3.bf16.msra.mxu1 %v2304_v36  ;;  %6881 = vmatprep.mubr.msk.bf16.mxu1 %vm1538_vm8, %v6217_v61  ;;  %1040 = vst.msk [vmem:[#allocation2 + $0xc0] sm:$0xf] %vm990_vm5, %v6176_v31  ;;  %1041 = vst.msk [vmem:[#allocation2 + $0xc4] sm:$0xf] %vm990_vm5, %v6177_v46  ;;  %v3144_v61 = vshll.u32 %v8168_v3, 16  ;;  %v2097_v31 = vrot.slane %v8160_v51, 5  ;;  %v6224_v62 = vcombine.low %v7978_v8, %v7980_v11 }
  0xc9   : > { %7408 = vmatprep.subr.msk.bf16.mxu1 %vm1587_vm0, %v8223_v58  ;;  %9330 = vst [vmem:[#allocation5_spill] sm:$0xff] %v8262_v45  ;;  %v3141_v2 = vor.u32 %v3140_v40, %v8262_v45  ;;  %v2046_v3 = vld [vmem:[#allocation2 + $0x18] sm:$0xe]  ;;  %v2111_v29 = vrot.slane %v8226_v17, 5  ;;  %v4946_v17 = vsel %vm1587_vm0, %v7720_v28, 0  ;;  %v7462_v40 = vld [vmem:[#allocation2 + $0x30] sm:$0xff]  }
  0xca   : > { %v8282_v46 = vrot.slane %v3144_v61, 5  ;;  %v6249_v5 = vrot.slane %v2046_v3, 9  ;;  %v7514_v61 = vld [vmem:[#allocation2 + $0x2c] sm:$0x1]  ;;  %v2132_v63 = vrot.slane %v8264_v42, 5  ;;  %v7466_v45 = vld [vmem:[#allocation2 + $0x60] sm:$0xff]  }
  0xcb   : > { %7038 = vmatmul.mubr.msk.bf16.gmra.mrb[24].mxu0 %vm1538_vm8, %v6389_v38  ;;  %v2104_v38 = vrot.slane %v8220_v52, 5  ;;  %v8288_v56 = vrot.slane %v3141_v2, 4  ;;  %v7511_v52 = vld [vmem:[#allocation2 + $0x60] sm:$0xf]  ;;  %v2113_v11 = vrot.slane %v2111_v29, 4 }
  0xcc   : > { %7041 = vmatprep.mubr.msk.bf16.mxu0 %vm1538_vm8, %v6390_v16  ;;  %9331 = vst [vmem:[#allocation6_spill] sm:$0xff] %v8282_v46  ;;  %v7509_v16 = vld [vmem:[#allocation2 + $0x54] sm:$0xf] }
  0xcd   : > { %v2907_v50 = vld [vmem:[#allocation2 + $0xc8] sm:$0x1]  ;;  %9332 = vst [vmem:[#allocation7_spill] sm:$0xff] %v8288_v56  ;;  %v2106_v57 = vrot.slane %v2104_v38, 4 }
  0xce   : > { %v3758_v10 = vrot.slane %v2907_v50, 5  ;;  %v8290_v50 = vld [vmem:[#allocation2 + $0x64] sm:$0xf] }
  0xcf   : > { %6882 = vmatmul.mubr.msk.bf16.gmra.mrb[4].mxu1 %vm1538_vm8, %v6218_v13  ;;  %v2906_v25 = vld [vmem:[#allocation2 + $0xc4] sm:$0xf]  ;;  %v3599_v22 = vld [vmem:[#allocation2 + $0xc0] sm:$0xe]  ;;  %v6222_v13 = vcombine.low %v7509_v16, %v8284_v60  ;;  %v6223_v51 = vcombine.low %v7511_v52, %v8290_v50  ;;  %v8328_v42 = vsel %vm7840_vm12, %v2106_v57, %v2107_v14  ;;  %v7515_v16 = vld [vmem:[#allocation2 + $0x38] sm:$0x1] }
  0xd0   : > { %6885 = vmatprep.mubr.msk.bf16.mxu1 %vm1538_vm8, %v6219_v35  ;;  %v6375_v55 = vrot.slane %v3599_v22, 9  ;;  %v3755_v6 = vrot.slane %v2906_v25, 5  ;;  %v2047_v35 = vld [vmem:[#allocation2 + $0x24] sm:$0xe]  ;;  %v2118_v22 = vrot.slane %v8250_v44, 5 }
  0xd1   : > { %v7461_v25 = vld [vmem:[#allocation2 + $0x24] sm:$0xff]   ;;  %v7513_v44 = vld [vmem:[#allocation2 + $0x20] sm:$0x1] }
  0xd2   : > { %v3756_v53 = vsel %vm7840_vm12, %v6375_v55, %v3755_v6  ;;  %v3757_v27 = vrot.slane %v3755_v6, 4  ;;  %v2099_v55 = vrot.slane %v2097_v31, 4  ;;  %v6248_v6 = vrot.slane %v2045_v18, 9  ;;  %v2050_v18 = vld [vmem:[#allocation2 + $0x48] sm:$0xe] }
  0xd3   : > { %v7516_v52 = vld [vmem:[#allocation2 + $0x44] sm:$0x1] }
  0xd4   : > { %v3759_v36 = vsel %vm7840_vm12, %v3757_v27, %v3758_v10  ;;  %v6247_v10 = vrot.slane %v2044_v0, 9  ;;  %v2114_v27 = vrot.slane %v7513_v44, 5  ;;  %v8320_v2 = vsel %vm7840_vm12, %v2099_v55, %v2100_v7  ;;  %v7463_v55 = vld [vmem:[#allocation2 + $0x3c] sm:$0xff]   ;;  %v2051_v44 = vld [vmem:[#allocation2 + $0x54] sm:$0xe] }
  0xd5   : > { %v6391_v47 = vcombine.low %v3756_v53, %v3759_v36  ;;  %v2048_v53 = vld [vmem:[#allocation2 + $0x30] sm:$0xe]  ;;  %v2125_v36 = vrot.slane %v8253_v43, 5  ;;  %v8324_v0 = vsel %vm7840_vm12, %v6248_v6, %v2104_v38  ;;  %v2128_v38 = vrot.slane %v7515_v16, 5  ;;  %v7520_v6 = vld [vmem:[#allocation2 + $0x68] sm:$0x1] }
  0xd6   : > { %v8316_v43 = vsel %vm7840_vm12, %v6247_v10, %v2097_v31  ;;  %v8333_v31 = vsel %vm7840_vm12, %v6249_v5, %v2111_v29  ;;  %v6251_v3 = vrot.slane %v2048_v53, 9  ;;  %v2139_v10 = vrot.slane %v8267_v32, 5  ;;  %v7464_v5 = vld [vmem:[#allocation2 + $0x48] sm:$0xff]  }
  0xd7   : > { %6886 = vmatmul.mubr.msk.bf16.gmra.mrb[8].mxu1 %vm1538_vm8, %v6220_v59  ;;  %7042 = vmatmul.mubr.msk.bf16.gmra.mrb[28].mxu0 %vm1538_vm8, %v6391_v47  ;;  %v6225_v59 = vcombine.low %v8036_v21, %v8038_v23  ;;  %v2120_v21 = vrot.slane %v2118_v22, 4  ;;  %v2121_v47 = vrot.slane %v7514_v61, 5  ;;  %v2127_v14 = vrot.slane %v2125_v36, 4  ;;  %v4413_v61 = vld [vmem:[#allocation2 + $0x18] sm:$0xf] }
  0xd8   : > { %6889 = vmatprep.mubr.msk.bf16.mxu1 %vm1538_vm8, %v6221_v54  ;;  %7047 = vmatprep.mubr.msk.bf16.mxu0 %vm1538_vm8, %v7460_v34  ;;  %v6250_v54 = vrot.slane %v2047_v35, 9  ;;  %v2049_v34 = vld [vmem:[#allocation2 + $0x3c] sm:$0xe]  ;;  %v2153_v16 = vrot.slane %v8290_v50, 5  ;;  %v4465_v53 = vshll.u32 %v4413_v61, 16 }
  0xd9   : > { %v6252_v35 = vrot.slane %v2049_v34, 9  ;;  %v8347_v29 = vsel %vm7840_vm12, %v2120_v21, %v2121_v47  ;;  %v2146_v21 = vrot.slane %v8284_v60, 5  ;;  %v4414_v47 = vld [vmem:[#allocation2 + $0x1c] sm:$0xf]  ;;  %v7517_v60 = vld [vmem:[#allocation2 + $0x50] sm:$0x1] }
  0xda   : > { %v8337_v7 = vsel %vm7840_vm12, %v6250_v54, %v2118_v22  ;;  %v6253_v22 = vrot.slane %v2050_v18, 9  ;;  %v2141_v18 = vrot.slane %v2139_v10, 4  ;;  %v4475_v32 = vshrl.u32 %v4414_v47, 16 }
  0xdb   : > { %v8379_v34 = vsel %vm7840_vm12, %v6252_v35, %v2132_v63  ;;  %v7518_v35 = vld [vmem:[#allocation2 + $0x5c] sm:$0x1]  ;;  %v2148_v54 = vrot.slane %v2146_v21, 4  ;;  %v4467_v56 = vrot.slane %v4465_v53, 5 }
  0xdf   : > { %6890 = vmatmul.mubr.msk.bf16.gmra.mrb[12].mxu1 %vm1538_vm8, %v6222_v13  ;;  %7048 = vmatmul.mubr.msk.bf16.vlgmr.msra.gmra.mrb[0].mxu0 %vm1538_vm8, %v7461_v25  ;;  %v8341_v13 = vsel %vm7840_vm12, %v2113_v11, %v2114_v27  ;;  %v2134_v25 = vrot.slane %v2132_v63, 4  ;;  %v8368_v11 = vsel %vm7840_vm12, %v6251_v3, %v2125_v36  ;;  %v8375_v27 = vsel %vm7840_vm12, %v2127_v14, %v2128_v38  ;;  %v2052_v3 = vld [vmem:[#allocation2 + $0x60] sm:$0xe]  ;;  %v4416_v63 = vld [vmem:[#allocation2 + $0x24] sm:$0xf] }
  0xe0   : > { %6893 = vmatprep.mubr.msk.bf16.mxu1 %vm1538_vm8, %v6223_v51  ;;  %7080 = vmatpush3.bf16.msra.mxu0 %v4946_v17  ;;  %v2135_v51 = vrot.slane %v7516_v52, 5  ;;  %v8389_v36 = vsel %vm7840_vm12, %v6253_v22, %v2139_v10  ;;  %v2142_v38 = vrot.slane %v7517_v60, 5  ;;  %v6254_v14 = vrot.slane %v2051_v44, 9  ;;  %v7519_v52 = vld [vmem:[#allocation2 + $0x70] sm:$0xf] }
  0xe1   : > { %7051 = vmatprep.mubr.msk.bf16.mxu0 %vm1538_vm8, %v7462_v40  ;;  %7414 = vmatprep.subr.msk.bf16.mxu0 %vm1587_vm0, %v8311_v12  ;;  %v8358_v40 = vsel %vm1587_vm0, %v8223_v58, 0  ;;  %v2160_v58 = vrot.slane %v7519_v52, 5  ;;  %v4462_v22 = vshrl.u32 %v4413_v61, 16  ;;  %v4471_v10 = vshll.u32 %v4414_v47, 16 }
  0xe2   : > { %v6255_v50 = vrot.slane %v2052_v3, 9  ;;  %v4486_v17 = vshrl.u32 %v4416_v63, 16  ;;  %v4489_v57 = vshll.u32 %v4416_v63, 16  ;;  %v2156_v60 = vrot.slane %v7520_v6, 5 }
  0xe3   : > { %v8396_v52 = vsel %vm7840_vm12, %v2141_v18, %v2142_v38  ;;  %v2162_v8 = vrot.slane %v2160_v58, 4  ;;  %v2163_v61 = vrot.slane %v7521_v4, 5  ;;  %v4464_v47 = vrot.slane %v4462_v22, 4  ;;  %v8412_v4 = vld [vmem:[#allocation2 + $0x20] sm:$0x1] }
  0xe4   : > { %v8398_v3 = vrot.slane %v4471_v10, 5  ;;  %v4477_v63 = vrot.slane %v4475_v32, 4  ;;  %v9333_v6 = vcombine.low %v8047_v48, %v8050_v49  ;;  %v8410_v18 = vsel %vm7840_vm12, %v6255_v50, %v2153_v16  ;;  %9334 = vst [vmem:[#allocation8_spill] sm:$0xff] %v8412_v4  ;;  %v4419_v10 = vld [vmem:[#allocation2 + $0x30] sm:$0xf] }
  0xe5   : > { %v4488_v38 = vrot.slane %v4486_v17, 4  ;;  %v4491_v53 = vrot.slane %v4489_v57, 5  ;;  %v9335_v32 = vcombine.low %v8072_v33, %v8074_v37  ;;  %v8439_v17 = vsel %vm7840_vm12, %v2162_v8, %v2163_v61  ;;  %v8446_v50 = vld [vmem:[#allocation2 + $0x34] sm:$0xf]  ;;  %v7522_v33 = vld [vmem:[#allocation2 + $0x80] sm:$0x1] }
  0xe6   : > { %9336 = vst [vmem:[#allocation9_spill] sm:$0xff] %v8439_v17  ;;  %v4481_v22 = vshll.u32 %v8412_v4, 16  ;;  %9337 = vst [vmem:[#allocation10_spill] sm:$0xff] %v8446_v50  ;;  %v2174_v61 = vrot.slane %v8050_v49, 5  ;;  %v2170_v57 = vrot.slane %v7522_v33, 5 }
  0xe7   : > { %6894 = vmatmul.mubr.msk.bf16.gmra.mrb[16].mxu1 %vm1538_vm8, %v6224_v62  ;;  %v8385_v62 = vsel %vm7840_vm12, %v2134_v25, %v2135_v51  ;;  %7052 = vmatmul.mubr.msk.bf16.gmra.mrb[4].mxu0 %vm1538_vm8, %v7463_v55  ;;  %v4417_v51 = vld [vmem:[#allocation2 + $0x28] sm:$0xf]  ;;  %v2053_v25 = vld [vmem:[#allocation2 + $0x6c] sm:$0xe]  ;;  %v2155_v55 = vrot.slane %v2153_v16, 4 }
  0xe8   : > { %6897 = vmatprep.mubr.msk.bf16.mxu1 %vm1538_vm8, %v6225_v59  ;;  %v2149_v59 = vrot.slane %v7518_v35, 5  ;;  %7055 = vmatprep.mubr.msk.bf16.mxu0 %vm1538_vm8, %v7464_v5  ;;  %v4495_v44 = vshll.u32 %v4417_v51, 16  ;;  %v4499_v28 = vshrl.u32 %v4417_v51, 16  ;;  %v7465_v35 = vld [vmem:[#allocation2 + $0x54] sm:$0xff]   ;;  %v6256_v5 = vrot.slane %v2053_v25, 9 }
  0xe9   : > { %v8406_v51 = vsel %vm7840_vm12, %v6254_v14, %v2146_v21  ;;  %v8424_v21 = vsel %vm7840_vm12, %v2155_v55, %v2156_v60  ;;  %v4418_v14 = vld [vmem:[#allocation2 + $0x2c] sm:$0x1]  ;;  %v4492_v55 = vor.u32 %v4491_v53, %v4488_v38  ;;  %v4523_v38 = vshrl.u32 %v8446_v50, 16 }
  0xea   : > { %v8420_v48 = vsel %vm7840_vm12, %v2148_v54, %v2149_v59  ;;  %v8426_v16 = vrot.slane %v4495_v44, 5  ;;  %v4501_v25 = vrot.slane %v4499_v28, 4  ;;  %v8435_v37 = vsel %vm7840_vm12, %v6256_v5, %v2160_v58  ;;  %v2055_v5 = vld [vmem:[#allocation2 + $0x84] sm:$0xe]  ;;  %v4422_v44 = vld [vmem:[#allocation2 + $0x3c] sm:$0xf] }
  0xeb   : > { %v4468_v54 = vor.u32 %v4467_v56, %v4464_v47  ;;  %v4478_v59 = vor.u32 %v4477_v63, %v8398_v3  ;;  %v4505_v60 = vshll.u32 %v4418_v14, 16  ;;  %v7467_v47 = vld [vmem:[#allocation2 + $0x6c] sm:$0xff]   ;;  %v7468_v63 = vld [vmem:[#allocation2 + $0x78] sm:$0xff]   ;;  %v4519_v58 = vshll.u32 %v8446_v50, 16 }
  0xec   : > { %v4502_v56 = vor.u32 %v4501_v25, %v8426_v16  ;;  %v4483_v8 = vrot.slane %v4481_v22, 5  ;;  %v9338_v25 = vcombine.low %v8092_v1, %v8094_v26  ;;  %v6258_v4 = vrot.slane %v2055_v5, 9  ;;  %v8470_v1 = vld [vmem:[#allocation2 + $0x38] sm:$0x1] }
  0xed   : > { %v4469_v53 = vrot.slane %v4468_v54, 4  ;;  %v4479_v14 = vrot.slane %v4478_v59, 4  ;;  %v4507_v49 = vrot.slane %v4505_v60, 5  ;;  %v9340_v50 = vcombine.low %v8146_v15, %v8148_v30  ;;  %9341 = vst [vmem:[#allocation12_spill] sm:$0xff] %v8470_v1 }
  0xee   : > { %v4503_v54 = vrot.slane %v4502_v56, 4  ;;  %v2176_v22 = vrot.slane %v2174_v61, 4  ;;  %v8472_v33 = vrot.slane %v4519_v58, 5  ;;  %v4525_v5 = vrot.slane %v4523_v38, 4  ;;  %v7469_v38 = vld [vmem:[#allocation2 + $0x84] sm:$0xff]  }
  0xef   : > { %6898 = vmatmul.mubr.msk.bf16.gmra.mrb[20].mxu1 %vm1538_vm8, %v9333_v6  ;;  %7056 = vmatmul.mubr.msk.bf16.gmra.mrb[8].mxu0 %vm1538_vm8, %v7465_v35  ;;  %v2167_v35 = vrot.slane %v8038_v23, 5  ;;  %v4510_v6 = vshrl.u32 %v4419_v10, 16  ;;  %v4493_v23 = vrot.slane %v4492_v55, 4  ;;  %v4534_v15 = vshrl.u32 %v4422_v44, 16 }
  0xf0   : > { %6901 = vmatprep.mubr.msk.bf16.mxu1 %vm1538_vm8, %v9335_v32  ;;  %7059 = vmatprep.mubr.msk.bf16.mxu0 %vm1538_vm8, %v7466_v45  ;;  %v2054_v45 = vld [vmem:[#allocation2 + $0x78] sm:$0xe]  ;;  %v4513_v32 = vshll.u32 %v4419_v10, 16  ;;  %v8463_v10 = vld [vmem:[#allocation2 + $0x40] sm:$0xf] }
  0xf1   : > { %v6257_v28 = vrot.slane %v2054_v45, 9  ;;  %9339 = vst [vmem:[#allocation11_spill] sm:$0xff] %v8463_v10  ;;  %v2169_v59 = vrot.slane %v2167_v35, 4  ;;  %v7523_v45 = vld [vmem:[#allocation2 + $0x8c] sm:$0x1]  ;;  %v4512_v55 = vrot.slane %v4510_v6, 4  ;;  %v4484_v6 = vsel %vm7714_vm9, %v4479_v14, %v4483_v8 }
  0xf2   : > { %v2177_v46 = vrot.slane %v7523_v45, 5  ;;  %v4515_v60 = vrot.slane %v4513_v32, 5  ;;  %v4543_v56 = vshll.u32 %v8463_v10, 16  ;;  %v4547_v17 = vshrl.u32 %v8463_v10, 16 }
  0xf3   : > { %v4498_v58 = vsel %vm7714_vm9, %v4493_v23, %v8426_v16  ;;  %v8495_v32 = vsel %vm7840_vm12, %v2169_v59, %v2170_v57  ;;  %v4425_v16 = vld [vmem:[#allocation2 + $0x48] sm:$0xf]  ;;  %v8508_v23 = vld [vmem:[#allocation2 + $0x4c] sm:$0xf]  ;;  %v7470_v57 = vld [vmem:[#allocation2 + $0x90] sm:$0xff]  }
  0xf4   : > { %v8503_v8 = vsel %vm7840_vm12, %v2176_v22, %v2177_v46  ;;  %9343 = vst [vmem:[#allocation14_spill] sm:$0xff] %v8508_v23  ;;  %v9344_v46 = vcombine.low %v8173_v41, %v8175_v9  ;;  %v8520_v22 = vsel %vm1587_vm0, %v8311_v12, 0  ;;  %v4558_v45 = vshrl.u32 %v4425_v16, 16  ;;  %v2057_v41 = vld [vmem:[#allocation2 + $0x9c] sm:$0xe] }
  0xf7   : > { %6902 = vmatmul.mubr.msk.bf16.gmra.mrb[24].mxu1 %vm1538_vm8, %v9338_v25  ;;  %7060 = vmatmul.mubr.msk.bf16.gmra.mrb[12].mxu0 %vm1538_vm8, %v7467_v47  ;;  %v8475_v25 = vld [vmem:[#allocation2 + $0x44] sm:$0x1]  ;;  %v4474_v47 = vsel %vm7714_vm9, %v4469_v53, %v8398_v3  ;;  %v8499_v3 = vsel %vm7840_vm12, %v6258_v4, %v2174_v61  ;;  %v4516_v53 = vor.u32 %v4515_v60, %v4512_v55  ;;  %v8510_v4 = vrot.slane %v4543_v56, 5 }
  0xf8   : > { %6905 = vmatprep.mubr.msk.bf16.mxu1 %vm1538_vm8, %v9340_v50  ;;  %7063 = vmatprep.mubr.msk.bf16.mxu0 %vm1538_vm8, %v7468_v63  ;;  %9342 = vst [vmem:[#allocation13_spill] sm:$0xff] %v8475_v25  ;;  %v4537_v50 = vshll.u32 %v4422_v44, 16  ;;  %v8489_v63 = vsel %vm7840_vm12, %v6257_v28, %v2167_v35  ;;  %v4508_v44 = vsel %vm7714_vm9, %v4503_v54, %v4507_v49  ;;  %v4529_v35 = vshll.u32 %v8470_v1, 16 }
  0xf9   : > { %v4526_v28 = vor.u32 %v4525_v5, %v8472_v33  ;;  %v4553_v14 = vshll.u32 %v8475_v25, 16  ;;  %v4536_v49 = vrot.slane %v4534_v15, 4  ;;  %v4549_v61 = vrot.slane %v4547_v17, 4 }
  0xfa   : > { %v4539_v54 = vrot.slane %v4537_v50, 5  ;;  %v8516_v59 = vcombine.low %v4474_v47, %v4484_v6  ;;  %v4561_v55 = vshll.u32 %v4425_v16, 16  ;;  %v9345_v60 = vcombine.low %v8316_v43, %v8320_v2  ;;  %v4428_v50 = vld [vmem:[#allocation2 + $0x54] sm:$0xf]  ;;  %v8537_v2 = vld [vmem:[#allocation2 + $0x58] sm:$0xf] }
  0xfb   : > { %v8526_v5 = vcombine.low %v4498_v58, %v4508_v44  ;;  %v4567_v17 = vshll.u32 %v8508_v23, 16  ;;  %v4571_v15 = vshrl.u32 %v8508_v23, 16  ;;  %v4517_v56 = vrot.slane %v4516_v53, 4  ;;  %9346 = vst [vmem:[#allocation15_spill] sm:$0xff] %v8537_v2  ;;  %v2056_v16 = vld [vmem:[#allocation2 + $0x90] sm:$0xe] }
  0xfc   : > { %v4531_v47 = vrot.slane %v4529_v35, 5  ;;  %v8535_v43 = vrot.slane %v4553_v14, 5  ;;  %v4527_v6 = vrot.slane %v4526_v28, 4  ;;  %v4540_v58 = vor.u32 %v4539_v54, %v4536_v49  ;;  %v7525_v54 = vld [vmem:[#allocation2 + $0x98] sm:$0x1] }
  0xfd   : > { %v4550_v44 = vor.u32 %v4549_v61, %v8510_v4  ;;  %v4563_v25 = vrot.slane %v4561_v55, 5  ;;  %v4582_v10 = vshrl.u32 %v4428_v50, 16  ;;  %v4585_v12 = vshll.u32 %v4428_v50, 16  ;;  %v7472_v55 = vld [vmem:[#allocation2 + $0xa8] sm:$0xff]   ;;  %v8555_v23 = vld [vmem:[#allocation2 + $0x5c] sm:$0x1] }
  0xfe   : > { %v8541_v53 = vrot.slane %v4567_v17, 5  ;;  %v4573_v35 = vrot.slane %v4571_v15, 4  ;;  %v4591_v14 = vshll.u32 %v8537_v2, 16  ;;  %v4595_v1 = vshrl.u32 %v8537_v2, 16  ;;  %9347 = vst [vmem:[#allocation16_spill] sm:$0xff] %v8555_v23 }
  0xff   : > { %6906 = vmatmul.mubr.msk.bf16.gmra.mrb[28].mxu1 %vm1538_vm8, %v9344_v46  ;;  %7064 = vmatmul.mubr.msk.bf16.gmra.mrb[16].mxu0 %vm1538_vm8, %v7469_v38  ;;  %v7524_v46 = vld [vmem:[#allocation2 + $0x94] sm:$0xf]  ;;  %v4560_v38 = vrot.slane %v4558_v45, 4  ;;  %v4522_v28 = vsel %vm7714_vm9, %v4517_v56, %v8472_v33  ;;  %v6259_v49 = vrot.slane %v2056_v16, 9  ;;  %v2184_v61 = vrot.slane %v7525_v54, 5 }
 0x100   : > { %6911 = vmatprep.mubr.msk.bf16.mxu1 %vm1538_vm8, %v9345_v60  ;;  %7067 = vmatprep.mubr.msk.bf16.mxu0 %vm1538_vm8, %v7470_v57  ;;  %v2181_v60 = vrot.slane %v7524_v46, 5  ;;  %v7471_v57 = vld [vmem:[#allocation2 + $0x9c] sm:$0xff]   ;;  %v6260_v46 = vrot.slane %v2057_v41, 9  ;;  %v8548_v45 = vld [vmem:[#allocation2 + $0x50] sm:$0x1]  ;;  %v4532_v17 = vsel %vm7714_vm9, %v4527_v6, %v4531_v47  ;;  %v8552_v15 = vrot.slane %v4540_v58, 4 }
 0x101   : > { %v2188_v2 = vrot.slane %v8094_v26, 5  ;;  %v9348_v33 = vcombine.low %v8324_v0, %v8328_v42  ;;  %v4551_v56 = vrot.slane %v4550_v44, 4  ;;  %v4564_v41 = vor.u32 %v4563_v25, %v4560_v38  ;;  %v7527_v44 = vld [vmem:[#allocation2 + $0xa4] sm:$0x1]  ;;  %v4431_v38 = vld [vmem:[#allocation2 + $0x60] sm:$0xf] }
 0x102   : > { %v2183_v50 = vrot.slane %v2181_v60, 4  ;;  %v4584_v16 = vrot.slane %v4582_v10, 4  ;;  %v4587_v54 = vrot.slane %v4585_v12, 5  ;;  %v9349_v47 = vcombine.low %v8333_v31, %v8341_v13 }
 0x103   : > { %v4574_v26 = vor.u32 %v4573_v35, %v8541_v53  ;;  %v4577_v6 = vshll.u32 %v8548_v45, 16  ;;  %v8568_v58 = vrot.slane %v4591_v14, 5  ;;  %v4597_v0 = vrot.slane %v4595_v1, 4 }
 0x104   : > { %v8571_v42 = vcombine.low %v4522_v28, %v4532_v17  ;;  %v8575_v10 = vsel %vm7840_vm12, %v6259_v49, %v2181_v60  ;;  %v8579_v31 = vsel %vm7840_vm12, %v6260_v46, %v2188_v2  ;;  %v4601_v13 = vshll.u32 %v8555_v23, 16  ;;  %v2058_v28 = vld [vmem:[#allocation2 + $0xa8] sm:$0xe]  ;;  %v8599_v46 = vld [vmem:[#allocation2 + $0x64] sm:$0xf] }
 0x105   : > { %v4546_v1 = vsel %vm7714_vm9, %v8552_v15, %v8510_v4  ;;  %v8593_v25 = vsel %vm7840_vm12, %v2183_v50, %v2184_v61  ;;  %v2190_v12 = vrot.slane %v2188_v2, 4  ;;  %v2191_v60 = vrot.slane %v7527_v44, 5  ;;  %9351 = vst [vmem:[#allocation18_spill] sm:$0xff] %v8599_v46  ;;  %v2059_v17 = vld [vmem:[#allocation2 + $0xb4] sm:$0xe] }
 0x106   : > { %9350 = vst [vmem:[#allocation17_spill] sm:$0xff] %v8593_v25  ;;  %v4556_v35 = vsel %vm7714_vm9, %v4551_v56, %v8535_v43  ;;  %v4565_v14 = vrot.slane %v4564_v41, 4  ;;  %v2195_v49 = vrot.slane %v8148_v30, 5  ;;  %v4575_v4 = vrot.slane %v4574_v26, 4  ;;  %v7473_v15 = vld [vmem:[#allocation2 + $0xb4] sm:$0xff]   ;;  %v7474_v30 = vld [vmem:[#allocation2 + $0xc0] sm:$0xff]  }
 0x107   : > { %6912 = vmatmul.mubr.msk.bf16.vlgmr.msra.gmra.mrb[0].mxu1 %vm1538_vm8, %v9348_v33  ;;  %7068 = vmatmul.mubr.msk.bf16.gmra.mrb[20].mxu0 %vm1538_vm8, %v7471_v57  ;;  %v4588_v57 = vor.u32 %v4587_v54, %v4584_v16  ;;  %v4598_v61 = vor.u32 %v4597_v0, %v8568_v58  ;;  %v2202_v2 = vrot.slane %v8175_v9, 5  ;;  %v8605_v33 = vrot.slane %v4601_v13, 5  ;;  %v8607_v43 = vld [vmem:[#allocation2 + $0x68] sm:$0x1]  ;;  %v8724_v25 = vld [vmem:[#allocation2 + $0xa0] sm:$0xf] }
 0x108   : > { %6944 = vmatpush3.bf16.msra.mxu1 %v8358_v40  ;;  %6915 = vmatprep.mubr.msk.bf16.mxu1 %vm1538_vm8, %v9349_v47  ;;  %v7526_v40 = vld [vmem:[%s9298_s3 + $0x8] sm:$0xf]  ;;  %9352 = vst [vmem:[#allocation19_spill] sm:$0xff] %v8607_v43  ;;  %v4606_v56 = vshrl.u32 %v4431_v38, 16  ;;  %v4609_v41 = vshll.u32 %v4431_v38, 16  ;;  %v6261_v16 = vrot.slane %v2058_v28, 9  ;;  %v9353_v9 = vcombine.low %v8337_v7, %v8347_v29 }
 0x109   : > { %7410 = vmatprep.subr.msk.bf16.mxu1 %vm1587_vm0, %v7526_v40  ;;  %7071 = vmatprep.mubr.msk.bf16.mxu0 %vm1538_vm8, %v7472_v55  ;;  %v4579_v55 = vrot.slane %v4577_v6, 5  ;;  %v2198_v54 = vrot.slane %v8140_v19, 5  ;;  %v4615_v47 = vshll.u32 %v8599_v46, 16  ;;  %v4619_v26 = vshrl.u32 %v8599_v46, 16 }
 0x10a   : > { %v4570_v6 = vsel %vm7714_vm9, %v4565_v14, %v8541_v53  ;;  %v8619_v0 = vrot.slane %v4588_v57, 4  ;;  %v2197_v13 = vrot.slane %v2195_v49, 4  ;;  %v6262_v40 = vrot.slane %v2059_v17, 9  ;;  %v4437_v17 = vld [vmem:[#allocation2 + $0x78] sm:$0xf] }
 0x10b   : > { %v9354_v19 = vcombine.low %v8368_v11, %v8375_v27  ;;  %v4580_v44 = vsel %vm7714_vm9, %v4575_v4, %v4579_v55  ;;  %v8627_v38 = vrot.slane %v4598_v61, 4  ;;  %v2204_v7 = vrot.slane %v2202_v2, 4  ;;  %v4434_v27 = vld [vmem:[#allocation2 + $0x6c] sm:$0xf]  ;;  %v8693_v61 = vld [vmem:[#allocation2 + $0x94] sm:$0xf] }
 0x10c   : > { %v2205_v29 = vrot.slane %v8170_v39, 5  ;;  %v8631_v53 = vcombine.low %v4546_v1, %v4556_v35  ;;  %v8633_v14 = vrot.slane %v4606_v56, 4  ;;  %v8635_v57 = vrot.slane %v4609_v41, 5  ;;  %v8649_v35 = vld [vmem:[#allocation2 + $0x70] sm:$0xf]  ;;  %9360 = vst [vmem:[#allocation24_spill] sm:$0xff] %v8693_v61 }
 0x10d   : > { %v4625_v11 = vshll.u32 %v8607_v43, 16  ;;  %v8641_v28 = vsel %vm7840_vm12, %v2190_v12, %v2191_v60  ;;  %v8645_v39 = vsel %vm7840_vm12, %v6261_v16, %v2195_v49  ;;  %v8647_v4 = vrot.slane %v4615_v47, 5  ;;  %9355 = vst [vmem:[#allocation20_spill] sm:$0xff] %v8649_v35  ;;  %v8665_v49 = vld [vmem:[#allocation2 + $0x74] sm:$0x1] }
 0x10e   : > { %v4621_v1 = vrot.slane %v4619_v26, 4  ;;  %v8651_v55 = vcombine.low %v4570_v6, %v4580_v44  ;;  %v8659_v12 = vsel %vm7840_vm12, %v2197_v13, %v2198_v54  ;;  %v8663_v60 = vsel %vm7840_vm12, %v6262_v40, %v2202_v2  ;;  %9356 = vst [vmem:[#allocation21_spill] sm:$0xff] %v8665_v49  ;;  %v4440_v54 = vld [vmem:[#allocation2 + $0x84] sm:$0xf]  ;;  %v8677_v47 = vld [vmem:[#allocation2 + $0x88] sm:$0xf] }
 0x10f   : > { %6916 = vmatmul.mubr.msk.bf16.gmra.mrb[4].mxu1 %vm1538_vm8, %v9353_v9  ;;  %7072 = vmatmul.mubr.msk.bf16.gmra.mrb[24].mxu0 %vm1538_vm8, %v7473_v15  ;;  %v8667_v15 = vld [vmem:[#allocation2 + $0x7c] sm:$0xf]  ;;  %v8675_v41 = vsel %vm7840_vm12, %v2204_v7, %v2205_v29  ;;  %v4633_v16 = vshll.u32 %v4434_v27, 16  ;;  %9358 = vst [vmem:[#allocation23_spill] sm:$0xff] %v8677_v47  ;;  %v7475_v2 = vld [vmem:[#allocation2 + $0xcc] sm:$0xff]   ;;  %v4612_v26 = vor.u32 %v8635_v57, %v8633_v14  ;;  %v8681_v9 = vrot.slane %v4625_v11, 5 }
 0x110   : > { %6919 = vmatprep.mubr.msk.bf16.mxu1 %vm1538_vm8, %v9354_v19  ;;  %7075 = vmatprep.mubr.msk.bf16.mxu0 %vm1538_vm8, %v7474_v30  ;;  %9357 = vst [vmem:[#allocation22_spill] sm:$0xff] %v8667_v15  ;;  %v4630_v30 = vshrl.u32 %v4434_v27, 16  ;;  %v4639_v6 = vshll.u32 %v8649_v35, 16  ;;  %v4643_v13 = vshrl.u32 %v8649_v35, 16  ;;  %v4443_v40 = vld [vmem:[#allocation2 + $0x90] sm:$0xf]  ;;  %v4622_v19 = vor.u32 %v4621_v1, %v8647_v4 }
 0x111   : > { %v4649_v44 = vshll.u32 %v8665_v49, 16  ;;  %v4654_v7 = vshrl.u32 %v4437_v17, 16  ;;  %v4657_v29 = vshll.u32 %v4437_v17, 16  ;;  %v9359_v27 = vcombine.low %v8379_v34, %v8385_v62  ;;  %v4446_v43 = vld [vmem:[#allocation2 + $0x9c] sm:$0xf] }
 0x112   : > { %v4663_v14 = vshll.u32 %v8667_v15, 16  ;;  %v4667_v57 = vshrl.u32 %v8667_v15, 16  ;;  %v4678_v11 = vshrl.u32 %v4440_v54, 16  ;;  %v4681_v50 = vshll.u32 %v4440_v54, 16 }
 0x113   : > { %v9361_v1 = vcombine.low %v8389_v36, %v8396_v52  ;;  %v4687_v17 = vshll.u32 %v8677_v47, 16  ;;  %v4691_v56 = vshrl.u32 %v8677_v47, 16  ;;  %v4702_v34 = vshrl.u32 %v4443_v40, 16 }
 0x114   : > { %v4705_v62 = vshll.u32 %v4443_v40, 16  ;;  %v4635_v49 = vrot.slane %v4633_v16, 5  ;;  %v8702_v15 = vrot.slane %v4639_v6, 5  ;;  %v4645_v54 = vrot.slane %v4643_v13, 4 }
 0x115   : > { %v4656_v35 = vrot.slane %v4654_v7, 4  ;;  %v4659_v36 = vrot.slane %v4657_v29, 5  ;;  %v4711_v52 = vshll.u32 %v8693_v61, 16  ;;  %v8708_v47 = vrot.slane %v4663_v14, 5  ;;  %v8718_v29 = vld [vmem:[#allocation2 + $0x8c] sm:$0x1] }
 0x116   : > { %v4669_v40 = vrot.slane %v4667_v57, 4  ;;  %v4680_v46 = vrot.slane %v4678_v11, 4  ;;  %v8712_v16 = vrot.slane %v4687_v17, 5  ;;  %v4693_v6 = vrot.slane %v4691_v56, 4 }
 0x117   : > { %6920 = vmatmul.mubr.msk.bf16.gmra.mrb[8].mxu1 %vm1538_vm8, %v9359_v27  ;;  %7076 = vmatmul.mubr.msk.bf16.gmra.mrb[28].mxu0 %vm1538_vm8, %v7475_v2  ;;  %v4632_v27 = vrot.slane %v4630_v30, 4  ;;  %v4683_v2 = vrot.slane %v4681_v50, 5  ;;  %v8710_v30 = vld [vmem:[#allocation2 + $0x80] sm:$0x1]  ;;  %v4704_v13 = vrot.slane %v4702_v34, 4  ;;  %v4707_v23 = vrot.slane %v4705_v62, 5 }
 0x118   : > { %6923 = vmatprep.mubr.msk.bf16.mxu1 %vm1538_vm8, %v9361_v1  ;;  %7081 = vmatprep.mubr.msk.bf16.mxu0 %vm1538_vm8, %v8516_v59  ;;  %v4715_v1 = vshrl.u32 %v8693_v61, 16  ;;  %v8714_v59 = vrot.slane %v4612_v26, 4  ;;  %v8716_v7 = vrot.slane %v4649_v44, 5  ;;  %v4726_v61 = vshrl.u32 %v4446_v43, 16 }
 0x119   : > { %v4729_v20 = vshll.u32 %v4446_v43, 16  ;;  %v8720_v14 = vrot.slane %v4622_v19, 4  ;;  %v4636_v57 = vor.u32 %v4635_v49, %v4632_v27  ;;  %v8722_v11 = vrot.slane %v4711_v52, 5  ;;  %v8733_v19 = vld [vmem:[#allocation2 + $0x98] sm:$0x1] }
 0x11a   : > { %v4717_v50 = vrot.slane %v4715_v1, 4  ;;  %v9362_v56 = vcombine.low %v8406_v51, %v8420_v48  ;;  %v4646_v26 = vor.u32 %v4645_v54, %v8702_v15  ;;  %v4660_v44 = vor.u32 %v4659_v36, %v4656_v35  ;;  %v4449_v1 = vld [vmem:[#allocation2 + $0xa8] sm:$0xf] }
 0x11b   : > { %v4670_v17 = vor.u32 %v4669_v40, %v8708_v47  ;;  %v4673_v43 = vshll.u32 %v8710_v30, 16  ;;  %v9363_v49 = vcombine.low %v8410_v18, %v8424_v21  ;;  %v4684_v34 = vor.u32 %v4683_v2, %v4680_v46 }
 0x11c   : > { %v4694_v62 = vor.u32 %v4693_v6, %v8712_v16  ;;  %v4697_v51 = vshll.u32 %v8718_v29, 16  ;;  %v4708_v48 = vor.u32 %v4707_v23, %v4704_v13  ;;  %v4728_v35 = vrot.slane %v4726_v61, 4 }
 0x11d   : > { %v4731_v27 = vrot.slane %v4729_v20, 5  ;;  %v4735_v54 = vshll.u32 %v8724_v25, 16  ;;  %v4739_v36 = vshrl.u32 %v8724_v25, 16  ;;  %v4618_v18 = vsel %vm7714_vm9, %v8714_v59, %v8647_v4  ;;  %v8758_v4 = vld [vmem:[#allocation2 + $0xa4] sm:$0x1] }
 0x11e   : > { %v4637_v21 = vrot.slane %v4636_v57, 4  ;;  %v4718_v23 = vor.u32 %v4717_v50, %v8722_v11  ;;  %v4647_v20 = vrot.slane %v4646_v26, 4  ;;  %v4661_v46 = vrot.slane %v4660_v44, 4  ;;  %v8762_v26 = vld [vmem:[#allocation2 + $0xac] sm:$0xf] }
 0x11f   : > { %6924 = vmatmul.mubr.msk.bf16.gmra.mrb[12].mxu1 %vm1538_vm8, %v9362_v56  ;;  %7082 = vmatmul.mubr.msk.bf16.vlgmr.msra.gmra.mrb[0].mxu0 %vm1538_vm8, %v8526_v5  ;;  %v4721_v5 = vshll.u32 %v8733_v19, 16  ;;  %v4671_v61 = vrot.slane %v4670_v17, 4  ;;  %v4675_v52 = vrot.slane %v4673_v43, 5  ;;  %v4685_v40 = vrot.slane %v4684_v34, 4  ;;  %v9364_v43 = vld [vmem:[#allocation9_spill] sm:$0xff] }
 0x120   : > { %6927 = vmatprep.mubr.msk.bf16.mxu1 %vm1538_vm8, %v9363_v49  ;;  %7114 = vmatpush3.bf16.msra.mxu0 %v8520_v22  ;;  %v4695_v22 = vrot.slane %v4694_v62, 4  ;;  %v4699_v2 = vrot.slane %v4697_v51, 5  ;;  %v4709_v6 = vrot.slane %v4708_v48, 4  ;;  %v4732_v13 = vor.u32 %v4731_v27, %v4728_v35  ;;  %v8779_v51 = vld [vmem:[#allocation2 + $0xb0] sm:$0x1] }
 0x121   : > { %7085 = vmatprep.mubr.msk.bf16.mxu0 %vm1538_vm8, %v8571_v42  ;;  %v4628_v42 = vsel %vm7714_vm9, %v8720_v14, %v8681_v9  ;;  %v8760_v59 = vrot.slane %v4735_v54, 5  ;;  %v4741_v57 = vrot.slane %v4739_v36, 4  ;;  %v4719_v50 = vrot.slane %v4718_v23, 4 }
 0x122   : > { %v4723_v56 = vrot.slane %v4721_v5, 5  ;;  %v4750_v44 = vshrl.u32 %v4449_v1, 16  ;;  %v4753_v17 = vshll.u32 %v4449_v1, 16  ;;  %v9365_v49 = vcombine.low %v8435_v37, %v9364_v43  ;;  %v5147_v43 = vld [vmem:[#allocation2 + $0x60] sm:$0xe] }
 0x123   : > { %v4642_v9 = vsel %vm7714_vm9, %v4637_v21, %v8702_v15  ;;  %v4652_v14 = vsel %vm7714_vm9, %v4647_v20, %v8716_v7  ;;  %v4666_v34 = vsel %vm7714_vm9, %v4661_v46, %v8708_v47  ;;  %v4676_v62 = vsel %vm7714_vm9, %v4671_v61, %v4675_v52 }
 0x124   : > { %v9366_v37 = vcombine.low %v8489_v63, %v8495_v32  ;;  %v4690_v15 = vsel %vm7714_vm9, %v4685_v40, %v8712_v16  ;;  %v4700_v7 = vsel %vm7714_vm9, %v4695_v22, %v4699_v2  ;;  %v4714_v47 = vsel %vm7714_vm9, %v4709_v6, %v8722_v11  ;;  %v8838_v40 = vld [vmem:[#allocation2 + $0xb8] sm:$0xf] }
 0x125   : > { %v4745_v48 = vshll.u32 %v8758_v4, 16  ;;  %v8796_v35 = vrot.slane %v4732_v13, 4  ;;  %v4742_v63 = vor.u32 %v4741_v57, %v8760_v59  ;;  %v4759_v32 = vshll.u32 %v8762_v26, 16 }
 0x126   : > { %v4763_v16 = vshrl.u32 %v8762_v26, 16  ;;  %v4724_v27 = vsel %vm7714_vm9, %v4719_v50, %v4723_v56  ;;  %v4752_v11 = vrot.slane %v4750_v44, 4  ;;  %v4755_v54 = vrot.slane %v4753_v17, 5  ;;  %v9370_v50 = vld [vmem:[#allocation14_spill] sm:$0xff] }
 0x127   : > { %6928 = vmatmul.mubr.msk.bf16.gmra.mrb[16].mxu1 %vm1538_vm8, %v9365_v49  ;;  %7086 = vmatmul.mubr.msk.bf16.gmra.mrb[4].mxu0 %vm1538_vm8, %v8631_v53  ;;  %v4769_v36 = vshll.u32 %v8779_v51, 16  ;;  %v6276_v53 = vcombine.low %v8579_v31, %v8641_v28  ;;  %v9367_v21 = vsel %vm7714_vm9, %v8627_v38, %v8605_v33  ;;  %v6277_v5 = vcombine.low %v8645_v39, %v8659_v12  ;;  %v5145_v33 = vld [vmem:[#allocation2 + $0x48] sm:$0xe]  ;;  %v5146_v38 = vld [vmem:[#allocation2 + $0x54] sm:$0xe] }
 0x128   : > { %6931 = vmatprep.mubr.msk.bf16.mxu1 %vm1538_vm8, %v9366_v37  ;;  %7089 = vmatprep.mubr.msk.bf16.mxu0 %vm1538_vm8, %v8651_v55  ;;  %v9368_v55 = vsel %vm7714_vm9, %v8619_v0, %v8568_v58  ;;  %v6278_v20 = vcombine.low %v8663_v60, %v8675_v41  ;;  %v6447_v46 = vcombine.low %v4618_v18, %v4628_v42  ;;  %v8834_v0 = vrot.slane %v4742_v63, 4  ;;  %v4452_v18 = vld [vmem:[#allocation2 + $0xb4] sm:$0xf]  ;;  %v9371_v49 = vld [vmem:[#allocation17_spill] sm:$0xff]  ;;  %v9373_v37 = vld [vmem:[#allocation15_spill] sm:$0xff] }
 0x129   : > { %v6446_v23 = vcombine.low %v9368_v55, %v9367_v21  ;;  %v8822_v61 = vcombine.low %v4642_v9, %v4652_v14  ;;  %v8824_v31 = vcombine.low %v4666_v34, %v4676_v62  ;;  %v8826_v28 = vcombine.low %v4690_v15, %v4700_v7  ;;  %v9377_v55 = vld [vmem:[#allocation19_spill] sm:$0xff]  ;;  %v7487_v15 = vld [vmem:[#allocation2 + $0x90] sm:$0xff]  }
 0x12a   : > { %v8828_v52 = vcombine.low %v4714_v47, %v4724_v27  ;;  %v4738_v58 = vsel %vm7714_vm9, %v8796_v35, %v8760_v59  ;;  %v8836_v1 = vrot.slane %v4745_v48, 5  ;;  %v4756_v22 = vor.u32 %v4755_v54, %v4752_v11  ;;  %v9375_v47 = vld [vmem:[#allocation16_spill] sm:$0xff] }
 0x12b   : > { %v8840_v2 = vrot.slane %v4759_v32, 5  ;;  %v4765_v6 = vrot.slane %v4763_v16, 4  ;;  %v8842_v42 = vrot.slane %v4769_v36, 5  ;;  %v9369_v13 = vcombine.low %v8499_v3, %v8503_v8  ;;  %v9376_v36 = vld [vmem:[#allocation18_spill] sm:$0xff] }
 0x12c   : > { %v6478_v57 = vrot.slane %v5145_v33, 9  ;;  %v5235_v56 = vrot.slane %v9370_v50, 5  ;;  %v5238_v44 = vrot.slane %v8548_v45, 5  ;;  %v6479_v17 = vrot.slane %v5146_v38, 9 }
 0x12d   : > { %v9372_v9 = vcombine.low %v8575_v10, %v9371_v49  ;;  %v4774_v14 = vshrl.u32 %v4452_v18, 16  ;;  %v4777_v34 = vshll.u32 %v4452_v18, 16  ;;  %v4783_v62 = vshll.u32 %v8838_v40, 16  ;;  %v5148_v10 = vld [vmem:[#allocation2 + $0x6c] sm:$0xe]  ;;  %v9378_v18 = vld [vmem:[#allocation20_spill] sm:$0xff] }
 0x12e   : > { %v5242_v3 = vrot.slane %v9373_v37, 5  ;;  %v4787_v8 = vshrl.u32 %v8838_v40, 16  ;;  %v8860_v45 = vsel %vm7840_vm12, %v6478_v57, %v5235_v56  ;;  %v5237_v7 = vrot.slane %v5235_v56, 4  ;;  %v9383_v57 = vld [vmem:[#allocation23_spill] sm:$0xff] }
 0x12f   : > { %6932 = vmatmul.mubr.msk.bf16.gmra.mrb[20].mxu1 %vm1538_vm8, %v9369_v13  ;;  %7090 = vmatmul.mubr.msk.bf16.gmra.mrb[8].mxu0 %vm1538_vm8, %v6446_v23  ;;  %v5245_v48 = vrot.slane %v9375_v47, 5  ;;  %v8864_v63 = vrot.slane %v4756_v22, 4  ;;  %v6480_v27 = vrot.slane %v5147_v43, 9  ;;  %v4766_v11 = vor.u32 %v4765_v6, %v8840_v2  ;;  %v8884_v13 = vld [vmem:[#allocation2 + $0xbc] sm:$0x1] }
 0x130   : > { %6935 = vmatprep.mubr.msk.bf16.mxu1 %vm1538_vm8, %v9372_v9  ;;  %7093 = vmatprep.mubr.msk.bf16.mxu0 %vm1538_vm8, %v6447_v46  ;;  %v8868_v32 = vsel %vm7840_vm12, %v6479_v17, %v5242_v3  ;;  %v5244_v16 = vrot.slane %v5242_v3, 4  ;;  %v8873_v54 = vsel %vm7840_vm12, %v5237_v7, %v5238_v44  ;;  %v5249_v21 = vrot.slane %v9376_v36, 5  ;;  %v4455_v6 = vld [vmem:[#allocation2 + $0xc0] sm:$0xf]  ;;  %v9379_v44 = vld [vmem:[#allocation21_spill] sm:$0xff] }
 0x131   : > { %v5252_v23 = vrot.slane %v9377_v55, 5  ;;  %v6494_v46 = vcombine.low %v8860_v45, %v8873_v54  ;;  %v6481_v38 = vrot.slane %v5148_v10, 9  ;;  %v5256_v22 = vrot.slane %v9378_v18, 5  ;;  %v8899_v9 = vld [vmem:[#allocation2 + $0xc4] sm:$0xf] }
 0x132   : > { %v8881_v33 = vsel %vm7840_vm12, %v5244_v16, %v5245_v48  ;;  %v8890_v50 = vsel %vm7840_vm12, %v6480_v27, %v5249_v21  ;;  %v5251_v56 = vrot.slane %v5249_v21, 4  ;;  %v5259_v17 = vrot.slane %v9379_v44, 5  ;;  %v5150_v36 = vld [vmem:[#allocation2 + $0x84] sm:$0xe]  ;;  %v2893_v54 = vld [vmem:[#allocation2 + $0x90] sm:$0xf] }
 0x133   : > { %v4748_v43 = vsel %vm7714_vm9, %v8834_v0, %v8836_v1  ;;  %v8897_v49 = vrot.slane %v4774_v14, 4  ;;  %v8903_v37 = vsel %vm7840_vm12, %v6481_v38, %v5256_v22  ;;  %v5258_v3 = vrot.slane %v5256_v22, 4  ;;  %v2887_v14 = vld [vmem:[#allocation2 + $0x78] sm:$0xf]  ;;  %v9380_v38 = vld [vmem:[#allocation6_spill] sm:$0xff] }
 0x134   : > { %v8906_v7 = vrot.slane %v4777_v34, 5  ;;  %v8908_v47 = vrot.slane %v4783_v62, 5  ;;  %v8910_v48 = vrot.slane %v4787_v8, 4  ;;  %v8914_v10 = vsel %vm7840_vm12, %v5251_v56, %v5252_v23  ;;  %v5149_v62 = vld [vmem:[#allocation2 + $0x78] sm:$0xe]  ;;  %v7476_v56 = vld [vmem:[#allocation2 + $0xc] sm:$0xff]  }
 0x135   : > { %v4793_v16 = vshll.u32 %v8884_v13, 16  ;;  %v4798_v27 = vshrl.u32 %v4455_v6, 16  ;;  %v8925_v34 = vsel %vm7840_vm12, %v5258_v3, %v5259_v17  ;;  %v4762_v39 = vsel %vm7714_vm9, %v8864_v63, %v8840_v2 }
 0x136   : > { %v4767_v12 = vrot.slane %v4766_v11, 4  ;;  %v4807_v21 = vshll.u32 %v8899_v9, 16  ;;  %v3125_v55 = vshrl.u32 %v2887_v14, 16  ;;  %v3128_v23 = vshll.u32 %v2887_v14, 16  ;;  %v9382_v11 = vld [vmem:[#allocation22_spill] sm:$0xff] }
 0x137   : > { %6936 = vmatmul.mubr.msk.bf16.gmra.mrb[24].mxu1 %vm1538_vm8, %v6276_v53  ;;  %7094 = vmatmul.mubr.msk.bf16.gmra.mrb[12].mxu0 %vm1538_vm8, %v8822_v61  ;;  %v9381_v61 = vld [vmem:[#allocation7_spill] sm:$0xff]  ;;  %v4811_v2 = vshrl.u32 %v8899_v9, 16  ;;  %v6482_v63 = vrot.slane %v5149_v62, 9  ;;  %v5263_v22 = vrot.slane %v9382_v11, 5  ;;  %v4800_v44 = vrot.slane %v4798_v27, 4 }
 0x138   : > { %6939 = vmatprep.mubr.msk.bf16.mxu1 %vm1538_vm8, %v6277_v5  ;;  %v4801_v5 = vshll.u32 %v4455_v6, 16  ;;  %7097 = vmatprep.mubr.msk.bf16.mxu0 %vm1538_vm8, %v8824_v31  ;;  %v3147_v18 = vsel %vm7714_vm9, %v9381_v61, %v9380_v38  ;;  %v5266_v6 = vrot.slane %v8710_v30, 5  ;;  %v3127_v17 = vrot.slane %v3125_v55, 4  ;;  %v4458_v11 = vld [vmem:[#allocation2 + $0xcc] sm:$0xf] }
 0x139   : > { %v3130_v31 = vrot.slane %v3128_v23, 5  ;;  %v6483_v3 = vrot.slane %v5150_v36, 9  ;;  %v8947_v14 = vsel %vm7840_vm12, %v6482_v63, %v5263_v22  ;;  %v5265_v53 = vrot.slane %v5263_v22, 4  ;;  %v8959_v36 = vld [vmem:[#allocation2 + $0xd0] sm:$0xf] }
 0x13a   : > { %v4803_v8 = vrot.slane %v4801_v5, 5  ;;  %v5270_v38 = vrot.slane %v9383_v57, 5  ;;  %v4780_v62 = vor.u32 %v8906_v7, %v8897_v49  ;;  %v8952_v61 = vrot.slane %v4807_v21, 5 }
 0x13b   : > { %v3131_v30 = vor.u32 %v3130_v31, %v3127_v17  ;;  %v5273_v27 = vrot.slane %v8718_v29, 5  ;;  %v4813_v5 = vrot.slane %v4811_v2, 4  ;;  %v8963_v57 = vsel %vm7840_vm12, %v5265_v53, %v5266_v6  ;;  %v8975_v29 = vld [vmem:[#allocation2 + $0xc8] sm:$0x1] }
 0x13c   : > { %v8967_v49 = vsel %vm7840_vm12, %v6483_v3, %v5270_v38  ;;  %v5272_v7 = vrot.slane %v5270_v38, 4  ;;  %v4772_v60 = vsel %vm7714_vm9, %v4767_v12, %v8842_v42  ;;  %v4790_v41 = vor.u32 %v8910_v48, %v8908_v47  ;;  %v9384_v12 = vld [vmem:[#allocation5_spill] sm:$0xff] }
 0x13d   : > { %v6498_v53 = vcombine.low %v8947_v14, %v8963_v57  ;;  %v4804_v21 = vor.u32 %v4803_v8, %v4800_v44  ;;  %v4822_v55 = vshrl.u32 %v4458_v11, 16  ;;  %v4825_v23 = vshll.u32 %v4458_v11, 16  ;;  %v7477_v8 = vld [vmem:[#allocation2 + $0x18] sm:$0xff]   ;;  %v5151_v44 = vld [vmem:[#allocation2 + $0x90] sm:$0xe] }
 0x13e   : > { %v8983_v2 = vsel %vm7840_vm12, %v5272_v7, %v5273_v27  ;;  %v4831_v42 = vshll.u32 %v8959_v36, 16  ;;  %v4835_v48 = vshrl.u32 %v8959_v36, 16  ;;  %v4814_v22 = vor.u32 %v4813_v5, %v8952_v61 }
 0x13f   : > { %6940 = vmatmul.mubr.msk.bf16.gmra.mrb[28].mxu1 %vm1538_vm8, %v6278_v20  ;;  %v3132_v20 = vrot.slane %v3131_v30, 4  ;;  %7098 = vmatmul.mubr.msk.bf16.gmra.mrb[16].mxu0 %vm1538_vm8, %v8826_v28  ;;  %v6499_v28 = vcombine.low %v8967_v49, %v8983_v2  ;;  %v4817_v6 = vshll.u32 %v8975_v29, 16  ;;  %v6452_v17 = vcombine.low %v4738_v58, %v4748_v43  ;;  %v9010_v30 = vld [vmem:[#allocation2 + $0xd4] sm:$0x1]  ;;  %v9386_v58 = vld [vmem:[#allocation3_spill] sm:$0xff] }
 0x140   : > { %6945 = vmatprep.mubr.msk.bf16.mxu1 %vm1538_vm8, %v7476_v56  ;;  %7101 = vmatprep.mubr.msk.bf16.mxu0 %vm1538_vm8, %v8828_v52  ;;  %v7478_v52 = vld [vmem:[#allocation2 + $0x24] sm:$0xff]   ;;  %v6453_v31 = vcombine.low %v4762_v39, %v4772_v60  ;;  %v4781_v3 = vrot.slane %v4780_v62, 4  ;;  %v4795_v38 = vrot.slane %v4793_v16, 5  ;;  %v4805_v11 = vrot.slane %v4804_v21, 4 }
 0x141   : > { %v3137_v63 = vsel %vm7714_vm9, %v3132_v20, %v9384_v12  ;;  %v4824_v27 = vrot.slane %v4822_v55, 4  ;;  %v4827_v5 = vrot.slane %v4825_v23, 5  ;;  %v9012_v7 = vrot.slane %v4831_v42, 5  ;;  %v9385_v20 = vld [vmem:[#allocation24_spill] sm:$0xff] }
 0x142   : > { %v8996_v56 = vcombine.low %v3137_v63, %v3147_v18  ;;  %v4791_v18 = vrot.slane %v4790_v41, 4  ;;  %v4837_v0 = vrot.slane %v4835_v48, 4  ;;  %v6484_v1 = vrot.slane %v5151_v44, 9  ;;  %v5152_v63 = vld [vmem:[#allocation2 + $0x9c] sm:$0xe]  ;;  %v7479_v48 = vld [vmem:[#allocation2 + $0x30] sm:$0xff]  }
 0x143   : > { %v5277_v12 = vrot.slane %v9385_v20, 5  ;;  %v4815_v59 = vrot.slane %v4814_v22, 4  ;;  %v4819_v35 = vrot.slane %v4817_v6, 5  ;;  %v4786_v43 = vsel %vm7714_vm9, %v4781_v3, %v8908_v47  ;;  %v7528_v22 = vld [vmem:[#allocation2 + $0x1c] sm:$0xf] }
 0x144   : > { %v5280_v62 = vrot.slane %v8733_v19, 5  ;;  %v4796_v60 = vsel %vm7714_vm9, %v4791_v18, %v4795_v38  ;;  %v4810_v41 = vsel %vm7714_vm9, %v4805_v11, %v8952_v61  ;;  %v4841_v21 = vshll.u32 %v9010_v30, 16 }
 0x145   : > { %v9023_v16 = vsel %vm7840_vm12, %v6484_v1, %v5277_v12  ;;  %v5279_v39 = vrot.slane %v5277_v12, 4  ;;  %v6485_v55 = vrot.slane %v5152_v63, 9  ;;  %v4828_v47 = vor.u32 %v4827_v5, %v4824_v27  ;;  %v9387_v1 = vld [vmem:[#allocation8_spill] sm:$0xff]  ;;  %v5153_v63 = vld [vmem:[#allocation2 + $0xa8] sm:$0xe] }
 0x146   : > { %v4838_v23 = vor.u32 %v4837_v0, %v9012_v7  ;;  %v5284_v42 = vrot.slane %v8724_v25, 5  ;;  %v5207_v61 = vrot.slane %v7528_v22, 5  ;;  %v5287_v44 = vrot.slane %v8758_v4, 5  ;;  %v5143_v22 = vld [vmem:[#allocation2 + $0x30] sm:$0xe] }
 0x147   : > { %6946 = vmatmul.mubr.msk.bf16.vlgmr.msra.gmra.mrb[0].mxu1 %vm1538_vm8, %v7477_v8  ;;  %7102 = vmatmul.mubr.msk.bf16.gmra.mrb[20].mxu0 %vm1538_vm8, %v6452_v17  ;;  %v9037_v19 = vsel %vm7840_vm12, %v5279_v39, %v5280_v62  ;;  %v4820_v8 = vsel %vm7714_vm9, %v4815_v59, %v4819_v35  ;;  %v5141_v17 = vld [vmem:[#allocation2 + $0x18] sm:$0xe]  ;;  %v6454_v38 = vcombine.low %v4786_v43, %v4796_v60  ;;  %v4843_v25 = vrot.slane %v4841_v21, 5  ;;  %v5142_v59 = vld [vmem:[#allocation2 + $0x24] sm:$0xe] }
 0x148   : > { %7148 = vmatpush3.bf16.msra.mxu1 %v9386_v58  ;;  %6949 = vmatprep.mubr.msk.bf16.mxu1 %vm1538_vm8, %v7478_v52  ;;  %v6500_v6 = vcombine.low %v9023_v16, %v9037_v19  ;;  %v7480_v52 = vld [vmem:[#allocation2 + $0x3c] sm:$0xff]   ;;  %v5286_v3 = vrot.slane %v5284_v42, 4  ;;  %v6455_v18 = vcombine.low %v4810_v41, %v4820_v8  ;;  %v4829_v11 = vrot.slane %v4828_v47, 4  ;;  %v7529_v35 = vld [vmem:[#allocation2 + $0x28] sm:$0xf]  ;;  %v9388_v47 = vld [vmem:[#allocation10_spill] sm:$0xff] }
 0x149   : > { %7105 = vmatprep.mubr.msk.bf16.mxu0 %vm1538_vm8, %v6453_v31  ;;  %v9047_v31 = vsel %vm7840_vm12, %v6485_v55, %v5284_v42  ;;  %v4839_v27 = vrot.slane %v4838_v23, 4  ;;  %v6474_v0 = vrot.slane %v5141_v17, 9  ;;  %v5209_v4 = vrot.slane %v5207_v61, 4  ;;  %v5154_v43 = vld [vmem:[#allocation2 + $0xb4] sm:$0xe]  ;;  %v7481_v41 = vld [vmem:[#allocation2 + $0x48] sm:$0xff]  }
 0x14a   : > { %v9051_v5 = vsel %vm7840_vm12, %v5286_v3, %v5287_v44  ;;  %v5210_v20 = vrot.slane %v9387_v1, 5  ;;  %v5214_v58 = vrot.slane %v7529_v35, 5  ;;  %v4834_v39 = vsel %vm7714_vm9, %v4829_v11, %v9012_v7  ;;  %v5144_v35 = vld [vmem:[#allocation2 + $0x3c] sm:$0xe]  ;;  %v7541_v19 = vld [vmem:[#allocation2 + $0xb0] sm:$0x1] }
 0x14b   : > { %v6501_v12 = vcombine.low %v9047_v31, %v9051_v5  ;;  %v4844_v62 = vsel %vm7714_vm9, %v4839_v27, %v4843_v25  ;;  %v6486_v60 = vrot.slane %v5153_v63, 9  ;;  %v5208_v21 = vsel %vm7840_vm12, %v6474_v0, %v5207_v61  ;;  %v7530_v25 = vld [vmem:[#allocation2 + $0x2c] sm:$0x1] }
 0x14c   : > { %v5211_v55 = vsel %vm7840_vm12, %v5209_v4, %v5210_v20  ;;  %v5221_v23 = vrot.slane %v9388_v47, 5  ;;  %v5291_v42 = vrot.slane %v8762_v26, 5  ;;  %v6475_v8 = vrot.slane %v5142_v59, 9  ;;  %v7484_v47 = vld [vmem:[#allocation2 + $0x6c] sm:$0xff]  }
 0x14d   : > { %v5294_v7 = vrot.slane %v8779_v51, 5  ;;  %v6487_v44 = vrot.slane %v5154_v43, 9  ;;  %v5216_v17 = vrot.slane %v5214_v58, 4  ;;  %v5298_v11 = vrot.slane %v8838_v40, 5  ;;  %v9389_v51 = vld [vmem:[#allocation12_spill] sm:$0xff]  ;;  %v9390_v43 = vld [vmem:[#allocation11_spill] sm:$0xff] }
 0x14e   : > { %v9074_v3 = vsel %vm7840_vm12, %v6486_v60, %v5291_v42  ;;  %v5293_v61 = vrot.slane %v5291_v42, 4  ;;  %v5301_v26 = vrot.slane %v8884_v13, 5  ;;  %v6476_v27 = vrot.slane %v5143_v22, 9  ;;  %v7483_v60 = vld [vmem:[#allocation2 + $0x60] sm:$0xff]  }
 0x14f   : > { %6950 = vmatmul.mubr.msk.bf16.gmra.mrb[4].mxu1 %vm1538_vm8, %v7479_v48  ;;  %7106 = vmatmul.mubr.msk.bf16.gmra.mrb[24].mxu0 %vm1538_vm8, %v6454_v38  ;;  %v7482_v48 = vld [vmem:[#allocation2 + $0x54] sm:$0xff]   ;;  %v6490_v38 = vcombine.low %v5208_v21, %v5211_v55  ;;  %v5223_v0 = vrot.slane %v5221_v23, 4  ;;  %v5224_v4 = vrot.slane %v9389_v51, 5  ;;  %v9089_v40 = vsel %vm7840_vm12, %v6487_v44, %v5298_v11  ;;  %v5155_v55 = vld [vmem:[#allocation2 + $0xc0] sm:$0xe]  ;;  %v9391_v44 = vld [vmem:[#allocation13_spill] sm:$0xff] }
 0x150   : > { %6953 = vmatprep.mubr.msk.bf16.mxu1 %vm1538_vm8, %v7480_v52  ;;  %7109 = vmatprep.mubr.msk.bf16.mxu0 %vm1538_vm8, %v6455_v18  ;;  %v6456_v52 = vcombine.low %v4834_v39, %v4844_v62  ;;  %v5217_v18 = vrot.slane %v7530_v25, 5  ;;  %v9082_v1 = vsel %vm7840_vm12, %v5293_v61, %v5294_v7  ;;  %v5300_v13 = vrot.slane %v5298_v11, 4 }
 0x151   : > { %v6502_v20 = vcombine.low %v9074_v3, %v9082_v1  ;;  %v5215_v63 = vsel %vm7840_vm12, %v6475_v8, %v5214_v58  ;;  %v5228_v39 = vrot.slane %v9390_v43, 5  ;;  %v5225_v21 = vsel %vm7840_vm12, %v5223_v0, %v5224_v4  ;;  %v5156_v8 = vld [vmem:[#allocation2 + $0xcc] sm:$0xe]  ;;  %v7485_v0 = vld [vmem:[#allocation2 + $0x78] sm:$0xff]   ;;  %v7486_v4 = vld [vmem:[#allocation2 + $0x84] sm:$0xff]  }
 0x152   : > { %v5218_v59 = vsel %vm7840_vm12, %v5216_v17, %v5217_v18  ;;  %v9100_v62 = vsel %vm7840_vm12, %v5300_v13, %v5301_v26  ;;  %v6488_v17 = vrot.slane %v5155_v55, 9  ;;  %v5308_v61 = vrot.slane %v8975_v29, 5 }
 0x153   : > { %v6503_v58 = vcombine.low %v9089_v40, %v9100_v62  ;;  %v6491_v42 = vcombine.low %v5215_v63, %v5218_v59  ;;  %v5230_v7 = vrot.slane %v5228_v39, 4  ;;  %v5312_v11 = vrot.slane %v8959_v36, 5 }
 0x154   : > { %v5315_v29 = vrot.slane %v9010_v30, 5 }
 0x155   : > { %v5314_v63 = vrot.slane %v5312_v11, 4 }
 0x157   : > { %6954 = vmatmul.mubr.msk.bf16.gmra.mrb[8].mxu1 %vm1538_vm8, %v7481_v41  ;;  %7110 = vmatmul.mubr.msk.bf16.gmra.mrb[28].mxu0 %vm1538_vm8, %v6456_v52  ;;  %v5222_v41 = vsel %vm7840_vm12, %v6476_v27, %v5221_v23  ;;  %v5231_v52 = vrot.slane %v9391_v44, 5  ;;  %v5305_v23 = vrot.slane %v8899_v9, 5  ;;  %v2884_v27 = vld [vmem:[#allocation2 + $0x6c] sm:$0xf]  ;;  %v9137_v30 = vsel %vm7840_vm12, %v5314_v63, %v5315_v29  ;;  %v2896_v63 = vld [vmem:[#allocation2 + $0x9c] sm:$0xf] }
 0x158   : > { %6957 = vmatprep.mubr.msk.bf16.mxu1 %vm1538_vm8, %v7482_v48  ;;  %7115 = vmatprep.mubr.msk.bf16.mxu0 %vm1538_vm8, %v6490_v38  ;;  %v6477_v48 = vrot.slane %v5144_v35, 9  ;;  %v6492_v22 = vcombine.low %v5222_v41, %v5225_v21  ;;  %v6489_v38 = vrot.slane %v5156_v8, 9  ;;  %v3101_v35 = vshrl.u32 %v2884_v27, 16  ;;  %v7488_v8 = vld [vmem:[#allocation2 + $0x9c] sm:$0xff]  }
 0x159   : > { %v9116_v25 = vsel %vm7840_vm12, %v6488_v17, %v5305_v23  ;;  %v5307_v18 = vrot.slane %v5305_v23, 4  ;;  %v5232_v9 = vsel %vm7840_vm12, %v5230_v7, %v5231_v52  ;;  %v3104_v43 = vshll.u32 %v2884_v27, 16  ;;  %v7532_v52 = vld [vmem:[#allocation2 + $0x74] sm:$0x1] }
 0x15a   : > { %v5229_v26 = vsel %vm7840_vm12, %v6477_v48, %v5228_v39  ;;  %v9133_v13 = vsel %vm7840_vm12, %v6489_v38, %v5312_v11  ;;  %v7531_v39 = vld [vmem:[#allocation2 + $0x70] sm:$0xf]  ;;  %v3103_v55 = vrot.slane %v3101_v35, 4  ;;  %v3120_v17 = vshll.u32 %v7532_v52, 16  ;;  %v7533_v38 = vld [vmem:[#allocation2 + $0x88] sm:$0xf] }
 0x15b   : > { %v9127_v51 = vsel %vm7840_vm12, %v5307_v18, %v5308_v61  ;;  %v6493_v59 = vcombine.low %v5229_v26, %v5232_v9  ;;  %v3114_v41 = vshrl.u32 %v7531_v39, 16  ;;  %v6505_v21 = vcombine.low %v9133_v13, %v9137_v30  ;;  %v7489_v26 = vld [vmem:[#allocation2 + $0xa8] sm:$0xff]  }
 0x15c   : > { %v6504_v36 = vcombine.low %v9116_v25, %v9127_v51  ;;  %v3158_v18 = vshll.u32 %v7533_v38, 16  ;;  %v3162_v45 = vshrl.u32 %v7533_v38, 16  ;;  %v9393_v9 = vcombine.low %v8890_v50, %v8914_v10 }
 0x15d   : > { %v3116_v48 = vrot.slane %v3114_v41, 4  ;;  %v3122_v29 = vrot.slane %v3120_v17, 5  ;;  %v3197_v50 = vshrl.u32 %v2896_v63, 16  ;;  %v3200_v10 = vshll.u32 %v2896_v63, 16 }
 0x15f   : > { %6958 = vmatmul.mubr.msk.bf16.gmra.mrb[12].mxu1 %vm1538_vm8, %v7483_v60  ;;  %7116 = vmatmul.mubr.msk.bf16.vlgmr.msra.gmra.mrb[0].mxu0 %vm1538_vm8, %v6491_v42  ;;  %v3110_v60 = vshll.u32 %v7531_v39, 16  ;;  %v3164_v39 = vrot.slane %v3162_v45, 4  ;;  %v3202_v45 = vrot.slane %v3200_v10, 5 }
 0x160   : > { %6961 = vmatprep.mubr.msk.bf16.mxu1 %vm1538_vm8, %v7484_v47  ;;  %7119 = vmatprep.mubr.msk.bf16.mxu0 %vm1538_vm8, %v6492_v22  ;;  %v3106_v47 = vrot.slane %v3104_v43, 5  ;;  %v2890_v22 = vld [vmem:[#allocation2 + $0x84] sm:$0xf]  ;;  %v9158_v43 = vrot.slane %v3158_v18, 5  ;;  %v3199_v18 = vrot.slane %v3197_v50, 4 }
 0x161   : > { %v3112_v42 = vrot.slane %v3110_v60, 5  ;;  %v3149_v23 = vshrl.u32 %v2890_v22, 16  ;;  %v3152_v61 = vshll.u32 %v2890_v22, 16  ;;  %v7534_v60 = vld [vmem:[#allocation2 + $0x94] sm:$0xf] }
 0x162   : > { %v3107_v7 = vor.u32 %v3106_v47, %v3103_v55  ;;  %v3182_v41 = vshll.u32 %v7534_v60, 16  ;;  %v3186_v55 = vshrl.u32 %v7534_v60, 16  ;;  %v3203_v57 = vor.u32 %v3202_v45, %v3199_v18 }
 0x163   : > { %v3117_v44 = vor.u32 %v3116_v48, %v3112_v42  ;;  %v3154_v35 = vrot.slane %v3152_v61, 5 }
 0x164   : > { %v3108_v11 = vrot.slane %v3107_v7, 4  ;;  %v9175_v61 = vrot.slane %v3182_v41, 5  ;;  %v3188_v38 = vrot.slane %v3186_v55, 4 }
 0x165   : > { %v3118_v27 = vrot.slane %v3117_v44, 4 }
 0x166   : > { %v3189_v14 = vor.u32 %v3188_v38, %v9175_v61 }
 0x167   : > { %6962 = vmatmul.mubr.msk.bf16.gmra.mrb[16].mxu1 %vm1538_vm8, %v7485_v0  ;;  %7120 = vmatmul.mubr.msk.bf16.gmra.mrb[4].mxu0 %vm1538_vm8, %v6493_v59  ;;  %v3151_v0 = vrot.slane %v3149_v23, 4  ;;  %v7490_v59 = vld [vmem:[#allocation2 + $0xb4] sm:$0xff]   ;;  %v3123_v47 = vsel %vm7714_vm9, %v3118_v27, %v3122_v29  ;;  %v9394_v23 = vcombine.low %v8903_v37, %v8925_v34  ;;  %v2899_v27 = vld [vmem:[#allocation2 + $0xa8] sm:$0xf] }
 0x168   : > { %6965 = vmatprep.mubr.msk.bf16.mxu1 %vm1538_vm8, %v7486_v4  ;;  %7123 = vmatprep.mubr.msk.bf16.mxu0 %vm1538_vm8, %v6494_v46  ;;  %v9392_v46 = vcombine.low %v8868_v32, %v8881_v33  ;;  %v3173_v4 = vshrl.u32 %v2893_v54, 16  ;;  %v3176_v32 = vshll.u32 %v2893_v54, 16  ;;  %v3113_v33 = vsel %vm7714_vm9, %v3108_v11, %v3112_v42  ;;  %v7491_v54 = vld [vmem:[#allocation2 + $0xc0] sm:$0xff]  }
 0x169   : > { %v3155_v44 = vor.u32 %v3154_v35, %v3151_v0  ;;  %v3165_v42 = vor.u32 %v3164_v39, %v9158_v43  ;;  %v7537_v0 = vld [vmem:[#allocation2 + $0x98] sm:$0x1]  ;;  %v2902_v35 = vld [vmem:[#allocation2 + $0xb4] sm:$0xf] }
 0x16a   : > { %v3175_v52 = vrot.slane %v3173_v4, 4  ;;  %v3178_v17 = vrot.slane %v3176_v32, 5  ;;  %v3192_v4 = vshll.u32 %v7537_v0, 16  ;;  %v3224_v32 = vshll.u32 %v2899_v27, 16  ;;  %v7542_v0 = vld [vmem:[#allocation2 + $0xc4] sm:$0xf] }
 0x16b   : > { %v3156_v37 = vrot.slane %v3155_v44, 4  ;;  %v3166_v34 = vrot.slane %v3165_v42, 4  ;;  %v3190_v44 = vrot.slane %v3189_v14, 4  ;;  %v3282_v14 = vshrl.u32 %v7542_v0, 16 }
 0x16c   : > { %v3179_v29 = vor.u32 %v3178_v17, %v3175_v52 }
 0x16d   : > { %v3161_v55 = vsel %vm7714_vm9, %v3156_v37, %v9158_v43  ;;  %v3204_v43 = vrot.slane %v3203_v57, 4  ;;  %v3284_v31 = vrot.slane %v3282_v14, 4 }
 0x16e   : > { %v3180_v10 = vrot.slane %v3179_v29, 4 }
 0x16f   : > { %6966 = vmatmul.mubr.msk.bf16.gmra.mrb[20].mxu1 %vm1538_vm8, %v7487_v15  ;;  %7124 = vmatmul.mubr.msk.bf16.gmra.mrb[8].mxu0 %vm1538_vm8, %v9392_v46  ;;  %v7535_v15 = vld [vmem:[#allocation2 + $0x8c] sm:$0x1]  ;;  %v6336_v46 = vcombine.low %v3113_v33, %v3123_v47  ;;  %v3194_v47 = vrot.slane %v3192_v4, 5  ;;  %v3278_v4 = vshll.u32 %v7542_v0, 16 }
 0x170   : > { %6969 = vmatprep.mubr.msk.bf16.mxu1 %vm1538_vm8, %v7488_v8  ;;  %7127 = vmatprep.mubr.msk.bf16.mxu0 %vm1538_vm8, %v9393_v9  ;;  %v3168_v48 = vshll.u32 %v7535_v15, 16  ;;  %v7536_v8 = vld [vmem:[#allocation2 + $0xa0] sm:$0xf]  ;;  %v7539_v33 = vld [vmem:[#allocation2 + $0xac] sm:$0xf]  ;;  %v3245_v15 = vshrl.u32 %v2902_v35, 16 }
 0x171   : > { %v3206_v22 = vshll.u32 %v7536_v8, 16  ;;  %v3210_v7 = vshrl.u32 %v7536_v8, 16  ;;  %v3230_v60 = vshll.u32 %v7539_v33, 16  ;;  %v3234_v41 = vshrl.u32 %v7539_v33, 16  ;;  %v7540_v8 = vld [vmem:[#allocation2 + $0xb8] sm:$0xf] }
 0x172   : > { %v3170_v11 = vrot.slane %v3168_v48, 5  ;;  %v3248_v48 = vshll.u32 %v2902_v35, 16  ;;  %v3195_v16 = vsel %vm7714_vm9, %v3190_v44, %v3194_v47 }
 0x173   : > { %v3212_v9 = vrot.slane %v3210_v7, 4  ;;  %v3258_v7 = vshrl.u32 %v7540_v8, 16  ;;  %v3232_v38 = vrot.slane %v3230_v60, 5  ;;  %v3236_v49 = vrot.slane %v3234_v41, 4 }
 0x174   : > { %v3171_v50 = vsel %vm7714_vm9, %v3166_v34, %v3170_v11  ;;  %v3250_v18 = vrot.slane %v3248_v48, 5  ;;  %v3185_v11 = vsel %vm7714_vm9, %v3180_v10, %v9175_v61  ;;  %v3280_v41 = vrot.slane %v3278_v4, 5  ;;  %v7544_v10 = vld [vmem:[#allocation2 + $0xc8] sm:$0x1] }
 0x175   : > { %v6338_v2 = vcombine.low %v3161_v55, %v3171_v50  ;;  %v3237_v34 = vor.u32 %v3236_v49, %v3232_v38  ;;  %v3288_v47 = vshll.u32 %v7544_v10, 16 }
 0x177   : > { %6970 = vmatmul.mubr.msk.bf16.gmra.mrb[24].mxu1 %vm1538_vm8, %v7489_v26  ;;  %7128 = vmatmul.mubr.msk.bf16.gmra.mrb[12].mxu0 %vm1538_vm8, %v9394_v23  ;;  %v9177_v26 = vrot.slane %v3206_v22, 5  ;;  %v3254_v22 = vshll.u32 %v7540_v8, 16  ;;  %v3226_v23 = vrot.slane %v3224_v32, 5 }
 0x178   : > { %6973 = vmatprep.mubr.msk.bf16.mxu1 %vm1538_vm8, %v7490_v59  ;;  %7131 = vmatprep.mubr.msk.bf16.mxu0 %vm1538_vm8, %v6498_v53  ;;  %v7538_v53 = vld [vmem:[#allocation2 + $0xa4] sm:$0x1]  ;;  %v3221_v59 = vshrl.u32 %v2899_v27, 16 }
 0x179   : > { %v3216_v63 = vshll.u32 %v7538_v53, 16  ;;  %v3213_v39 = vor.u32 %v3212_v9, %v9177_v26  ;;  %v3256_v45 = vrot.slane %v3254_v22, 5  ;;  %v3209_v9 = vsel %vm7714_vm9, %v3204_v43, %v9177_v26  ;;  %v7543_v26 = vld [vmem:[#allocation2 + $0xbc] sm:$0x1] }
 0x17a   : > { %v3223_v52 = vrot.slane %v3221_v59, 4  ;;  %v3264_v53 = vshll.u32 %v7543_v26, 16  ;;  %v3290_v43 = vrot.slane %v3288_v47, 5 }
 0x17b   : > { %v3218_v42 = vrot.slane %v3216_v63, 5  ;;  %v3214_v17 = vrot.slane %v3213_v39, 4  ;;  %v6339_v63 = vcombine.low %v3185_v11, %v3195_v16  ;;  %v3238_v39 = vrot.slane %v3237_v34, 4 }
 0x17c   : > { %v3227_v37 = vor.u32 %v3226_v23, %v3223_v52  ;;  %v3266_v55 = vrot.slane %v3264_v53, 5 }
 0x17d   : > { %v3219_v27 = vsel %vm7714_vm9, %v3214_v17, %v3218_v42 }
 0x17e   : > { %v6340_v59 = vcombine.low %v3209_v9, %v3219_v27  ;;  %v3228_v35 = vrot.slane %v3227_v37, 4 }
 0x17f   : > { %6974 = vmatmul.mubr.msk.bf16.gmra.mrb[28].mxu1 %vm1538_vm8, %v7491_v54  ;;  %7132 = vmatmul.mubr.msk.bf16.gmra.mrb[16].mxu0 %vm1538_vm8, %v6499_v28  ;;  %v3247_v28 = vrot.slane %v3245_v15, 4  ;;  %v3260_v54 = vrot.slane %v3258_v7, 4 }
 0x180   : > { %6995 = vmatprep.mubr.msk.bf16.mxu1 %vm1538_vm8, %v6336_v46  ;;  %7135 = vmatprep.mubr.msk.bf16.mxu0 %vm1538_vm8, %v6500_v6  ;;  %v2905_v46 = vld [vmem:[#allocation2 + $0xc0] sm:$0xf]  ;;  %v3240_v6 = vshll.u32 %v7541_v19, 16  ;;  %v3233_v50 = vsel %vm7714_vm9, %v3228_v35, %v3232_v38 }
 0x181   : > { %v3269_v61 = vshrl.u32 %v2905_v46, 16  ;;  %v3272_v29 = vshll.u32 %v2905_v46, 16  ;;  %v3261_v57 = vor.u32 %v3260_v54, %v3256_v45 }
 0x182   : > { %v3242_v32 = vrot.slane %v3240_v6, 5 }
 0x183   : > { %v3271_v33 = vrot.slane %v3269_v61, 4  ;;  %v3274_v60 = vrot.slane %v3272_v29, 5 }
 0x184   : > { %v3243_v3 = vsel %vm7714_vm9, %v3238_v39, %v3242_v32 }
 0x185   : > { %v3275_v1 = vor.u32 %v3274_v60, %v3271_v33  ;;  %v6341_v8 = vcombine.low %v3233_v50, %v3243_v3 }
 0x187   : > { %6996 = vmatmul.mubr.msk.bf16.vlgmr.msra.gmra.mrb[16].mxu1 %vm1538_vm8, %v8996_v56  ;;  %7136 = vmatmul.mubr.msk.bf16.gmra.mrb[20].mxu0 %vm1538_vm8, %v6501_v12  ;;  %v3251_v56 = vor.u32 %v3250_v18, %v3247_v28  ;;  %v3262_v12 = vrot.slane %v3261_v57, 4  ;;  %v3276_v7 = vrot.slane %v3275_v1, 4 }
 0x188   : > { %6999 = vmatprep.mubr.msk.bf16.mxu1 %vm1538_vm8, %v6338_v2  ;;  %7139 = vmatprep.mubr.msk.bf16.mxu0 %vm1538_vm8, %v6502_v20  ;;  %v3285_v20 = vor.u32 %v3284_v31, %v3280_v41 }
 0x189   : > { %v3252_v5 = vrot.slane %v3251_v56, 4  ;;  %v3267_v48 = vsel %vm7714_vm9, %v3262_v12, %v3266_v55  ;;  %v3281_v40 = vsel %vm7714_vm9, %v3276_v7, %v3280_v41 }
 0x18a   : > { %v3286_v44 = vrot.slane %v3285_v20, 4 }
 0x18b   : > { %v3257_v15 = vsel %vm7714_vm9, %v3252_v5, %v3256_v45 }
 0x18c   : > { %v6342_v22 = vcombine.low %v3257_v15, %v3267_v48  ;;  %v3291_v62 = vsel %vm7714_vm9, %v3286_v44, %v3290_v43 }
 0x18f   : > { %7000 = vmatmul.mubr.msk.bf16.gmra.mrb[20].mxu1 %vm1538_vm8, %v6339_v63  ;;  %7140 = vmatmul.mubr.msk.bf16.gmra.mrb[24].mxu0 %vm1538_vm8, %v6503_v58  ;;  %v6343_v58 = vcombine.low %v3281_v40, %v3291_v62 }
 0x190   : > { %7003 = vmatprep.mubr.msk.bf16.mxu1 %vm1538_vm8, %v6340_v59  ;;  %7143 = vmatprep.mubr.msk.bf16.mxu0 %vm1538_vm8, %v6504_v36 }
 0x197   : > { %7004 = vmatmul.mubr.msk.bf16.gmra.mrb[24].mxu1 %vm1538_vm8, %v6341_v8  ;;  %7144 = vmatmul.mubr.msk.bf16.gmra.mrb[28].mxu0 %vm1538_vm8, %v6505_v21 }
 0x198   : > { %7007 = vmatprep.mubr.msk.bf16.mxu1 %vm1538_vm8, %v6342_v22 }
 0x19f   : > { %7008 = vmatmul.mubr.msk.bf16.gmra.mrb[28].mxu1 %vm1538_vm8, %v6343_v58 }
 0x21a   : > { %v6947_v25 = vpop.f32.mrb[0].mxu1 }
 0x21b   : > { %v2701_v51 = vpop.f32.mrb[1].mxu1 }
 0x21c   : > { %v6948_v36 = vpop.f32.mrb[2].mxu1 }
 0x21d   : > { %v2704_v42 = vpop.f32.mrb[3].mxu1 }
 0x222   : > { %v6951_v52 = vpop.f32.mrb[4].mxu1 }
 0x223   : > { %v2717_v17 = vpop.f32.mrb[5].mxu1 }
 0x224   : > { %v6952_v23 = vpop.f32.mrb[6].mxu1 }
 0x225   : > { %v2720_v38 = vpop.f32.mrb[7].mxu1 }
 0x22a   : > { %v6955_v49 = vpop.f32.mrb[8].mxu1 }
 0x22b   : > { %v2733_v24 = vpop.f32.mrb[9].mxu1 }
 0x22c   : > { %v6956_v2 = vpop.f32.mrb[10].mxu1 }
 0x22d   : > { %v2736_v28 = vpop.f32.mrb[11].mxu1 }
 0x232   : > { %v9246_v18 = vpop.f32.mrb[12].mxu1  ;;  %v7117_v21 = vpop.f32.mrb[0].mxu0 }
 0x233   : > { %v9248_v13 = vpop.f32.mrb[13].mxu1  ;;  %v7149_v54 = vadd.f32 %v7117_v21, %v6947_v25  ;;  %v5450_v46 = vpop.f32.mrb[1].mxu0 }
 0x234   : > { %v9250_v30 = vpop.f32.mrb[14].mxu1  ;;  %v7150_v11 = vadd.f32 %v5450_v46, %v2701_v51  ;;  %v7118_v16 = vpop.f32.mrb[2].mxu0 }
 0x235   : > { %v9252_v45 = vpop.f32.mrb[15].mxu1  ;;  %v7151_v19 = vadd.f32 %v7118_v16, %v6948_v36  ;;  %v5453_v6 = vpop.f32.mrb[3].mxu0  ;;  %v5808_v0 = vmul.f32 %v7149_v54, %v7149_v54 }
 0x236   : > { %v7152_v9 = vadd.f32 %v5453_v6, %v2704_v42  ;;  %v5806_v37 = vmul.f32 %v7150_v11, %v7150_v11 }
 0x237   : > { %v6601_v27 = vpack.c.bf16 %v7151_v19, %v7149_v54  ;;  %v5809_v53 = vmul.f32 %v7151_v19, %v7151_v19 }
 0x238   : > { %v6596_v34 = vpack.c.bf16 %v7152_v9, %v7150_v11  ;;  %v5769_v61 = vadd.f32 %v7152_v9, %v7150_v11  ;;  %v5807_v29 = vmul.f32 %v7152_v9, %v7152_v9 }
 0x239   : > { %6673 = vst [vmem:[%s9259_s15 + $0x8] sm:$0xff] %v6601_v27  }
 0x23a   : > { %6597 = vst [vmem:[%s9259_s15] sm:$0xff] %v6596_v34   ;;  %v5770_v4 = vadd.f32 %v7149_v54, %v5769_v61  ;;  %v5838_v14 = vadd.f32 %v5807_v29, %v5806_v37  ;;  %v7121_v56 = vpop.f32.mrb[4].mxu0 }
 0x23b   : > { %v7153_v57 = vadd.f32 %v7121_v56, %v6951_v52  ;;  %v5466_v26 = vpop.f32.mrb[5].mxu0 }
 0x23c   : > { %v5839_v63 = vadd.f32 %v5838_v14, %v5808_v0  ;;  %v7154_v59 = vadd.f32 %v5466_v26, %v2717_v17  ;;  %v5771_v35 = vadd.f32 %v7151_v19, %v5770_v4  ;;  %v7122_v39 = vpop.f32.mrb[6].mxu0 }
 0x23d   : > { %v7155_v32 = vadd.f32 %v7122_v39, %v6952_v23  ;;  %v5469_v33 = vpop.f32.mrb[7].mxu0  ;;  %v5812_v20 = vmul.f32 %v7153_v57, %v7153_v57 }
 0x23e   : > { %v5772_v60 = vadd.f32 %v7154_v59, %v5771_v35  ;;  %v5810_v41 = vmul.f32 %v7154_v59, %v7154_v59  ;;  %v5840_v31 = vadd.f32 %v5839_v63, %v5809_v53  ;;  %v7156_v5 = vadd.f32 %v5469_v33, %v2720_v38 }
 0x23f   : > { %v6611_v12 = vpack.c.bf16 %v7155_v32, %v7153_v57  ;;  %v5813_v22 = vmul.f32 %v7155_v32, %v7155_v32 }
 0x240   : > { %v5841_v55 = vadd.f32 %v5840_v31, %v5810_v41  ;;  %v6606_v50 = vpack.c.bf16 %v7156_v5, %v7154_v59  ;;  %v5773_v3 = vadd.f32 %v7156_v5, %v5772_v60  ;;  %v5811_v1 = vmul.f32 %v7156_v5, %v7156_v5 }
 0x241   : > { %6675 = vst [vmem:[%s9259_s15 + $0x18] sm:$0xff] %v6611_v12  }
 0x242   : > { %6674 = vst [vmem:[%s9259_s15 + $0x10] sm:$0xff] %v6606_v50   ;;  %v5774_v10 = vadd.f32 %v7153_v57, %v5773_v3  ;;  %v5842_v47 = vadd.f32 %v5841_v55, %v5811_v1  ;;  %v7125_v15 = vpop.f32.mrb[8].mxu0 }
 0x243   : > { %v7157_v48 = vadd.f32 %v7125_v15, %v6955_v49  ;;  %v5482_v8 = vpop.f32.mrb[9].mxu0 }
 0x244   : > { %v5843_v7 = vadd.f32 %v5842_v47, %v5812_v20  ;;  %v7158_v44 = vadd.f32 %v5482_v8, %v2733_v24  ;;  %v5775_v43 = vadd.f32 %v7155_v32, %v5774_v10  ;;  %v7126_v40 = vpop.f32.mrb[10].mxu0 }
 0x245   : > { %v7159_v62 = vadd.f32 %v7126_v40, %v6956_v2  ;;  %v5485_v58 = vpop.f32.mrb[11].mxu0  ;;  %v5816_v49 = vmul.f32 %v7157_v48, %v7157_v48 }
 0x246   : > { %v5776_v25 = vadd.f32 %v7158_v44, %v5775_v43  ;;  %v5814_v51 = vmul.f32 %v7158_v44, %v7158_v44  ;;  %v5844_v36 = vadd.f32 %v5843_v7, %v5813_v22  ;;  %v7160_v42 = vadd.f32 %v5485_v58, %v2736_v28 }
 0x247   : > { %v6621_v52 = vpack.c.bf16 %v7159_v62, %v7157_v48  ;;  %v5817_v2 = vmul.f32 %v7159_v62, %v7159_v62 }
 0x248   : > { %v5845_v17 = vadd.f32 %v5844_v36, %v5814_v51  ;;  %v6616_v23 = vpack.c.bf16 %v7160_v42, %v7158_v44  ;;  %v5777_v38 = vadd.f32 %v7160_v42, %v5776_v25  ;;  %v5815_v21 = vmul.f32 %v7160_v42, %v7160_v42 }
 0x249   : > { %6677 = vst [vmem:[%s9259_s15 + $0x28] sm:$0xff] %v6621_v52  }
 0x24a   : > { %6676 = vst [vmem:[%s9259_s15 + $0x20] sm:$0xff] %v6616_v23   ;;  %v5778_v54 = vadd.f32 %v7157_v48, %v5777_v38  ;;  %v5846_v46 = vadd.f32 %v5845_v17, %v5815_v21  ;;  %v7129_v24 = vpop.f32.mrb[12].mxu0 }
 0x24b   : > { %v7161_v11 = vadd.f32 %v7129_v24, %v9246_v18  ;;  %v5498_v16 = vpop.f32.mrb[13].mxu0 }
 0x24c   : > { %v5847_v19 = vadd.f32 %v5846_v46, %v5816_v49  ;;  %v7162_v6 = vadd.f32 %v5498_v16, %v9248_v13  ;;  %v5779_v28 = vadd.f32 %v7159_v62, %v5778_v54  ;;  %v7130_v9 = vpop.f32.mrb[14].mxu0 }
 0x24d   : > { %v7163_v27 = vadd.f32 %v7130_v9, %v9250_v30  ;;  %v5501_v37 = vpop.f32.mrb[15].mxu0  ;;  %v5820_v26 = vmul.f32 %v7161_v11, %v7161_v11 }
 0x24e   : > { %v5780_v34 = vadd.f32 %v7162_v6, %v5779_v28  ;;  %v5818_v61 = vmul.f32 %v7162_v6, %v7162_v6  ;;  %v5848_v29 = vadd.f32 %v5847_v19, %v5817_v2  ;;  %v7164_v0 = vadd.f32 %v5501_v37, %v9252_v45 }
 0x24f   : > { %v6631_v4 = vpack.c.bf16 %v7163_v27, %v7161_v11  ;;  %v5821_v35 = vmul.f32 %v7163_v27, %v7163_v27 }
 0x250   : > { %v5849_v14 = vadd.f32 %v5848_v29, %v5818_v61  ;;  %v6626_v18 = vpack.c.bf16 %v7164_v0, %v7162_v6  ;;  %v5781_v56 = vadd.f32 %v7164_v0, %v5780_v34  ;;  %v5819_v57 = vmul.f32 %v7164_v0, %v7164_v0 }
 0x251   : > { %6679 = vst [vmem:[%s9259_s15 + $0x38] sm:$0xff] %v6631_v4  }
 0x252   : > { %6678 = vst [vmem:[%s9259_s15 + $0x30] sm:$0xff] %v6626_v18   ;;  %v5782_v13 = vadd.f32 %v7161_v11, %v5781_v56  ;;  %v5850_v53 = vadd.f32 %v5849_v14, %v5819_v57  ;;  %v7133_v63 = vpop.f32.mrb[16].mxu0 }
 0x253   : > { %v5514_v59 = vpop.f32.mrb[17].mxu0 }
 0x254   : > { %v5851_v30 = vadd.f32 %v5850_v53, %v5820_v26  ;;  %v5783_v39 = vadd.f32 %v7163_v27, %v5782_v13  ;;  %v7134_v32 = vpop.f32.mrb[18].mxu0 }
 0x255   : > { %v5517_v33 = vpop.f32.mrb[19].mxu0 }
 0x256   : > { %v5852_v60 = vadd.f32 %v5851_v30, %v5821_v35 }
 0x25a   : > { %v6997_v41 = vpop.f32.mrb[16].mxu1  ;;  %v7137_v55 = vpop.f32.mrb[20].mxu0 }
 0x25b   : > { %v3489_v45 = vpop.f32.mrb[17].mxu1  ;;  %v7165_v31 = vadd.f32 %v7133_v63, %v6997_v41  ;;  %v5530_v1 = vpop.f32.mrb[21].mxu0 }
 0x25c   : > { %v6998_v5 = vpop.f32.mrb[18].mxu1  ;;  %v7166_v12 = vadd.f32 %v5514_v59, %v3489_v45  ;;  %v7138_v15 = vpop.f32.mrb[22].mxu0 }
 0x25d   : > { %v3492_v50 = vpop.f32.mrb[19].mxu1  ;;  %v7167_v3 = vadd.f32 %v7134_v32, %v6998_v5  ;;  %v5533_v8 = vpop.f32.mrb[23].mxu0  ;;  %v5824_v40 = vmul.f32 %v7165_v31, %v7165_v31 }
 0x25e   : > { %v5784_v20 = vadd.f32 %v7166_v12, %v5783_v39  ;;  %v5822_v10 = vmul.f32 %v7166_v12, %v7166_v12  ;;  %v7168_v47 = vadd.f32 %v5517_v33, %v3492_v50 }
 0x25f   : > { %v6641_v48 = vpack.c.bf16 %v7167_v3, %v7165_v31  ;;  %v5825_v42 = vmul.f32 %v7167_v3, %v7167_v3 }
 0x260   : > { %v5853_v22 = vadd.f32 %v5852_v60, %v5822_v10  ;;  %v6636_v7 = vpack.c.bf16 %v7168_v47, %v7166_v12  ;;  %v5785_v44 = vadd.f32 %v7168_v47, %v5784_v20  ;;  %v5823_v43 = vmul.f32 %v7168_v47, %v7168_v47 }
 0x261   : > { %6681 = vst [vmem:[%s9259_s15 + $0x48] sm:$0xff] %v6641_v48  }
 0x262   : > { %6680 = vst [vmem:[%s9259_s15 + $0x40] sm:$0xff] %v6636_v7   ;;  %v5786_v62 = vadd.f32 %v7165_v31, %v5785_v44  ;;  %v5854_v58 = vadd.f32 %v5853_v22, %v5823_v43  ;;  %v7001_v25 = vpop.f32.mrb[20].mxu1  ;;  %v7141_v21 = vpop.f32.mrb[24].mxu0 }
 0x263   : > { %v3505_v51 = vpop.f32.mrb[21].mxu1  ;;  %v7169_v36 = vadd.f32 %v7137_v55, %v7001_v25  ;;  %v5546_v46 = vpop.f32.mrb[25].mxu0 }
 0x264   : > { %v5855_v52 = vadd.f32 %v5854_v58, %v5824_v40  ;;  %v7002_v17 = vpop.f32.mrb[22].mxu1  ;;  %v7170_v23 = vadd.f32 %v5530_v1, %v3505_v51  ;;  %v5787_v38 = vadd.f32 %v7167_v3, %v5786_v62  ;;  %v7142_v19 = vpop.f32.mrb[26].mxu0 }
 0x265   : > { %v3508_v49 = vpop.f32.mrb[23].mxu1  ;;  %v7171_v54 = vadd.f32 %v7138_v15, %v7002_v17  ;;  %v5549_v28 = vpop.f32.mrb[27].mxu0  ;;  %v5828_v61 = vmul.f32 %v7169_v36, %v7169_v36 }
 0x266   : > { %v5788_v24 = vadd.f32 %v7170_v23, %v5787_v38  ;;  %v5826_v11 = vmul.f32 %v7170_v23, %v7170_v23  ;;  %v5856_v16 = vadd.f32 %v5855_v52, %v5825_v42  ;;  %v7172_v2 = vadd.f32 %v5533_v8, %v3508_v49 }
 0x267   : > { %v6651_v6 = vpack.c.bf16 %v7171_v54, %v7169_v36  ;;  %v5829_v56 = vmul.f32 %v7171_v54, %v7171_v54 }
 0x268   : > { %v5857_v9 = vadd.f32 %v5856_v16, %v5826_v11  ;;  %v6646_v27 = vpack.c.bf16 %v7172_v2, %v7170_v23  ;;  %v5789_v37 = vadd.f32 %v7172_v2, %v5788_v24  ;;  %v5827_v34 = vmul.f32 %v7172_v2, %v7172_v2 }
 0x269   : > { %6683 = vst [vmem:[%s9259_s15 + $0x58] sm:$0xff] %v6651_v6  }
 0x26a   : > { %6682 = vst [vmem:[%s9259_s15 + $0x50] sm:$0xff] %v6646_v27   ;;  %v5790_v29 = vadd.f32 %v7169_v36, %v5789_v37  ;;  %v5858_v0 = vadd.f32 %v5857_v9, %v5827_v34  ;;  %v7005_v4 = vpop.f32.mrb[24].mxu1  ;;  %v7145_v63 = vpop.f32.mrb[28].mxu0 }
 0x26b   : > { %v3521_v14 = vpop.f32.mrb[25].mxu1  ;;  %v7173_v18 = vadd.f32 %v7141_v21, %v7005_v4  ;;  %v5562_v30 = vpop.f32.mrb[29].mxu0 }
 0x26c   : > { %v5859_v57 = vadd.f32 %v5858_v0, %v5828_v61  ;;  %v7006_v26 = vpop.f32.mrb[26].mxu1  ;;  %v7174_v13 = vadd.f32 %v5546_v46, %v3521_v14  ;;  %v5791_v53 = vadd.f32 %v7171_v54, %v5790_v29  ;;  %v7146_v41 = vpop.f32.mrb[30].mxu0 }
 0x26d   : > { %v3524_v59 = vpop.f32.mrb[27].mxu1  ;;  %v7175_v35 = vadd.f32 %v7142_v19, %v7006_v26  ;;  %v5565_v31 = vpop.f32.mrb[31].mxu0  ;;  %v5832_v3 = vmul.f32 %v7173_v18, %v7173_v18 }
 0x26e   : > { %v5792_v39 = vadd.f32 %v7174_v13, %v5791_v53  ;;  %v5830_v32 = vmul.f32 %v7174_v13, %v7174_v13  ;;  %v5860_v33 = vadd.f32 %v5859_v57, %v5829_v56  ;;  %v7176_v60 = vadd.f32 %v5549_v28, %v3524_v59 }
 0x26f   : > { %v6661_v45 = vpack.c.bf16 %v7175_v35, %v7173_v18  ;;  %v5833_v48 = vmul.f32 %v7175_v35, %v7175_v35 }
 0x270   : > { %v5861_v5 = vadd.f32 %v5860_v33, %v5830_v32  ;;  %v6656_v12 = vpack.c.bf16 %v7176_v60, %v7174_v13  ;;  %v5793_v55 = vadd.f32 %v7176_v60, %v5792_v39  ;;  %v5831_v50 = vmul.f32 %v7176_v60, %v7176_v60 }
 0x271   : > { %6685 = vst [vmem:[%s9259_s15 + $0x68] sm:$0xff] %v6661_v45  }
 0x272   : > { %6684 = vst [vmem:[%s9259_s15 + $0x60] sm:$0xff] %v6656_v12   ;;  %v5794_v1 = vadd.f32 %v7173_v18, %v5793_v55  ;;  %v5862_v20 = vadd.f32 %v5861_v5, %v5831_v50  ;;  %v7009_v10 = vpop.f32.mrb[28].mxu1 }
 0x273   : > { %v3537_v47 = vpop.f32.mrb[29].mxu1  ;;  %v7177_v15 = vadd.f32 %v7145_v63, %v7009_v10 }
 0x274   : > { %v5863_v8 = vadd.f32 %v5862_v20, %v5832_v3  ;;  %v7010_v22 = vpop.f32.mrb[30].mxu1  ;;  %v7178_v7 = vadd.f32 %v5562_v30, %v3537_v47  ;;  %v5795_v44 = vadd.f32 %v7175_v35, %v5794_v1 }
 0x275   : > { %v3540_v43 = vpop.f32.mrb[31].mxu1  ;;  %v7179_v40 = vadd.f32 %v7146_v41, %v7010_v22  ;;  %v5836_v38 = vmul.f32 %v7177_v15, %v7177_v15 }
 0x276   : > { %v5796_v62 = vadd.f32 %v7178_v7, %v5795_v44  ;;  %v5834_v58 = vmul.f32 %v7178_v7, %v7178_v7  ;;  %v5864_v25 = vadd.f32 %v5863_v8, %v5833_v48  ;;  %v7180_v51 = vadd.f32 %v5565_v31, %v3540_v43 }
 0x277   : > { %v6671_v36 = vpack.c.bf16 %v7179_v40, %v7177_v15  ;;  %v5837_v54 = vmul.f32 %v7179_v40, %v7179_v40 }
 0x278   : > { %v5865_v42 = vadd.f32 %v5864_v25, %v5834_v58  ;;  %v6666_v52 = vpack.c.bf16 %v7180_v51, %v7178_v7  ;;  %v5797_v17 = vadd.f32 %v7180_v51, %v5796_v62  ;;  %v5835_v23 = vmul.f32 %v7180_v51, %v7180_v51 }
 0x279   : > { %6687 = vst [vmem:[%s9259_s15 + $0x78] sm:$0xff] %v6671_v36  }
 0x27a   : > { %6686 = vst [vmem:[%s9259_s15 + $0x70] sm:$0xff] %v6666_v52   ;;  %v5798_v21 = vadd.f32 %v7177_v15, %v5797_v17  ;;  %v5866_v49 = vadd.f32 %v5865_v42, %v5835_v23 }
 0x27c   : > { %v5799_v46 = vadd.f32 %v7179_v40, %v5798_v21  ;;  %v5867_v24 = vadd.f32 %v5866_v49, %v5836_v38 }
 0x27e   : > { %v5800_v11 = vrot.slane %v5799_v46, 4  ;;  %v5868_v16 = vadd.f32 %v5867_v24, %v5837_v54 }
 0x280   : > { %v5801_v2 = vadd.f32 %v5800_v11, %v5799_v46  ;;  %v5869_v19 = vrot.slane %v5868_v16, 4 }
 0x282   : > { %v5802_v6 = vrot.slane %v5801_v2, 2  ;;  %v5870_v28 = vadd.f32 %v5869_v19, %v5868_v16 }
 0x284   : > { %v5803_v9 = vadd.f32 %v5802_v6, %v5801_v2  ;;  %v5871_v27 = vrot.slane %v5870_v28, 2 }
 0x286   : > { %v5804_v37 = vrot.slane %v5803_v9, 1  ;;  %v5872_v34 = vadd.f32 %v5871_v27, %v5870_v28 }
 0x288   : > { %v5873_v61 = vrot.slane %v5872_v34, 1  ;;  %v5805_v29 = vadd.f32 %v5804_v37, %v5803_v9 }
 0x28a   : > { %v5874_v0 = vadd.f32 %v5873_v61, %v5872_v34 }
 0x28c   : > { %v5876_v4 = vsel %vm753_vm1, %v5805_v29, %v5874_v0 }
 0x28d   : > { %5877 = vst [vmem:[%s451_s21] sm:$0x3] %v5876_v4 }
 0x28e PF: > { %s16_s0 = sadd.s32 1, %s7567_s0   ;;  %s9395_s18 = smov %s7563_s19 }
 0x28f   : > { %p13_p5 = scmp.ge.s32.totalorder %s16_s0, 4   ;;  %s9396_s19 = smov %s9398_s2 }
 0x291   :  { %15 = sbr.rel (!%p13_p5) target bundleno = 2 (0x2), region = 93 }

</bundles_post_ra>
